<compile_context>
chip_gen: v7x
topology: tpu7x:2x2x1
jax: 0.10.0
libtpu: 0.0.40
codegen_flags: <defaults>
</compile_context>

<pallas_src>
import jax
import jax.numpy as jnp
from jax.experimental import pallas as pl
from jax.experimental.pallas import tpu as pltpu

# ----------------------------- configuration --------------------------------
DIM_EMB      = 32
NUM_QUESTION = 20
NUM_CONCEPT  = 10
AGG_HOPS     = 2
RANK_K       = 3
Q_NEIGHBORS  = 4     # question -> concept neighbors
C_NEIGHBORS  = 4     # concept  -> question neighbors
MAX_CONCEPT  = 2     # every synthetic question maps to exactly 2 concepts
BATCH        = 8     # >= 8 rows so f32 (sublane, lane) tiles are actually filled
SEQ_LEN      = 8

NQ_BLK  = MAX_CONCEPT + 1          # rows of (question ; its concepts) block
NS_MAX  = RANK_K + 1               # fixed number of attention state slots
NEG_INF = -1e30


# ------------------------------ fused Pallas kernel --------------------------
def gikt_kernel(
    # --- per-timestep streams, time-major, all VMEM resident ---
    agg0_ref,      # (S-1, B, D)           embed_question[q_t]
    agg1_ref,      # (S-1, B*Qn, D)        embed_concept[1-hop neighbors]
    agg2m_ref,     # (S-1, B*Qn, D)        mean over 2-hop neighbor embeddings
    respgi_ref,    # (S-1, B, 3D)          resp_t @ W_ir^T + b_ih   (hoisted)
    mask_ref,      # (S-1, B, 1)           mask_t as float
    qc_ref,        # (S-1, NQ*B, D)        [emb(q_{t+1}); concepts], rows q*B+b
    selmat_ref,    # (S-1, RANK_K*B, (S-1)*B)  precomputed history-selection matmul
    attmask_ref,   # (S-1, NQ*B, NS*B)     additive 0 / -inf attention mask
    # --- constants ---
    pool_ref,      # (B, B*Qn)             block-diagonal 1/Qn neighbor-mean matrix
    gq_ref,        # (B, NQ*B)             batch-group row-sum matrix
    h1init_ref,    # (B, D)
    h2init_ref,    # (B, D)
    # --- weights, pre-transposed to [in, out] ---
    agg_wT_ref,    # (3, D, D)  [mlp4agg[0], mlp4agg[1], MLP_AGG_last]
    agg_b_ref,     # (3, 1, D)
    g1_wiTq_ref,   # (D, 3D)    GRU1 W_ih^T rows that multiply the question part
    g1_whT_ref,    # (D, 3D)
    g1_bh_ref,     # (1, 3D)
    g2_wiT_ref,    # (D, 3D)
    g2_whT_ref,    # (D, 3D)
    g2_bi_ref,     # (1, 3D)
    g2_bh_ref,     # (1, 3D)
    qk_wT_ref,     # (D, 2D)    [MLP_query^T | MLP_key^T]
    qk_b_ref,      # (1, 2D)
    ww_q_ref,      # (1, D)     MLP_W columns that multiply Q (key-side)
    ww_k_ref,      # (1, D)     MLP_W columns that multiply K (query-side)
    ww_b_ref,      # (1, 1)
    # --- output ---
    y_ref,         # (S-1, B, 1)  prediction of step t (wrapper maps to y_hat cols)
    # --- scratch ---
    hist_ref,      # ((S-1)*B, D)  state_history, rows t*B + b
):
    Sm1, B, D = agg0_ref.shape
    NSB = selmat_ref.shape[1] + B          # (RANK_K + 1) * B attention-state rows

    def mm(a, b):
        return jnp.dot(a, b, preferred_element_type=jnp.float32)

    def mm_bt(a, b):                       # a @ b.T via dot_general (no transpose op)
        return jax.lax.dot_general(
            a, b, (((1,), (1,)), ((), ())), preferred_element_type=jnp.float32)

    # ---------------- loop-invariant loads (once, not per timestep) -----------
    pool = pool_ref[...]
    gq = gq_ref[...]
    w0T, b0 = agg_wT_ref[0], agg_b_ref[0]
    w1T, b1 = agg_wT_ref[1], agg_b_ref[1]
    wLT, bL = agg_wT_ref[2], agg_b_ref[2]
    g1_wiTq, g1_whT, g1_bh = g1_wiTq_ref[...], g1_whT_ref[...], g1_bh_ref[...]
    g2_wiT, g2_whT = g2_wiT_ref[...], g2_whT_ref[...]
    g2_bi, g2_bh = g2_bi_ref[...], g2_bh_ref[...]
    qk_wT, qk_b = qk_wT_ref[...], qk_b_ref[...]
    ww_q, ww_k, ww_b = ww_q_ref[...], ww_k_ref[...], ww_b_ref[...]

    def gru(gi, gh, h):
        # packed [r | z | n] gates (torch GRUCell semantics)
        r = jax.nn.sigmoid(gi[:, 0:D] + gh[:, 0:D])
        z = jax.nn.sigmoid(gi[:, D:2 * D] + gh[:, D:2 * D])
        n = jnp.tanh(gi[:, 2 * D:3 * D] + r * gh[:, 2 * D:3 * D])
        return (1.0 - z) * n + z * h

    h1 = h1init_ref[...]
    h2 = h2init_ref[...]
    # position 0 of the history is never written (torch leaves it zero)
    hist_ref[...] = jnp.zeros_like(hist_ref)

    for t in range(Sm1):                   # fully unrolled serial time loop
        # -------- GNN neighbor aggregation (agg_hops == 2) --------
        e0, e1, e2m = agg0_ref[t], agg1_ref[t], agg2m_ref[t]
        e0_h = jnp.tanh(mm(mm(pool, e1) + e0, w0T) + b0)          # hop 0, pass 0
        e1_h = jnp.tanh(mm(e2m + e1, w1T) + b1)                   # hop 1, pass 0
        e0_hh = jnp.tanh(mm(mm(pool, e1_h) + e0_h, w0T) + b0)     # hop 0, pass 1
        emb_agg = jnp.tanh(mm(e0_hh, wLT) + bL)                   # MLP_AGG_last
        emb_q = jnp.where(mask_ref[t] > 0.5, emb_agg, e0)         # (B, D)

        # -------- GRU1 (response half of the input matmul precomputed) --------
        gi1 = mm(emb_q, g1_wiTq) + respgi_ref[t]
        gh1 = mm(h1, g1_whT) + g1_bh
        h1 = gru(gi1, gh1, h1)             # updated every step (incl. t == 0)

        # -------- GRU2 --------
        gi2 = mm(h1, g2_wiT) + g2_bi
        gh2 = mm(h2, g2_whT) + g2_bh
        g2_out = gru(gi2, gh2, h2)

        # -------- soft recap: history states via one precomputed selection matmul
        sel = mm(selmat_ref[t], hist_ref[...])                    # (RANK_K*B, D)
        qc = qc_ref[t]                                            # (NQ*B, D)
        x = jnp.concatenate([g2_out, sel, qc], axis=0)            # ((NS+NQ)*B, D)
        hs = x[0:NSB]                                             # state slots

        # -------- predict(): attention of (question, concepts) over state slots
        out_g = mm_bt(qc, hs)                                     # (NQ*B, NS*B)
        proj = jnp.tanh(mm(x, qk_wT) + qk_b)                      # merged projections
        k_part = mm_bt(ww_k, proj[0:NSB, 0:D])                    # (1, NS*B)
        q_part = jnp.sum(proj[NSB:, D:2 * D] * ww_q,
                         axis=1, keepdims=True)                   # (NQ*B, 1)
        logits = q_part + k_part + ww_b + attmask_ref[t]          # masked logits
        logits = logits - jnp.max(logits, axis=1, keepdims=True)
        ex = jnp.exp(logits)
        alpha = ex * pl.reciprocal(jnp.sum(ex, axis=1, keepdims=True), approx=True)
        row_sum = jnp.sum(alpha * out_g, axis=1, keepdims=True)   # (NQ*B, 1)
        y_ref[t] = jax.nn.sigmoid(mm(gq, row_sum))                # (B, 1), static store

        # -------- carry updates (torch `continue`s past these at t == 0) ------
        if t >= 1:
            h2 = g2_out
            hist_ref[pl.ds(t * B, B), :] = g2_out                 # static row-block store


# ------------------------------ parameters / graph ----------------------------
def init_params(key):
    D = DIM_EMB
    keys = iter(jax.random.split(key, 64))

    def nrm(shape):
        return jax.random.normal(next(keys), shape, jnp.float32)

    def uni(shape, bound):
        return jax.random.uniform(next(keys), shape, jnp.float32, -bound, bound)

    def linear(din, dout):
        bound = din ** -0.5
        w = uni((dout, din), bound)       # torch layout (out, in)
        b = uni((1, dout), bound)
        return w.T, b                     # pass pre-transposed

    def gru_packed(din, dh):
        # torch.nn.GRUCell init; gates packed [r | z | n] along the output axis.
        bound = dh ** -0.5
        wi = jnp.concatenate([uni((dh, din), bound).T for _ in range(3)], axis=1)
        wh = jnp.concatenate([uni((dh, dh), bound).T for _ in range(3)], axis=1)
        bi = jnp.concatenate([uni((1, dh), bound) for _ in range(3)], axis=1)
        bh = jnp.concatenate([uni((1, dh), bound) for _ in range(3)], axis=1)
        return wi, wh, bi, bh

    params = {
        'embed_question': nrm((NUM_QUESTION, D)),
        'embed_concept':  nrm((NUM_CONCEPT, D)),
        'embed_correct':  nrm((2, D)),
    }

    # GNN MLPs stacked: [mlp4agg[0], mlp4agg[1], MLP_AGG_last]
    agg_w, agg_b = [], []
    for _ in range(AGG_HOPS + 1):
        wT, b = linear(D, D)
        agg_w.append(wT)
        agg_b.append(b)
    params['agg_wT'] = jnp.stack(agg_w)                 # (3, D, D)
    params['agg_b'] = jnp.stack(agg_b)                  # (3, 1, D)

    (params['gru1_wiT'], params['gru1_whT'],
     params['gru1_bi'], params['gru1_bh']) = gru_packed(2 * D, D)   # wiT: (2D, 3D)
    (params['gru2_wiT'], params['gru2_whT'],
     params['gru2_bi'], params['gru2_bh']) = gru_packed(D, D)

    mq_wT, mq_b = linear(D, D)                          # MLP_query (applied to states)
    mk_wT, mk_b = linear(D, D)                          # MLP_key   (applied to qc)
    params['qk_wT'] = jnp.concatenate([mq_wT, mk_wT], axis=1)   # (D, 2D)
    params['qk_b'] = jnp.concatenate([mq_b, mk_b], axis=1)      # (1, 2D)

    bound = (2 * D) ** -0.5
    w_W = uni((1, 2 * D), bound)                        # MLP_W weight (1, 2D)
    params['mlp_w_q'] = w_W[:, :D]                      # multiplies Q (key-side)
    params['mlp_w_k'] = w_W[:, D:]                      # multiplies K (query-side)
    params['mlp_w_b'] = uni((1, 1), bound)
    return params


def build_graph(key):
    k1, k2 = jax.random.split(key)
    question_neighbors = jax.random.randint(
        k1, (NUM_QUESTION, Q_NEIGHBORS), 0, NUM_CONCEPT)
    concept_neighbors = jax.random.randint(
        k2, (NUM_CONCEPT, C_NEIGHBORS), 0, NUM_QUESTION)
    # Q_table: every question q maps to concepts {q % NC, (q+1) % NC} (ascending,
    # as torch.nonzero would return them).  A fixed-width table is exact here.
    q_ids = jnp.arange(NUM_QUESTION)
    q2c_ids = jnp.sort(
        jnp.stack([q_ids % NUM_CONCEPT, (q_ids + 1) % NUM_CONCEPT], axis=1),
        axis=1)
    return question_neighbors, concept_neighbors, q2c_ids


# --------------------------------- forward ------------------------------------
def _prepare_inputs(params, graph, question_seq, correct_seq, mask_seq,
                    h1_init, h2_init):
    """Hoist every state-independent computation out of the serial kernel loop."""
    question_neighbors, concept_neighbors, q2c_ids = graph
    B, S = question_seq.shape
    Sm1 = S - 1
    D = DIM_EMB
    eq, ec, er = (params['embed_question'], params['embed_concept'],
                  params['embed_correct'])

    q_t = question_seq[:, :Sm1]                              # (B, S-1)
    q_next = question_seq[:, 1:]                             # (B, S-1)

    # --- GNN input streams ---
    agg0 = jnp.transpose(eq[q_t], (1, 0, 2))                 # (S-1, B, D)
    n1 = question_neighbors[q_t]                             # (B, S-1, Qn)
    agg1 = jnp.transpose(ec[n1], (1, 0, 2, 3)).reshape(Sm1, B * Q_NEIGHBORS, D)
    n2 = concept_neighbors[n1]                               # (B, S-1, Qn, Cn)
    agg2m = jnp.transpose(jnp.mean(eq[n2], axis=-2),
                          (1, 0, 2, 3)).reshape(Sm1, B * Q_NEIGHBORS, D)

    # --- GRU1: response half of the input matmul (state-independent -> hoisted)
    resp_emb = er[correct_seq[:, :Sm1]]                      # (B, S-1, D)
    g1_wiT = params['gru1_wiT']                              # (2D, 3D)
    respgi = (jnp.einsum('btd,de->tbe', resp_emb, g1_wiT[D:])
              + params['gru1_bi'])                           # (S-1, B, 3D)

    maskf = jnp.transpose(mask_seq[:, :Sm1].astype(jnp.float32))[:, :, None]

    # --- (question_{t+1}; its concepts) rows, q-major: row = q*B + b ---
    qc = jnp.concatenate(
        [eq[q_next][:, :, None, :], ec[q2c_ids[q_next]]], axis=2)   # (B,S-1,NQ,D)
    qc = jnp.transpose(qc, (1, 2, 0, 3)).reshape(Sm1, NQ_BLK * B, D)

    # --- soft-recap: scores + top-k selection precomputed as selection matrices
    allq = eq[q_t]                                           # history pos 0..S-2
    qnexte = eq[q_next]
    scores = jnp.einsum('bsd,btd->tbs', allq, qnexte)        # (S-1, B, S-1)
    t_idx = jnp.arange(Sm1)
    s_idx = jnp.arange(Sm1)
    scores = jnp.where(s_idx[None, None, :] < t_idx[:, None, None], scores, NEG_INF)
    _, topk_idx = jax.lax.top_k(scores, RANK_K)              # (S-1, B, RANK_K)
    k_idx = jnp.arange(RANK_K)
    direct_idx = jnp.broadcast_to(k_idx[None, None, :], (Sm1, B, RANK_K))
    use_topk = (t_idx > RANK_K)[:, None, None]
    sel_idx = jnp.where(use_topk, topk_idx, direct_idx)      # t<=rank_k: pos 0..t-1
    slot_ok = jnp.where(use_topk, True,
                        k_idx[None, None, :] < t_idx[:, None, None])
    onehot = (jax.nn.one_hot(sel_idx, Sm1, dtype=jnp.float32)
              * slot_ok[..., None].astype(jnp.float32))      # (S-1, B, K, S-1)
    selmat = jnp.einsum('tbks,bc->tkbsc', onehot, jnp.eye(B, dtype=jnp.float32))
    selmat = selmat.reshape(Sm1, RANK_K * B, Sm1 * B)

    # --- additive attention mask: batch-block diagonal + valid-slot gating ---
    i_idx = jnp.arange(NQ_BLK * B)
    j_idx = jnp.arange(NS_MAX * B)
    batch_match = (i_idx[:, None] % B) == (j_idx[None, :] % B)
    n_states = 1 + jnp.minimum(t_idx, RANK_K)                # (S-1,)
    slot_valid = (j_idx[None, :] // B) < n_states[:, None]
    attmask = jnp.where(batch_match[None] & slot_valid[:, None, :],
                        0.0, NEG_INF).astype(jnp.float32)    # (S-1, NQ*B, NS*B)

    pool = (jnp.repeat(jnp.eye(B, dtype=jnp.float32), Q_NEIGHBORS, axis=1)
            / float(Q_NEIGHBORS))                            # (B, B*Qn)
    gq = (i_idx[None, :] % B == jnp.arange(B)[:, None]).astype(jnp.float32)

    return (
        agg0, agg1, agg2m, respgi, maskf, qc, selmat, attmask,
        pool, gq, h1_init, h2_init,
        params['agg_wT'], params['agg_b'],
        g1_wiT[:D], params['gru1_whT'], params['gru1_bh'],
        params['gru2_wiT'], params['gru2_whT'], params['gru2_bi'], params['gru2_bh'],
        params['qk_wT'], params['qk_b'],
        params['mlp_w_q'], params['mlp_w_k'], params['mlp_w_b'],
    )


def gikt_forward(params, graph, question_seq, correct_seq, mask_seq,
                 h1_init, h2_init):
    # TODO(synk): hard_recap (per-row variable-length history membership test)
    #             has no fixed-shape equivalent; config uses the soft path.
    # TODO(synk): dropout4gru / dropout4gnn treated as 0 (eval-mode identity).
    B, S = question_seq.shape
    Sm1 = S - 1

    inputs = _prepare_inputs(params, graph, question_seq, correct_seq, mask_seq,
                             h1_init, h2_init)

    vmem_specs = [pl.BlockSpec(memory_space=pltpu.MemorySpace.VMEM)
                  for _ in inputs]

    y_steps = pl.pallas_call(
        gikt_kernel,
        out_shape=jax.ShapeDtypeStruct((Sm1, B, 1), jnp.float32),
        in_specs=vmem_specs,
        out_specs=pl.BlockSpec(memory_space=pltpu.MemorySpace.VMEM),
        scratch_shapes=[
            pltpu.VMEM((Sm1 * B, DIM_EMB), jnp.float32),   # state_history
        ],
    )(*inputs)

    # torch indexing: y_hat[:, 0] at t == 0, y_hat[:, t+1] for t >= 1 (col 1 stays 0)
    y_cols = jnp.transpose(y_steps[:, :, 0])                 # (B, S-1)
    y_hat = jnp.zeros((B, S), jnp.float32)
    y_hat = y_hat.at[:, 0].set(y_cols[:, 0])
    y_hat = y_hat.at[:, 2:].set(y_cols[:, 1:])
    return y_hat


# ----------------------------------- main -------------------------------------
if __name__ == "__main__":
    root = jax.random.PRNGKey(0)
    k_param, k_graph, k_data, k_h = jax.random.split(root, 4)

    params = init_params(k_param)
    graph = build_graph(k_graph)

    kq, kc, km = jax.random.split(k_data, 3)
    question_seq = jax.random.randint(kq, (BATCH, SEQ_LEN), 0, NUM_QUESTION)
    correct_seq = jax.random.randint(kc, (BATCH, SEQ_LEN), 0, 2)
    mask_seq = (jax.random.uniform(km, (BATCH, SEQ_LEN)) < 0.9).astype(jnp.int32)

    # torch code re-draws xavier_uniform hidden-state inits every forward;
    # here they are drawn deterministically once.
    bound = (6.0 / (BATCH + DIM_EMB)) ** 0.5
    kh1, kh2 = jax.random.split(k_h)
    h1_init = jax.random.uniform(kh1, (BATCH, DIM_EMB), jnp.float32, -bound, bound)
    h2_init = jax.random.uniform(kh2, (BATCH, DIM_EMB), jnp.float32, -bound, bound)

    fwd = jax.jit(gikt_forward)
    y_hat = fwd(params, graph, question_seq, correct_seq, mask_seq,
                h1_init, h2_init)
    jax.block_until_ready(y_hat)

    assert y_hat.shape == (BATCH, SEQ_LEN)
    assert bool(jnp.all(jnp.isfinite(y_hat)))
    assert bool(jnp.all((y_hat >= 0.0) & (y_hat <= 1.0)))
    print("KERNEL_OK")
</pallas_src>

<mosaic_0001>
module attributes {stable_mosaic.version = 11 : i64} {
  func.func @gikt_kernel(%arg0: memref<7x8x32xf32, #tpu.memory_space<vmem>>, %arg1: memref<7x32x32xf32, #tpu.memory_space<vmem>>, %arg2: memref<7x32x32xf32, #tpu.memory_space<vmem>>, %arg3: memref<7x8x96xf32, #tpu.memory_space<vmem>>, %arg4: memref<7x8x1xf32, #tpu.memory_space<vmem>>, %arg5: memref<7x24x32xf32, #tpu.memory_space<vmem>>, %arg6: memref<7x24x56xf32, #tpu.memory_space<vmem>>, %arg7: memref<7x24x32xf32, #tpu.memory_space<vmem>>, %arg8: memref<8x32xf32, #tpu.memory_space<vmem>>, %arg9: memref<8x24xf32, #tpu.memory_space<vmem>>, %arg10: memref<8x32xf32, #tpu.memory_space<vmem>>, %arg11: memref<8x32xf32, #tpu.memory_space<vmem>>, %arg12: memref<3x32x32xf32, #tpu.memory_space<vmem>>, %arg13: memref<3x1x32xf32, #tpu.memory_space<vmem>>, %arg14: memref<32x96xf32, #tpu.memory_space<vmem>>, %arg15: memref<32x96xf32, #tpu.memory_space<vmem>>, %arg16: memref<1x96xf32, #tpu.memory_space<vmem>>, %arg17: memref<32x96xf32, #tpu.memory_space<vmem>>, %arg18: memref<32x96xf32, #tpu.memory_space<vmem>>, %arg19: memref<1x96xf32, #tpu.memory_space<vmem>>, %arg20: memref<1x96xf32, #tpu.memory_space<vmem>>, %arg21: memref<32x64xf32, #tpu.memory_space<vmem>>, %arg22: memref<1x64xf32, #tpu.memory_space<vmem>>, %arg23: memref<1x32xf32, #tpu.memory_space<vmem>>, %arg24: memref<1x32xf32, #tpu.memory_space<vmem>>, %arg25: memref<1x1xf32, #tpu.memory_space<vmem>>, %arg26: memref<7x8x1xf32, #tpu.memory_space<vmem>>, %arg27: memref<56x32xf32, #tpu.memory_space<vmem>>) attributes {dimension_semantics = [], scalar_prefetch = 0 : i64, scratch_operands = 1 : i64, tpu.core_type = #tpu.core_type<tc>} {
    %c0 = arith.constant 0 : index
    %c0_0 = arith.constant 0 : index
    %0 = vector.load %arg8[%c0, %c0_0] : memref<8x32xf32, #tpu.memory_space<vmem>>, vector<8x32xf32>
    %c0_1 = arith.constant 0 : index
    %c0_2 = arith.constant 0 : index
    %1 = vector.load %arg9[%c0_1, %c0_2] : memref<8x24xf32, #tpu.memory_space<vmem>>, vector<8x24xf32>
    %c0_3 = arith.constant 0 : index
    %c0_4 = arith.constant 0 : index
    %c0_5 = arith.constant 0 : index
    %2 = vector.load %arg12[%c0_3, %c0_4, %c0_5] : memref<3x32x32xf32, #tpu.memory_space<vmem>>, vector<1x32x32xf32>
    %3 = vector.shape_cast %2 : vector<1x32x32xf32> to vector<32x32xf32>
    %c0_6 = arith.constant 0 : index
    %c0_7 = arith.constant 0 : index
    %c0_8 = arith.constant 0 : index
    %4 = vector.load %arg13[%c0_6, %c0_7, %c0_8] : memref<3x1x32xf32, #tpu.memory_space<vmem>>, vector<1x1x32xf32>
    %5 = vector.shape_cast %4 : vector<1x1x32xf32> to vector<1x32xf32>
    %c1 = arith.constant 1 : index
    %c0_9 = arith.constant 0 : index
    %c0_10 = arith.constant 0 : index
    %6 = vector.load %arg12[%c1, %c0_9, %c0_10] : memref<3x32x32xf32, #tpu.memory_space<vmem>>, vector<1x32x32xf32>
    %7 = vector.shape_cast %6 : vector<1x32x32xf32> to vector<32x32xf32>
    %c1_11 = arith.constant 1 : index
    %c0_12 = arith.constant 0 : index
    %c0_13 = arith.constant 0 : index
    %8 = vector.load %arg13[%c1_11, %c0_12, %c0_13] : memref<3x1x32xf32, #tpu.memory_space<vmem>>, vector<1x1x32xf32>
    %9 = vector.shape_cast %8 : vector<1x1x32xf32> to vector<1x32xf32>
    %c2 = arith.constant 2 : index
    %c0_14 = arith.constant 0 : index
    %c0_15 = arith.constant 0 : index
    %10 = vector.load %arg12[%c2, %c0_14, %c0_15] : memref<3x32x32xf32, #tpu.memory_space<vmem>>, vector<1x32x32xf32>
    %11 = vector.shape_cast %10 : vector<1x32x32xf32> to vector<32x32xf32>
    %c2_16 = arith.constant 2 : index
    %c0_17 = arith.constant 0 : index
    %c0_18 = arith.constant 0 : index
    %12 = vector.load %arg13[%c2_16, %c0_17, %c0_18] : memref<3x1x32xf32, #tpu.memory_space<vmem>>, vector<1x1x32xf32>
    %13 = vector.shape_cast %12 : vector<1x1x32xf32> to vector<1x32xf32>
    %c0_19 = arith.constant 0 : index
    %c0_20 = arith.constant 0 : index
    %14 = vector.load %arg14[%c0_19, %c0_20] : memref<32x96xf32, #tpu.memory_space<vmem>>, vector<32x96xf32>
    %c0_21 = arith.constant 0 : index
    %c0_22 = arith.constant 0 : index
    %15 = vector.load %arg15[%c0_21, %c0_22] : memref<32x96xf32, #tpu.memory_space<vmem>>, vector<32x96xf32>
    %c0_23 = arith.constant 0 : index
    %c0_24 = arith.constant 0 : index
    %16 = vector.load %arg16[%c0_23, %c0_24] : memref<1x96xf32, #tpu.memory_space<vmem>>, vector<1x96xf32>
    %c0_25 = arith.constant 0 : index
    %c0_26 = arith.constant 0 : index
    %17 = vector.load %arg17[%c0_25, %c0_26] : memref<32x96xf32, #tpu.memory_space<vmem>>, vector<32x96xf32>
    %c0_27 = arith.constant 0 : index
    %c0_28 = arith.constant 0 : index
    %18 = vector.load %arg18[%c0_27, %c0_28] : memref<32x96xf32, #tpu.memory_space<vmem>>, vector<32x96xf32>
    %c0_29 = arith.constant 0 : index
    %c0_30 = arith.constant 0 : index
    %19 = vector.load %arg19[%c0_29, %c0_30] : memref<1x96xf32, #tpu.memory_space<vmem>>, vector<1x96xf32>
    %c0_31 = arith.constant 0 : index
    %c0_32 = arith.constant 0 : index
    %20 = vector.load %arg20[%c0_31, %c0_32] : memref<1x96xf32, #tpu.memory_space<vmem>>, vector<1x96xf32>
    %c0_33 = arith.constant 0 : index
    %c0_34 = arith.constant 0 : index
    %21 = vector.load %arg21[%c0_33, %c0_34] : memref<32x64xf32, #tpu.memory_space<vmem>>, vector<32x64xf32>
    %c0_35 = arith.constant 0 : index
    %c0_36 = arith.constant 0 : index
    %22 = vector.load %arg22[%c0_35, %c0_36] : memref<1x64xf32, #tpu.memory_space<vmem>>, vector<1x64xf32>
    %c0_37 = arith.constant 0 : index
    %c0_38 = arith.constant 0 : index
    %23 = vector.load %arg23[%c0_37, %c0_38] : memref<1x32xf32, #tpu.memory_space<vmem>>, vector<1x32xf32>
    %c0_39 = arith.constant 0 : index
    %c0_40 = arith.constant 0 : index
    %24 = vector.load %arg24[%c0_39, %c0_40] : memref<1x32xf32, #tpu.memory_space<vmem>>, vector<1x32xf32>
    %c0_41 = arith.constant 0 : index
    %c0_42 = arith.constant 0 : index
    %25 = vector.load %arg25[%c0_41, %c0_42] : memref<1x1xf32, #tpu.memory_space<vmem>>, vector<1x1xf32>
    %c0_43 = arith.constant 0 : index
    %c0_44 = arith.constant 0 : index
    %26 = vector.load %arg10[%c0_43, %c0_44] : memref<8x32xf32, #tpu.memory_space<vmem>>, vector<8x32xf32>
    %c0_45 = arith.constant 0 : index
    %c0_46 = arith.constant 0 : index
    %27 = vector.load %arg11[%c0_45, %c0_46] : memref<8x32xf32, #tpu.memory_space<vmem>>, vector<8x32xf32>
    %cst = arith.constant 0.000000e+00 : f32
    %28 = vector.broadcast %cst : f32 to vector<56x32xf32>
    %c0_47 = arith.constant 0 : index
    %c0_48 = arith.constant 0 : index
    %29 = vector.load %arg27[%c0_47, %c0_48] : memref<56x32xf32, #tpu.memory_space<vmem>>, vector<56x32xf32>
    tpu.vector_store %arg27[%c0_47, %c0_48], %28 {strides = array<i32>} : memref<56x32xf32, #tpu.memory_space<vmem>>, vector<56x32xf32>,
    %c0_49 = arith.constant 0 : index
    %c0_50 = arith.constant 0 : index
    %c0_51 = arith.constant 0 : index
    %30 = vector.load %arg0[%c0_49, %c0_50, %c0_51] : memref<7x8x32xf32, #tpu.memory_space<vmem>>, vector<1x8x32xf32>
    %31 = vector.shape_cast %30 : vector<1x8x32xf32> to vector<8x32xf32>
    %c0_52 = arith.constant 0 : index
    %c0_53 = arith.constant 0 : index
    %c0_54 = arith.constant 0 : index
    %32 = vector.load %arg1[%c0_52, %c0_53, %c0_54] : memref<7x32x32xf32, #tpu.memory_space<vmem>>, vector<1x32x32xf32>
    %33 = vector.shape_cast %32 : vector<1x32x32xf32> to vector<32x32xf32>
    %c0_55 = arith.constant 0 : index
    %c0_56 = arith.constant 0 : index
    %c0_57 = arith.constant 0 : index
    %34 = vector.load %arg2[%c0_55, %c0_56, %c0_57] : memref<7x32x32xf32, #tpu.memory_space<vmem>>, vector<1x32x32xf32>
    %35 = vector.shape_cast %34 : vector<1x32x32xf32> to vector<32x32xf32>
    %cst_58 = arith.constant dense<0.000000e+00> : vector<8x32xf32>
    %36 = tpu.matmul %0, %33, %cst_58 {dimension_numbers = #tpu.dot_dimension_numbers<[1], [0], [0], [1], [0, 0, 1, 1], [], []>} : vector<8x32xf32>, vector<32x32xf32>, vector<8x32xf32> -> vector<8x32xf32>
    %37 = arith.addf %36, %31 : vector<8x32xf32>
    %cst_59 = arith.constant dense<0.000000e+00> : vector<8x32xf32>
    %38 = tpu.matmul %37, %3, %cst_59 {dimension_numbers = #tpu.dot_dimension_numbers<[1], [0], [0], [1], [0, 0, 1, 1], [], []>} : vector<8x32xf32>, vector<32x32xf32>, vector<8x32xf32> -> vector<8x32xf32>
    %39 = vector.broadcast %5 : vector<1x32xf32> to vector<8x32xf32>
    %40 = arith.addf %38, %39 : vector<8x32xf32>
    %41 = math.tanh %40 : vector<8x32xf32>
    %42 = arith.addf %35, %33 : vector<32x32xf32>
    %cst_60 = arith.constant dense<0.000000e+00> : vector<32x32xf32>
    %43 = tpu.matmul %42, %7, %cst_60 {dimension_numbers = #tpu.dot_dimension_numbers<[1], [0], [0], [1], [0, 0, 1, 1], [], []>} : vector<32x32xf32>, vector<32x32xf32>, vector<32x32xf32> -> vector<32x32xf32>
    %44 = vector.broadcast %9 : vector<1x32xf32> to vector<32x32xf32>
    %45 = arith.addf %43, %44 : vector<32x32xf32>
    %46 = math.tanh %45 : vector<32x32xf32>
    %cst_61 = arith.constant dense<0.000000e+00> : vector<8x32xf32>
    %47 = tpu.matmul %0, %46, %cst_61 {dimension_numbers = #tpu.dot_dimension_numbers<[1], [0], [0], [1], [0, 0, 1, 1], [], []>} : vector<8x32xf32>, vector<32x32xf32>, vector<8x32xf32> -> vector<8x32xf32>
    %48 = arith.addf %47, %41 : vector<8x32xf32>
    %cst_62 = arith.constant dense<0.000000e+00> : vector<8x32xf32>
    %49 = tpu.matmul %48, %3, %cst_62 {dimension_numbers = #tpu.dot_dimension_numbers<[1], [0], [0], [1], [0, 0, 1, 1], [], []>} : vector<8x32xf32>, vector<32x32xf32>, vector<8x32xf32> -> vector<8x32xf32>
    %50 = vector.broadcast %5 : vector<1x32xf32> to vector<8x32xf32>
    %51 = arith.addf %49, %50 : vector<8x32xf32>
    %52 = math.tanh %51 : vector<8x32xf32>
    %cst_63 = arith.constant dense<0.000000e+00> : vector<8x32xf32>
    %53 = tpu.matmul %52, %11, %cst_63 {dimension_numbers = #tpu.dot_dimension_numbers<[1], [0], [0], [1], [0, 0, 1, 1], [], []>} : vector<8x32xf32>, vector<32x32xf32>, vector<8x32xf32> -> vector<8x32xf32>
    %54 = vector.broadcast %13 : vector<1x32xf32> to vector<8x32xf32>
    %55 = arith.addf %53, %54 : vector<8x32xf32>
    %56 = math.tanh %55 : vector<8x32xf32>
    %c0_64 = arith.constant 0 : index
    %c0_65 = arith.constant 0 : index
    %c0_66 = arith.constant 0 : index
    %57 = vector.load %arg4[%c0_64, %c0_65, %c0_66] : memref<7x8x1xf32, #tpu.memory_space<vmem>>, vector<1x8x1xf32>
    %58 = vector.shape_cast %57 : vector<1x8x1xf32> to vector<8x1xf32>
    %cst_67 = arith.constant 5.000000e-01 : f32
    %59 = vector.broadcast %cst_67 : f32 to vector<8x1xf32>
    %60 = arith.cmpf ogt, %58, %59 : vector<8x1xf32>
    %61 = vector.shape_cast %60 : vector<8x1xi1> to vector<8x1xi1>
    %62 = vector.broadcast %61 : vector<8x1xi1> to vector<8x32xi1>
    %63 = arith.select %62, %56, %31 : vector<8x32xi1>, vector<8x32xf32>
    %cst_68 = arith.constant dense<0.000000e+00> : vector<8x96xf32>
    %64 = tpu.matmul %63, %14, %cst_68 {dimension_numbers = #tpu.dot_dimension_numbers<[1], [0], [0], [1], [0, 0, 1, 1], [], []>} : vector<8x32xf32>, vector<32x96xf32>, vector<8x96xf32> -> vector<8x96xf32>
    %c0_69 = arith.constant 0 : index
    %c0_70 = arith.constant 0 : index
    %c0_71 = arith.constant 0 : index
    %65 = vector.load %arg3[%c0_69, %c0_70, %c0_71] : memref<7x8x96xf32, #tpu.memory_space<vmem>>, vector<1x8x96xf32>
    %66 = vector.shape_cast %65 : vector<1x8x96xf32> to vector<8x96xf32>
    %67 = arith.addf %64, %66 : vector<8x96xf32>
    %cst_72 = arith.constant dense<0.000000e+00> : vector<8x96xf32>
    %68 = tpu.matmul %26, %15, %cst_72 {dimension_numbers = #tpu.dot_dimension_numbers<[1], [0], [0], [1], [0, 0, 1, 1], [], []>} : vector<8x32xf32>, vector<32x96xf32>, vector<8x96xf32> -> vector<8x96xf32>
    %69 = vector.broadcast %16 : vector<1x96xf32> to vector<8x96xf32>
    %70 = arith.addf %68, %69 : vector<8x96xf32>
    %71 = vector.extract_strided_slice %67 {offsets = [0, 0], sizes = [8, 32], strides = [1, 1]} : vector<8x96xf32> to vector<8x32xf32>
    %72 = vector.extract_strided_slice %70 {offsets = [0, 0], sizes = [8, 32], strides = [1, 1]} : vector<8x96xf32> to vector<8x32xf32>
    %73 = arith.addf %71, %72 : vector<8x32xf32>
    %74 = arith.negf %73 : vector<8x32xf32>
    %75 = math.exp %74 : vector<8x32xf32>
    %cst_73 = arith.constant 1.000000e+00 : f32
    %76 = vector.broadcast %cst_73 : f32 to vector<8x32xf32>
    %77 = arith.addf %76, %75 : vector<8x32xf32>
    %78 = arith.divf %76, %77 : vector<8x32xf32>
    %79 = vector.extract_strided_slice %67 {offsets = [0, 32], sizes = [8, 32], strides = [1, 1]} : vector<8x96xf32> to vector<8x32xf32>
    %80 = vector.extract_strided_slice %70 {offsets = [0, 32], sizes = [8, 32], strides = [1, 1]} : vector<8x96xf32> to vector<8x32xf32>
    %81 = arith.addf %79, %80 : vector<8x32xf32>
    %82 = arith.negf %81 : vector<8x32xf32>
    %83 = math.exp %82 : vector<8x32xf32>
    %cst_74 = arith.constant 1.000000e+00 : f32
    %84 = vector.broadcast %cst_74 : f32 to vector<8x32xf32>
    %85 = arith.addf %84, %83 : vector<8x32xf32>
    %86 = arith.divf %84, %85 : vector<8x32xf32>
    %87 = vector.extract_strided_slice %67 {offsets = [0, 64], sizes = [8, 32], strides = [1, 1]} : vector<8x96xf32> to vector<8x32xf32>
    %88 = vector.extract_strided_slice %70 {offsets = [0, 64], sizes = [8, 32], strides = [1, 1]} : vector<8x96xf32> to vector<8x32xf32>
    %89 = arith.mulf %78, %88 : vector<8x32xf32>
    %90 = arith.addf %87, %89 : vector<8x32xf32>
    %91 = math.tanh %90 : vector<8x32xf32>
    %cst_75 = arith.constant 1.000000e+00 : f32
    %92 = vector.broadcast %cst_75 : f32 to vector<8x32xf32>
    %93 = arith.subf %92, %86 : vector<8x32xf32>
    %94 = arith.mulf %93, %91 : vector<8x32xf32>
    %95 = arith.mulf %86, %26 : vector<8x32xf32>
    %96 = arith.addf %94, %95 : vector<8x32xf32>
    %cst_76 = arith.constant dense<0.000000e+00> : vector<8x96xf32>
    %97 = tpu.matmul %96, %17, %cst_76 {dimension_numbers = #tpu.dot_dimension_numbers<[1], [0], [0], [1], [0, 0, 1, 1], [], []>} : vector<8x32xf32>, vector<32x96xf32>, vector<8x96xf32> -> vector<8x96xf32>
    %98 = vector.broadcast %19 : vector<1x96xf32> to vector<8x96xf32>
    %99 = arith.addf %97, %98 : vector<8x96xf32>
    %cst_77 = arith.constant dense<0.000000e+00> : vector<8x96xf32>
    %100 = tpu.matmul %27, %18, %cst_77 {dimension_numbers = #tpu.dot_dimension_numbers<[1], [0], [0], [1], [0, 0, 1, 1], [], []>} : vector<8x32xf32>, vector<32x96xf32>, vector<8x96xf32> -> vector<8x96xf32>
    %101 = vector.broadcast %20 : vector<1x96xf32> to vector<8x96xf32>
    %102 = arith.addf %100, %101 : vector<8x96xf32>
    %103 = vector.extract_strided_slice %99 {offsets = [0, 0], sizes = [8, 32], strides = [1, 1]} : vector<8x96xf32> to vector<8x32xf32>
    %104 = vector.extract_strided_slice %102 {offsets = [0, 0], sizes = [8, 32], strides = [1, 1]} : vector<8x96xf32> to vector<8x32xf32>
    %105 = arith.addf %103, %104 : vector<8x32xf32>
    %106 = arith.negf %105 : vector<8x32xf32>
    %107 = math.exp %106 : vector<8x32xf32>
    %cst_78 = arith.constant 1.000000e+00 : f32
    %108 = vector.broadcast %cst_78 : f32 to vector<8x32xf32>
    %109 = arith.addf %108, %107 : vector<8x32xf32>
    %110 = arith.divf %108, %109 : vector<8x32xf32>
    %111 = vector.extract_strided_slice %99 {offsets = [0, 32], sizes = [8, 32], strides = [1, 1]} : vector<8x96xf32> to vector<8x32xf32>
    %112 = vector.extract_strided_slice %102 {offsets = [0, 32], sizes = [8, 32], strides = [1, 1]} : vector<8x96xf32> to vector<8x32xf32>
    %113 = arith.addf %111, %112 : vector<8x32xf32>
    %114 = arith.negf %113 : vector<8x32xf32>
    %115 = math.exp %114 : vector<8x32xf32>
    %cst_79 = arith.constant 1.000000e+00 : f32
    %116 = vector.broadcast %cst_79 : f32 to vector<8x32xf32>
    %117 = arith.addf %116, %115 : vector<8x32xf32>
    %118 = arith.divf %116, %117 : vector<8x32xf32>
    %119 = vector.extract_strided_slice %99 {offsets = [0, 64], sizes = [8, 32], strides = [1, 1]} : vector<8x96xf32> to vector<8x32xf32>
    %120 = vector.extract_strided_slice %102 {offsets = [0, 64], sizes = [8, 32], strides = [1, 1]} : vector<8x96xf32> to vector<8x32xf32>
    %121 = arith.mulf %110, %120 : vector<8x32xf32>
    %122 = arith.addf %119, %121 : vector<8x32xf32>
    %123 = math.tanh %122 : vector<8x32xf32>
    %cst_80 = arith.constant 1.000000e+00 : f32
    %124 = vector.broadcast %cst_80 : f32 to vector<8x32xf32>
    %125 = arith.subf %124, %118 : vector<8x32xf32>
    %126 = arith.mulf %125, %123 : vector<8x32xf32>
    %127 = arith.mulf %118, %27 : vector<8x32xf32>
    %128 = arith.addf %126, %127 : vector<8x32xf32>
    %c0_81 = arith.constant 0 : index
    %c0_82 = arith.constant 0 : index
    %c0_83 = arith.constant 0 : index
    %129 = vector.load %arg6[%c0_81, %c0_82, %c0_83] : memref<7x24x56xf32, #tpu.memory_space<vmem>>, vector<1x24x56xf32>
    %130 = vector.shape_cast %129 : vector<1x24x56xf32> to vector<24x56xf32>
    %c0_84 = arith.constant 0 : index
    %c0_85 = arith.constant 0 : index
    %131 = vector.load %arg27[%c0_84, %c0_85] : memref<56x32xf32, #tpu.memory_space<vmem>>, vector<56x32xf32>
    %cst_86 = arith.constant dense<0.000000e+00> : vector<24x32xf32>
    %132 = tpu.matmul %130, %131, %cst_86 {dimension_numbers = #tpu.dot_dimension_numbers<[1], [0], [0], [1], [0, 0, 1, 1], [], []>} : vector<24x56xf32>, vector<56x32xf32>, vector<24x32xf32> -> vector<24x32xf32>
    %c0_87 = arith.constant 0 : index
    %c0_88 = arith.constant 0 : index
    %c0_89 = arith.constant 0 : index
    %133 = vector.load %arg5[%c0_87, %c0_88, %c0_89] : memref<7x24x32xf32, #tpu.memory_space<vmem>>, vector<1x24x32xf32>
    %134 = vector.shape_cast %133 : vector<1x24x32xf32> to vector<24x32xf32>
    %135 = tpu.concatenate %128, %132, %134 in 0 : vector<8x32xf32>, vector<24x32xf32>, vector<24x32xf32> -> vector<56x32xf32>
    %136 = vector.extract_strided_slice %135 {offsets = [0, 0], sizes = [32, 32], strides = [1, 1]} : vector<56x32xf32> to vector<32x32xf32>
    %cst_90 = arith.constant dense<0.000000e+00> : vector<24x32xf32>
    %137 = tpu.matmul %134, %136, %cst_90 {dimension_numbers = #tpu.dot_dimension_numbers<[1], [1], [0], [0], [0, 0, 1, 0], [], []>} : vector<24x32xf32>, vector<32x32xf32>, vector<24x32xf32> -> vector<24x32xf32>
    %cst_91 = arith.constant dense<0.000000e+00> : vector<56x64xf32>
    %138 = tpu.matmul %135, %21, %cst_91 {dimension_numbers = #tpu.dot_dimension_numbers<[1], [0], [0], [1], [0, 0, 1, 1], [], []>} : vector<56x32xf32>, vector<32x64xf32>, vector<56x64xf32> -> vector<56x64xf32>
    %139 = vector.broadcast %22 : vector<1x64xf32> to vector<56x64xf32>
    %140 = arith.addf %138, %139 : vector<56x64xf32>
    %141 = math.tanh %140 : vector<56x64xf32>
    %142 = vector.extract_strided_slice %141 {offsets = [0, 0], sizes = [32, 32], strides = [1, 1]} : vector<56x64xf32> to vector<32x32xf32>
    %cst_92 = arith.constant dense<0.000000e+00> : vector<1x32xf32>
    %143 = tpu.matmul %24, %142, %cst_92 {dimension_numbers = #tpu.dot_dimension_numbers<[1], [1], [0], [0], [0, 0, 1, 0], [], []>} : vector<1x32xf32>, vector<32x32xf32>, vector<1x32xf32> -> vector<1x32xf32>
    %144 = vector.extract_strided_slice %141 {offsets = [32, 32], sizes = [24, 32], strides = [1, 1]} : vector<56x64xf32> to vector<24x32xf32>
    %145 = vector.broadcast %23 : vector<1x32xf32> to vector<24x32xf32>
    %146 = arith.mulf %144, %145 : vector<24x32xf32>
    %cst_93 = arith.constant dense<0.000000e+00> : vector<24xf32>
    %147 = vector.multi_reduction <add>, %146, %cst_93 [1] : vector<24x32xf32> to vector<24xf32>
    %148 = vector.shape_cast %147 : vector<24xf32> to vector<24x1xf32>
    %149 = vector.broadcast %148 : vector<24x1xf32> to vector<24x32xf32>
    %150 = vector.broadcast %143 : vector<1x32xf32> to vector<24x32xf32>
    %151 = arith.addf %149, %150 : vector<24x32xf32>
    %152 = vector.broadcast %25 : vector<1x1xf32> to vector<24x32xf32>
    %153 = arith.addf %151, %152 : vector<24x32xf32>
    %c0_94 = arith.constant 0 : index
    %c0_95 = arith.constant 0 : index
    %c0_96 = arith.constant 0 : index
    %154 = vector.load %arg7[%c0_94, %c0_95, %c0_96] : memref<7x24x32xf32, #tpu.memory_space<vmem>>, vector<1x24x32xf32>
    %155 = vector.shape_cast %154 : vector<1x24x32xf32> to vector<24x32xf32>
    %156 = arith.addf %153, %155 : vector<24x32xf32>
    %cst_97 = arith.constant dense<0xFF800000> : vector<24xf32>
    %157 = vector.multi_reduction <maximumf>, %156, %cst_97 [1] : vector<24x32xf32> to vector<24xf32>
    %158 = vector.shape_cast %157 : vector<24xf32> to vector<24x1xf32>
    %159 = vector.broadcast %158 : vector<24x1xf32> to vector<24x32xf32>
    %160 = arith.subf %156, %159 : vector<24x32xf32>
    %161 = math.exp %160 : vector<24x32xf32>
    %cst_98 = arith.constant dense<0.000000e+00> : vector<24xf32>
    %162 = vector.multi_reduction <add>, %161, %cst_98 [1] : vector<24x32xf32> to vector<24xf32>
    %163 = vector.shape_cast %162 : vector<24xf32> to vector<24x1xf32>
    %164 = tpu.reciprocal %163 {approx = true} : vector<24x1xf32> -> vector<24x1xf32>
    %165 = vector.broadcast %164 : vector<24x1xf32> to vector<24x32xf32>
    %166 = arith.mulf %161, %165 : vector<24x32xf32>
    %167 = arith.mulf %166, %137 : vector<24x32xf32>
    %cst_99 = arith.constant dense<0.000000e+00> : vector<24xf32>
    %168 = vector.multi_reduction <add>, %167, %cst_99 [1] : vector<24x32xf32> to vector<24xf32>
    %169 = vector.shape_cast %168 : vector<24xf32> to vector<24x1xf32>
    %cst_100 = arith.constant dense<0.000000e+00> : vector<8x1xf32>
    %170 = tpu.matmul %1, %169, %cst_100 {dimension_numbers = #tpu.dot_dimension_numbers<[1], [0], [0], [1], [0, 0, 1, 1], [], []>} : vector<8x24xf32>, vector<24x1xf32>, vector<8x1xf32> -> vector<8x1xf32>
    %171 = arith.negf %170 : vector<8x1xf32>
    %172 = math.exp %171 : vector<8x1xf32>
    %cst_101 = arith.constant 1.000000e+00 : f32
    %173 = vector.broadcast %cst_101 : f32 to vector<8x1xf32>
    %174 = arith.addf %173, %172 : vector<8x1xf32>
    %175 = arith.divf %173, %174 : vector<8x1xf32>
    %c0_102 = arith.constant 0 : index
    %c0_103 = arith.constant 0 : index
    %c0_104 = arith.constant 0 : index
    %176 = vector.load %arg26[%c0_102, %c0_103, %c0_104] : memref<7x8x1xf32, #tpu.memory_space<vmem>>, vector<1x8x1xf32>
    %177 = vector.shape_cast %176 : vector<1x8x1xf32> to vector<8x1xf32>
    %178 = vector.shape_cast %175 : vector<8x1xf32> to vector<1x8x1xf32>
    tpu.vector_store %arg26[%c0_102, %c0_103, %c0_104], %178 {strides = array<i32>} : memref<7x8x1xf32, #tpu.memory_space<vmem>>, vector<1x8x1xf32>,
    %c1_105 = arith.constant 1 : index
    %c0_106 = arith.constant 0 : index
    %c0_107 = arith.constant 0 : index
    %179 = vector.load %arg0[%c1_105, %c0_106, %c0_107] : memref<7x8x32xf32, #tpu.memory_space<vmem>>, vector<1x8x32xf32>
    %180 = vector.shape_cast %179 : vector<1x8x32xf32> to vector<8x32xf32>
    %c1_108 = arith.constant 1 : index
    %c0_109 = arith.constant 0 : index
    %c0_110 = arith.constant 0 : index
    %181 = vector.load %arg1[%c1_108, %c0_109, %c0_110] : memref<7x32x32xf32, #tpu.memory_space<vmem>>, vector<1x32x32xf32>
    %182 = vector.shape_cast %181 : vector<1x32x32xf32> to vector<32x32xf32>
    %c1_111 = arith.constant 1 : index
    %c0_112 = arith.constant 0 : index
    %c0_113 = arith.constant 0 : index
    %183 = vector.load %arg2[%c1_111, %c0_112, %c0_113] : memref<7x32x32xf32, #tpu.memory_space<vmem>>, vector<1x32x32xf32>
    %184 = vector.shape_cast %183 : vector<1x32x32xf32> to vector<32x32xf32>
    %cst_114 = arith.constant dense<0.000000e+00> : vector<8x32xf32>
    %185 = tpu.matmul %0, %182, %cst_114 {dimension_numbers = #tpu.dot_dimension_numbers<[1], [0], [0], [1], [0, 0, 1, 1], [], []>} : vector<8x32xf32>, vector<32x32xf32>, vector<8x32xf32> -> vector<8x32xf32>
    %186 = arith.addf %185, %180 : vector<8x32xf32>
    %cst_115 = arith.constant dense<0.000000e+00> : vector<8x32xf32>
    %187 = tpu.matmul %186, %3, %cst_115 {dimension_numbers = #tpu.dot_dimension_numbers<[1], [0], [0], [1], [0, 0, 1, 1], [], []>} : vector<8x32xf32>, vector<32x32xf32>, vector<8x32xf32> -> vector<8x32xf32>
    %188 = vector.broadcast %5 : vector<1x32xf32> to vector<8x32xf32>
    %189 = arith.addf %187, %188 : vector<8x32xf32>
    %190 = math.tanh %189 : vector<8x32xf32>
    %191 = arith.addf %184, %182 : vector<32x32xf32>
    %cst_116 = arith.constant dense<0.000000e+00> : vector<32x32xf32>
    %192 = tpu.matmul %191, %7, %cst_116 {dimension_numbers = #tpu.dot_dimension_numbers<[1], [0], [0], [1], [0, 0, 1, 1], [], []>} : vector<32x32xf32>, vector<32x32xf32>, vector<32x32xf32> -> vector<32x32xf32>
    %193 = vector.broadcast %9 : vector<1x32xf32> to vector<32x32xf32>
    %194 = arith.addf %192, %193 : vector<32x32xf32>
    %195 = math.tanh %194 : vector<32x32xf32>
    %cst_117 = arith.constant dense<0.000000e+00> : vector<8x32xf32>
    %196 = tpu.matmul %0, %195, %cst_117 {dimension_numbers = #tpu.dot_dimension_numbers<[1], [0], [0], [1], [0, 0, 1, 1], [], []>} : vector<8x32xf32>, vector<32x32xf32>, vector<8x32xf32> -> vector<8x32xf32>
    %197 = arith.addf %196, %190 : vector<8x32xf32>
    %cst_118 = arith.constant dense<0.000000e+00> : vector<8x32xf32>
    %198 = tpu.matmul %197, %3, %cst_118 {dimension_numbers = #tpu.dot_dimension_numbers<[1], [0], [0], [1], [0, 0, 1, 1], [], []>} : vector<8x32xf32>, vector<32x32xf32>, vector<8x32xf32> -> vector<8x32xf32>
    %199 = vector.broadcast %5 : vector<1x32xf32> to vector<8x32xf32>
    %200 = arith.addf %198, %199 : vector<8x32xf32>
    %201 = math.tanh %200 : vector<8x32xf32>
    %cst_119 = arith.constant dense<0.000000e+00> : vector<8x32xf32>
    %202 = tpu.matmul %201, %11, %cst_119 {dimension_numbers = #tpu.dot_dimension_numbers<[1], [0], [0], [1], [0, 0, 1, 1], [], []>} : vector<8x32xf32>, vector<32x32xf32>, vector<8x32xf32> -> vector<8x32xf32>
    %203 = vector.broadcast %13 : vector<1x32xf32> to vector<8x32xf32>
    %204 = arith.addf %202, %203 : vector<8x32xf32>
    %205 = math.tanh %204 : vector<8x32xf32>
    %c1_120 = arith.constant 1 : index
    %c0_121 = arith.constant 0 : index
    %c0_122 = arith.constant 0 : index
    %206 = vector.load %arg4[%c1_120, %c0_121, %c0_122] : memref<7x8x1xf32, #tpu.memory_space<vmem>>, vector<1x8x1xf32>
    %207 = vector.shape_cast %206 : vector<1x8x1xf32> to vector<8x1xf32>
    %cst_123 = arith.constant 5.000000e-01 : f32
    %208 = vector.broadcast %cst_123 : f32 to vector<8x1xf32>
    %209 = arith.cmpf ogt, %207, %208 : vector<8x1xf32>
    %210 = vector.shape_cast %209 : vector<8x1xi1> to vector<8x1xi1>
    %211 = vector.broadcast %210 : vector<8x1xi1> to vector<8x32xi1>
    %212 = arith.select %211, %205, %180 : vector<8x32xi1>, vector<8x32xf32>
    %cst_124 = arith.constant dense<0.000000e+00> : vector<8x96xf32>
    %213 = tpu.matmul %212, %14, %cst_124 {dimension_numbers = #tpu.dot_dimension_numbers<[1], [0], [0], [1], [0, 0, 1, 1], [], []>} : vector<8x32xf32>, vector<32x96xf32>, vector<8x96xf32> -> vector<8x96xf32>
    %c1_125 = arith.constant 1 : index
    %c0_126 = arith.constant 0 : index
    %c0_127 = arith.constant 0 : index
    %214 = vector.load %arg3[%c1_125, %c0_126, %c0_127] : memref<7x8x96xf32, #tpu.memory_space<vmem>>, vector<1x8x96xf32>
    %215 = vector.shape_cast %214 : vector<1x8x96xf32> to vector<8x96xf32>
    %216 = arith.addf %213, %215 : vector<8x96xf32>
    %cst_128 = arith.constant dense<0.000000e+00> : vector<8x96xf32>
    %217 = tpu.matmul %96, %15, %cst_128 {dimension_numbers = #tpu.dot_dimension_numbers<[1], [0], [0], [1], [0, 0, 1, 1], [], []>} : vector<8x32xf32>, vector<32x96xf32>, vector<8x96xf32> -> vector<8x96xf32>
    %218 = vector.broadcast %16 : vector<1x96xf32> to vector<8x96xf32>
    %219 = arith.addf %217, %218 : vector<8x96xf32>
    %220 = vector.extract_strided_slice %216 {offsets = [0, 0], sizes = [8, 32], strides = [1, 1]} : vector<8x96xf32> to vector<8x32xf32>
    %221 = vector.extract_strided_slice %219 {offsets = [0, 0], sizes = [8, 32], strides = [1, 1]} : vector<8x96xf32> to vector<8x32xf32>
    %222 = arith.addf %220, %221 : vector<8x32xf32>
    %223 = arith.negf %222 : vector<8x32xf32>
    %224 = math.exp %223 : vector<8x32xf32>
    %cst_129 = arith.constant 1.000000e+00 : f32
    %225 = vector.broadcast %cst_129 : f32 to vector<8x32xf32>
    %226 = arith.addf %225, %224 : vector<8x32xf32>
    %227 = arith.divf %225, %226 : vector<8x32xf32>
    %228 = vector.extract_strided_slice %216 {offsets = [0, 32], sizes = [8, 32], strides = [1, 1]} : vector<8x96xf32> to vector<8x32xf32>
    %229 = vector.extract_strided_slice %219 {offsets = [0, 32], sizes = [8, 32], strides = [1, 1]} : vector<8x96xf32> to vector<8x32xf32>
    %230 = arith.addf %228, %229 : vector<8x32xf32>
    %231 = arith.negf %230 : vector<8x32xf32>
    %232 = math.exp %231 : vector<8x32xf32>
    %cst_130 = arith.constant 1.000000e+00 : f32
    %233 = vector.broadcast %cst_130 : f32 to vector<8x32xf32>
    %234 = arith.addf %233, %232 : vector<8x32xf32>
    %235 = arith.divf %233, %234 : vector<8x32xf32>
    %236 = vector.extract_strided_slice %216 {offsets = [0, 64], sizes = [8, 32], strides = [1, 1]} : vector<8x96xf32> to vector<8x32xf32>
    %237 = vector.extract_strided_slice %219 {offsets = [0, 64], sizes = [8, 32], strides = [1, 1]} : vector<8x96xf32> to vector<8x32xf32>
    %238 = arith.mulf %227, %237 : vector<8x32xf32>
    %239 = arith.addf %236, %238 : vector<8x32xf32>
    %240 = math.tanh %239 : vector<8x32xf32>
    %cst_131 = arith.constant 1.000000e+00 : f32
    %241 = vector.broadcast %cst_131 : f32 to vector<8x32xf32>
    %242 = arith.subf %241, %235 : vector<8x32xf32>
    %243 = arith.mulf %242, %240 : vector<8x32xf32>
    %244 = arith.mulf %235, %96 : vector<8x32xf32>
    %245 = arith.addf %243, %244 : vector<8x32xf32>
    %cst_132 = arith.constant dense<0.000000e+00> : vector<8x96xf32>
    %246 = tpu.matmul %245, %17, %cst_132 {dimension_numbers = #tpu.dot_dimension_numbers<[1], [0], [0], [1], [0, 0, 1, 1], [], []>} : vector<8x32xf32>, vector<32x96xf32>, vector<8x96xf32> -> vector<8x96xf32>
    %247 = vector.broadcast %19 : vector<1x96xf32> to vector<8x96xf32>
    %248 = arith.addf %246, %247 : vector<8x96xf32>
    %cst_133 = arith.constant dense<0.000000e+00> : vector<8x96xf32>
    %249 = tpu.matmul %27, %18, %cst_133 {dimension_numbers = #tpu.dot_dimension_numbers<[1], [0], [0], [1], [0, 0, 1, 1], [], []>} : vector<8x32xf32>, vector<32x96xf32>, vector<8x96xf32> -> vector<8x96xf32>
    %250 = vector.broadcast %20 : vector<1x96xf32> to vector<8x96xf32>
    %251 = arith.addf %249, %250 : vector<8x96xf32>
    %252 = vector.extract_strided_slice %248 {offsets = [0, 0], sizes = [8, 32], strides = [1, 1]} : vector<8x96xf32> to vector<8x32xf32>
    %253 = vector.extract_strided_slice %251 {offsets = [0, 0], sizes = [8, 32], strides = [1, 1]} : vector<8x96xf32> to vector<8x32xf32>
    %254 = arith.addf %252, %253 : vector<8x32xf32>
    %255 = arith.negf %254 : vector<8x32xf32>
    %256 = math.exp %255 : vector<8x32xf32>
    %cst_134 = arith.constant 1.000000e+00 : f32
    %257 = vector.broadcast %cst_134 : f32 to vector<8x32xf32>
    %258 = arith.addf %257, %256 : vector<8x32xf32>
    %259 = arith.divf %257, %258 : vector<8x32xf32>
    %260 = vector.extract_strided_slice %248 {offsets = [0, 32], sizes = [8, 32], strides = [1, 1]} : vector<8x96xf32> to vector<8x32xf32>
    %261 = vector.extract_strided_slice %251 {offsets = [0, 32], sizes = [8, 32], strides = [1, 1]} : vector<8x96xf32> to vector<8x32xf32>
    %262 = arith.addf %260, %261 : vector<8x32xf32>
    %263 = arith.negf %262 : vector<8x32xf32>
    %264 = math.exp %263 : vector<8x32xf32>
    %cst_135 = arith.constant 1.000000e+00 : f32
    %265 = vector.broadcast %cst_135 : f32 to vector<8x32xf32>
    %266 = arith.addf %265, %264 : vector<8x32xf32>
    %267 = arith.divf %265, %266 : vector<8x32xf32>
    %268 = vector.extract_strided_slice %248 {offsets = [0, 64], sizes = [8, 32], strides = [1, 1]} : vector<8x96xf32> to vector<8x32xf32>
    %269 = vector.extract_strided_slice %251 {offsets = [0, 64], sizes = [8, 32], strides = [1, 1]} : vector<8x96xf32> to vector<8x32xf32>
    %270 = arith.mulf %259, %269 : vector<8x32xf32>
    %271 = arith.addf %268, %270 : vector<8x32xf32>
    %272 = math.tanh %271 : vector<8x32xf32>
    %cst_136 = arith.constant 1.000000e+00 : f32
    %273 = vector.broadcast %cst_136 : f32 to vector<8x32xf32>
    %274 = arith.subf %273, %267 : vector<8x32xf32>
    %275 = arith.mulf %274, %272 : vector<8x32xf32>
    %276 = arith.mulf %267, %27 : vector<8x32xf32>
    %277 = arith.addf %275, %276 : vector<8x32xf32>
    %c1_137 = arith.constant 1 : index
    %c0_138 = arith.constant 0 : index
    %c0_139 = arith.constant 0 : index
    %278 = vector.load %arg6[%c1_137, %c0_138, %c0_139] : memref<7x24x56xf32, #tpu.memory_space<vmem>>, vector<1x24x56xf32>
    %279 = vector.shape_cast %278 : vector<1x24x56xf32> to vector<24x56xf32>
    %c0_140 = arith.constant 0 : index
    %c0_141 = arith.constant 0 : index
    %280 = vector.load %arg27[%c0_140, %c0_141] : memref<56x32xf32, #tpu.memory_space<vmem>>, vector<56x32xf32>
    %cst_142 = arith.constant dense<0.000000e+00> : vector<24x32xf32>
    %281 = tpu.matmul %279, %280, %cst_142 {dimension_numbers = #tpu.dot_dimension_numbers<[1], [0], [0], [1], [0, 0, 1, 1], [], []>} : vector<24x56xf32>, vector<56x32xf32>, vector<24x32xf32> -> vector<24x32xf32>
    %c1_143 = arith.constant 1 : index
    %c0_144 = arith.constant 0 : index
    %c0_145 = arith.constant 0 : index
    %282 = vector.load %arg5[%c1_143, %c0_144, %c0_145] : memref<7x24x32xf32, #tpu.memory_space<vmem>>, vector<1x24x32xf32>
    %283 = vector.shape_cast %282 : vector<1x24x32xf32> to vector<24x32xf32>
    %284 = tpu.concatenate %277, %281, %283 in 0 : vector<8x32xf32>, vector<24x32xf32>, vector<24x32xf32> -> vector<56x32xf32>
    %285 = vector.extract_strided_slice %284 {offsets = [0, 0], sizes = [32, 32], strides = [1, 1]} : vector<56x32xf32> to vector<32x32xf32>
    %cst_146 = arith.constant dense<0.000000e+00> : vector<24x32xf32>
    %286 = tpu.matmul %283, %285, %cst_146 {dimension_numbers = #tpu.dot_dimension_numbers<[1], [1], [0], [0], [0, 0, 1, 0], [], []>} : vector<24x32xf32>, vector<32x32xf32>, vector<24x32xf32> -> vector<24x32xf32>
    %cst_147 = arith.constant dense<0.000000e+00> : vector<56x64xf32>
    %287 = tpu.matmul %284, %21, %cst_147 {dimension_numbers = #tpu.dot_dimension_numbers<[1], [0], [0], [1], [0, 0, 1, 1], [], []>} : vector<56x32xf32>, vector<32x64xf32>, vector<56x64xf32> -> vector<56x64xf32>
    %288 = vector.broadcast %22 : vector<1x64xf32> to vector<56x64xf32>
    %289 = arith.addf %287, %288 : vector<56x64xf32>
    %290 = math.tanh %289 : vector<56x64xf32>
    %291 = vector.extract_strided_slice %290 {offsets = [0, 0], sizes = [32, 32], strides = [1, 1]} : vector<56x64xf32> to vector<32x32xf32>
    %cst_148 = arith.constant dense<0.000000e+00> : vector<1x32xf32>
    %292 = tpu.matmul %24, %291, %cst_148 {dimension_numbers = #tpu.dot_dimension_numbers<[1], [1], [0], [0], [0, 0, 1, 0], [], []>} : vector<1x32xf32>, vector<32x32xf32>, vector<1x32xf32> -> vector<1x32xf32>
    %293 = vector.extract_strided_slice %290 {offsets = [32, 32], sizes = [24, 32], strides = [1, 1]} : vector<56x64xf32> to vector<24x32xf32>
    %294 = vector.broadcast %23 : vector<1x32xf32> to vector<24x32xf32>
    %295 = arith.mulf %293, %294 : vector<24x32xf32>
    %cst_149 = arith.constant dense<0.000000e+00> : vector<24xf32>
    %296 = vector.multi_reduction <add>, %295, %cst_149 [1] : vector<24x32xf32> to vector<24xf32>
    %297 = vector.shape_cast %296 : vector<24xf32> to vector<24x1xf32>
    %298 = vector.broadcast %297 : vector<24x1xf32> to vector<24x32xf32>
    %299 = vector.broadcast %292 : vector<1x32xf32> to vector<24x32xf32>
    %300 = arith.addf %298, %299 : vector<24x32xf32>
    %301 = vector.broadcast %25 : vector<1x1xf32> to vector<24x32xf32>
    %302 = arith.addf %300, %301 : vector<24x32xf32>
    %c1_150 = arith.constant 1 : index
    %c0_151 = arith.constant 0 : index
    %c0_152 = arith.constant 0 : index
    %303 = vector.load %arg7[%c1_150, %c0_151, %c0_152] : memref<7x24x32xf32, #tpu.memory_space<vmem>>, vector<1x24x32xf32>
    %304 = vector.shape_cast %303 : vector<1x24x32xf32> to vector<24x32xf32>
    %305 = arith.addf %302, %304 : vector<24x32xf32>
    %cst_153 = arith.constant dense<0xFF800000> : vector<24xf32>
    %306 = vector.multi_reduction <maximumf>, %305, %cst_153 [1] : vector<24x32xf32> to vector<24xf32>
    %307 = vector.shape_cast %306 : vector<24xf32> to vector<24x1xf32>
    %308 = vector.broadcast %307 : vector<24x1xf32> to vector<24x32xf32>
    %309 = arith.subf %305, %308 : vector<24x32xf32>
    %310 = math.exp %309 : vector<24x32xf32>
    %cst_154 = arith.constant dense<0.000000e+00> : vector<24xf32>
    %311 = vector.multi_reduction <add>, %310, %cst_154 [1] : vector<24x32xf32> to vector<24xf32>
    %312 = vector.shape_cast %311 : vector<24xf32> to vector<24x1xf32>
    %313 = tpu.reciprocal %312 {approx = true} : vector<24x1xf32> -> vector<24x1xf32>
    %314 = vector.broadcast %313 : vector<24x1xf32> to vector<24x32xf32>
    %315 = arith.mulf %310, %314 : vector<24x32xf32>
    %316 = arith.mulf %315, %286 : vector<24x32xf32>
    %cst_155 = arith.constant dense<0.000000e+00> : vector<24xf32>
    %317 = vector.multi_reduction <add>, %316, %cst_155 [1] : vector<24x32xf32> to vector<24xf32>
    %318 = vector.shape_cast %317 : vector<24xf32> to vector<24x1xf32>
    %cst_156 = arith.constant dense<0.000000e+00> : vector<8x1xf32>
    %319 = tpu.matmul %1, %318, %cst_156 {dimension_numbers = #tpu.dot_dimension_numbers<[1], [0], [0], [1], [0, 0, 1, 1], [], []>} : vector<8x24xf32>, vector<24x1xf32>, vector<8x1xf32> -> vector<8x1xf32>
    %320 = arith.negf %319 : vector<8x1xf32>
    %321 = math.exp %320 : vector<8x1xf32>
    %cst_157 = arith.constant 1.000000e+00 : f32
    %322 = vector.broadcast %cst_157 : f32 to vector<8x1xf32>
    %323 = arith.addf %322, %321 : vector<8x1xf32>
    %324 = arith.divf %322, %323 : vector<8x1xf32>
    %c1_158 = arith.constant 1 : index
    %c0_159 = arith.constant 0 : index
    %c0_160 = arith.constant 0 : index
    %325 = vector.load %arg26[%c1_158, %c0_159, %c0_160] : memref<7x8x1xf32, #tpu.memory_space<vmem>>, vector<1x8x1xf32>
    %326 = vector.shape_cast %325 : vector<1x8x1xf32> to vector<8x1xf32>
    %327 = vector.shape_cast %324 : vector<8x1xf32> to vector<1x8x1xf32>
    tpu.vector_store %arg26[%c1_158, %c0_159, %c0_160], %327 {strides = array<i32>} : memref<7x8x1xf32, #tpu.memory_space<vmem>>, vector<1x8x1xf32>,
    %c8 = arith.constant 8 : index
    %c0_161 = arith.constant 0 : index
    %328 = vector.load %arg27[%c8, %c0_161] : memref<56x32xf32, #tpu.memory_space<vmem>>, vector<8x32xf32>
    tpu.vector_store %arg27[%c8, %c0_161], %277 {strides = array<i32>} : memref<56x32xf32, #tpu.memory_space<vmem>>, vector<8x32xf32>,
    %c2_162 = arith.constant 2 : index
    %c0_163 = arith.constant 0 : index
    %c0_164 = arith.constant 0 : index
    %329 = vector.load %arg0[%c2_162, %c0_163, %c0_164] : memref<7x8x32xf32, #tpu.memory_space<vmem>>, vector<1x8x32xf32>
    %330 = vector.shape_cast %329 : vector<1x8x32xf32> to vector<8x32xf32>
    %c2_165 = arith.constant 2 : index
    %c0_166 = arith.constant 0 : index
    %c0_167 = arith.constant 0 : index
    %331 = vector.load %arg1[%c2_165, %c0_166, %c0_167] : memref<7x32x32xf32, #tpu.memory_space<vmem>>, vector<1x32x32xf32>
    %332 = vector.shape_cast %331 : vector<1x32x32xf32> to vector<32x32xf32>
    %c2_168 = arith.constant 2 : index
    %c0_169 = arith.constant 0 : index
    %c0_170 = arith.constant 0 : index
    %333 = vector.load %arg2[%c2_168, %c0_169, %c0_170] : memref<7x32x32xf32, #tpu.memory_space<vmem>>, vector<1x32x32xf32>
    %334 = vector.shape_cast %333 : vector<1x32x32xf32> to vector<32x32xf32>
    %cst_171 = arith.constant dense<0.000000e+00> : vector<8x32xf32>
    %335 = tpu.matmul %0, %332, %cst_171 {dimension_numbers = #tpu.dot_dimension_numbers<[1], [0], [0], [1], [0, 0, 1, 1], [], []>} : vector<8x32xf32>, vector<32x32xf32>, vector<8x32xf32> -> vector<8x32xf32>
    %336 = arith.addf %335, %330 : vector<8x32xf32>
    %cst_172 = arith.constant dense<0.000000e+00> : vector<8x32xf32>
    %337 = tpu.matmul %336, %3, %cst_172 {dimension_numbers = #tpu.dot_dimension_numbers<[1], [0], [0], [1], [0, 0, 1, 1], [], []>} : vector<8x32xf32>, vector<32x32xf32>, vector<8x32xf32> -> vector<8x32xf32>
    %338 = vector.broadcast %5 : vector<1x32xf32> to vector<8x32xf32>
    %339 = arith.addf %337, %338 : vector<8x32xf32>
    %340 = math.tanh %339 : vector<8x32xf32>
    %341 = arith.addf %334, %332 : vector<32x32xf32>
    %cst_173 = arith.constant dense<0.000000e+00> : vector<32x32xf32>
    %342 = tpu.matmul %341, %7, %cst_173 {dimension_numbers = #tpu.dot_dimension_numbers<[1], [0], [0], [1], [0, 0, 1, 1], [], []>} : vector<32x32xf32>, vector<32x32xf32>, vector<32x32xf32> -> vector<32x32xf32>
    %343 = vector.broadcast %9 : vector<1x32xf32> to vector<32x32xf32>
    %344 = arith.addf %342, %343 : vector<32x32xf32>
    %345 = math.tanh %344 : vector<32x32xf32>
    %cst_174 = arith.constant dense<0.000000e+00> : vector<8x32xf32>
    %346 = tpu.matmul %0, %345, %cst_174 {dimension_numbers = #tpu.dot_dimension_numbers<[1], [0], [0], [1], [0, 0, 1, 1], [], []>} : vector<8x32xf32>, vector<32x32xf32>, vector<8x32xf32> -> vector<8x32xf32>
    %347 = arith.addf %346, %340 : vector<8x32xf32>
    %cst_175 = arith.constant dense<0.000000e+00> : vector<8x32xf32>
    %348 = tpu.matmul %347, %3, %cst_175 {dimension_numbers = #tpu.dot_dimension_numbers<[1], [0], [0], [1], [0, 0, 1, 1], [], []>} : vector<8x32xf32>, vector<32x32xf32>, vector<8x32xf32> -> vector<8x32xf32>
    %349 = vector.broadcast %5 : vector<1x32xf32> to vector<8x32xf32>
    %350 = arith.addf %348, %349 : vector<8x32xf32>
    %351 = math.tanh %350 : vector<8x32xf32>
    %cst_176 = arith.constant dense<0.000000e+00> : vector<8x32xf32>
    %352 = tpu.matmul %351, %11, %cst_176 {dimension_numbers = #tpu.dot_dimension_numbers<[1], [0], [0], [1], [0, 0, 1, 1], [], []>} : vector<8x32xf32>, vector<32x32xf32>, vector<8x32xf32> -> vector<8x32xf32>
    %353 = vector.broadcast %13 : vector<1x32xf32> to vector<8x32xf32>
    %354 = arith.addf %352, %353 : vector<8x32xf32>
    %355 = math.tanh %354 : vector<8x32xf32>
    %c2_177 = arith.constant 2 : index
    %c0_178 = arith.constant 0 : index
    %c0_179 = arith.constant 0 : index
    %356 = vector.load %arg4[%c2_177, %c0_178, %c0_179] : memref<7x8x1xf32, #tpu.memory_space<vmem>>, vector<1x8x1xf32>
    %357 = vector.shape_cast %356 : vector<1x8x1xf32> to vector<8x1xf32>
    %cst_180 = arith.constant 5.000000e-01 : f32
    %358 = vector.broadcast %cst_180 : f32 to vector<8x1xf32>
    %359 = arith.cmpf ogt, %357, %358 : vector<8x1xf32>
    %360 = vector.shape_cast %359 : vector<8x1xi1> to vector<8x1xi1>
    %361 = vector.broadcast %360 : vector<8x1xi1> to vector<8x32xi1>
    %362 = arith.select %361, %355, %330 : vector<8x32xi1>, vector<8x32xf32>
    %cst_181 = arith.constant dense<0.000000e+00> : vector<8x96xf32>
    %363 = tpu.matmul %362, %14, %cst_181 {dimension_numbers = #tpu.dot_dimension_numbers<[1], [0], [0], [1], [0, 0, 1, 1], [], []>} : vector<8x32xf32>, vector<32x96xf32>, vector<8x96xf32> -> vector<8x96xf32>
    %c2_182 = arith.constant 2 : index
    %c0_183 = arith.constant 0 : index
    %c0_184 = arith.constant 0 : index
    %364 = vector.load %arg3[%c2_182, %c0_183, %c0_184] : memref<7x8x96xf32, #tpu.memory_space<vmem>>, vector<1x8x96xf32>
    %365 = vector.shape_cast %364 : vector<1x8x96xf32> to vector<8x96xf32>
    %366 = arith.addf %363, %365 : vector<8x96xf32>
    %cst_185 = arith.constant dense<0.000000e+00> : vector<8x96xf32>
    %367 = tpu.matmul %245, %15, %cst_185 {dimension_numbers = #tpu.dot_dimension_numbers<[1], [0], [0], [1], [0, 0, 1, 1], [], []>} : vector<8x32xf32>, vector<32x96xf32>, vector<8x96xf32> -> vector<8x96xf32>
    %368 = vector.broadcast %16 : vector<1x96xf32> to vector<8x96xf32>
    %369 = arith.addf %367, %368 : vector<8x96xf32>
    %370 = vector.extract_strided_slice %366 {offsets = [0, 0], sizes = [8, 32], strides = [1, 1]} : vector<8x96xf32> to vector<8x32xf32>
    %371 = vector.extract_strided_slice %369 {offsets = [0, 0], sizes = [8, 32], strides = [1, 1]} : vector<8x96xf32> to vector<8x32xf32>
    %372 = arith.addf %370, %371 : vector<8x32xf32>
    %373 = arith.negf %372 : vector<8x32xf32>
    %374 = math.exp %373 : vector<8x32xf32>
    %cst_186 = arith.constant 1.000000e+00 : f32
    %375 = vector.broadcast %cst_186 : f32 to vector<8x32xf32>
    %376 = arith.addf %375, %374 : vector<8x32xf32>
    %377 = arith.divf %375, %376 : vector<8x32xf32>
    %378 = vector.extract_strided_slice %366 {offsets = [0, 32], sizes = [8, 32], strides = [1, 1]} : vector<8x96xf32> to vector<8x32xf32>
    %379 = vector.extract_strided_slice %369 {offsets = [0, 32], sizes = [8, 32], strides = [1, 1]} : vector<8x96xf32> to vector<8x32xf32>
    %380 = arith.addf %378, %379 : vector<8x32xf32>
    %381 = arith.negf %380 : vector<8x32xf32>
    %382 = math.exp %381 : vector<8x32xf32>
    %cst_187 = arith.constant 1.000000e+00 : f32
    %383 = vector.broadcast %cst_187 : f32 to vector<8x32xf32>
    %384 = arith.addf %383, %382 : vector<8x32xf32>
    %385 = arith.divf %383, %384 : vector<8x32xf32>
    %386 = vector.extract_strided_slice %366 {offsets = [0, 64], sizes = [8, 32], strides = [1, 1]} : vector<8x96xf32> to vector<8x32xf32>
    %387 = vector.extract_strided_slice %369 {offsets = [0, 64], sizes = [8, 32], strides = [1, 1]} : vector<8x96xf32> to vector<8x32xf32>
    %388 = arith.mulf %377, %387 : vector<8x32xf32>
    %389 = arith.addf %386, %388 : vector<8x32xf32>
    %390 = math.tanh %389 : vector<8x32xf32>
    %cst_188 = arith.constant 1.000000e+00 : f32
    %391 = vector.broadcast %cst_188 : f32 to vector<8x32xf32>
    %392 = arith.subf %391, %385 : vector<8x32xf32>
    %393 = arith.mulf %392, %390 : vector<8x32xf32>
    %394 = arith.mulf %385, %245 : vector<8x32xf32>
    %395 = arith.addf %393, %394 : vector<8x32xf32>
    %cst_189 = arith.constant dense<0.000000e+00> : vector<8x96xf32>
    %396 = tpu.matmul %395, %17, %cst_189 {dimension_numbers = #tpu.dot_dimension_numbers<[1], [0], [0], [1], [0, 0, 1, 1], [], []>} : vector<8x32xf32>, vector<32x96xf32>, vector<8x96xf32> -> vector<8x96xf32>
    %397 = vector.broadcast %19 : vector<1x96xf32> to vector<8x96xf32>
    %398 = arith.addf %396, %397 : vector<8x96xf32>
    %cst_190 = arith.constant dense<0.000000e+00> : vector<8x96xf32>
    %399 = tpu.matmul %277, %18, %cst_190 {dimension_numbers = #tpu.dot_dimension_numbers<[1], [0], [0], [1], [0, 0, 1, 1], [], []>} : vector<8x32xf32>, vector<32x96xf32>, vector<8x96xf32> -> vector<8x96xf32>
    %400 = vector.broadcast %20 : vector<1x96xf32> to vector<8x96xf32>
    %401 = arith.addf %399, %400 : vector<8x96xf32>
    %402 = vector.extract_strided_slice %398 {offsets = [0, 0], sizes = [8, 32], strides = [1, 1]} : vector<8x96xf32> to vector<8x32xf32>
    %403 = vector.extract_strided_slice %401 {offsets = [0, 0], sizes = [8, 32], strides = [1, 1]} : vector<8x96xf32> to vector<8x32xf32>
    %404 = arith.addf %402, %403 : vector<8x32xf32>
    %405 = arith.negf %404 : vector<8x32xf32>
    %406 = math.exp %405 : vector<8x32xf32>
    %cst_191 = arith.constant 1.000000e+00 : f32
    %407 = vector.broadcast %cst_191 : f32 to vector<8x32xf32>
    %408 = arith.addf %407, %406 : vector<8x32xf32>
    %409 = arith.divf %407, %408 : vector<8x32xf32>
    %410 = vector.extract_strided_slice %398 {offsets = [0, 32], sizes = [8, 32], strides = [1, 1]} : vector<8x96xf32> to vector<8x32xf32>
    %411 = vector.extract_strided_slice %401 {offsets = [0, 32], sizes = [8, 32], strides = [1, 1]} : vector<8x96xf32> to vector<8x32xf32>
    %412 = arith.addf %410, %411 : vector<8x32xf32>
    %413 = arith.negf %412 : vector<8x32xf32>
    %414 = math.exp %413 : vector<8x32xf32>
    %cst_192 = arith.constant 1.000000e+00 : f32
    %415 = vector.broadcast %cst_192 : f32 to vector<8x32xf32>
    %416 = arith.addf %415, %414 : vector<8x32xf32>
    %417 = arith.divf %415, %416 : vector<8x32xf32>
    %418 = vector.extract_strided_slice %398 {offsets = [0, 64], sizes = [8, 32], strides = [1, 1]} : vector<8x96xf32> to vector<8x32xf32>
    %419 = vector.extract_strided_slice %401 {offsets = [0, 64], sizes = [8, 32], strides = [1, 1]} : vector<8x96xf32> to vector<8x32xf32>
    %420 = arith.mulf %409, %419 : vector<8x32xf32>
    %421 = arith.addf %418, %420 : vector<8x32xf32>
    %422 = math.tanh %421 : vector<8x32xf32>
    %cst_193 = arith.constant 1.000000e+00 : f32
    %423 = vector.broadcast %cst_193 : f32 to vector<8x32xf32>
    %424 = arith.subf %423, %417 : vector<8x32xf32>
    %425 = arith.mulf %424, %422 : vector<8x32xf32>
    %426 = arith.mulf %417, %277 : vector<8x32xf32>
    %427 = arith.addf %425, %426 : vector<8x32xf32>
    %c2_194 = arith.constant 2 : index
    %c0_195 = arith.constant 0 : index
    %c0_196 = arith.constant 0 : index
    %428 = vector.load %arg6[%c2_194, %c0_195, %c0_196] : memref<7x24x56xf32, #tpu.memory_space<vmem>>, vector<1x24x56xf32>
    %429 = vector.shape_cast %428 : vector<1x24x56xf32> to vector<24x56xf32>
    %c0_197 = arith.constant 0 : index
    %c0_198 = arith.constant 0 : index
    %430 = vector.load %arg27[%c0_197, %c0_198] : memref<56x32xf32, #tpu.memory_space<vmem>>, vector<56x32xf32>
    %cst_199 = arith.constant dense<0.000000e+00> : vector<24x32xf32>
    %431 = tpu.matmul %429, %430, %cst_199 {dimension_numbers = #tpu.dot_dimension_numbers<[1], [0], [0], [1], [0, 0, 1, 1], [], []>} : vector<24x56xf32>, vector<56x32xf32>, vector<24x32xf32> -> vector<24x32xf32>
    %c2_200 = arith.constant 2 : index
    %c0_201 = arith.constant 0 : index
    %c0_202 = arith.constant 0 : index
    %432 = vector.load %arg5[%c2_200, %c0_201, %c0_202] : memref<7x24x32xf32, #tpu.memory_space<vmem>>, vector<1x24x32xf32>
    %433 = vector.shape_cast %432 : vector<1x24x32xf32> to vector<24x32xf32>
    %434 = tpu.concatenate %427, %431, %433 in 0 : vector<8x32xf32>, vector<24x32xf32>, vector<24x32xf32> -> vector<56x32xf32>
    %435 = vector.extract_strided_slice %434 {offsets = [0, 0], sizes = [32, 32], strides = [1, 1]} : vector<56x32xf32> to vector<32x32xf32>
    %cst_203 = arith.constant dense<0.000000e+00> : vector<24x32xf32>
    %436 = tpu.matmul %433, %435, %cst_203 {dimension_numbers = #tpu.dot_dimension_numbers<[1], [1], [0], [0], [0, 0, 1, 0], [], []>} : vector<24x32xf32>, vector<32x32xf32>, vector<24x32xf32> -> vector<24x32xf32>
    %cst_204 = arith.constant dense<0.000000e+00> : vector<56x64xf32>
    %437 = tpu.matmul %434, %21, %cst_204 {dimension_numbers = #tpu.dot_dimension_numbers<[1], [0], [0], [1], [0, 0, 1, 1], [], []>} : vector<56x32xf32>, vector<32x64xf32>, vector<56x64xf32> -> vector<56x64xf32>
    %438 = vector.broadcast %22 : vector<1x64xf32> to vector<56x64xf32>
    %439 = arith.addf %437, %438 : vector<56x64xf32>
    %440 = math.tanh %439 : vector<56x64xf32>
    %441 = vector.extract_strided_slice %440 {offsets = [0, 0], sizes = [32, 32], strides = [1, 1]} : vector<56x64xf32> to vector<32x32xf32>
    %cst_205 = arith.constant dense<0.000000e+00> : vector<1x32xf32>
    %442 = tpu.matmul %24, %441, %cst_205 {dimension_numbers = #tpu.dot_dimension_numbers<[1], [1], [0], [0], [0, 0, 1, 0], [], []>} : vector<1x32xf32>, vector<32x32xf32>, vector<1x32xf32> -> vector<1x32xf32>
    %443 = vector.extract_strided_slice %440 {offsets = [32, 32], sizes = [24, 32], strides = [1, 1]} : vector<56x64xf32> to vector<24x32xf32>
    %444 = vector.broadcast %23 : vector<1x32xf32> to vector<24x32xf32>
    %445 = arith.mulf %443, %444 : vector<24x32xf32>
    %cst_206 = arith.constant dense<0.000000e+00> : vector<24xf32>
    %446 = vector.multi_reduction <add>, %445, %cst_206 [1] : vector<24x32xf32> to vector<24xf32>
    %447 = vector.shape_cast %446 : vector<24xf32> to vector<24x1xf32>
    %448 = vector.broadcast %447 : vector<24x1xf32> to vector<24x32xf32>
    %449 = vector.broadcast %442 : vector<1x32xf32> to vector<24x32xf32>
    %450 = arith.addf %448, %449 : vector<24x32xf32>
    %451 = vector.broadcast %25 : vector<1x1xf32> to vector<24x32xf32>
    %452 = arith.addf %450, %451 : vector<24x32xf32>
    %c2_207 = arith.constant 2 : index
    %c0_208 = arith.constant 0 : index
    %c0_209 = arith.constant 0 : index
    %453 = vector.load %arg7[%c2_207, %c0_208, %c0_209] : memref<7x24x32xf32, #tpu.memory_space<vmem>>, vector<1x24x32xf32>
    %454 = vector.shape_cast %453 : vector<1x24x32xf32> to vector<24x32xf32>
    %455 = arith.addf %452, %454 : vector<24x32xf32>
    %cst_210 = arith.constant dense<0xFF800000> : vector<24xf32>
    %456 = vector.multi_reduction <maximumf>, %455, %cst_210 [1] : vector<24x32xf32> to vector<24xf32>
    %457 = vector.shape_cast %456 : vector<24xf32> to vector<24x1xf32>
    %458 = vector.broadcast %457 : vector<24x1xf32> to vector<24x32xf32>
    %459 = arith.subf %455, %458 : vector<24x32xf32>
    %460 = math.exp %459 : vector<24x32xf32>
    %cst_211 = arith.constant dense<0.000000e+00> : vector<24xf32>
    %461 = vector.multi_reduction <add>, %460, %cst_211 [1] : vector<24x32xf32> to vector<24xf32>
    %462 = vector.shape_cast %461 : vector<24xf32> to vector<24x1xf32>
    %463 = tpu.reciprocal %462 {approx = true} : vector<24x1xf32> -> vector<24x1xf32>
    %464 = vector.broadcast %463 : vector<24x1xf32> to vector<24x32xf32>
    %465 = arith.mulf %460, %464 : vector<24x32xf32>
    %466 = arith.mulf %465, %436 : vector<24x32xf32>
    %cst_212 = arith.constant dense<0.000000e+00> : vector<24xf32>
    %467 = vector.multi_reduction <add>, %466, %cst_212 [1] : vector<24x32xf32> to vector<24xf32>
    %468 = vector.shape_cast %467 : vector<24xf32> to vector<24x1xf32>
    %cst_213 = arith.constant dense<0.000000e+00> : vector<8x1xf32>
    %469 = tpu.matmul %1, %468, %cst_213 {dimension_numbers = #tpu.dot_dimension_numbers<[1], [0], [0], [1], [0, 0, 1, 1], [], []>} : vector<8x24xf32>, vector<24x1xf32>, vector<8x1xf32> -> vector<8x1xf32>
    %470 = arith.negf %469 : vector<8x1xf32>
    %471 = math.exp %470 : vector<8x1xf32>
    %cst_214 = arith.constant 1.000000e+00 : f32
    %472 = vector.broadcast %cst_214 : f32 to vector<8x1xf32>
    %473 = arith.addf %472, %471 : vector<8x1xf32>
    %474 = arith.divf %472, %473 : vector<8x1xf32>
    %c2_215 = arith.constant 2 : index
    %c0_216 = arith.constant 0 : index
    %c0_217 = arith.constant 0 : index
    %475 = vector.load %arg26[%c2_215, %c0_216, %c0_217] : memref<7x8x1xf32, #tpu.memory_space<vmem>>, vector<1x8x1xf32>
    %476 = vector.shape_cast %475 : vector<1x8x1xf32> to vector<8x1xf32>
    %477 = vector.shape_cast %474 : vector<8x1xf32> to vector<1x8x1xf32>
    tpu.vector_store %arg26[%c2_215, %c0_216, %c0_217], %477 {strides = array<i32>} : memref<7x8x1xf32, #tpu.memory_space<vmem>>, vector<1x8x1xf32>,
    %c16 = arith.constant 16 : index
    %c0_218 = arith.constant 0 : index
    %478 = vector.load %arg27[%c16, %c0_218] : memref<56x32xf32, #tpu.memory_space<vmem>>, vector<8x32xf32>
    tpu.vector_store %arg27[%c16, %c0_218], %427 {strides = array<i32>} : memref<56x32xf32, #tpu.memory_space<vmem>>, vector<8x32xf32>,
    %c3 = arith.constant 3 : index
    %c0_219 = arith.constant 0 : index
    %c0_220 = arith.constant 0 : index
    %479 = vector.load %arg0[%c3, %c0_219, %c0_220] : memref<7x8x32xf32, #tpu.memory_space<vmem>>, vector<1x8x32xf32>
    %480 = vector.shape_cast %479 : vector<1x8x32xf32> to vector<8x32xf32>
    %c3_221 = arith.constant 3 : index
    %c0_222 = arith.constant 0 : index
    %c0_223 = arith.constant 0 : index
    %481 = vector.load %arg1[%c3_221, %c0_222, %c0_223] : memref<7x32x32xf32, #tpu.memory_space<vmem>>, vector<1x32x32xf32>
    %482 = vector.shape_cast %481 : vector<1x32x32xf32> to vector<32x32xf32>
    %c3_224 = arith.constant 3 : index
    %c0_225 = arith.constant 0 : index
    %c0_226 = arith.constant 0 : index
    %483 = vector.load %arg2[%c3_224, %c0_225, %c0_226] : memref<7x32x32xf32, #tpu.memory_space<vmem>>, vector<1x32x32xf32>
    %484 = vector.shape_cast %483 : vector<1x32x32xf32> to vector<32x32xf32>
    %cst_227 = arith.constant dense<0.000000e+00> : vector<8x32xf32>
    %485 = tpu.matmul %0, %482, %cst_227 {dimension_numbers = #tpu.dot_dimension_numbers<[1], [0], [0], [1], [0, 0, 1, 1], [], []>} : vector<8x32xf32>, vector<32x32xf32>, vector<8x32xf32> -> vector<8x32xf32>
    %486 = arith.addf %485, %480 : vector<8x32xf32>
    %cst_228 = arith.constant dense<0.000000e+00> : vector<8x32xf32>
    %487 = tpu.matmul %486, %3, %cst_228 {dimension_numbers = #tpu.dot_dimension_numbers<[1], [0], [0], [1], [0, 0, 1, 1], [], []>} : vector<8x32xf32>, vector<32x32xf32>, vector<8x32xf32> -> vector<8x32xf32>
    %488 = vector.broadcast %5 : vector<1x32xf32> to vector<8x32xf32>
    %489 = arith.addf %487, %488 : vector<8x32xf32>
    %490 = math.tanh %489 : vector<8x32xf32>
    %491 = arith.addf %484, %482 : vector<32x32xf32>
    %cst_229 = arith.constant dense<0.000000e+00> : vector<32x32xf32>
    %492 = tpu.matmul %491, %7, %cst_229 {dimension_numbers = #tpu.dot_dimension_numbers<[1], [0], [0], [1], [0, 0, 1, 1], [], []>} : vector<32x32xf32>, vector<32x32xf32>, vector<32x32xf32> -> vector<32x32xf32>
    %493 = vector.broadcast %9 : vector<1x32xf32> to vector<32x32xf32>
    %494 = arith.addf %492, %493 : vector<32x32xf32>
    %495 = math.tanh %494 : vector<32x32xf32>
    %cst_230 = arith.constant dense<0.000000e+00> : vector<8x32xf32>
    %496 = tpu.matmul %0, %495, %cst_230 {dimension_numbers = #tpu.dot_dimension_numbers<[1], [0], [0], [1], [0, 0, 1, 1], [], []>} : vector<8x32xf32>, vector<32x32xf32>, vector<8x32xf32> -> vector<8x32xf32>
    %497 = arith.addf %496, %490 : vector<8x32xf32>
    %cst_231 = arith.constant dense<0.000000e+00> : vector<8x32xf32>
    %498 = tpu.matmul %497, %3, %cst_231 {dimension_numbers = #tpu.dot_dimension_numbers<[1], [0], [0], [1], [0, 0, 1, 1], [], []>} : vector<8x32xf32>, vector<32x32xf32>, vector<8x32xf32> -> vector<8x32xf32>
    %499 = vector.broadcast %5 : vector<1x32xf32> to vector<8x32xf32>
    %500 = arith.addf %498, %499 : vector<8x32xf32>
    %501 = math.tanh %500 : vector<8x32xf32>
    %cst_232 = arith.constant dense<0.000000e+00> : vector<8x32xf32>
    %502 = tpu.matmul %501, %11, %cst_232 {dimension_numbers = #tpu.dot_dimension_numbers<[1], [0], [0], [1], [0, 0, 1, 1], [], []>} : vector<8x32xf32>, vector<32x32xf32>, vector<8x32xf32> -> vector<8x32xf32>
    %503 = vector.broadcast %13 : vector<1x32xf32> to vector<8x32xf32>
    %504 = arith.addf %502, %503 : vector<8x32xf32>
    %505 = math.tanh %504 : vector<8x32xf32>
    %c3_233 = arith.constant 3 : index
    %c0_234 = arith.constant 0 : index
    %c0_235 = arith.constant 0 : index
    %506 = vector.load %arg4[%c3_233, %c0_234, %c0_235] : memref<7x8x1xf32, #tpu.memory_space<vmem>>, vector<1x8x1xf32>
    %507 = vector.shape_cast %506 : vector<1x8x1xf32> to vector<8x1xf32>
    %cst_236 = arith.constant 5.000000e-01 : f32
    %508 = vector.broadcast %cst_236 : f32 to vector<8x1xf32>
    %509 = arith.cmpf ogt, %507, %508 : vector<8x1xf32>
    %510 = vector.shape_cast %509 : vector<8x1xi1> to vector<8x1xi1>
    %511 = vector.broadcast %510 : vector<8x1xi1> to vector<8x32xi1>
    %512 = arith.select %511, %505, %480 : vector<8x32xi1>, vector<8x32xf32>
    %cst_237 = arith.constant dense<0.000000e+00> : vector<8x96xf32>
    %513 = tpu.matmul %512, %14, %cst_237 {dimension_numbers = #tpu.dot_dimension_numbers<[1], [0], [0], [1], [0, 0, 1, 1], [], []>} : vector<8x32xf32>, vector<32x96xf32>, vector<8x96xf32> -> vector<8x96xf32>
    %c3_238 = arith.constant 3 : index
    %c0_239 = arith.constant 0 : index
    %c0_240 = arith.constant 0 : index
    %514 = vector.load %arg3[%c3_238, %c0_239, %c0_240] : memref<7x8x96xf32, #tpu.memory_space<vmem>>, vector<1x8x96xf32>
    %515 = vector.shape_cast %514 : vector<1x8x96xf32> to vector<8x96xf32>
    %516 = arith.addf %513, %515 : vector<8x96xf32>
    %cst_241 = arith.constant dense<0.000000e+00> : vector<8x96xf32>
    %517 = tpu.matmul %395, %15, %cst_241 {dimension_numbers = #tpu.dot_dimension_numbers<[1], [0], [0], [1], [0, 0, 1, 1], [], []>} : vector<8x32xf32>, vector<32x96xf32>, vector<8x96xf32> -> vector<8x96xf32>
    %518 = vector.broadcast %16 : vector<1x96xf32> to vector<8x96xf32>
    %519 = arith.addf %517, %518 : vector<8x96xf32>
    %520 = vector.extract_strided_slice %516 {offsets = [0, 0], sizes = [8, 32], strides = [1, 1]} : vector<8x96xf32> to vector<8x32xf32>
    %521 = vector.extract_strided_slice %519 {offsets = [0, 0], sizes = [8, 32], strides = [1, 1]} : vector<8x96xf32> to vector<8x32xf32>
    %522 = arith.addf %520, %521 : vector<8x32xf32>
    %523 = arith.negf %522 : vector<8x32xf32>
    %524 = math.exp %523 : vector<8x32xf32>
    %cst_242 = arith.constant 1.000000e+00 : f32
    %525 = vector.broadcast %cst_242 : f32 to vector<8x32xf32>
    %526 = arith.addf %525, %524 : vector<8x32xf32>
    %527 = arith.divf %525, %526 : vector<8x32xf32>
    %528 = vector.extract_strided_slice %516 {offsets = [0, 32], sizes = [8, 32], strides = [1, 1]} : vector<8x96xf32> to vector<8x32xf32>
    %529 = vector.extract_strided_slice %519 {offsets = [0, 32], sizes = [8, 32], strides = [1, 1]} : vector<8x96xf32> to vector<8x32xf32>
    %530 = arith.addf %528, %529 : vector<8x32xf32>
    %531 = arith.negf %530 : vector<8x32xf32>
    %532 = math.exp %531 : vector<8x32xf32>
    %cst_243 = arith.constant 1.000000e+00 : f32
    %533 = vector.broadcast %cst_243 : f32 to vector<8x32xf32>
    %534 = arith.addf %533, %532 : vector<8x32xf32>
    %535 = arith.divf %533, %534 : vector<8x32xf32>
    %536 = vector.extract_strided_slice %516 {offsets = [0, 64], sizes = [8, 32], strides = [1, 1]} : vector<8x96xf32> to vector<8x32xf32>
    %537 = vector.extract_strided_slice %519 {offsets = [0, 64], sizes = [8, 32], strides = [1, 1]} : vector<8x96xf32> to vector<8x32xf32>
    %538 = arith.mulf %527, %537 : vector<8x32xf32>
    %539 = arith.addf %536, %538 : vector<8x32xf32>
    %540 = math.tanh %539 : vector<8x32xf32>
    %cst_244 = arith.constant 1.000000e+00 : f32
    %541 = vector.broadcast %cst_244 : f32 to vector<8x32xf32>
    %542 = arith.subf %541, %535 : vector<8x32xf32>
    %543 = arith.mulf %542, %540 : vector<8x32xf32>
    %544 = arith.mulf %535, %395 : vector<8x32xf32>
    %545 = arith.addf %543, %544 : vector<8x32xf32>
    %cst_245 = arith.constant dense<0.000000e+00> : vector<8x96xf32>
    %546 = tpu.matmul %545, %17, %cst_245 {dimension_numbers = #tpu.dot_dimension_numbers<[1], [0], [0], [1], [0, 0, 1, 1], [], []>} : vector<8x32xf32>, vector<32x96xf32>, vector<8x96xf32> -> vector<8x96xf32>
    %547 = vector.broadcast %19 : vector<1x96xf32> to vector<8x96xf32>
    %548 = arith.addf %546, %547 : vector<8x96xf32>
    %cst_246 = arith.constant dense<0.000000e+00> : vector<8x96xf32>
    %549 = tpu.matmul %427, %18, %cst_246 {dimension_numbers = #tpu.dot_dimension_numbers<[1], [0], [0], [1], [0, 0, 1, 1], [], []>} : vector<8x32xf32>, vector<32x96xf32>, vector<8x96xf32> -> vector<8x96xf32>
    %550 = vector.broadcast %20 : vector<1x96xf32> to vector<8x96xf32>
    %551 = arith.addf %549, %550 : vector<8x96xf32>
    %552 = vector.extract_strided_slice %548 {offsets = [0, 0], sizes = [8, 32], strides = [1, 1]} : vector<8x96xf32> to vector<8x32xf32>
    %553 = vector.extract_strided_slice %551 {offsets = [0, 0], sizes = [8, 32], strides = [1, 1]} : vector<8x96xf32> to vector<8x32xf32>
    %554 = arith.addf %552, %553 : vector<8x32xf32>
    %555 = arith.negf %554 : vector<8x32xf32>
    %556 = math.exp %555 : vector<8x32xf32>
    %cst_247 = arith.constant 1.000000e+00 : f32
    %557 = vector.broadcast %cst_247 : f32 to vector<8x32xf32>
    %558 = arith.addf %557, %556 : vector<8x32xf32>
    %559 = arith.divf %557, %558 : vector<8x32xf32>
    %560 = vector.extract_strided_slice %548 {offsets = [0, 32], sizes = [8, 32], strides = [1, 1]} : vector<8x96xf32> to vector<8x32xf32>
    %561 = vector.extract_strided_slice %551 {offsets = [0, 32], sizes = [8, 32], strides = [1, 1]} : vector<8x96xf32> to vector<8x32xf32>
    %562 = arith.addf %560, %561 : vector<8x32xf32>
    %563 = arith.negf %562 : vector<8x32xf32>
    %564 = math.exp %563 : vector<8x32xf32>
    %cst_248 = arith.constant 1.000000e+00 : f32
    %565 = vector.broadcast %cst_248 : f32 to vector<8x32xf32>
    %566 = arith.addf %565, %564 : vector<8x32xf32>
    %567 = arith.divf %565, %566 : vector<8x32xf32>
    %568 = vector.extract_strided_slice %548 {offsets = [0, 64], sizes = [8, 32], strides = [1, 1]} : vector<8x96xf32> to vector<8x32xf32>
    %569 = vector.extract_strided_slice %551 {offsets = [0, 64], sizes = [8, 32], strides = [1, 1]} : vector<8x96xf32> to vector<8x32xf32>
    %570 = arith.mulf %559, %569 : vector<8x32xf32>
    %571 = arith.addf %568, %570 : vector<8x32xf32>
    %572 = math.tanh %571 : vector<8x32xf32>
    %cst_249 = arith.constant 1.000000e+00 : f32
    %573 = vector.broadcast %cst_249 : f32 to vector<8x32xf32>
    %574 = arith.subf %573, %567 : vector<8x32xf32>
    %575 = arith.mulf %574, %572 : vector<8x32xf32>
    %576 = arith.mulf %567, %427 : vector<8x32xf32>
    %577 = arith.addf %575, %576 : vector<8x32xf32>
    %c3_250 = arith.constant 3 : index
    %c0_251 = arith.constant 0 : index
    %c0_252 = arith.constant 0 : index
    %578 = vector.load %arg6[%c3_250, %c0_251, %c0_252] : memref<7x24x56xf32, #tpu.memory_space<vmem>>, vector<1x24x56xf32>
    %579 = vector.shape_cast %578 : vector<1x24x56xf32> to vector<24x56xf32>
    %c0_253 = arith.constant 0 : index
    %c0_254 = arith.constant 0 : index
    %580 = vector.load %arg27[%c0_253, %c0_254] : memref<56x32xf32, #tpu.memory_space<vmem>>, vector<56x32xf32>
    %cst_255 = arith.constant dense<0.000000e+00> : vector<24x32xf32>
    %581 = tpu.matmul %579, %580, %cst_255 {dimension_numbers = #tpu.dot_dimension_numbers<[1], [0], [0], [1], [0, 0, 1, 1], [], []>} : vector<24x56xf32>, vector<56x32xf32>, vector<24x32xf32> -> vector<24x32xf32>
    %c3_256 = arith.constant 3 : index
    %c0_257 = arith.constant 0 : index
    %c0_258 = arith.constant 0 : index
    %582 = vector.load %arg5[%c3_256, %c0_257, %c0_258] : memref<7x24x32xf32, #tpu.memory_space<vmem>>, vector<1x24x32xf32>
    %583 = vector.shape_cast %582 : vector<1x24x32xf32> to vector<24x32xf32>
    %584 = tpu.concatenate %577, %581, %583 in 0 : vector<8x32xf32>, vector<24x32xf32>, vector<24x32xf32> -> vector<56x32xf32>
    %585 = vector.extract_strided_slice %584 {offsets = [0, 0], sizes = [32, 32], strides = [1, 1]} : vector<56x32xf32> to vector<32x32xf32>
    %cst_259 = arith.constant dense<0.000000e+00> : vector<24x32xf32>
    %586 = tpu.matmul %583, %585, %cst_259 {dimension_numbers = #tpu.dot_dimension_numbers<[1], [1], [0], [0], [0, 0, 1, 0], [], []>} : vector<24x32xf32>, vector<32x32xf32>, vector<24x32xf32> -> vector<24x32xf32>
    %cst_260 = arith.constant dense<0.000000e+00> : vector<56x64xf32>
    %587 = tpu.matmul %584, %21, %cst_260 {dimension_numbers = #tpu.dot_dimension_numbers<[1], [0], [0], [1], [0, 0, 1, 1], [], []>} : vector<56x32xf32>, vector<32x64xf32>, vector<56x64xf32> -> vector<56x64xf32>
    %588 = vector.broadcast %22 : vector<1x64xf32> to vector<56x64xf32>
    %589 = arith.addf %587, %588 : vector<56x64xf32>
    %590 = math.tanh %589 : vector<56x64xf32>
    %591 = vector.extract_strided_slice %590 {offsets = [0, 0], sizes = [32, 32], strides = [1, 1]} : vector<56x64xf32> to vector<32x32xf32>
    %cst_261 = arith.constant dense<0.000000e+00> : vector<1x32xf32>
    %592 = tpu.matmul %24, %591, %cst_261 {dimension_numbers = #tpu.dot_dimension_numbers<[1], [1], [0], [0], [0, 0, 1, 0], [], []>} : vector<1x32xf32>, vector<32x32xf32>, vector<1x32xf32> -> vector<1x32xf32>
    %593 = vector.extract_strided_slice %590 {offsets = [32, 32], sizes = [24, 32], strides = [1, 1]} : vector<56x64xf32> to vector<24x32xf32>
    %594 = vector.broadcast %23 : vector<1x32xf32> to vector<24x32xf32>
    %595 = arith.mulf %593, %594 : vector<24x32xf32>
    %cst_262 = arith.constant dense<0.000000e+00> : vector<24xf32>
    %596 = vector.multi_reduction <add>, %595, %cst_262 [1] : vector<24x32xf32> to vector<24xf32>
    %597 = vector.shape_cast %596 : vector<24xf32> to vector<24x1xf32>
    %598 = vector.broadcast %597 : vector<24x1xf32> to vector<24x32xf32>
    %599 = vector.broadcast %592 : vector<1x32xf32> to vector<24x32xf32>
    %600 = arith.addf %598, %599 : vector<24x32xf32>
    %601 = vector.broadcast %25 : vector<1x1xf32> to vector<24x32xf32>
    %602 = arith.addf %600, %601 : vector<24x32xf32>
    %c3_263 = arith.constant 3 : index
    %c0_264 = arith.constant 0 : index
    %c0_265 = arith.constant 0 : index
    %603 = vector.load %arg7[%c3_263, %c0_264, %c0_265] : memref<7x24x32xf32, #tpu.memory_space<vmem>>, vector<1x24x32xf32>
    %604 = vector.shape_cast %603 : vector<1x24x32xf32> to vector<24x32xf32>
    %605 = arith.addf %602, %604 : vector<24x32xf32>
    %cst_266 = arith.constant dense<0xFF800000> : vector<24xf32>
    %606 = vector.multi_reduction <maximumf>, %605, %cst_266 [1] : vector<24x32xf32> to vector<24xf32>
    %607 = vector.shape_cast %606 : vector<24xf32> to vector<24x1xf32>
    %608 = vector.broadcast %607 : vector<24x1xf32> to vector<24x32xf32>
    %609 = arith.subf %605, %608 : vector<24x32xf32>
    %610 = math.exp %609 : vector<24x32xf32>
    %cst_267 = arith.constant dense<0.000000e+00> : vector<24xf32>
    %611 = vector.multi_reduction <add>, %610, %cst_267 [1] : vector<24x32xf32> to vector<24xf32>
    %612 = vector.shape_cast %611 : vector<24xf32> to vector<24x1xf32>
    %613 = tpu.reciprocal %612 {approx = true} : vector<24x1xf32> -> vector<24x1xf32>
    %614 = vector.broadcast %613 : vector<24x1xf32> to vector<24x32xf32>
    %615 = arith.mulf %610, %614 : vector<24x32xf32>
    %616 = arith.mulf %615, %586 : vector<24x32xf32>
    %cst_268 = arith.constant dense<0.000000e+00> : vector<24xf32>
    %617 = vector.multi_reduction <add>, %616, %cst_268 [1] : vector<24x32xf32> to vector<24xf32>
    %618 = vector.shape_cast %617 : vector<24xf32> to vector<24x1xf32>
    %cst_269 = arith.constant dense<0.000000e+00> : vector<8x1xf32>
    %619 = tpu.matmul %1, %618, %cst_269 {dimension_numbers = #tpu.dot_dimension_numbers<[1], [0], [0], [1], [0, 0, 1, 1], [], []>} : vector<8x24xf32>, vector<24x1xf32>, vector<8x1xf32> -> vector<8x1xf32>
    %620 = arith.negf %619 : vector<8x1xf32>
    %621 = math.exp %620 : vector<8x1xf32>
    %cst_270 = arith.constant 1.000000e+00 : f32
    %622 = vector.broadcast %cst_270 : f32 to vector<8x1xf32>
    %623 = arith.addf %622, %621 : vector<8x1xf32>
    %624 = arith.divf %622, %623 : vector<8x1xf32>
    %c3_271 = arith.constant 3 : index
    %c0_272 = arith.constant 0 : index
    %c0_273 = arith.constant 0 : index
    %625 = vector.load %arg26[%c3_271, %c0_272, %c0_273] : memref<7x8x1xf32, #tpu.memory_space<vmem>>, vector<1x8x1xf32>
    %626 = vector.shape_cast %625 : vector<1x8x1xf32> to vector<8x1xf32>
    %627 = vector.shape_cast %624 : vector<8x1xf32> to vector<1x8x1xf32>
    tpu.vector_store %arg26[%c3_271, %c0_272, %c0_273], %627 {strides = array<i32>} : memref<7x8x1xf32, #tpu.memory_space<vmem>>, vector<1x8x1xf32>,
    %c24 = arith.constant 24 : index
    %c0_274 = arith.constant 0 : index
    %628 = vector.load %arg27[%c24, %c0_274] : memref<56x32xf32, #tpu.memory_space<vmem>>, vector<8x32xf32>
    tpu.vector_store %arg27[%c24, %c0_274], %577 {strides = array<i32>} : memref<56x32xf32, #tpu.memory_space<vmem>>, vector<8x32xf32>,
    %c4 = arith.constant 4 : index
    %c0_275 = arith.constant 0 : index
    %c0_276 = arith.constant 0 : index
    %629 = vector.load %arg0[%c4, %c0_275, %c0_276] : memref<7x8x32xf32, #tpu.memory_space<vmem>>, vector<1x8x32xf32>
    %630 = vector.shape_cast %629 : vector<1x8x32xf32> to vector<8x32xf32>
    %c4_277 = arith.constant 4 : index
    %c0_278 = arith.constant 0 : index
    %c0_279 = arith.constant 0 : index
    %631 = vector.load %arg1[%c4_277, %c0_278, %c0_279] : memref<7x32x32xf32, #tpu.memory_space<vmem>>, vector<1x32x32xf32>
    %632 = vector.shape_cast %631 : vector<1x32x32xf32> to vector<32x32xf32>
    %c4_280 = arith.constant 4 : index
    %c0_281 = arith.constant 0 : index
    %c0_282 = arith.constant 0 : index
    %633 = vector.load %arg2[%c4_280, %c0_281, %c0_282] : memref<7x32x32xf32, #tpu.memory_space<vmem>>, vector<1x32x32xf32>
    %634 = vector.shape_cast %633 : vector<1x32x32xf32> to vector<32x32xf32>
    %cst_283 = arith.constant dense<0.000000e+00> : vector<8x32xf32>
    %635 = tpu.matmul %0, %632, %cst_283 {dimension_numbers = #tpu.dot_dimension_numbers<[1], [0], [0], [1], [0, 0, 1, 1], [], []>} : vector<8x32xf32>, vector<32x32xf32>, vector<8x32xf32> -> vector<8x32xf32>
    %636 = arith.addf %635, %630 : vector<8x32xf32>
    %cst_284 = arith.constant dense<0.000000e+00> : vector<8x32xf32>
    %637 = tpu.matmul %636, %3, %cst_284 {dimension_numbers = #tpu.dot_dimension_numbers<[1], [0], [0], [1], [0, 0, 1, 1], [], []>} : vector<8x32xf32>, vector<32x32xf32>, vector<8x32xf32> -> vector<8x32xf32>
    %638 = vector.broadcast %5 : vector<1x32xf32> to vector<8x32xf32>
    %639 = arith.addf %637, %638 : vector<8x32xf32>
    %640 = math.tanh %639 : vector<8x32xf32>
    %641 = arith.addf %634, %632 : vector<32x32xf32>
    %cst_285 = arith.constant dense<0.000000e+00> : vector<32x32xf32>
    %642 = tpu.matmul %641, %7, %cst_285 {dimension_numbers = #tpu.dot_dimension_numbers<[1], [0], [0], [1], [0, 0, 1, 1], [], []>} : vector<32x32xf32>, vector<32x32xf32>, vector<32x32xf32> -> vector<32x32xf32>
    %643 = vector.broadcast %9 : vector<1x32xf32> to vector<32x32xf32>
    %644 = arith.addf %642, %643 : vector<32x32xf32>
    %645 = math.tanh %644 : vector<32x32xf32>
    %cst_286 = arith.constant dense<0.000000e+00> : vector<8x32xf32>
    %646 = tpu.matmul %0, %645, %cst_286 {dimension_numbers = #tpu.dot_dimension_numbers<[1], [0], [0], [1], [0, 0, 1, 1], [], []>} : vector<8x32xf32>, vector<32x32xf32>, vector<8x32xf32> -> vector<8x32xf32>
    %647 = arith.addf %646, %640 : vector<8x32xf32>
    %cst_287 = arith.constant dense<0.000000e+00> : vector<8x32xf32>
    %648 = tpu.matmul %647, %3, %cst_287 {dimension_numbers = #tpu.dot_dimension_numbers<[1], [0], [0], [1], [0, 0, 1, 1], [], []>} : vector<8x32xf32>, vector<32x32xf32>, vector<8x32xf32> -> vector<8x32xf32>
    %649 = vector.broadcast %5 : vector<1x32xf32> to vector<8x32xf32>
    %650 = arith.addf %648, %649 : vector<8x32xf32>
    %651 = math.tanh %650 : vector<8x32xf32>
    %cst_288 = arith.constant dense<0.000000e+00> : vector<8x32xf32>
    %652 = tpu.matmul %651, %11, %cst_288 {dimension_numbers = #tpu.dot_dimension_numbers<[1], [0], [0], [1], [0, 0, 1, 1], [], []>} : vector<8x32xf32>, vector<32x32xf32>, vector<8x32xf32> -> vector<8x32xf32>
    %653 = vector.broadcast %13 : vector<1x32xf32> to vector<8x32xf32>
    %654 = arith.addf %652, %653 : vector<8x32xf32>
    %655 = math.tanh %654 : vector<8x32xf32>
    %c4_289 = arith.constant 4 : index
    %c0_290 = arith.constant 0 : index
    %c0_291 = arith.constant 0 : index
    %656 = vector.load %arg4[%c4_289, %c0_290, %c0_291] : memref<7x8x1xf32, #tpu.memory_space<vmem>>, vector<1x8x1xf32>
    %657 = vector.shape_cast %656 : vector<1x8x1xf32> to vector<8x1xf32>
    %cst_292 = arith.constant 5.000000e-01 : f32
    %658 = vector.broadcast %cst_292 : f32 to vector<8x1xf32>
    %659 = arith.cmpf ogt, %657, %658 : vector<8x1xf32>
    %660 = vector.shape_cast %659 : vector<8x1xi1> to vector<8x1xi1>
    %661 = vector.broadcast %660 : vector<8x1xi1> to vector<8x32xi1>
    %662 = arith.select %661, %655, %630 : vector<8x32xi1>, vector<8x32xf32>
    %cst_293 = arith.constant dense<0.000000e+00> : vector<8x96xf32>
    %663 = tpu.matmul %662, %14, %cst_293 {dimension_numbers = #tpu.dot_dimension_numbers<[1], [0], [0], [1], [0, 0, 1, 1], [], []>} : vector<8x32xf32>, vector<32x96xf32>, vector<8x96xf32> -> vector<8x96xf32>
    %c4_294 = arith.constant 4 : index
    %c0_295 = arith.constant 0 : index
    %c0_296 = arith.constant 0 : index
    %664 = vector.load %arg3[%c4_294, %c0_295, %c0_296] : memref<7x8x96xf32, #tpu.memory_space<vmem>>, vector<1x8x96xf32>
    %665 = vector.shape_cast %664 : vector<1x8x96xf32> to vector<8x96xf32>
    %666 = arith.addf %663, %665 : vector<8x96xf32>
    %cst_297 = arith.constant dense<0.000000e+00> : vector<8x96xf32>
    %667 = tpu.matmul %545, %15, %cst_297 {dimension_numbers = #tpu.dot_dimension_numbers<[1], [0], [0], [1], [0, 0, 1, 1], [], []>} : vector<8x32xf32>, vector<32x96xf32>, vector<8x96xf32> -> vector<8x96xf32>
    %668 = vector.broadcast %16 : vector<1x96xf32> to vector<8x96xf32>
    %669 = arith.addf %667, %668 : vector<8x96xf32>
    %670 = vector.extract_strided_slice %666 {offsets = [0, 0], sizes = [8, 32], strides = [1, 1]} : vector<8x96xf32> to vector<8x32xf32>
    %671 = vector.extract_strided_slice %669 {offsets = [0, 0], sizes = [8, 32], strides = [1, 1]} : vector<8x96xf32> to vector<8x32xf32>
    %672 = arith.addf %670, %671 : vector<8x32xf32>
    %673 = arith.negf %672 : vector<8x32xf32>
    %674 = math.exp %673 : vector<8x32xf32>
    %cst_298 = arith.constant 1.000000e+00 : f32
    %675 = vector.broadcast %cst_298 : f32 to vector<8x32xf32>
    %676 = arith.addf %675, %674 : vector<8x32xf32>
    %677 = arith.divf %675, %676 : vector<8x32xf32>
    %678 = vector.extract_strided_slice %666 {offsets = [0, 32], sizes = [8, 32], strides = [1, 1]} : vector<8x96xf32> to vector<8x32xf32>
    %679 = vector.extract_strided_slice %669 {offsets = [0, 32], sizes = [8, 32], strides = [1, 1]} : vector<8x96xf32> to vector<8x32xf32>
    %680 = arith.addf %678, %679 : vector<8x32xf32>
    %681 = arith.negf %680 : vector<8x32xf32>
    %682 = math.exp %681 : vector<8x32xf32>
    %cst_299 = arith.constant 1.000000e+00 : f32
    %683 = vector.broadcast %cst_299 : f32 to vector<8x32xf32>
    %684 = arith.addf %683, %682 : vector<8x32xf32>
    %685 = arith.divf %683, %684 : vector<8x32xf32>
    %686 = vector.extract_strided_slice %666 {offsets = [0, 64], sizes = [8, 32], strides = [1, 1]} : vector<8x96xf32> to vector<8x32xf32>
    %687 = vector.extract_strided_slice %669 {offsets = [0, 64], sizes = [8, 32], strides = [1, 1]} : vector<8x96xf32> to vector<8x32xf32>
    %688 = arith.mulf %677, %687 : vector<8x32xf32>
    %689 = arith.addf %686, %688 : vector<8x32xf32>
    %690 = math.tanh %689 : vector<8x32xf32>
    %cst_300 = arith.constant 1.000000e+00 : f32
    %691 = vector.broadcast %cst_300 : f32 to vector<8x32xf32>
    %692 = arith.subf %691, %685 : vector<8x32xf32>
    %693 = arith.mulf %692, %690 : vector<8x32xf32>
    %694 = arith.mulf %685, %545 : vector<8x32xf32>
    %695 = arith.addf %693, %694 : vector<8x32xf32>
    %cst_301 = arith.constant dense<0.000000e+00> : vector<8x96xf32>
    %696 = tpu.matmul %695, %17, %cst_301 {dimension_numbers = #tpu.dot_dimension_numbers<[1], [0], [0], [1], [0, 0, 1, 1], [], []>} : vector<8x32xf32>, vector<32x96xf32>, vector<8x96xf32> -> vector<8x96xf32>
    %697 = vector.broadcast %19 : vector<1x96xf32> to vector<8x96xf32>
    %698 = arith.addf %696, %697 : vector<8x96xf32>
    %cst_302 = arith.constant dense<0.000000e+00> : vector<8x96xf32>
    %699 = tpu.matmul %577, %18, %cst_302 {dimension_numbers = #tpu.dot_dimension_numbers<[1], [0], [0], [1], [0, 0, 1, 1], [], []>} : vector<8x32xf32>, vector<32x96xf32>, vector<8x96xf32> -> vector<8x96xf32>
    %700 = vector.broadcast %20 : vector<1x96xf32> to vector<8x96xf32>
    %701 = arith.addf %699, %700 : vector<8x96xf32>
    %702 = vector.extract_strided_slice %698 {offsets = [0, 0], sizes = [8, 32], strides = [1, 1]} : vector<8x96xf32> to vector<8x32xf32>
    %703 = vector.extract_strided_slice %701 {offsets = [0, 0], sizes = [8, 32], strides = [1, 1]} : vector<8x96xf32> to vector<8x32xf32>
    %704 = arith.addf %702, %703 : vector<8x32xf32>
    %705 = arith.negf %704 : vector<8x32xf32>
    %706 = math.exp %705 : vector<8x32xf32>
    %cst_303 = arith.constant 1.000000e+00 : f32
    %707 = vector.broadcast %cst_303 : f32 to vector<8x32xf32>
    %708 = arith.addf %707, %706 : vector<8x32xf32>
    %709 = arith.divf %707, %708 : vector<8x32xf32>
    %710 = vector.extract_strided_slice %698 {offsets = [0, 32], sizes = [8, 32], strides = [1, 1]} : vector<8x96xf32> to vector<8x32xf32>
    %711 = vector.extract_strided_slice %701 {offsets = [0, 32], sizes = [8, 32], strides = [1, 1]} : vector<8x96xf32> to vector<8x32xf32>
    %712 = arith.addf %710, %711 : vector<8x32xf32>
    %713 = arith.negf %712 : vector<8x32xf32>
    %714 = math.exp %713 : vector<8x32xf32>
    %cst_304 = arith.constant 1.000000e+00 : f32
    %715 = vector.broadcast %cst_304 : f32 to vector<8x32xf32>
    %716 = arith.addf %715, %714 : vector<8x32xf32>
    %717 = arith.divf %715, %716 : vector<8x32xf32>
    %718 = vector.extract_strided_slice %698 {offsets = [0, 64], sizes = [8, 32], strides = [1, 1]} : vector<8x96xf32> to vector<8x32xf32>
    %719 = vector.extract_strided_slice %701 {offsets = [0, 64], sizes = [8, 32], strides = [1, 1]} : vector<8x96xf32> to vector<8x32xf32>
    %720 = arith.mulf %709, %719 : vector<8x32xf32>
    %721 = arith.addf %718, %720 : vector<8x32xf32>
    %722 = math.tanh %721 : vector<8x32xf32>
    %cst_305 = arith.constant 1.000000e+00 : f32
    %723 = vector.broadcast %cst_305 : f32 to vector<8x32xf32>
    %724 = arith.subf %723, %717 : vector<8x32xf32>
    %725 = arith.mulf %724, %722 : vector<8x32xf32>
    %726 = arith.mulf %717, %577 : vector<8x32xf32>
    %727 = arith.addf %725, %726 : vector<8x32xf32>
    %c4_306 = arith.constant 4 : index
    %c0_307 = arith.constant 0 : index
    %c0_308 = arith.constant 0 : index
    %728 = vector.load %arg6[%c4_306, %c0_307, %c0_308] : memref<7x24x56xf32, #tpu.memory_space<vmem>>, vector<1x24x56xf32>
    %729 = vector.shape_cast %728 : vector<1x24x56xf32> to vector<24x56xf32>
    %c0_309 = arith.constant 0 : index
    %c0_310 = arith.constant 0 : index
    %730 = vector.load %arg27[%c0_309, %c0_310] : memref<56x32xf32, #tpu.memory_space<vmem>>, vector<56x32xf32>
    %cst_311 = arith.constant dense<0.000000e+00> : vector<24x32xf32>
    %731 = tpu.matmul %729, %730, %cst_311 {dimension_numbers = #tpu.dot_dimension_numbers<[1], [0], [0], [1], [0, 0, 1, 1], [], []>} : vector<24x56xf32>, vector<56x32xf32>, vector<24x32xf32> -> vector<24x32xf32>
    %c4_312 = arith.constant 4 : index
    %c0_313 = arith.constant 0 : index
    %c0_314 = arith.constant 0 : index
    %732 = vector.load %arg5[%c4_312, %c0_313, %c0_314] : memref<7x24x32xf32, #tpu.memory_space<vmem>>, vector<1x24x32xf32>
    %733 = vector.shape_cast %732 : vector<1x24x32xf32> to vector<24x32xf32>
    %734 = tpu.concatenate %727, %731, %733 in 0 : vector<8x32xf32>, vector<24x32xf32>, vector<24x32xf32> -> vector<56x32xf32>
    %735 = vector.extract_strided_slice %734 {offsets = [0, 0], sizes = [32, 32], strides = [1, 1]} : vector<56x32xf32> to vector<32x32xf32>
    %cst_315 = arith.constant dense<0.000000e+00> : vector<24x32xf32>
    %736 = tpu.matmul %733, %735, %cst_315 {dimension_numbers = #tpu.dot_dimension_numbers<[1], [1], [0], [0], [0, 0, 1, 0], [], []>} : vector<24x32xf32>, vector<32x32xf32>, vector<24x32xf32> -> vector<24x32xf32>
    %cst_316 = arith.constant dense<0.000000e+00> : vector<56x64xf32>
    %737 = tpu.matmul %734, %21, %cst_316 {dimension_numbers = #tpu.dot_dimension_numbers<[1], [0], [0], [1], [0, 0, 1, 1], [], []>} : vector<56x32xf32>, vector<32x64xf32>, vector<56x64xf32> -> vector<56x64xf32>
    %738 = vector.broadcast %22 : vector<1x64xf32> to vector<56x64xf32>
    %739 = arith.addf %737, %738 : vector<56x64xf32>
    %740 = math.tanh %739 : vector<56x64xf32>
    %741 = vector.extract_strided_slice %740 {offsets = [0, 0], sizes = [32, 32], strides = [1, 1]} : vector<56x64xf32> to vector<32x32xf32>
    %cst_317 = arith.constant dense<0.000000e+00> : vector<1x32xf32>
    %742 = tpu.matmul %24, %741, %cst_317 {dimension_numbers = #tpu.dot_dimension_numbers<[1], [1], [0], [0], [0, 0, 1, 0], [], []>} : vector<1x32xf32>, vector<32x32xf32>, vector<1x32xf32> -> vector<1x32xf32>
    %743 = vector.extract_strided_slice %740 {offsets = [32, 32], sizes = [24, 32], strides = [1, 1]} : vector<56x64xf32> to vector<24x32xf32>
    %744 = vector.broadcast %23 : vector<1x32xf32> to vector<24x32xf32>
    %745 = arith.mulf %743, %744 : vector<24x32xf32>
    %cst_318 = arith.constant dense<0.000000e+00> : vector<24xf32>
    %746 = vector.multi_reduction <add>, %745, %cst_318 [1] : vector<24x32xf32> to vector<24xf32>
    %747 = vector.shape_cast %746 : vector<24xf32> to vector<24x1xf32>
    %748 = vector.broadcast %747 : vector<24x1xf32> to vector<24x32xf32>
    %749 = vector.broadcast %742 : vector<1x32xf32> to vector<24x32xf32>
    %750 = arith.addf %748, %749 : vector<24x32xf32>
    %751 = vector.broadcast %25 : vector<1x1xf32> to vector<24x32xf32>
    %752 = arith.addf %750, %751 : vector<24x32xf32>
    %c4_319 = arith.constant 4 : index
    %c0_320 = arith.constant 0 : index
    %c0_321 = arith.constant 0 : index
    %753 = vector.load %arg7[%c4_319, %c0_320, %c0_321] : memref<7x24x32xf32, #tpu.memory_space<vmem>>, vector<1x24x32xf32>
    %754 = vector.shape_cast %753 : vector<1x24x32xf32> to vector<24x32xf32>
    %755 = arith.addf %752, %754 : vector<24x32xf32>
    %cst_322 = arith.constant dense<0xFF800000> : vector<24xf32>
    %756 = vector.multi_reduction <maximumf>, %755, %cst_322 [1] : vector<24x32xf32> to vector<24xf32>
    %757 = vector.shape_cast %756 : vector<24xf32> to vector<24x1xf32>
    %758 = vector.broadcast %757 : vector<24x1xf32> to vector<24x32xf32>
    %759 = arith.subf %755, %758 : vector<24x32xf32>
    %760 = math.exp %759 : vector<24x32xf32>
    %cst_323 = arith.constant dense<0.000000e+00> : vector<24xf32>
    %761 = vector.multi_reduction <add>, %760, %cst_323 [1] : vector<24x32xf32> to vector<24xf32>
    %762 = vector.shape_cast %761 : vector<24xf32> to vector<24x1xf32>
    %763 = tpu.reciprocal %762 {approx = true} : vector<24x1xf32> -> vector<24x1xf32>
    %764 = vector.broadcast %763 : vector<24x1xf32> to vector<24x32xf32>
    %765 = arith.mulf %760, %764 : vector<24x32xf32>
    %766 = arith.mulf %765, %736 : vector<24x32xf32>
    %cst_324 = arith.constant dense<0.000000e+00> : vector<24xf32>
    %767 = vector.multi_reduction <add>, %766, %cst_324 [1] : vector<24x32xf32> to vector<24xf32>
    %768 = vector.shape_cast %767 : vector<24xf32> to vector<24x1xf32>
    %cst_325 = arith.constant dense<0.000000e+00> : vector<8x1xf32>
    %769 = tpu.matmul %1, %768, %cst_325 {dimension_numbers = #tpu.dot_dimension_numbers<[1], [0], [0], [1], [0, 0, 1, 1], [], []>} : vector<8x24xf32>, vector<24x1xf32>, vector<8x1xf32> -> vector<8x1xf32>
    %770 = arith.negf %769 : vector<8x1xf32>
    %771 = math.exp %770 : vector<8x1xf32>
    %cst_326 = arith.constant 1.000000e+00 : f32
    %772 = vector.broadcast %cst_326 : f32 to vector<8x1xf32>
    %773 = arith.addf %772, %771 : vector<8x1xf32>
    %774 = arith.divf %772, %773 : vector<8x1xf32>
    %c4_327 = arith.constant 4 : index
    %c0_328 = arith.constant 0 : index
    %c0_329 = arith.constant 0 : index
    %775 = vector.load %arg26[%c4_327, %c0_328, %c0_329] : memref<7x8x1xf32, #tpu.memory_space<vmem>>, vector<1x8x1xf32>
    %776 = vector.shape_cast %775 : vector<1x8x1xf32> to vector<8x1xf32>
    %777 = vector.shape_cast %774 : vector<8x1xf32> to vector<1x8x1xf32>
    tpu.vector_store %arg26[%c4_327, %c0_328, %c0_329], %777 {strides = array<i32>} : memref<7x8x1xf32, #tpu.memory_space<vmem>>, vector<1x8x1xf32>,
    %c32 = arith.constant 32 : index
    %c0_330 = arith.constant 0 : index
    %778 = vector.load %arg27[%c32, %c0_330] : memref<56x32xf32, #tpu.memory_space<vmem>>, vector<8x32xf32>
    tpu.vector_store %arg27[%c32, %c0_330], %727 {strides = array<i32>} : memref<56x32xf32, #tpu.memory_space<vmem>>, vector<8x32xf32>,
    %c5 = arith.constant 5 : index
    %c0_331 = arith.constant 0 : index
    %c0_332 = arith.constant 0 : index
    %779 = vector.load %arg0[%c5, %c0_331, %c0_332] : memref<7x8x32xf32, #tpu.memory_space<vmem>>, vector<1x8x32xf32>
    %780 = vector.shape_cast %779 : vector<1x8x32xf32> to vector<8x32xf32>
    %c5_333 = arith.constant 5 : index
    %c0_334 = arith.constant 0 : index
    %c0_335 = arith.constant 0 : index
    %781 = vector.load %arg1[%c5_333, %c0_334, %c0_335] : memref<7x32x32xf32, #tpu.memory_space<vmem>>, vector<1x32x32xf32>
    %782 = vector.shape_cast %781 : vector<1x32x32xf32> to vector<32x32xf32>
    %c5_336 = arith.constant 5 : index
    %c0_337 = arith.constant 0 : index
    %c0_338 = arith.constant 0 : index
    %783 = vector.load %arg2[%c5_336, %c0_337, %c0_338] : memref<7x32x32xf32, #tpu.memory_space<vmem>>, vector<1x32x32xf32>
    %784 = vector.shape_cast %783 : vector<1x32x32xf32> to vector<32x32xf32>
    %cst_339 = arith.constant dense<0.000000e+00> : vector<8x32xf32>
    %785 = tpu.matmul %0, %782, %cst_339 {dimension_numbers = #tpu.dot_dimension_numbers<[1], [0], [0], [1], [0, 0, 1, 1], [], []>} : vector<8x32xf32>, vector<32x32xf32>, vector<8x32xf32> -> vector<8x32xf32>
    %786 = arith.addf %785, %780 : vector<8x32xf32>
    %cst_340 = arith.constant dense<0.000000e+00> : vector<8x32xf32>
    %787 = tpu.matmul %786, %3, %cst_340 {dimension_numbers = #tpu.dot_dimension_numbers<[1], [0], [0], [1], [0, 0, 1, 1], [], []>} : vector<8x32xf32>, vector<32x32xf32>, vector<8x32xf32> -> vector<8x32xf32>
    %788 = vector.broadcast %5 : vector<1x32xf32> to vector<8x32xf32>
    %789 = arith.addf %787, %788 : vector<8x32xf32>
    %790 = math.tanh %789 : vector<8x32xf32>
    %791 = arith.addf %784, %782 : vector<32x32xf32>
    %cst_341 = arith.constant dense<0.000000e+00> : vector<32x32xf32>
    %792 = tpu.matmul %791, %7, %cst_341 {dimension_numbers = #tpu.dot_dimension_numbers<[1], [0], [0], [1], [0, 0, 1, 1], [], []>} : vector<32x32xf32>, vector<32x32xf32>, vector<32x32xf32> -> vector<32x32xf32>
    %793 = vector.broadcast %9 : vector<1x32xf32> to vector<32x32xf32>
    %794 = arith.addf %792, %793 : vector<32x32xf32>
    %795 = math.tanh %794 : vector<32x32xf32>
    %cst_342 = arith.constant dense<0.000000e+00> : vector<8x32xf32>
    %796 = tpu.matmul %0, %795, %cst_342 {dimension_numbers = #tpu.dot_dimension_numbers<[1], [0], [0], [1], [0, 0, 1, 1], [], []>} : vector<8x32xf32>, vector<32x32xf32>, vector<8x32xf32> -> vector<8x32xf32>
    %797 = arith.addf %796, %790 : vector<8x32xf32>
    %cst_343 = arith.constant dense<0.000000e+00> : vector<8x32xf32>
    %798 = tpu.matmul %797, %3, %cst_343 {dimension_numbers = #tpu.dot_dimension_numbers<[1], [0], [0], [1], [0, 0, 1, 1], [], []>} : vector<8x32xf32>, vector<32x32xf32>, vector<8x32xf32> -> vector<8x32xf32>
    %799 = vector.broadcast %5 : vector<1x32xf32> to vector<8x32xf32>
    %800 = arith.addf %798, %799 : vector<8x32xf32>
    %801 = math.tanh %800 : vector<8x32xf32>
    %cst_344 = arith.constant dense<0.000000e+00> : vector<8x32xf32>
    %802 = tpu.matmul %801, %11, %cst_344 {dimension_numbers = #tpu.dot_dimension_numbers<[1], [0], [0], [1], [0, 0, 1, 1], [], []>} : vector<8x32xf32>, vector<32x32xf32>, vector<8x32xf32> -> vector<8x32xf32>
    %803 = vector.broadcast %13 : vector<1x32xf32> to vector<8x32xf32>
    %804 = arith.addf %802, %803 : vector<8x32xf32>
    %805 = math.tanh %804 : vector<8x32xf32>
    %c5_345 = arith.constant 5 : index
    %c0_346 = arith.constant 0 : index
    %c0_347 = arith.constant 0 : index
    %806 = vector.load %arg4[%c5_345, %c0_346, %c0_347] : memref<7x8x1xf32, #tpu.memory_space<vmem>>, vector<1x8x1xf32>
    %807 = vector.shape_cast %806 : vector<1x8x1xf32> to vector<8x1xf32>
    %cst_348 = arith.constant 5.000000e-01 : f32
    %808 = vector.broadcast %cst_348 : f32 to vector<8x1xf32>
    %809 = arith.cmpf ogt, %807, %808 : vector<8x1xf32>
    %810 = vector.shape_cast %809 : vector<8x1xi1> to vector<8x1xi1>
    %811 = vector.broadcast %810 : vector<8x1xi1> to vector<8x32xi1>
    %812 = arith.select %811, %805, %780 : vector<8x32xi1>, vector<8x32xf32>
    %cst_349 = arith.constant dense<0.000000e+00> : vector<8x96xf32>
    %813 = tpu.matmul %812, %14, %cst_349 {dimension_numbers = #tpu.dot_dimension_numbers<[1], [0], [0], [1], [0, 0, 1, 1], [], []>} : vector<8x32xf32>, vector<32x96xf32>, vector<8x96xf32> -> vector<8x96xf32>
    %c5_350 = arith.constant 5 : index
    %c0_351 = arith.constant 0 : index
    %c0_352 = arith.constant 0 : index
    %814 = vector.load %arg3[%c5_350, %c0_351, %c0_352] : memref<7x8x96xf32, #tpu.memory_space<vmem>>, vector<1x8x96xf32>
    %815 = vector.shape_cast %814 : vector<1x8x96xf32> to vector<8x96xf32>
    %816 = arith.addf %813, %815 : vector<8x96xf32>
    %cst_353 = arith.constant dense<0.000000e+00> : vector<8x96xf32>
    %817 = tpu.matmul %695, %15, %cst_353 {dimension_numbers = #tpu.dot_dimension_numbers<[1], [0], [0], [1], [0, 0, 1, 1], [], []>} : vector<8x32xf32>, vector<32x96xf32>, vector<8x96xf32> -> vector<8x96xf32>
    %818 = vector.broadcast %16 : vector<1x96xf32> to vector<8x96xf32>
    %819 = arith.addf %817, %818 : vector<8x96xf32>
    %820 = vector.extract_strided_slice %816 {offsets = [0, 0], sizes = [8, 32], strides = [1, 1]} : vector<8x96xf32> to vector<8x32xf32>
    %821 = vector.extract_strided_slice %819 {offsets = [0, 0], sizes = [8, 32], strides = [1, 1]} : vector<8x96xf32> to vector<8x32xf32>
    %822 = arith.addf %820, %821 : vector<8x32xf32>
    %823 = arith.negf %822 : vector<8x32xf32>
    %824 = math.exp %823 : vector<8x32xf32>
    %cst_354 = arith.constant 1.000000e+00 : f32
    %825 = vector.broadcast %cst_354 : f32 to vector<8x32xf32>
    %826 = arith.addf %825, %824 : vector<8x32xf32>
    %827 = arith.divf %825, %826 : vector<8x32xf32>
    %828 = vector.extract_strided_slice %816 {offsets = [0, 32], sizes = [8, 32], strides = [1, 1]} : vector<8x96xf32> to vector<8x32xf32>
    %829 = vector.extract_strided_slice %819 {offsets = [0, 32], sizes = [8, 32], strides = [1, 1]} : vector<8x96xf32> to vector<8x32xf32>
    %830 = arith.addf %828, %829 : vector<8x32xf32>
    %831 = arith.negf %830 : vector<8x32xf32>
    %832 = math.exp %831 : vector<8x32xf32>
    %cst_355 = arith.constant 1.000000e+00 : f32
    %833 = vector.broadcast %cst_355 : f32 to vector<8x32xf32>
    %834 = arith.addf %833, %832 : vector<8x32xf32>
    %835 = arith.divf %833, %834 : vector<8x32xf32>
    %836 = vector.extract_strided_slice %816 {offsets = [0, 64], sizes = [8, 32], strides = [1, 1]} : vector<8x96xf32> to vector<8x32xf32>
    %837 = vector.extract_strided_slice %819 {offsets = [0, 64], sizes = [8, 32], strides = [1, 1]} : vector<8x96xf32> to vector<8x32xf32>
    %838 = arith.mulf %827, %837 : vector<8x32xf32>
    %839 = arith.addf %836, %838 : vector<8x32xf32>
    %840 = math.tanh %839 : vector<8x32xf32>
    %cst_356 = arith.constant 1.000000e+00 : f32
    %841 = vector.broadcast %cst_356 : f32 to vector<8x32xf32>
    %842 = arith.subf %841, %835 : vector<8x32xf32>
    %843 = arith.mulf %842, %840 : vector<8x32xf32>
    %844 = arith.mulf %835, %695 : vector<8x32xf32>
    %845 = arith.addf %843, %844 : vector<8x32xf32>
    %cst_357 = arith.constant dense<0.000000e+00> : vector<8x96xf32>
    %846 = tpu.matmul %845, %17, %cst_357 {dimension_numbers = #tpu.dot_dimension_numbers<[1], [0], [0], [1], [0, 0, 1, 1], [], []>} : vector<8x32xf32>, vector<32x96xf32>, vector<8x96xf32> -> vector<8x96xf32>
    %847 = vector.broadcast %19 : vector<1x96xf32> to vector<8x96xf32>
    %848 = arith.addf %846, %847 : vector<8x96xf32>
    %cst_358 = arith.constant dense<0.000000e+00> : vector<8x96xf32>
    %849 = tpu.matmul %727, %18, %cst_358 {dimension_numbers = #tpu.dot_dimension_numbers<[1], [0], [0], [1], [0, 0, 1, 1], [], []>} : vector<8x32xf32>, vector<32x96xf32>, vector<8x96xf32> -> vector<8x96xf32>
    %850 = vector.broadcast %20 : vector<1x96xf32> to vector<8x96xf32>
    %851 = arith.addf %849, %850 : vector<8x96xf32>
    %852 = vector.extract_strided_slice %848 {offsets = [0, 0], sizes = [8, 32], strides = [1, 1]} : vector<8x96xf32> to vector<8x32xf32>
    %853 = vector.extract_strided_slice %851 {offsets = [0, 0], sizes = [8, 32], strides = [1, 1]} : vector<8x96xf32> to vector<8x32xf32>
    %854 = arith.addf %852, %853 : vector<8x32xf32>
    %855 = arith.negf %854 : vector<8x32xf32>
    %856 = math.exp %855 : vector<8x32xf32>
    %cst_359 = arith.constant 1.000000e+00 : f32
    %857 = vector.broadcast %cst_359 : f32 to vector<8x32xf32>
    %858 = arith.addf %857, %856 : vector<8x32xf32>
    %859 = arith.divf %857, %858 : vector<8x32xf32>
    %860 = vector.extract_strided_slice %848 {offsets = [0, 32], sizes = [8, 32], strides = [1, 1]} : vector<8x96xf32> to vector<8x32xf32>
    %861 = vector.extract_strided_slice %851 {offsets = [0, 32], sizes = [8, 32], strides = [1, 1]} : vector<8x96xf32> to vector<8x32xf32>
    %862 = arith.addf %860, %861 : vector<8x32xf32>
    %863 = arith.negf %862 : vector<8x32xf32>
    %864 = math.exp %863 : vector<8x32xf32>
    %cst_360 = arith.constant 1.000000e+00 : f32
    %865 = vector.broadcast %cst_360 : f32 to vector<8x32xf32>
    %866 = arith.addf %865, %864 : vector<8x32xf32>
    %867 = arith.divf %865, %866 : vector<8x32xf32>
    %868 = vector.extract_strided_slice %848 {offsets = [0, 64], sizes = [8, 32], strides = [1, 1]} : vector<8x96xf32> to vector<8x32xf32>
    %869 = vector.extract_strided_slice %851 {offsets = [0, 64], sizes = [8, 32], strides = [1, 1]} : vector<8x96xf32> to vector<8x32xf32>
    %870 = arith.mulf %859, %869 : vector<8x32xf32>
    %871 = arith.addf %868, %870 : vector<8x32xf32>
    %872 = math.tanh %871 : vector<8x32xf32>
    %cst_361 = arith.constant 1.000000e+00 : f32
    %873 = vector.broadcast %cst_361 : f32 to vector<8x32xf32>
    %874 = arith.subf %873, %867 : vector<8x32xf32>
    %875 = arith.mulf %874, %872 : vector<8x32xf32>
    %876 = arith.mulf %867, %727 : vector<8x32xf32>
    %877 = arith.addf %875, %876 : vector<8x32xf32>
    %c5_362 = arith.constant 5 : index
    %c0_363 = arith.constant 0 : index
    %c0_364 = arith.constant 0 : index
    %878 = vector.load %arg6[%c5_362, %c0_363, %c0_364] : memref<7x24x56xf32, #tpu.memory_space<vmem>>, vector<1x24x56xf32>
    %879 = vector.shape_cast %878 : vector<1x24x56xf32> to vector<24x56xf32>
    %c0_365 = arith.constant 0 : index
    %c0_366 = arith.constant 0 : index
    %880 = vector.load %arg27[%c0_365, %c0_366] : memref<56x32xf32, #tpu.memory_space<vmem>>, vector<56x32xf32>
    %cst_367 = arith.constant dense<0.000000e+00> : vector<24x32xf32>
    %881 = tpu.matmul %879, %880, %cst_367 {dimension_numbers = #tpu.dot_dimension_numbers<[1], [0], [0], [1], [0, 0, 1, 1], [], []>} : vector<24x56xf32>, vector<56x32xf32>, vector<24x32xf32> -> vector<24x32xf32>
    %c5_368 = arith.constant 5 : index
    %c0_369 = arith.constant 0 : index
    %c0_370 = arith.constant 0 : index
    %882 = vector.load %arg5[%c5_368, %c0_369, %c0_370] : memref<7x24x32xf32, #tpu.memory_space<vmem>>, vector<1x24x32xf32>
    %883 = vector.shape_cast %882 : vector<1x24x32xf32> to vector<24x32xf32>
    %884 = tpu.concatenate %877, %881, %883 in 0 : vector<8x32xf32>, vector<24x32xf32>, vector<24x32xf32> -> vector<56x32xf32>
    %885 = vector.extract_strided_slice %884 {offsets = [0, 0], sizes = [32, 32], strides = [1, 1]} : vector<56x32xf32> to vector<32x32xf32>
    %cst_371 = arith.constant dense<0.000000e+00> : vector<24x32xf32>
    %886 = tpu.matmul %883, %885, %cst_371 {dimension_numbers = #tpu.dot_dimension_numbers<[1], [1], [0], [0], [0, 0, 1, 0], [], []>} : vector<24x32xf32>, vector<32x32xf32>, vector<24x32xf32> -> vector<24x32xf32>
    %cst_372 = arith.constant dense<0.000000e+00> : vector<56x64xf32>
    %887 = tpu.matmul %884, %21, %cst_372 {dimension_numbers = #tpu.dot_dimension_numbers<[1], [0], [0], [1], [0, 0, 1, 1], [], []>} : vector<56x32xf32>, vector<32x64xf32>, vector<56x64xf32> -> vector<56x64xf32>
    %888 = vector.broadcast %22 : vector<1x64xf32> to vector<56x64xf32>
    %889 = arith.addf %887, %888 : vector<56x64xf32>
    %890 = math.tanh %889 : vector<56x64xf32>
    %891 = vector.extract_strided_slice %890 {offsets = [0, 0], sizes = [32, 32], strides = [1, 1]} : vector<56x64xf32> to vector<32x32xf32>
    %cst_373 = arith.constant dense<0.000000e+00> : vector<1x32xf32>
    %892 = tpu.matmul %24, %891, %cst_373 {dimension_numbers = #tpu.dot_dimension_numbers<[1], [1], [0], [0], [0, 0, 1, 0], [], []>} : vector<1x32xf32>, vector<32x32xf32>, vector<1x32xf32> -> vector<1x32xf32>
    %893 = vector.extract_strided_slice %890 {offsets = [32, 32], sizes = [24, 32], strides = [1, 1]} : vector<56x64xf32> to vector<24x32xf32>
    %894 = vector.broadcast %23 : vector<1x32xf32> to vector<24x32xf32>
    %895 = arith.mulf %893, %894 : vector<24x32xf32>
    %cst_374 = arith.constant dense<0.000000e+00> : vector<24xf32>
    %896 = vector.multi_reduction <add>, %895, %cst_374 [1] : vector<24x32xf32> to vector<24xf32>
    %897 = vector.shape_cast %896 : vector<24xf32> to vector<24x1xf32>
    %898 = vector.broadcast %897 : vector<24x1xf32> to vector<24x32xf32>
    %899 = vector.broadcast %892 : vector<1x32xf32> to vector<24x32xf32>
    %900 = arith.addf %898, %899 : vector<24x32xf32>
    %901 = vector.broadcast %25 : vector<1x1xf32> to vector<24x32xf32>
    %902 = arith.addf %900, %901 : vector<24x32xf32>
    %c5_375 = arith.constant 5 : index
    %c0_376 = arith.constant 0 : index
    %c0_377 = arith.constant 0 : index
    %903 = vector.load %arg7[%c5_375, %c0_376, %c0_377] : memref<7x24x32xf32, #tpu.memory_space<vmem>>, vector<1x24x32xf32>
    %904 = vector.shape_cast %903 : vector<1x24x32xf32> to vector<24x32xf32>
    %905 = arith.addf %902, %904 : vector<24x32xf32>
    %cst_378 = arith.constant dense<0xFF800000> : vector<24xf32>
    %906 = vector.multi_reduction <maximumf>, %905, %cst_378 [1] : vector<24x32xf32> to vector<24xf32>
    %907 = vector.shape_cast %906 : vector<24xf32> to vector<24x1xf32>
    %908 = vector.broadcast %907 : vector<24x1xf32> to vector<24x32xf32>
    %909 = arith.subf %905, %908 : vector<24x32xf32>
    %910 = math.exp %909 : vector<24x32xf32>
    %cst_379 = arith.constant dense<0.000000e+00> : vector<24xf32>
    %911 = vector.multi_reduction <add>, %910, %cst_379 [1] : vector<24x32xf32> to vector<24xf32>
    %912 = vector.shape_cast %911 : vector<24xf32> to vector<24x1xf32>
    %913 = tpu.reciprocal %912 {approx = true} : vector<24x1xf32> -> vector<24x1xf32>
    %914 = vector.broadcast %913 : vector<24x1xf32> to vector<24x32xf32>
    %915 = arith.mulf %910, %914 : vector<24x32xf32>
    %916 = arith.mulf %915, %886 : vector<24x32xf32>
    %cst_380 = arith.constant dense<0.000000e+00> : vector<24xf32>
    %917 = vector.multi_reduction <add>, %916, %cst_380 [1] : vector<24x32xf32> to vector<24xf32>
    %918 = vector.shape_cast %917 : vector<24xf32> to vector<24x1xf32>
    %cst_381 = arith.constant dense<0.000000e+00> : vector<8x1xf32>
    %919 = tpu.matmul %1, %918, %cst_381 {dimension_numbers = #tpu.dot_dimension_numbers<[1], [0], [0], [1], [0, 0, 1, 1], [], []>} : vector<8x24xf32>, vector<24x1xf32>, vector<8x1xf32> -> vector<8x1xf32>
    %920 = arith.negf %919 : vector<8x1xf32>
    %921 = math.exp %920 : vector<8x1xf32>
    %cst_382 = arith.constant 1.000000e+00 : f32
    %922 = vector.broadcast %cst_382 : f32 to vector<8x1xf32>
    %923 = arith.addf %922, %921 : vector<8x1xf32>
    %924 = arith.divf %922, %923 : vector<8x1xf32>
    %c5_383 = arith.constant 5 : index
    %c0_384 = arith.constant 0 : index
    %c0_385 = arith.constant 0 : index
    %925 = vector.load %arg26[%c5_383, %c0_384, %c0_385] : memref<7x8x1xf32, #tpu.memory_space<vmem>>, vector<1x8x1xf32>
    %926 = vector.shape_cast %925 : vector<1x8x1xf32> to vector<8x1xf32>
    %927 = vector.shape_cast %924 : vector<8x1xf32> to vector<1x8x1xf32>
    tpu.vector_store %arg26[%c5_383, %c0_384, %c0_385], %927 {strides = array<i32>} : memref<7x8x1xf32, #tpu.memory_space<vmem>>, vector<1x8x1xf32>,
    %c40 = arith.constant 40 : index
    %c0_386 = arith.constant 0 : index
    %928 = vector.load %arg27[%c40, %c0_386] : memref<56x32xf32, #tpu.memory_space<vmem>>, vector<8x32xf32>
    tpu.vector_store %arg27[%c40, %c0_386], %877 {strides = array<i32>} : memref<56x32xf32, #tpu.memory_space<vmem>>, vector<8x32xf32>,
    %c6 = arith.constant 6 : index
    %c0_387 = arith.constant 0 : index
    %c0_388 = arith.constant 0 : index
    %929 = vector.load %arg0[%c6, %c0_387, %c0_388] : memref<7x8x32xf32, #tpu.memory_space<vmem>>, vector<1x8x32xf32>
    %930 = vector.shape_cast %929 : vector<1x8x32xf32> to vector<8x32xf32>
    %c6_389 = arith.constant 6 : index
    %c0_390 = arith.constant 0 : index
    %c0_391 = arith.constant 0 : index
    %931 = vector.load %arg1[%c6_389, %c0_390, %c0_391] : memref<7x32x32xf32, #tpu.memory_space<vmem>>, vector<1x32x32xf32>
    %932 = vector.shape_cast %931 : vector<1x32x32xf32> to vector<32x32xf32>
    %c6_392 = arith.constant 6 : index
    %c0_393 = arith.constant 0 : index
    %c0_394 = arith.constant 0 : index
    %933 = vector.load %arg2[%c6_392, %c0_393, %c0_394] : memref<7x32x32xf32, #tpu.memory_space<vmem>>, vector<1x32x32xf32>
    %934 = vector.shape_cast %933 : vector<1x32x32xf32> to vector<32x32xf32>
    %cst_395 = arith.constant dense<0.000000e+00> : vector<8x32xf32>
    %935 = tpu.matmul %0, %932, %cst_395 {dimension_numbers = #tpu.dot_dimension_numbers<[1], [0], [0], [1], [0, 0, 1, 1], [], []>} : vector<8x32xf32>, vector<32x32xf32>, vector<8x32xf32> -> vector<8x32xf32>
    %936 = arith.addf %935, %930 : vector<8x32xf32>
    %cst_396 = arith.constant dense<0.000000e+00> : vector<8x32xf32>
    %937 = tpu.matmul %936, %3, %cst_396 {dimension_numbers = #tpu.dot_dimension_numbers<[1], [0], [0], [1], [0, 0, 1, 1], [], []>} : vector<8x32xf32>, vector<32x32xf32>, vector<8x32xf32> -> vector<8x32xf32>
    %938 = vector.broadcast %5 : vector<1x32xf32> to vector<8x32xf32>
    %939 = arith.addf %937, %938 : vector<8x32xf32>
    %940 = math.tanh %939 : vector<8x32xf32>
    %941 = arith.addf %934, %932 : vector<32x32xf32>
    %cst_397 = arith.constant dense<0.000000e+00> : vector<32x32xf32>
    %942 = tpu.matmul %941, %7, %cst_397 {dimension_numbers = #tpu.dot_dimension_numbers<[1], [0], [0], [1], [0, 0, 1, 1], [], []>} : vector<32x32xf32>, vector<32x32xf32>, vector<32x32xf32> -> vector<32x32xf32>
    %943 = vector.broadcast %9 : vector<1x32xf32> to vector<32x32xf32>
    %944 = arith.addf %942, %943 : vector<32x32xf32>
    %945 = math.tanh %944 : vector<32x32xf32>
    %cst_398 = arith.constant dense<0.000000e+00> : vector<8x32xf32>
    %946 = tpu.matmul %0, %945, %cst_398 {dimension_numbers = #tpu.dot_dimension_numbers<[1], [0], [0], [1], [0, 0, 1, 1], [], []>} : vector<8x32xf32>, vector<32x32xf32>, vector<8x32xf32> -> vector<8x32xf32>
    %947 = arith.addf %946, %940 : vector<8x32xf32>
    %cst_399 = arith.constant dense<0.000000e+00> : vector<8x32xf32>
    %948 = tpu.matmul %947, %3, %cst_399 {dimension_numbers = #tpu.dot_dimension_numbers<[1], [0], [0], [1], [0, 0, 1, 1], [], []>} : vector<8x32xf32>, vector<32x32xf32>, vector<8x32xf32> -> vector<8x32xf32>
    %949 = vector.broadcast %5 : vector<1x32xf32> to vector<8x32xf32>
    %950 = arith.addf %948, %949 : vector<8x32xf32>
    %951 = math.tanh %950 : vector<8x32xf32>
    %cst_400 = arith.constant dense<0.000000e+00> : vector<8x32xf32>
    %952 = tpu.matmul %951, %11, %cst_400 {dimension_numbers = #tpu.dot_dimension_numbers<[1], [0], [0], [1], [0, 0, 1, 1], [], []>} : vector<8x32xf32>, vector<32x32xf32>, vector<8x32xf32> -> vector<8x32xf32>
    %953 = vector.broadcast %13 : vector<1x32xf32> to vector<8x32xf32>
    %954 = arith.addf %952, %953 : vector<8x32xf32>
    %955 = math.tanh %954 : vector<8x32xf32>
    %c6_401 = arith.constant 6 : index
    %c0_402 = arith.constant 0 : index
    %c0_403 = arith.constant 0 : index
    %956 = vector.load %arg4[%c6_401, %c0_402, %c0_403] : memref<7x8x1xf32, #tpu.memory_space<vmem>>, vector<1x8x1xf32>
    %957 = vector.shape_cast %956 : vector<1x8x1xf32> to vector<8x1xf32>
    %cst_404 = arith.constant 5.000000e-01 : f32
    %958 = vector.broadcast %cst_404 : f32 to vector<8x1xf32>
    %959 = arith.cmpf ogt, %957, %958 : vector<8x1xf32>
    %960 = vector.shape_cast %959 : vector<8x1xi1> to vector<8x1xi1>
    %961 = vector.broadcast %960 : vector<8x1xi1> to vector<8x32xi1>
    %962 = arith.select %961, %955, %930 : vector<8x32xi1>, vector<8x32xf32>
    %cst_405 = arith.constant dense<0.000000e+00> : vector<8x96xf32>
    %963 = tpu.matmul %962, %14, %cst_405 {dimension_numbers = #tpu.dot_dimension_numbers<[1], [0], [0], [1], [0, 0, 1, 1], [], []>} : vector<8x32xf32>, vector<32x96xf32>, vector<8x96xf32> -> vector<8x96xf32>
    %c6_406 = arith.constant 6 : index
    %c0_407 = arith.constant 0 : index
    %c0_408 = arith.constant 0 : index
    %964 = vector.load %arg3[%c6_406, %c0_407, %c0_408] : memref<7x8x96xf32, #tpu.memory_space<vmem>>, vector<1x8x96xf32>
    %965 = vector.shape_cast %964 : vector<1x8x96xf32> to vector<8x96xf32>
    %966 = arith.addf %963, %965 : vector<8x96xf32>
    %cst_409 = arith.constant dense<0.000000e+00> : vector<8x96xf32>
    %967 = tpu.matmul %845, %15, %cst_409 {dimension_numbers = #tpu.dot_dimension_numbers<[1], [0], [0], [1], [0, 0, 1, 1], [], []>} : vector<8x32xf32>, vector<32x96xf32>, vector<8x96xf32> -> vector<8x96xf32>
    %968 = vector.broadcast %16 : vector<1x96xf32> to vector<8x96xf32>
    %969 = arith.addf %967, %968 : vector<8x96xf32>
    %970 = vector.extract_strided_slice %966 {offsets = [0, 0], sizes = [8, 32], strides = [1, 1]} : vector<8x96xf32> to vector<8x32xf32>
    %971 = vector.extract_strided_slice %969 {offsets = [0, 0], sizes = [8, 32], strides = [1, 1]} : vector<8x96xf32> to vector<8x32xf32>
    %972 = arith.addf %970, %971 : vector<8x32xf32>
    %973 = arith.negf %972 : vector<8x32xf32>
    %974 = math.exp %973 : vector<8x32xf32>
    %cst_410 = arith.constant 1.000000e+00 : f32
    %975 = vector.broadcast %cst_410 : f32 to vector<8x32xf32>
    %976 = arith.addf %975, %974 : vector<8x32xf32>
    %977 = arith.divf %975, %976 : vector<8x32xf32>
    %978 = vector.extract_strided_slice %966 {offsets = [0, 32], sizes = [8, 32], strides = [1, 1]} : vector<8x96xf32> to vector<8x32xf32>
    %979 = vector.extract_strided_slice %969 {offsets = [0, 32], sizes = [8, 32], strides = [1, 1]} : vector<8x96xf32> to vector<8x32xf32>
    %980 = arith.addf %978, %979 : vector<8x32xf32>
    %981 = arith.negf %980 : vector<8x32xf32>
    %982 = math.exp %981 : vector<8x32xf32>
    %cst_411 = arith.constant 1.000000e+00 : f32
    %983 = vector.broadcast %cst_411 : f32 to vector<8x32xf32>
    %984 = arith.addf %983, %982 : vector<8x32xf32>
    %985 = arith.divf %983, %984 : vector<8x32xf32>
    %986 = vector.extract_strided_slice %966 {offsets = [0, 64], sizes = [8, 32], strides = [1, 1]} : vector<8x96xf32> to vector<8x32xf32>
    %987 = vector.extract_strided_slice %969 {offsets = [0, 64], sizes = [8, 32], strides = [1, 1]} : vector<8x96xf32> to vector<8x32xf32>
    %988 = arith.mulf %977, %987 : vector<8x32xf32>
    %989 = arith.addf %986, %988 : vector<8x32xf32>
    %990 = math.tanh %989 : vector<8x32xf32>
    %cst_412 = arith.constant 1.000000e+00 : f32
    %991 = vector.broadcast %cst_412 : f32 to vector<8x32xf32>
    %992 = arith.subf %991, %985 : vector<8x32xf32>
    %993 = arith.mulf %992, %990 : vector<8x32xf32>
    %994 = arith.mulf %985, %845 : vector<8x32xf32>
    %995 = arith.addf %993, %994 : vector<8x32xf32>
    %cst_413 = arith.constant dense<0.000000e+00> : vector<8x96xf32>
    %996 = tpu.matmul %995, %17, %cst_413 {dimension_numbers = #tpu.dot_dimension_numbers<[1], [0], [0], [1], [0, 0, 1, 1], [], []>} : vector<8x32xf32>, vector<32x96xf32>, vector<8x96xf32> -> vector<8x96xf32>
    %997 = vector.broadcast %19 : vector<1x96xf32> to vector<8x96xf32>
    %998 = arith.addf %996, %997 : vector<8x96xf32>
    %cst_414 = arith.constant dense<0.000000e+00> : vector<8x96xf32>
    %999 = tpu.matmul %877, %18, %cst_414 {dimension_numbers = #tpu.dot_dimension_numbers<[1], [0], [0], [1], [0, 0, 1, 1], [], []>} : vector<8x32xf32>, vector<32x96xf32>, vector<8x96xf32> -> vector<8x96xf32>
    %1000 = vector.broadcast %20 : vector<1x96xf32> to vector<8x96xf32>
    %1001 = arith.addf %999, %1000 : vector<8x96xf32>
    %1002 = vector.extract_strided_slice %998 {offsets = [0, 0], sizes = [8, 32], strides = [1, 1]} : vector<8x96xf32> to vector<8x32xf32>
    %1003 = vector.extract_strided_slice %1001 {offsets = [0, 0], sizes = [8, 32], strides = [1, 1]} : vector<8x96xf32> to vector<8x32xf32>
    %1004 = arith.addf %1002, %1003 : vector<8x32xf32>
    %1005 = arith.negf %1004 : vector<8x32xf32>
    %1006 = math.exp %1005 : vector<8x32xf32>
    %cst_415 = arith.constant 1.000000e+00 : f32
    %1007 = vector.broadcast %cst_415 : f32 to vector<8x32xf32>
    %1008 = arith.addf %1007, %1006 : vector<8x32xf32>
    %1009 = arith.divf %1007, %1008 : vector<8x32xf32>
    %1010 = vector.extract_strided_slice %998 {offsets = [0, 32], sizes = [8, 32], strides = [1, 1]} : vector<8x96xf32> to vector<8x32xf32>
    %1011 = vector.extract_strided_slice %1001 {offsets = [0, 32], sizes = [8, 32], strides = [1, 1]} : vector<8x96xf32> to vector<8x32xf32>
    %1012 = arith.addf %1010, %1011 : vector<8x32xf32>
    %1013 = arith.negf %1012 : vector<8x32xf32>
    %1014 = math.exp %1013 : vector<8x32xf32>
    %cst_416 = arith.constant 1.000000e+00 : f32
    %1015 = vector.broadcast %cst_416 : f32 to vector<8x32xf32>
    %1016 = arith.addf %1015, %1014 : vector<8x32xf32>
    %1017 = arith.divf %1015, %1016 : vector<8x32xf32>
    %1018 = vector.extract_strided_slice %998 {offsets = [0, 64], sizes = [8, 32], strides = [1, 1]} : vector<8x96xf32> to vector<8x32xf32>
    %1019 = vector.extract_strided_slice %1001 {offsets = [0, 64], sizes = [8, 32], strides = [1, 1]} : vector<8x96xf32> to vector<8x32xf32>
    %1020 = arith.mulf %1009, %1019 : vector<8x32xf32>
    %1021 = arith.addf %1018, %1020 : vector<8x32xf32>
    %1022 = math.tanh %1021 : vector<8x32xf32>
    %cst_417 = arith.constant 1.000000e+00 : f32
    %1023 = vector.broadcast %cst_417 : f32 to vector<8x32xf32>
    %1024 = arith.subf %1023, %1017 : vector<8x32xf32>
    %1025 = arith.mulf %1024, %1022 : vector<8x32xf32>
    %1026 = arith.mulf %1017, %877 : vector<8x32xf32>
    %1027 = arith.addf %1025, %1026 : vector<8x32xf32>
    %c6_418 = arith.constant 6 : index
    %c0_419 = arith.constant 0 : index
    %c0_420 = arith.constant 0 : index
    %1028 = vector.load %arg6[%c6_418, %c0_419, %c0_420] : memref<7x24x56xf32, #tpu.memory_space<vmem>>, vector<1x24x56xf32>
    %1029 = vector.shape_cast %1028 : vector<1x24x56xf32> to vector<24x56xf32>
    %c0_421 = arith.constant 0 : index
    %c0_422 = arith.constant 0 : index
    %1030 = vector.load %arg27[%c0_421, %c0_422] : memref<56x32xf32, #tpu.memory_space<vmem>>, vector<56x32xf32>
    %cst_423 = arith.constant dense<0.000000e+00> : vector<24x32xf32>
    %1031 = tpu.matmul %1029, %1030, %cst_423 {dimension_numbers = #tpu.dot_dimension_numbers<[1], [0], [0], [1], [0, 0, 1, 1], [], []>} : vector<24x56xf32>, vector<56x32xf32>, vector<24x32xf32> -> vector<24x32xf32>
    %c6_424 = arith.constant 6 : index
    %c0_425 = arith.constant 0 : index
    %c0_426 = arith.constant 0 : index
    %1032 = vector.load %arg5[%c6_424, %c0_425, %c0_426] : memref<7x24x32xf32, #tpu.memory_space<vmem>>, vector<1x24x32xf32>
    %1033 = vector.shape_cast %1032 : vector<1x24x32xf32> to vector<24x32xf32>
    %1034 = tpu.concatenate %1027, %1031, %1033 in 0 : vector<8x32xf32>, vector<24x32xf32>, vector<24x32xf32> -> vector<56x32xf32>
    %1035 = vector.extract_strided_slice %1034 {offsets = [0, 0], sizes = [32, 32], strides = [1, 1]} : vector<56x32xf32> to vector<32x32xf32>
    %cst_427 = arith.constant dense<0.000000e+00> : vector<24x32xf32>
    %1036 = tpu.matmul %1033, %1035, %cst_427 {dimension_numbers = #tpu.dot_dimension_numbers<[1], [1], [0], [0], [0, 0, 1, 0], [], []>} : vector<24x32xf32>, vector<32x32xf32>, vector<24x32xf32> -> vector<24x32xf32>
    %cst_428 = arith.constant dense<0.000000e+00> : vector<56x64xf32>
    %1037 = tpu.matmul %1034, %21, %cst_428 {dimension_numbers = #tpu.dot_dimension_numbers<[1], [0], [0], [1], [0, 0, 1, 1], [], []>} : vector<56x32xf32>, vector<32x64xf32>, vector<56x64xf32> -> vector<56x64xf32>
    %1038 = vector.broadcast %22 : vector<1x64xf32> to vector<56x64xf32>
    %1039 = arith.addf %1037, %1038 : vector<56x64xf32>
    %1040 = math.tanh %1039 : vector<56x64xf32>
    %1041 = vector.extract_strided_slice %1040 {offsets = [0, 0], sizes = [32, 32], strides = [1, 1]} : vector<56x64xf32> to vector<32x32xf32>
    %cst_429 = arith.constant dense<0.000000e+00> : vector<1x32xf32>
    %1042 = tpu.matmul %24, %1041, %cst_429 {dimension_numbers = #tpu.dot_dimension_numbers<[1], [1], [0], [0], [0, 0, 1, 0], [], []>} : vector<1x32xf32>, vector<32x32xf32>, vector<1x32xf32> -> vector<1x32xf32>
    %1043 = vector.extract_strided_slice %1040 {offsets = [32, 32], sizes = [24, 32], strides = [1, 1]} : vector<56x64xf32> to vector<24x32xf32>
    %1044 = vector.broadcast %23 : vector<1x32xf32> to vector<24x32xf32>
    %1045 = arith.mulf %1043, %1044 : vector<24x32xf32>
    %cst_430 = arith.constant dense<0.000000e+00> : vector<24xf32>
    %1046 = vector.multi_reduction <add>, %1045, %cst_430 [1] : vector<24x32xf32> to vector<24xf32>
    %1047 = vector.shape_cast %1046 : vector<24xf32> to vector<24x1xf32>
    %1048 = vector.broadcast %1047 : vector<24x1xf32> to vector<24x32xf32>
    %1049 = vector.broadcast %1042 : vector<1x32xf32> to vector<24x32xf32>
    %1050 = arith.addf %1048, %1049 : vector<24x32xf32>
    %1051 = vector.broadcast %25 : vector<1x1xf32> to vector<24x32xf32>
    %1052 = arith.addf %1050, %1051 : vector<24x32xf32>
    %c6_431 = arith.constant 6 : index
    %c0_432 = arith.constant 0 : index
    %c0_433 = arith.constant 0 : index
    %1053 = vector.load %arg7[%c6_431, %c0_432, %c0_433] : memref<7x24x32xf32, #tpu.memory_space<vmem>>, vector<1x24x32xf32>
    %1054 = vector.shape_cast %1053 : vector<1x24x32xf32> to vector<24x32xf32>
    %1055 = arith.addf %1052, %1054 : vector<24x32xf32>
    %cst_434 = arith.constant dense<0xFF800000> : vector<24xf32>
    %1056 = vector.multi_reduction <maximumf>, %1055, %cst_434 [1] : vector<24x32xf32> to vector<24xf32>
    %1057 = vector.shape_cast %1056 : vector<24xf32> to vector<24x1xf32>
    %1058 = vector.broadcast %1057 : vector<24x1xf32> to vector<24x32xf32>
    %1059 = arith.subf %1055, %1058 : vector<24x32xf32>
    %1060 = math.exp %1059 : vector<24x32xf32>
    %cst_435 = arith.constant dense<0.000000e+00> : vector<24xf32>
    %1061 = vector.multi_reduction <add>, %1060, %cst_435 [1] : vector<24x32xf32> to vector<24xf32>
    %1062 = vector.shape_cast %1061 : vector<24xf32> to vector<24x1xf32>
    %1063 = tpu.reciprocal %1062 {approx = true} : vector<24x1xf32> -> vector<24x1xf32>
    %1064 = vector.broadcast %1063 : vector<24x1xf32> to vector<24x32xf32>
    %1065 = arith.mulf %1060, %1064 : vector<24x32xf32>
    %1066 = arith.mulf %1065, %1036 : vector<24x32xf32>
    %cst_436 = arith.constant dense<0.000000e+00> : vector<24xf32>
    %1067 = vector.multi_reduction <add>, %1066, %cst_436 [1] : vector<24x32xf32> to vector<24xf32>
    %1068 = vector.shape_cast %1067 : vector<24xf32> to vector<24x1xf32>
    %cst_437 = arith.constant dense<0.000000e+00> : vector<8x1xf32>
    %1069 = tpu.matmul %1, %1068, %cst_437 {dimension_numbers = #tpu.dot_dimension_numbers<[1], [0], [0], [1], [0, 0, 1, 1], [], []>} : vector<8x24xf32>, vector<24x1xf32>, vector<8x1xf32> -> vector<8x1xf32>
    %1070 = arith.negf %1069 : vector<8x1xf32>
    %1071 = math.exp %1070 : vector<8x1xf32>
    %cst_438 = arith.constant 1.000000e+00 : f32
    %1072 = vector.broadcast %cst_438 : f32 to vector<8x1xf32>
    %1073 = arith.addf %1072, %1071 : vector<8x1xf32>
    %1074 = arith.divf %1072, %1073 : vector<8x1xf32>
    %c6_439 = arith.constant 6 : index
    %c0_440 = arith.constant 0 : index
    %c0_441 = arith.constant 0 : index
    %1075 = vector.load %arg26[%c6_439, %c0_440, %c0_441] : memref<7x8x1xf32, #tpu.memory_space<vmem>>, vector<1x8x1xf32>
    %1076 = vector.shape_cast %1075 : vector<1x8x1xf32> to vector<8x1xf32>
    %1077 = vector.shape_cast %1074 : vector<8x1xf32> to vector<1x8x1xf32>
    tpu.vector_store %arg26[%c6_439, %c0_440, %c0_441], %1077 {strides = array<i32>} : memref<7x8x1xf32, #tpu.memory_space<vmem>>, vector<1x8x1xf32>,
    %c48 = arith.constant 48 : index
    %c0_442 = arith.constant 0 : index
    %1078 = vector.load %arg27[%c48, %c0_442] : memref<56x32xf32, #tpu.memory_space<vmem>>, vector<8x32xf32>
    tpu.vector_store %arg27[%c48, %c0_442], %1027 {strides = array<i32>} : memref<56x32xf32, #tpu.memory_space<vmem>>, vector<8x32xf32>,
    return
  }
}

</mosaic_0001>

<bundles_post_ra>
// kernel: gikt_forward.1
= control target key start
LH: loop header
LB: loop body
LE: loop exit
PB: predicated region body
PF: predicated region fallthrough
CT: control target
= control target key end

     0   :  { %vm135_vm0 = vcmask 261120   ;;  %v13641_v0 = vmov 0.0|0.0   ;;  %vm13642_vm1 = vmmov 0   ;;  %v13643_v3 = vmov 0.0   ;;  %s16207_s1 = inlined_call_operand.vmem [shape: f32[7,32,32], index: 1, kind: input, shape index: {}]   ;;  %s16208_s12 = inlined_call_operand.vmem [shape: f32[3,32,32], index: 12, kind: input, shape index: {}]   ;;  %s16209_s2 = inlined_call_operand.vmem [shape: f32[7,32,32], index: 2, kind: input, shape index: {}]   ;;  %s16210_s8 = inlined_call_operand.vmem [shape: f32[8,32], index: 8, kind: input, shape index: {}]   ;;  %s16211_s0 = inlined_call_operand.vmem [shape: f32[7,8,32], index: 0, kind: input, shape index: {}]   ;;  %s16212_s13 = inlined_call_operand.vmem [shape: f32[3,1,32], index: 13, kind: input, shape index: {}]   ;;  %s16213_s4 = inlined_call_operand.vmem [shape: f32[7,8,1], index: 4, kind: input, shape index: {}]   ;;  %s16214_s15 = inlined_call_operand.vmem [shape: f32[32,96], index: 15, kind: input, shape index: {}]   ;;  %s16215_s10 = inlined_call_operand.vmem [shape: f32[8,32], index: 10, kind: input, shape index: {}]   ;;  %s16216_s14 = inlined_call_operand.vmem [shape: f32[32,96], index: 14, kind: input, shape index: {}]   ;;  %s16217_s16 = inlined_call_operand.vmem [shape: f32[1,96], index: 16, kind: input, shape index: {}]   ;;  %s16218_s3 = inlined_call_operand.vmem [shape: f32[7,8,96], index: 3, kind: input, shape index: {}]   ;;  %s16219_s18 = inlined_call_operand.vmem [shape: f32[32,96], index: 18, kind: input, shape index: {}]   ;;  %s16220_s17 = inlined_call_operand.vmem [shape: f32[32,96], index: 17, kind: input, shape index: {}]   ;;  %s16221_s11 = inlined_call_operand.vmem [shape: f32[8,32], index: 11, kind: input, shape index: {}]   ;;  %s16222_s20 = inlined_call_operand.vmem [shape: f32[1,96], index: 20, kind: input, shape index: {}]   ;;  %s16223_s6 = inlined_call_operand.vmem [shape: f32[7,24,56], index: 6, kind: input, shape index: {}]   ;;  %s16224_s19 = inlined_call_operand.vmem [shape: f32[1,96], index: 19, kind: input, shape index: {}]   ;;  %s16225_s21 = inlined_call_operand.vmem [shape: f32[32,64], index: 21, kind: input, shape index: {}]   ;;  %s16226_s5 = inlined_call_operand.vmem [shape: f32[7,24,32], index: 5, kind: input, shape index: {}]   ;;  %s16227_s23 = inlined_call_operand.vmem [shape: f32[1,32], index: 23, kind: input, shape index: {}]   ;;  %s16228_s22 = inlined_call_operand.vmem [shape: f32[1,64], index: 22, kind: input, shape index: {}]   ;;  %s16229_s24 = inlined_call_operand.vmem [shape: f32[1,32], index: 24, kind: input, shape index: {}]   ;;  %s16230_s25 = inlined_call_operand.<no memory space> [shape: f32[1,1], index: 25, kind: input, shape index: {}]   ;;  %s16231_s7 = inlined_call_operand.vmem [shape: f32[7,24,32], index: 7, kind: input, shape index: {}]   ;;  %s16232_s9 = inlined_call_operand.vmem [shape: f32[8,24], index: 9, kind: input, shape index: {}]   ;;  %s16233_s26 = inlined_call_operand.vmem [shape: f32[7,8,1], index: 26, kind: output, shape index: {}]  }
   0x1   :  { %16250 = sst [smem:[#allocation4_spill]] %s16207_s1  ;;  %12544 = vmatprep.subr.bf16.mxu0 %v13641_v0  ;;  %11149 = vmatprep.mubr.msk.f32.mxu0 %vm13642_vm1, %v13643_v3  ;;  %136 = vst.msk [vmem:[#allocation2] sm:$0xff] %vm135_vm0, %v13643_v3  ;;  %137 = vst.msk [vmem:[#allocation2 + $0x8] sm:$0xff] %vm135_vm0, %v13643_v3  ;;  %v13644_v62 = vmov 0   ;;  %vm1029_vm4 = vcmask 457728   ;;  %vm1555_vm7 = vcmask 195584  }
   0x2   :  { %16251 = sst [smem:[#allocation5_spill]] %s16208_s12  ;;  %138 = vst.msk [vmem:[#allocation2 + $0x10] sm:$0xff] %vm135_vm0, %v13643_v3  ;;  %139 = vst.msk [vmem:[#allocation2 + $0x18] sm:$0xff] %vm135_vm0, %v13643_v3  ;;  %12550 = vmatprep.subr.bf16.mxu1 %v13641_v0  ;;  %11160 = vmatprep.mubr.msk.f32.mxu1 %vm13642_vm1, %v13643_v3  ;;  %vm1635_vm8 = vcmask 7168  }
   0x3   :  { %16252 = sst [smem:[#allocation6_spill]] %s16209_s2  ;;  %140 = vst.msk [vmem:[#allocation2 + $0x20] sm:$0xff] %vm135_vm0, %v13643_v3  ;;  %141 = vst.msk [vmem:[#allocation2 + $0x28] sm:$0xff] %vm135_vm0, %v13643_v3  ;;  %13217 = vset.pattern.permute.xlu0 %v13644_v62  ;;  %13218 = vset.pattern.permute.xlu1 %v13644_v62 }
   0x4   :  { %16253 = sst [smem:[#allocation7_spill]] %s16210_s8  ;;  %142 = vst.msk [vmem:[#allocation2 + $0x30] sm:$0xff] %vm135_vm0, %v13643_v3  ;;  %s16264_s12 = sld [smem:[#allocation6_spill]]  ;;  %vm14162_vm5 = vmpackc.low %vm135_vm0, %vm135_vm0 }
   0x5   :  { %16254 = sst [smem:[#allocation8_spill]] %s16211_s0  ;;  %s16265_s8 = sld [smem:[#allocation7_spill]] }
   0x6   :  { %16255 = sst [smem:[#allocation9_spill]] %s16212_s13  ;;  %s16263_s13 = sld [smem:[#allocation5_spill]] }
   0x7   :  { %16256 = sst [smem:[#allocation10_spill]] %s16213_s4  ;;  %s16266_s28 = sld [smem:[#allocation8_spill]] }
   0x8   :  { %16257 = sst [smem:[#allocation11_spill]] %s16214_s15  ;;  %s16262_s15 = sld [smem:[#allocation4_spill]] }
   0x9   :  { %16258 = sst [smem:[#allocation12_spill]] %s16215_s10  ;;  %s16267_s29 = sld [smem:[#allocation9_spill]] }
   0xa   :  { %16259 = sst [smem:[#allocation13_spill]] %s16216_s14  ;;  %v148_v10 = vld [vmem:[%s16264_s12] sm:$0xff]  ;;  %v149_v20 = vld [vmem:[%s16264_s12 + $0x8] sm:$0xff]  ;;  %v150_v21 = vld [vmem:[%s16264_s12 + $0x10] sm:$0xff]  ;;  %s16268_s2 = sld [smem:[#allocation10_spill]] }
   0xb   :  { %16260 = sst [smem:[#allocation14_spill]] %s16217_s16  ;;  %v85_v18 = vld [vmem:[%s16265_s8] sm:$0xff]  ;;  %v151_v23 = vld [vmem:[%s16264_s12 + $0x18] sm:$0xff]  ;;  %s16269_s4 = sld [smem:[#allocation11_spill]] }
   0xc   :  { %16261 = sst [smem:[#allocation15_spill]] %s16218_s3  ;;  %v10099_v8 = vld [vmem:[%s16263_s13 + $0x20] sm:$0xff]  ;;  %v10100_v9 = vld [vmem:[%s16263_s13 + $0x28] sm:$0xff]  ;;  %v10101_v14 = vld [vmem:[%s16263_s13 + $0x30] sm:$0xff]  ;;  %s16270_s27 = sld [smem:[#allocation12_spill]] }
   0xd   :  { %v13825_v11 = vpack.c.bf16 %v10100_v9, %v10099_v8  ;;  %v87_v12 = vld [vmem:[%s16263_s13] sm:$0xff]  ;;  %v88_v13 = vld [vmem:[%s16263_s13 + $0x8] sm:$0xff]  ;;  %v10102_v15 = vld [vmem:[%s16263_s13 + $0x38] sm:$0xff]  ;;  %s16271_s0 = sld [smem:[#allocation13_spill]]  ;;  %s16272_s30 = sld [smem:[#allocation14_spill]] }
   0xe   :  { %v144_v1 = vld [vmem:[%s16262_s15] sm:$0xff]  ;;  %v145_v2 = vld [vmem:[%s16262_s15 + $0x8] sm:$0xff]  ;;  %v146_v5 = vld [vmem:[%s16262_s15 + $0x10] sm:$0xff]  ;;  %v13839_v16 = vpack.c.bf16 %v88_v13, %v87_v12  ;;  %v13846_v19 = vpack.c.bf16 %v10102_v15, %v10101_v14  ;;  %s16278_s1 = sld [smem:[#allocation14_spill]] }
   0xf   :  { %v12545_v4 = vpack.c.bf16 %v145_v2, %v144_v1  ;;  %v147_v6 = vld [vmem:[%s16262_s15 + $0x18] sm:$0xff]  ;;  %v305_v17 = vadd.f32 %v148_v10, %v144_v1  ;;  %v306_v22 = vadd.f32 %v149_v20, %v145_v2  ;;  %v307_v24 = vadd.f32 %v150_v21, %v146_v5  ;;  %v89_v26 = vld [vmem:[%s16263_s13 + $0x10] sm:$0xff]  ;;  %v13886_v29 = vld [vmem:[%s16266_s28] sm:$0xff] }
  0x10   :  { %v12548_v7 = vpack.c.bf16 %v147_v6, %v146_v5  ;;  %12552 = vmatpush3.bf16.msra.mxu1 %v13839_v16  ;;  %v308_v25 = vadd.f32 %v151_v23, %v147_v6  ;;  %v90_v27 = vld [vmem:[%s16263_s13 + $0x18] sm:$0xff]  ;;  %v10112_v33 = vld [vmem:[%s16267_s29 + $0x1] ss:$0 sm:$0xff]  ;;  %v10110_v50 = vld [vmem:[%s16267_s29] ss:$0 sm:$0xff] }
  0x11   :  { %12546 = vmatpush3.bf16.msra.mxu0 %v12545_v4  ;;  %12553 = vmatprep.subr.bf16.mxu1 %v13641_v0  ;;  %v13877_v28 = vpack.c.bf16 %v90_v27, %v89_v26  ;;  %v10104_v56 = vld [vmem:[%s16263_s13 + $0x40] sm:$0xff]  ;;  %v10105_v57 = vld [vmem:[%s16263_s13 + $0x48] sm:$0xff]  ;;  %v10106_v58 = vld [vmem:[%s16263_s13 + $0x50] sm:$0xff] }
  0x12   :  { %12547 = vmatprep.subr.bf16.mxu0 %v13641_v0  ;;  %v13915_v59 = vpack.c.bf16 %v10105_v57, %v10104_v56  ;;  %v10107_v60 = vld [vmem:[%s16263_s13 + $0x58] sm:$0xff]  ;;  %v640_v63 = vld [vmem:[%s16268_s2] sm:$0xff]  ;;  %v112_v9 = vld [vmem:[%s16269_s4 + $0x10] sm:$0xff]  ;;  %s16244_s13 = smov 32  }
  0x13   :  { %v13921_v61 = vpack.c.bf16 %v10107_v60, %v10106_v58  ;;  %vm641_vm2 = vcmp.gt.f32.partialorder %v640_v63, 0.5  ;;  %v110_v6 = vld [vmem:[%s16269_s4] sm:$0xff]  ;;  %v113_v10 = vld [vmem:[%s16269_s4 + $0x18] sm:$0xff]  ;;  %v108_v20 = vld [vmem:[%s16271_s0 + $0x10] sm:$0xff] }
  0x14   :  { %12555 = vmatpush3.bf16.msra.mxu1 %v13877_v28  ;;  %v642_v1 = vsel %vm641_vm2, 1, %v13644_v62  ;;  %v13948_v13 = vpack.c.bf16 %v113_v10, %v112_v9  ;;  %v133_v14 = vld [vmem:[%s16270_s27] sm:$0xff]  ;;  %v109_v21 = vld [vmem:[%s16271_s0 + $0x18] sm:$0xff]  ;;  %s16277_s27 = sld [smem:[#allocation15_spill]] }
  0x15   :  { %12549 = vmatpush3.bf16.msra.mxu0 %v12548_v7  ;;  %12564 = vmatprep.subr.bf16.mxu1 %v13641_v0  ;;  %v111_v7 = vld [vmem:[%s16269_s4 + $0x8] sm:$0xff]  ;;  %v106_v15 = vld [vmem:[%s16271_s0] sm:$0xff]  ;;  %v118_v56 = vld [vmem:[%s16220_s17 + $0x18] sm:$0xff] }
  0x16   :  { %12557 = vmatprep.subr.bf16.mxu0 %v13825_v11  ;;  %644 = vperm.xlu0 %13217, %v642_v1   ;;  %v13938_v8 = vpack.c.bf16 %v111_v7, %v110_v6  ;;  %v13984_v23 = vld [vmem:[%s16267_s29 + $0x2] ss:$0 sm:$0xff]  ;;  %v13990_v27 = vld [vmem:[%s16272_s30] ss:$0 sm:$0xff] }
  0x17   :  { %v14043_v1 = vld [vmem:[%s16221_s11] sm:$0xff] }
  0x18   :  { %11150 = vmatmul.mubr.msk.f32.vlgmr.msra.gmra.mrb[0].mxu0 %vm135_vm0, %v85_v18  ;;  %v10127_v10 = vld [vmem:[%s16222_s20] ss:$0 sm:$0xff] }
  0x19   :  { %12559 = vmatpush3.bf16.msra.mxu0 %v13825_v11  ;;  %11171 = vmatprep.mubr.msk.f32.mxu0 %vm135_vm0, %v305_v17  ;;  %v107_v17 = vld [vmem:[%s16271_s0 + $0x8] sm:$0xff]  ;;  %s16246_s0 = smov 64  }
  0x1a   :  { %12561 = vmatprep.subr.bf16.mxu0 %v13846_v19 }
  0x1d   :  { %12563 = vmatpush3.bf16.msra.mxu0 %v13846_v19 }
  0x1e   :  { %12570 = vmatprep.subr.bf16.mxu0 %v13641_v0 }
  0x20   :  { %11172 = vmatmul.mubr.msk.f32.vlgmr.msra.gmra.mrb[2].mxu0 %vm135_vm0, %v306_v22  ;;  %v13977_v22 = vpack.c.bf16 %v109_v21, %v108_v20  ;;  %v1023_v20 = vld [vmem:[#allocation2 + $0x8] sm:$0xff] }
  0x21   :  { %11174 = vmatprep.mubr.msk.f32.mxu0 %vm135_vm0, %v307_v24  ;;  %12572 = vmatpush3.bf16.msra.mxu0 %v13839_v16 }
  0x22   :  { %12573 = vmatprep.subr.bf16.mxu0 %v13641_v0 }
  0x24   :  { %11175 = vmatmul.mubr.msk.f32.gmra.mrb[4].mxu0 %vm135_vm0, %v308_v25 }
  0x25   :  { %11196 = vmatprep.mubr.msk.f32.mxu0 %vm13642_vm1, %v13643_v3  ;;  %12575 = vmatpush3.bf16.msra.mxu0 %v13877_v28 }
  0x26   :  { %12582 = vmatprep.subr.bf16.mxu0 %v13641_v0 }
  0xeb   :  { %v221_v30 = vpop.f32.mrb[0].mxu0 }
  0xec   :  { %v222_v31 = vadd.f32 %v221_v30, %v13886_v29  ;;  %v11151_v32 = vpop.f32.mrb[1].mxu0  ;;  %v645_v30 = vpop.permute.xlu0 %644 }
  0xed   :  { %vm646_vm3 = vcmp.eq.s32.totalorder %v645_v30, 1 }
  0xee   :  { %11161 = vmatmul.mubr.msk.f32.vlgmr.msra.gmra.mrb[0].mxu1 %vm135_vm0, %v222_v31 }
  0xef   :  { %11185 = vmatprep.mubr.msk.f32.mxu1 %vm13642_vm1, %v13643_v3 }
  0xf3   :  { %v11173_v34 = vpop.f32.mrb[2].mxu0 }
  0xf4   :  { %v399_v35 = vadd.f32 %v11173_v34, %v10112_v33  ;;  %v393_v36 = vpop.f32.mrb[3].mxu0 }
  0xf5   :  { %v394_v37 = vadd.f32 %v10112_v33, %v393_v36  ;;  %v648_v36 = vld [vmem:[%s16218_s3] sm:$0xff] }
  0xf6   :  { %13219 = vtanh.f32 %v399_v35 }
  0xf7   :  { %13221 = vtanh.f32 %v394_v37  ;;  %v11176_v38 = vpop.f32.mrb[4].mxu0 }
  0xf8   :  { %v409_v39 = vadd.f32 %v11176_v38, %v10112_v33  ;;  %v403_v40 = vpop.f32.mrb[5].mxu0 }
  0xf9   :  { %v404_v41 = vadd.f32 %v10112_v33, %v403_v40 }
  0xfa   :  { %13223 = vtanh.f32 %v409_v39 }
  0xfb   :  { %13225 = vtanh.f32 %v404_v41 }
 0x100   :  { %v13220_v42 = vpop.eup %13219 }
 0x101   :  { %v13222_v43 = vpop.eup %13221 }
 0x102   :  { %v12565_v44 = vpack.c.bf16 %v13220_v42, %v13222_v43 }
 0x104   :  { %v13224_v45 = vpop.eup %13223  ;;  %12566 = vmatpush3.bf16.msra.mxu1 %v12565_v44 }
 0x105   :  { %v13226_v46 = vpop.eup %13225  ;;  %12567 = vmatprep.subr.bf16.mxu1 %v13641_v0 }
 0x106   :  { %v12568_v47 = vpack.c.bf16 %v13224_v45, %v13226_v46 }
 0x108   :  { %12569 = vmatpush3.bf16.msra.mxu1 %v12568_v47 }
 0x109   :  { %12576 = vmatprep.subr.bf16.mxu1 %v13641_v0 }
 0x10b   :  { %11186 = vmatmul.mubr.msk.f32.vlgmr.msra.gmra.mrb[2].mxu1 %vm135_vm0, %v85_v18  ;;  %v13967_v18 = vpack.c.bf16 %v107_v17, %v106_v15  ;;  %v1022_v17 = vld [vmem:[#allocation2] sm:$0xff] }
 0x10c   :  { %11207 = vmatprep.mubr.msk.f32.mxu1 %vm13642_vm1, %v13643_v3  ;;  %12578 = vmatpush3.bf16.msra.mxu1 %v13915_v59  ;;  %v14064_v21 = vpack.c.bf16 %v1023_v20, %v1022_v17 }
 0x10d   :  { %12579 = vmatprep.subr.bf16.mxu1 %v13641_v0 }
 0x110   :  { %12581 = vmatpush3.bf16.msra.mxu1 %v13921_v61 }
 0x111   :  { %12588 = vmatprep.subr.bf16.mxu1 %v13641_v0 }
 0x1c1   :  { %v300_v48 = vpop.f32.mrb[0].mxu1 }
 0x1c2   :  { %v11162_v49 = vpop.f32.mrb[1].mxu1  ;;  %v301_v51 = vadd.f32 %v10110_v50, %v300_v48  ;;  %v119_v48 = vld [vmem:[%s16219_s18] sm:$0xff] }
 0x1c3   :  { %v120_v49 = vld [vmem:[%s16219_s18 + $0x8] sm:$0xff] }
 0x1c4   :  { %13227 = vtanh.f32 %v301_v51  ;;  %v14012_v51 = vpack.c.bf16 %v120_v49, %v119_v48 }
 0x1ce   :  { %v13228_v52 = vpop.eup %13227 }
 0x1de   :  { %v482_v53 = vpop.f32.mrb[2].mxu1 }
 0x1df   :  { %v483_v54 = vadd.f32 %v13228_v52, %v482_v53  ;;  %v11187_v55 = vpop.f32.mrb[3].mxu1  ;;  %v122_v52 = vld [vmem:[%s16219_s18 + $0x18] sm:$0xff]  ;;  %v115_v53 = vld [vmem:[%s16220_s17] sm:$0xff] }
 0x1e0   :  { %v117_v55 = vld [vmem:[%s16220_s17 + $0x10] sm:$0xff] }
 0x1e1   :  { %11197 = vmatmul.mubr.msk.f32.vlgmr.msra.gmra.mrb[6].mxu0 %vm135_vm0, %v483_v54  ;;  %v116_v54 = vld [vmem:[%s16220_s17 + $0x8] sm:$0xff]  ;;  %v14036_v60 = vpack.c.bf16 %v118_v56, %v117_v55  ;;  %s13647_s17 = smov 96  }
 0x1e2   :  { %11218 = vmatprep.mubr.msk.f32.mxu0 %vm13642_vm1, %v13643_v3  ;;  %12584 = vmatpush3.bf16.msra.mxu0 %v13967_v18  ;;  %v14032_v58 = vpack.c.bf16 %v116_v54, %v115_v53 }
 0x1e3   :  { %12585 = vmatprep.subr.bf16.mxu0 %v13641_v0 }
 0x1e6   :  { %12587 = vmatpush3.bf16.msra.mxu0 %v13977_v22 }
 0x1e7   :  { %12594 = vmatprep.subr.bf16.mxu0 %v13641_v0 }
 0x2b4   :  { %v555_v2 = vpop.f32.mrb[6].mxu0 }
 0x2b5   :  { %v556_v4 = vadd.f32 %v10110_v50, %v555_v2  ;;  %v11198_v5 = vpop.f32.mrb[7].mxu0  ;;  %v121_v50 = vld [vmem:[%s16219_s18 + $0x10] sm:$0xff]  ;;  %s16274_s18 = smov 32  }
 0x2b6   :  { %v14030_v57 = vpack.c.bf16 %v122_v52, %v121_v50 }
 0x2b7   :  { %13229 = vtanh.f32 %v556_v4 }
 0x2c1   :  { %v13230_v12 = vpop.eup %13229 }
 0x2c2   :  { %11208 = vmatmul.mubr.msk.f32.vlgmr.msra.gmra.mrb[4].mxu1 %vm135_vm0, %v13230_v12 }
 0x2c3   :  { %12590 = vmatpush3.bf16.msra.mxu1 %v13938_v8  ;;  %11229 = vmatprep.mubr.msk.f32.mxu1 %vm13642_vm1, %v13643_v3 }
 0x2c4   :  { %12591 = vmatprep.subr.bf16.mxu1 %v13641_v0 }
 0x2c7   :  { %12593 = vmatpush3.bf16.msra.mxu1 %v13948_v13 }
 0x2c8   :  { %12600 = vmatprep.subr.bf16.mxu1 %v13641_v0 }
 0x2ca   :  { %11230 = vmatmul.mubr.msk.f32.vlgmr.msra.gmra.mrb[6].mxu1 %vm135_vm0, %v133_v14 }
 0x2cb   :  { %11251 = vmatprep.mubr.msk.f32.mxu1 %vm13642_vm1, %v13643_v3  ;;  %12602 = vmatpush3.bf16.msra.mxu1 %v14012_v51 }
 0x2cc   :  { %12603 = vmatprep.subr.bf16.mxu1 %v13641_v0 }
 0x2cf   :  { %12605 = vmatpush3.bf16.msra.mxu1 %v14030_v57 }
 0x2d0   :  { %12615 = vmatprep.subr.bf16.mxu1 %v13641_v0 }
 0x2d2   :  { %11252 = vmatmul.mubr.msk.f32.vlgmr.msra.gmra.mrb[8].mxu1 %vm135_vm0, %v14043_v1 }
 0x2d3   :  { %11285 = vmatprep.mubr.msk.f32.mxu1 %vm13642_vm1, %v13643_v3 }
 0x395   :  { %v635_v24 = vpop.f32.mrb[4].mxu1 }
 0x396   :  { %v636_v25 = vadd.f32 %v13984_v23, %v635_v24  ;;  %v11209_v26 = vpop.f32.mrb[5].mxu1  ;;  %v1024_v24 = vld [vmem:[#allocation2 + $0x10] sm:$0xff] }
 0x398   :  { %13231 = vtanh.f32 %v636_v25  ;;  %v1025_v25 = vld [vmem:[#allocation2 + $0x18] sm:$0xff] }
 0x399   :  { %v14071_v30 = vpack.c.bf16 %v1025_v25, %v1024_v24 }
 0x39d   :  { %v797_v31 = vpop.f32.mrb[6].mxu1 }
 0x39e   :  { %v798_v32 = vadd.f32 %v13990_v27, %v797_v31  ;;  %v11231_v33 = vpop.f32.mrb[7].mxu1  ;;  %v1026_v31 = vld [vmem:[#allocation2 + $0x20] sm:$0xff] }
 0x3a0   :  { %809 = vrot.lane.b32.xlu0 %v798_v32, %s16246_s0 }
 0x3a2   :  { %v13232_v34 = vpop.eup %13231 }
 0x3a3   :  { %v647_v35 = vsel %vm646_vm3, %v13232_v34, %v13886_v29  ;;  %v14082_v34 = vld [vmem:[#allocation2 + $0x30] sm:$0xff] }
 0x3a4   :  { %11219 = vmatmul.mubr.msk.f32.vlgmr.msra.gmra.mrb[8].mxu0 %vm135_vm0, %v647_v35  ;;  %825 = vrot.lane.b32.xlu0 %v133_v14, %s16244_s13  ;;  %v1019_v35 = vld [vmem:[%s16223_s6] sm:$0xff] }
 0x3a5   :  { %11240 = vmatprep.mubr.msk.f32.mxu0 %vm13642_vm1, %v13643_v3  ;;  %12596 = vmatpush3.bf16.msra.mxu0 %v14032_v58  ;;  %v986_v12 = vpop.f32.mrb[8].mxu1 }
 0x3a6   :  { %12597 = vmatprep.subr.bf16.mxu0 %v13641_v0  ;;  %v14060_v14 = vadd.f32 %v10127_v10, %v986_v12  ;;  %v11253_v15 = vpop.f32.mrb[9].mxu1 }
 0x3a9   :  { %12599 = vmatpush3.bf16.msra.mxu0 %v14036_v60 }
 0x3aa   :  { %12606 = vmatprep.subr.bf16.mxu0 %v13641_v0 }
 0x412   :  { %v810_v44 = vpop.permute.xlu0 %809 }
 0x416   :  { %v826_v2 = vpop.permute.xlu0 %825 }
 0x477   :  { %v718_v37 = vpop.f32.mrb[8].mxu0 }
 0x478   :  { %v719_v38 = vadd.f32 %v718_v37, %v648_v36  ;;  %v11220_v39 = vpop.f32.mrb[9].mxu0  ;;  %v1020_v36 = vld [vmem:[%s16223_s6 + $0x8] sm:$0xff]  ;;  %v1021_v37 = vld [vmem:[%s16223_s6 + $0x10] sm:$0xff] }
 0x47a   :  { %v801_v40 = vadd.f32 %v798_v32, %v719_v38  ;;  %v1027_v32 = vld [vmem:[#allocation2 + $0x28] sm:$0xff] }
 0x47b   :  { %v14077_v33 = vpack.c.bf16 %v1027_v32, %v1026_v31 }
 0x47c   :  { %v10124_v41 = vmul.f32 -1.442695, %v801_v40 }
 0x47e   :  { %13233 = vpow2.f32 %v10124_v41 }
 0x488   :  { %v13234_v42 = vpop.eup %13233 }
 0x489   :  { %v805_v29 = vadd.f32 1.0, %v13234_v42 }
 0x48b   :  { %13235 = vrcp.f32 %v805_v29 }
 0x495   :  { %v13236_v43 = vpop.eup %13235 }
 0x496   :  { %v812_v45 = vmul.f32 %v13236_v43, %v810_v44  ;;  %v819_v4 = vsub.f32 1.0, %v13236_v43  ;;  %v828_v6 = vmul.f32 %v13236_v43, %v826_v2  ;;  %v125_v2 = vld [vmem:[%s16225_s21] sm:$0xff] }
 0x498   :  { %814 = vrot.lane.b32.xlu1 %v812_v45, %s16246_s0  ;;  %s16273_s0 = smov 64  }
 0x499   :  { %998 = vrot.lane.b32.xlu0 %v14060_v14, %s16273_s0 }
 0x50a   :  { %v815_v46 = vpop.permute.xlu1 %814 }
 0x50b   :  { %v817_v47 = vadd.f32 %v815_v46, %v719_v38  ;;  %v14107_v38 = vld [vmem:[%s16224_s19] ss:$0 sm:$0xff]  ;;  %v14111_v45 = vpop.permute.xlu0 %998 }
 0x50d   :  { %13237 = vtanh.f32 %v817_v47 }
 0x517   :  { %v13238_v63 = vpop.eup %13237 }
 0x518   :  { %821 = vrot.lane.b32.xlu1 %v13238_v63, %s13647_s17 }
 0x58a   :  { %v822_v5 = vpop.permute.xlu1 %821 }
 0x58b   :  { %v824_v7 = vmul.f32 %v822_v5, %v819_v4  ;;  %v127_v4 = vld [vmem:[%s16225_s21 + $0x10] sm:$0xff] }
 0x58d   :  { %v14053_v9 = vadd.f32 %v828_v6, %v824_v7  ;;  %v128_v6 = vld [vmem:[%s16225_s21 + $0x18] sm:$0xff] }
 0x58e   :  { %v14135_v7 = vpack.c.bf16 %v128_v6, %v127_v4 }
 0x58f   :  { %837 = vrot.lane.b32.xlu1 %v14053_v9, %s13647_s17 }
 0x601   :  { %v14066_v26 = vpop.permute.xlu1 %837 }
 0x602   :  { %11241 = vmatmul.mubr.msk.f32.vlgmr.msra.gmra.mrb[10].mxu0 %vm135_vm0, %v14066_v26 }
 0x603   :  { %12608 = vmatpush3.bf16.msra.mxu0 %v14064_v21  ;;  %11268 = vmatprep.mubr.msk.f32.mxu0 %vm13642_vm1, %v13643_v3 }
 0x604   :  { %12609 = vmatprep.subr.bf16.mxu0 %v13641_v0 }
 0x607   :  { %12611 = vmatpush3.bf16.msra.mxu0 %v14071_v30 }
 0x608   :  { %12612 = vmatprep.subr.bf16.mxu0 %v13641_v0 }
 0x60b   :  { %12614 = vmatpush3.bf16.msra.mxu0 %v14077_v33 }
 0x60c   :  { %11266 = vmatprep.subr.mxu0 %v13643_v3 }
 0x60f   :  { %11267 = vmatpush3.msra.mxu0 %v14082_v34 }
 0x610   :  { %11269 = vmatmul.mubr.msk.f32.vlgmr.msra.gmra.mrb[12].mxu0 %vm1029_vm4, %v1019_v35  ;;  %12623 = vmatprep.subr.bf16.mxu0 %v13641_v0  ;;  %v1119_v35 = vld [vmem:[%s16226_s5] sm:$0xff] }
 0x611   :  { %11271 = vmatprep.mubr.msk.f32.mxu0 %vm13642_vm1, %v13643_v3 }
 0x614   :  { %11272 = vmatmul.mubr.msk.f32.gmra.mrb[14].mxu0 %vm1029_vm4, %v1020_v36  ;;  %v1120_v36 = vld [vmem:[%s16226_s5 + $0x8] sm:$0xff] }
 0x615   :  { %11274 = vmatprep.mubr.msk.f32.mxu0 %vm13642_vm1, %v13643_v3 }
 0x618   :  { %11275 = vmatmul.mubr.msk.f32.gmra.mrb[16].mxu0 %vm1029_vm4, %v1021_v37  ;;  %v1121_v37 = vld [vmem:[%s16226_s5 + $0x10] sm:$0xff] }
 0x619   :  { %11302 = vmatprep.mubr.msk.f32.mxu0 %vm13642_vm1, %v13643_v3 }
 0x6d5   :  { %v907_v39 = vpop.f32.mrb[10].mxu0 }
 0x6d6   :  { %v908_v40 = vadd.f32 %v14107_v38, %v907_v39  ;;  %v11242_v41 = vpop.f32.mrb[11].mxu0 }
 0x6d8   :  { %v990_v42 = vadd.f32 %v14060_v14, %v908_v40 }
 0x6da   :  { %v10129_v29 = vmul.f32 -1.442695, %v990_v42 }
 0x6dc   :  { %13239 = vpow2.f32 %v10129_v29 }
 0x6e3   :  { %v1105_v48 = vpop.f32.mrb[12].mxu0 }
 0x6e4   :  { %v11270_v49 = vpop.f32.mrb[13].mxu0 }
 0x6e5   :  { %v10153_v49 = vld [vmem:[%s16227_s23] ss:$0 sm:$0xff] }
 0x6e6   :  { %v13240_v43 = vpop.eup %13239 }
 0x6e7   :  { %v994_v44 = vadd.f32 1.0, %v13240_v43  ;;  %v1110_v50 = vpop.f32.mrb[14].mxu0 }
 0x6e8   :  { %v11273_v52 = vpop.f32.mrb[15].mxu0 }
 0x6e9   :  { %13241 = vrcp.f32 %v994_v44 }
 0x6eb   :  { %v1115_v53 = vpop.f32.mrb[16].mxu0 }
 0x6ec   :  { %v11276_v54 = vpop.f32.mrb[17].mxu0 }
 0x6ed   :  { %v14216_v54 = vld [vmem:[%s16228_s22] ss:$0 sm:$0xff] }
 0x6f3   :  { %v13242_v46 = vpop.eup %13241 }
 0x6f4   :  { %v1001_v47 = vmul.f32 %v13242_v46, %v14111_v45  ;;  %v1008_v12 = vsub.f32 1.0, %v13242_v46 }
 0x6f6   :  { %1003 = vrot.lane.b32.xlu1 %v1001_v47, %s16273_s0 }
 0x6fa   :  { %1014 = vrot.lane.b32.xlu1 %v14043_v1, %s16274_s18  ;;  %v126_v1 = vld [vmem:[%s16225_s21 + $0x8] sm:$0xff] }
 0x6fb   :  { %v14129_v5 = vpack.c.bf16 %v126_v1, %v125_v2 }
 0x6fd   :  { %12625 = vmatpush3.bf16.msra.mxu0 %v14129_v5 }
 0x6fe   :  { %1127 = vrot.lane.b32.xlu1 %v1110_v50, %s16274_s18  ;;  %12626 = vmatprep.subr.bf16.mxu0 %v13641_v0 }
 0x701   :  { %12628 = vmatpush3.bf16.msra.mxu0 %v14135_v7 }
 0x702   :  { %12646 = vmatprep.subr.bf16.mxu0 %v13641_v0 }
 0x768   :  { %v1004_v55 = vpop.permute.xlu1 %1003 }
 0x769   :  { %v1006_v56 = vadd.f32 %v1004_v55, %v908_v40 }
 0x76b   :  { %13243 = vtanh.f32 %v1006_v56 }
 0x76c   :  { %v14141_v10 = vpop.permute.xlu1 %1014 }
 0x76d   :  { %v1017_v17 = vmul.f32 %v13242_v46, %v14141_v10 }
 0x770   :  { %v1128_v31 = vpop.permute.xlu1 %1127 }
 0x775   :  { %v13244_v63 = vpop.eup %13243 }
 0x776   :  { %1010 = vrot.lane.b32.xlu0 %v13244_v63, %s13647_s17 }
 0x77a   :  { %1125 = vrot.lane.b32.xlu0 %v1105_v48, %s16274_s18 }
 0x77e   :  { %1129 = vrot.lane.b32.xlu0 %v1115_v53, %s16274_s18 }
 0x7e8   :  { %v1011_v15 = vpop.permute.xlu0 %1010 }
 0x7e9   :  { %v1013_v20 = vmul.f32 %v1011_v15, %v1008_v12 }
 0x7eb   :  { %v1018_v24 = vadd.f32 %v1017_v17, %v1013_v20 }
 0x7ec   :  { %v1126_v25 = vpop.permute.xlu0 %1125 }
 0x7ed   :  { %1143 = vrot.lane.b32.xlu0 %v1126_v25, %s13647_s17  ;;  %1141 = vrot.lane.b32.xlu1 %v1018_v24, %s13647_s17 }
 0x7f0   :  { %v1130_v32 = vpop.permute.xlu0 %1129 }
 0x7f1   :  { %1147 = vrot.lane.b32.xlu0 %v1130_v32, %s13647_s17  ;;  %1145 = vrot.lane.b32.xlu1 %v1128_v31, %s13647_s17 }
 0x7f5   :  { %1134 = vrot.lane.b32.xlu1 %v1119_v35, %s16274_s18  ;;  %1136 = vrot.lane.b32.xlu0 %v1120_v36, %s16274_s18 }
 0x7f9   :  { %1138 = vrot.lane.b32.xlu1 %v1121_v37, %s16274_s18 }
 0x85f   :  { %v1144_v39 = vpop.permute.xlu0 %1143  ;;  %v1142_v40 = vpop.permute.xlu1 %1141 }
 0x860   :  { %v12616_v42 = vpack.c.bf16 %v1144_v39, %v1142_v40  ;;  %11303 = vmatmul.mubr.msk.f32.vlgmr.msra.gmra.mrb[18].mxu0 %vm135_vm0, %v1142_v40 }
 0x861   :  { %11305 = vmatprep.mubr.msk.f32.mxu0 %vm13642_vm1, %v13643_v3  ;;  %12648 = vmatpush3.bf16.msra.mxu0 %v13839_v16 }
 0x862   :  { %12618 = vmatpush3.bf16.xpose.msk.msra.mxu1 %vm14162_vm5, %v12616_v42  ;;  %12649 = vmatprep.subr.bf16.mxu0 %v13641_v0 }
 0x863   :  { %v1148_v29 = vpop.permute.xlu0 %1147  ;;  %v1146_v43 = vpop.permute.xlu1 %1145  ;;  %12619 = vmatprep.subr.bf16.mxu1 %v13641_v0 }
 0x864   :  { %11306 = vmatmul.mubr.msk.f32.gmra.mrb[20].mxu0 %vm135_vm0, %v1144_v39  ;;  %v12620_v47 = vpack.c.bf16 %v1148_v29, %v1146_v43  ;;  %v14231_v39 = vld [vmem:[%s16229_s24] sm:$0x1] }
 0x865   :  { %11308 = vmatprep.mubr.msk.f32.mxu0 %vm13642_vm1, %v13643_v3  ;;  %12651 = vmatpush3.bf16.msra.mxu0 %v13877_v28 }
 0x866   :  { %12660 = vmatprep.subr.bf16.mxu0 %v13641_v0 }
 0x867   :  { %v1135_v44 = vpop.permute.xlu1 %1134  ;;  %v1137_v46 = vpop.permute.xlu0 %1136 }
 0x868   :  { %11309 = vmatmul.mubr.msk.f32.gmra.mrb[22].mxu0 %vm135_vm0, %v1146_v43  ;;  %1249 = vrot.lane.b32.xlu0 %v1135_v44, %s13647_s17 }
 0x869   :  { %11311 = vmatprep.mubr.msk.f32.mxu0 %vm13642_vm1, %v13643_v3  ;;  %1251 = vrot.lane.b32.xlu1 %v1137_v46, %s13647_s17 }
 0x86a   :  { %12622 = vmatpush3.bf16.xpose.msk.msra.mxu1 %vm14162_vm5, %v12620_v47 }
 0x86b   :  { %v1139_v48 = vpop.permute.xlu1 %1138  ;;  %12629 = vmatprep.subr.bf16.mxu1 %v13641_v0 }
 0x86c   :  { %11312 = vmatmul.mubr.msk.f32.gmra.mrb[24].mxu0 %vm135_vm0, %v1148_v29  ;;  %1253 = vrot.lane.b32.xlu0 %v1139_v48, %s13647_s17 }
 0x86d   :  { %11314 = vmatprep.mubr.msk.f32.mxu0 %vm13642_vm1, %v13643_v3  ;;  %1458 = vrot.lane.b32.xlu1 %v10153_v49, %s16274_s18 }
 0x871   :  { %11286 = vmatmul.mubr.msk.f32.vlgmr.msra.gmra.mrb[10].mxu1 %vm135_vm0, %v1119_v35 }
 0x872   :  { %11288 = vmatprep.mubr.msk.f32.mxu1 %vm13642_vm1, %v13643_v3 }
 0x875   :  { %11289 = vmatmul.mubr.msk.f32.gmra.mrb[12].mxu1 %vm135_vm0, %v1120_v36 }
 0x876   :  { %11291 = vmatprep.mubr.msk.f32.mxu1 %vm13642_vm1, %v13643_v3 }
 0x879   :  { %11292 = vmatmul.mubr.msk.f32.gmra.mrb[14].mxu1 %vm135_vm0, %v1121_v37 }
 0x87a   :  { %11331 = vmatprep.mubr.msk.f32.mxu1 %vm13642_vm1, %v13643_v3 }
 0x8da   :  { %v1250_v50 = vpop.permute.xlu0 %1249 }
 0x8db   :  { %11315 = vmatmul.mubr.msk.f32.gmra.mrb[26].mxu0 %vm135_vm0, %v1250_v50  ;;  %v1252_v52 = vpop.permute.xlu1 %1251 }
 0x8dc   :  { %11317 = vmatprep.mubr.msk.f32.mxu0 %vm13642_vm1, %v13643_v3 }
 0x8de   :  { %v1254_v53 = vpop.permute.xlu0 %1253 }
 0x8df   :  { %11318 = vmatmul.mubr.msk.f32.gmra.mrb[28].mxu0 %vm135_vm0, %v1252_v52  ;;  %v14240_v50 = vpop.permute.xlu1 %1458 }
 0x8e0   :  { %11320 = vmatprep.mubr.msk.f32.mxu0 %vm13642_vm1, %v13643_v3 }
 0x8e3   :  { %11321 = vmatmul.mubr.msk.f32.gmra.mrb[30].mxu0 %vm135_vm0, %v1254_v53  ;;  %v31_v53 = vstv %s16230_s25 }
 0x8e4   :  { %11362 = vmatprep.mubr.msk.f32.mxu0 %vm13642_vm1, %v13643_v3  ;;  %32 = vst [vmem:[#allocation3] sm:$0x1] %v31_v53  ;;  %v1504_v53 = vld [vmem:[%s16231_s7] sm:$0xff] }
 0x933   :  { %v1327_v55 = vpop.f32.mrb[18].mxu0 }
 0x934   :  { %v11304_v56 = vpop.f32.mrb[19].mxu0  ;;  %v1328_v63 = vadd.f32 %v14216_v54, %v1327_v55 }
 0x936   :  { %13245 = vtanh.f32 %v1328_v63 }
 0x937   :  { %v1332_v2 = vpop.f32.mrb[20].mxu0 }
 0x938   :  { %v1333_v1 = vadd.f32 %v14216_v54, %v1332_v2  ;;  %v11307_v4 = vpop.f32.mrb[21].mxu0 }
 0x93a   :  { %13247 = vtanh.f32 %v1333_v1 }
 0x93b   :  { %v1337_v6 = vpop.f32.mrb[22].mxu0 }
 0x93c   :  { %v11310_v12 = vpop.f32.mrb[23].mxu0  ;;  %v1338_v15 = vadd.f32 %v14216_v54, %v1337_v6 }
 0x93e   :  { %13249 = vtanh.f32 %v1338_v15 }
 0x93f   :  { %v1342_v17 = vpop.f32.mrb[24].mxu0 }
 0x940   :  { %v1343_v20 = vadd.f32 %v14216_v54, %v1342_v17  ;;  %v11313_v24 = vpop.f32.mrb[25].mxu0  ;;  %v13246_v25 = vpop.eup %13245 }
 0x942   :  { %13251 = vtanh.f32 %v1343_v20 }
 0x944   :  { %v13248_v31 = vpop.eup %13247  ;;  %v14249_v1 = vpop.f32.mrb[10].mxu1 }
 0x945   :  { %v12630_v32 = vpack.c.bf16 %v13248_v31, %v13246_v25  ;;  %v11287_v6 = vpop.f32.mrb[11].mxu1 }
 0x947   :  { %12632 = vmatpush3.bf16.xpose.msk.msra.mxu1 %vm14162_vm5, %v12630_v32 }
 0x948   :  { %12633 = vmatprep.subr.bf16.mxu1 %v13641_v0  ;;  %v13250_v35 = vpop.eup %13249  ;;  %v14252_v12 = vpop.f32.mrb[12].mxu1 }
 0x949   :  { %v11290_v15 = vpop.f32.mrb[13].mxu1 }
 0x94c   :  { %v13252_v36 = vpop.eup %13251  ;;  %v14255_v17 = vpop.f32.mrb[14].mxu1 }
 0x94d   :  { %v12634_v37 = vpack.c.bf16 %v13252_v36, %v13250_v35  ;;  %v11293_v20 = vpop.f32.mrb[15].mxu1 }
 0x94f   :  { %12636 = vmatpush3.bf16.xpose.msk.msra.mxu1 %vm14162_vm5, %v12634_v37 }
 0x950   :  { %12637 = vmatprep.subr.bf16.mxu1 %v13641_v0 }
 0x956   :  { %11332 = vmatmul.mubr.msk.f32.vlgmr.msra.gmra.mrb[16].mxu1 %vm135_vm0, %v14231_v39 }
 0x957   :  { %11340 = vmatprep.mubr.msk.f32.mxu1 %vm13642_vm1, %v13643_v3 }
 0x9ae   :  { %v1347_v40 = vpop.f32.mrb[26].mxu0 }
 0x9af   :  { %v1348_v42 = vadd.f32 %v14216_v54, %v1347_v40  ;;  %v11316_v29 = vpop.f32.mrb[27].mxu0 }
 0x9b0   :  { %v1485_v29 = vlaneseq }
 0x9b1   :  { %13253 = vtanh.f32 %v1348_v42  ;;  %v10154_v42 = vld [vmem:[#allocation3] ss:$0 sm:$0xff] }
 0x9b2   :  { %v1352_v43 = vpop.f32.mrb[28].mxu0 }
 0x9b3   :  { %v1353_v44 = vadd.f32 %v14216_v54, %v1352_v43  ;;  %v11319_v46 = vpop.f32.mrb[29].mxu0  ;;  %v1486_v43 = vshrl.u32 %v1485_v29, 7 }
 0x9b5   :  { %13255 = vtanh.f32 %v1353_v44  ;;  %v14260_v44 = vsub.s32 0, %v1486_v43 }
 0x9b6   :  { %v1357_v47 = vpop.f32.mrb[30].mxu0 }
 0x9b7   :  { %v1358_v48 = vadd.f32 %v14216_v54, %v1357_v47  ;;  %v11322_v49 = vpop.f32.mrb[31].mxu0 }
 0x9b9   :  { %13257 = vtanh.f32 %v1358_v48 }
 0x9bb   :  { %v13254_v52 = vpop.eup %13253 }
 0x9bc   :  { %v1461_v55 = vmul.f32 %v13254_v52, %v14240_v50 }
 0x9be   :  { %1467 = vrot.lane.b32.xlu0 %v1461_v55, %s13647_s17 }
 0x9bf   :  { %v13256_v56 = vpop.eup %13255 }
 0x9c0   :  { %v1462_v63 = vmul.f32 %v13256_v56, %v14240_v50 }
 0x9c2   :  { %1469 = vrot.lane.b32.xlu1 %v1462_v63, %s13647_s17  ;;  %v1505_v63 = vld [vmem:[%s16231_s7 + $0x8] sm:$0xff] }
 0x9c3   :  { %v13258_v2 = vpop.eup %13257 }
 0x9c4   :  { %v1463_v4 = vmul.f32 %v13258_v2, %v14240_v50 }
 0x9c6   :  { %1471 = vrot.lane.b32.xlu0 %v1463_v4, %s13647_s17 }
 0xa29   :  { %v1449_v24 = vpop.f32.mrb[16].mxu1 }
 0xa2a   :  { %v11333_v25 = vpop.f32.mrb[17].mxu1  ;;  %v1488_v46 = vrot.slane %v1449_v24, %v14260_v44 }
 0xa2b   :  { %v1506_v25 = vld [vmem:[%s16231_s7 + $0x10] sm:$0xff] }
 0xa30   :  { %v1468_v31 = vpop.permute.xlu0 %1467 }
 0xa31   :  { %v1476_v32 = vsel %vm135_vm0, %v1468_v31, 0.0 }
 0xa32   :  { %1477 = vadd.xlane.f32.xlu1 %v1476_v32 }
 0xa34   :  { %v1470_v35 = vpop.permute.xlu1 %1469 }
 0xa35   :  { %v1479_v36 = vsel %vm135_vm0, %v1470_v35, 0.0 }
 0xa36   :  { %1480 = vadd.xlane.f32.xlu0 %v1479_v36 }
 0xa38   :  { %v1472_v37 = vpop.permute.xlu0 %1471 }
 0xa39   :  { %v1482_v40 = vsel %vm135_vm0, %v1472_v37, 0.0 }
 0xa3a   :  { %1483 = vadd.xlane.f32.xlu0 %v1482_v40 }
 0xa43   :  { %1498 = vperm.xlu1 %13218, %v10154_v42  }
 0xabf   :  { %v1478_v47 = vpop.xlane.xlu1 %1477 }
 0xac0   :  { %v1489_v48 = vadd.f32 %v1488_v46, %v1478_v47 }
 0xac3   :  { %v14263_v49 = vpop.permute.xlu1 %1498  ;;  %v1481_v52 = vpop.xlane.xlu0 %1480 }
 0xac4   :  { %v1490_v55 = vadd.f32 %v1488_v46, %v1481_v52  ;;  %v1501_v56 = vadd.f32 %v14263_v49, %v1489_v48 }
 0xac6   :  { %v1502_v2 = vadd.f32 %v14263_v49, %v1490_v55  ;;  %v1507_v4 = vadd.f32 %v1504_v53, %v1501_v56 }
 0xac7   :  { %v1484_v6 = vpop.xlane.xlu0 %1483 }
 0xac8   :  { %v1491_v15 = vadd.f32 %v1488_v46, %v1484_v6  ;;  %v1510_v20 = vsel %vm135_vm0, %v1507_v4, -inf  ;;  %v1508_v24 = vadd.f32 %v1505_v63, %v1502_v2 }
 0xac9   :  { %1511 = vmax.xlane.f32.xlu0 %v1510_v20 }
 0xaca   :  { %v1503_v31 = vadd.f32 %v14263_v49, %v1491_v15  ;;  %v1513_v32 = vsel %vm135_vm0, %v1508_v24, -inf }
 0xacc   :  { %v1509_v35 = vadd.f32 %v1506_v25, %v1503_v31 }
 0xacd   :  { %1514 = vmax.xlane.f32.xlu0 %v1513_v32 }
 0xace   :  { %v1516_v36 = vsel %vm135_vm0, %v1509_v35, -inf }
 0xad1   :  { %1517 = vmax.xlane.f32.xlu0 %v1516_v36 }
 0xb56   :  { %v1512_v37 = vpop.xlane.xlu0 %1511 }
 0xb57   :  { %v1519_v40 = vsub.f32 %v1507_v4, %v1512_v37 }
 0xb59   :  { %v1522_v42 = vmul.f32 1.442695, %v1519_v40 }
 0xb5a   :  { %v1515_v29 = vpop.xlane.xlu0 %1514 }
 0xb5b   :  { %13259 = vpow2.f32 %v1522_v42  ;;  %v1520_v43 = vsub.f32 %v1508_v24, %v1515_v29 }
 0xb5d   :  { %v1524_v46 = vmul.f32 1.442695, %v1520_v43 }
 0xb5e   :  { %v1518_v47 = vpop.xlane.xlu0 %1517 }
 0xb5f   :  { %13261 = vpow2.f32 %v1524_v46  ;;  %v1521_v48 = vsub.f32 %v1509_v35, %v1518_v47 }
 0xb61   :  { %v1526_v52 = vmul.f32 1.442695, %v1521_v48 }
 0xb63   :  { %13263 = vpow2.f32 %v1526_v52 }
 0xb65   :  { %v13260_v53 = vpop.eup %13259 }
 0xb66   :  { %v1528_v55 = vsel %vm135_vm0, %v13260_v53, 0.0 }
 0xb67   :  { %1529 = vadd.xlane.f32.xlu0 %v1528_v55  ;;  %v14303_v55 = vld [vmem:[%s16232_s9] sm:$0xff] }
 0xb69   :  { %v13262_v56 = vpop.eup %13261 }
 0xb6a   :  { %v1531_v63 = vsel %vm135_vm0, %v13262_v56, 0.0 }
 0xb6b   :  { %1532 = vadd.xlane.f32.xlu1 %v1531_v63 }
 0xb6d   :  { %v13264_v2 = vpop.eup %13263 }
 0xb6e   :  { %v1534_v4 = vsel %vm135_vm0, %v13264_v2, 0.0 }
 0xb6f   :  { %1535 = vadd.xlane.f32.xlu0 %v1534_v4  ;;  %v10161_v4 = vld [vmem:[%s16262_s15 + $0x38] sm:$0xff] }
 0xbf4   :  { %v1530_v6 = vpop.xlane.xlu0 %1529 }
 0xbf5   :  { %13265 = vrcp.f32 %v1530_v6 }
 0xbf8   :  { %v1533_v15 = vpop.xlane.xlu1 %1532 }
 0xbf9   :  { %13267 = vrcp.f32 %v1533_v15  ;;  %v10162_v15 = vld [vmem:[%s16264_s12 + $0x20] sm:$0xff] }
 0xbfc   :  { %v1536_v20 = vpop.xlane.xlu0 %1535 }
 0xbfd   :  { %13269 = vrcp.f32 %v1536_v20 }
 0xbff   :  { %v13266_v24 = vpop.eup %13265 }
 0xc00   :  { %v1540_v25 = vmul.f32 %v13266_v24, %v13260_v53  ;;  %v10158_v53 = vld [vmem:[%s16262_s15 + $0x20] sm:$0xff] }
 0xc01   :  { %v1793_v20 = vadd.f32 %v10162_v15, %v10158_v53  ;;  %v14324_v24 = vld [vmem:[%s16265_s8] sm:$0xff] }
 0xc02   :  { %v1543_v31 = vmul.f32 %v1540_v25, %v14249_v1  ;;  %v10175_v1 = vld [vmem:[%s16268_s2 + $0x8] sm:$0xff] }
 0xc03   :  { %v13268_v32 = vpop.eup %13267  ;;  %vm2118_vm6 = vcmp.gt.f32.partialorder %v10175_v1, 0.5  ;;  %v10163_v25 = vld [vmem:[%s16264_s12 + $0x28] sm:$0xff] }
 0xc04   :  { %v1546_v35 = vsel %vm135_vm0, %v1543_v31, 0.0  ;;  %v1541_v36 = vmul.f32 %v13268_v32, %v13262_v56  ;;  %v2119_v47 = vsel %vm2118_vm6, 1, %v13644_v62  ;;  %v10164_v31 = vld [vmem:[%s16264_s12 + $0x30] sm:$0xff] }
 0xc05   :  { %1547 = vadd.xlane.f32.xlu0 %v1546_v35 }
 0xc06   :  { %v1544_v37 = vmul.f32 %v1541_v36, %v14252_v12  ;;  %v10165_v36 = vld [vmem:[%s16264_s12 + $0x38] sm:$0xff] }
 0xc07   :  { %v13270_v40 = vpop.eup %13269 }
 0xc08   :  { %v1549_v42 = vsel %vm135_vm0, %v1544_v37, 0.0  ;;  %v1542_v29 = vmul.f32 %v13270_v40, %v13264_v2  ;;  %v10160_v2 = vld [vmem:[%s16262_s15 + $0x30] sm:$0xff]  ;;  %v1796_v37 = vadd.f32 %v10165_v36, %v10161_v4 }
 0xc09   :  { %1550 = vadd.xlane.f32.xlu0 %v1549_v42  ;;  %v12644_v6 = vpack.c.bf16 %v10161_v4, %v10160_v2  ;;  %v1795_v35 = vadd.f32 %v10164_v31, %v10160_v2 }
 0xc0a   :  { %v1545_v43 = vmul.f32 %v1542_v29, %v14255_v17  ;;  %v10159_v17 = vld [vmem:[%s16262_s15 + $0x28] sm:$0xff] }
 0xc0b   :  { %v12641_v56 = vpack.c.bf16 %v10159_v17, %v10158_v53  ;;  %v1794_v32 = vadd.f32 %v10163_v25, %v10159_v17  ;;  %v14363_v53 = vld [vmem:[%s16267_s29 + $0x1] ss:$0 sm:$0xff] }
 0xc0c   :  { %v1552_v46 = vsel %vm135_vm0, %v1545_v43, 0.0  ;;  %v14354_v43 = vld [vmem:[%s16266_s28 + $0x8] sm:$0xff] }
 0xc0d   :  { %1553 = vadd.xlane.f32.xlu0 %v1552_v46 }
 0xc23   :  { %2121 = vperm.xlu0 %13217, %v2119_v47  }
 0xc92   :  { %v1548_v48 = vpop.xlane.xlu0 %1547 }
 0xc96   :  { %v1551_v12 = vpop.xlane.xlu0 %1550 }
 0xc97   :  { %v12638_v52 = vpack.c.bf16 %v1551_v12, %v1548_v48 }
 0xc99   :  { %12639 = vmatpush3.bf16.msra.mxu1 %v12638_v52 }
 0xc9a   :  { %11338 = vmatprep.subr.mxu1 %v13643_v3  ;;  %v1554_v63 = vpop.xlane.xlu0 %1553 }
 0xc9d   :  { %11339 = vmatpush3.msra.mxu1 %v1554_v63 }
 0xc9e   :  { %11341 = vmatmul.mubr.msk.f32.vlgmr.msra.gmra.mrb[18].mxu1 %vm1555_vm7, %v14303_v55  ;;  %12640 = vmatprep.subr.bf16.mxu1 %v13641_v0 }
 0xc9f   :  { %12642 = vmatpush3.bf16.msra.mxu1 %v12641_v56  ;;  %11351 = vmatprep.mubr.msk.f32.mxu1 %vm13642_vm1, %v13643_v3 }
 0xca0   :  { %12643 = vmatprep.subr.bf16.mxu1 %v13641_v0 }
 0xca3   :  { %12645 = vmatpush3.bf16.msra.mxu1 %v12644_v6 }
 0xca4   :  { %12653 = vmatprep.subr.bf16.mxu1 %v13825_v11 }
 0xca6   :  { %11352 = vmatmul.mubr.msk.f32.vlgmr.msra.gmra.mrb[20].mxu1 %vm135_vm0, %v14324_v24 }
 0xca7   :  { %12655 = vmatpush3.bf16.msra.mxu1 %v13825_v11  ;;  %11373 = vmatprep.mubr.msk.f32.mxu1 %vm135_vm0, %v1793_v20 }
 0xca8   :  { %12657 = vmatprep.subr.bf16.mxu1 %v13846_v19 }
 0xcab   :  { %12659 = vmatpush3.bf16.msra.mxu1 %v13846_v19 }
 0xcac   :  { %12666 = vmatprep.subr.bf16.mxu1 %v13641_v0 }
 0xcae   :  { %11374 = vmatmul.mubr.msk.f32.vlgmr.msra.gmra.mrb[22].mxu1 %vm135_vm0, %v1794_v32 }
 0xcaf   :  { %11376 = vmatprep.mubr.msk.f32.mxu1 %vm135_vm0, %v1795_v35  ;;  %12668 = vmatpush3.bf16.msra.mxu1 %v13839_v16 }
 0xcb0   :  { %12669 = vmatprep.subr.bf16.mxu1 %v13641_v0 }
 0xcb2   :  { %11377 = vmatmul.mubr.msk.f32.gmra.mrb[24].mxu1 %vm135_vm0, %v1796_v37 }
 0xcb3   :  { %12671 = vmatpush3.bf16.msra.mxu1 %v13877_v28  ;;  %11398 = vmatprep.mubr.msk.f32.mxu1 %vm13642_vm1, %v13643_v3 }
 0xcb4   :  { %12678 = vmatprep.subr.bf16.mxu1 %v13641_v0 }
 0xd71   :  { %v1625_v40 = vpop.f32.mrb[18].mxu1 }
 0xd72   :  { %v10156_v42 = vmul.f32 -1.442695, %v1625_v40  ;;  %v11342_v29 = vpop.f32.mrb[19].mxu1 }
 0xd73   :  { %v14386_v29 = vld [vmem:[%s16267_s29] ss:$0 sm:$0xff] }
 0xd74   :  { %13271 = vpow2.f32 %v10156_v42 }
 0xd79   :  { %v1715_v46 = vpop.f32.mrb[20].mxu1 }
 0xd7a   :  { %v1716_v1 = vadd.f32 %v14354_v43, %v1715_v46  ;;  %v11353_v47 = vpop.f32.mrb[21].mxu1 }
 0xd7c   :  { %11363 = vmatmul.mubr.msk.f32.vlgmr.msra.gmra.mrb[32].mxu0 %vm135_vm0, %v1716_v1 }
 0xd7d   :  { %11387 = vmatprep.mubr.msk.f32.mxu0 %vm13642_vm1, %v13643_v3 }
 0xd7e   :  { %v13272_v48 = vpop.eup %13271 }
 0xd7f   :  { %v1632_v12 = vadd.f32 1.0, %v13272_v48 }
 0xd81   :  { %13273 = vrcp.f32 %v1632_v12  ;;  %v11375_v52 = vpop.f32.mrb[22].mxu1 }
 0xd82   :  { %v1881_v17 = vadd.f32 %v14363_v53, %v11375_v52  ;;  %v1875_v56 = vpop.f32.mrb[23].mxu1 }
 0xd83   :  { %v1876_v63 = vadd.f32 %v14363_v53, %v1875_v56 }
 0xd84   :  { %13275 = vtanh.f32 %v1881_v17 }
 0xd85   :  { %13277 = vtanh.f32 %v1876_v63  ;;  %v11378_v2 = vpop.f32.mrb[24].mxu1 }
 0xd86   :  { %v1891_v4 = vadd.f32 %v14363_v53, %v11378_v2  ;;  %v1885_v6 = vpop.f32.mrb[25].mxu1 }
 0xd87   :  { %v1886_v15 = vadd.f32 %v14363_v53, %v1885_v6 }
 0xd88   :  { %13279 = vtanh.f32 %v1891_v4 }
 0xd89   :  { %13281 = vtanh.f32 %v1886_v15 }
 0xd8b   :  { %v13274_v20 = vpop.eup %13273 }
 0xd8c   :  { %1636 = vst.msk [vmem:[%s16233_s26] sm:$0xff] %vm1635_vm8, %v13274_v20 }
 0xd8e   :  { %v13276_v25 = vpop.eup %13275 }
 0xd8f   :  { %v13278_v31 = vpop.eup %13277 }
 0xd90   :  { %v12661_v32 = vpack.c.bf16 %v13276_v25, %v13278_v31 }
 0xd92   :  { %v13280_v35 = vpop.eup %13279  ;;  %12662 = vmatpush3.bf16.msra.mxu0 %v12661_v32 }
 0xd93   :  { %v13282_v36 = vpop.eup %13281  ;;  %12663 = vmatprep.subr.bf16.mxu0 %v13641_v0 }
 0xd94   :  { %v12664_v37 = vpack.c.bf16 %v13280_v35, %v13282_v36 }
 0xd96   :  { %12665 = vmatpush3.bf16.msra.mxu0 %v12664_v37 }
 0xd97   :  { %12672 = vmatprep.subr.bf16.mxu0 %v13641_v0 }
 0xd99   :  { %11388 = vmatmul.mubr.msk.f32.vlgmr.msra.gmra.mrb[34].mxu0 %vm135_vm0, %v14324_v24 }
 0xd9a   :  { %12674 = vmatpush3.bf16.msra.mxu0 %v13915_v59  ;;  %11409 = vmatprep.mubr.msk.f32.mxu0 %vm13642_vm1, %v13643_v3 }
 0xd9b   :  { %12675 = vmatprep.subr.bf16.mxu0 %v13641_v0 }
 0xd9e   :  { %12677 = vmatpush3.bf16.msra.mxu0 %v13921_v61 }
 0xd9f   :  { %12684 = vmatprep.subr.bf16.mxu0 %v13641_v0 }
 0xe4f   :  { %v1788_v40 = vpop.f32.mrb[32].mxu0 }
 0xe50   :  { %v11364_v42 = vpop.f32.mrb[33].mxu0  ;;  %v1789_v46 = vadd.f32 %v14386_v29, %v1788_v40 }
 0xe52   :  { %13283 = vtanh.f32 %v1789_v46 }
 0xe5c   :  { %v13284_v1 = vpop.eup %13283 }
 0xe6c   :  { %v1964_v47 = vpop.f32.mrb[34].mxu0 }
 0xe6d   :  { %v1965_v48 = vadd.f32 %v13284_v1, %v1964_v47  ;;  %v11389_v12 = vpop.f32.mrb[35].mxu0  ;;  %v10182_v47 = vld [vmem:[%s16223_s6 + $0x18] sm:$0xff] }
 0xe6e   :  { %v10184_v12 = vld [vmem:[%s16223_s6 + $0x28] sm:$0xff] }
 0xe6f   :  { %11399 = vmatmul.mubr.msk.f32.vlgmr.msra.gmra.mrb[26].mxu1 %vm135_vm0, %v1965_v48  ;;  %v10183_v48 = vld [vmem:[%s16223_s6 + $0x20] sm:$0xff] }
 0xe70   :  { %12680 = vmatpush3.bf16.msra.mxu1 %v13967_v18  ;;  %11420 = vmatprep.mubr.msk.f32.mxu1 %vm13642_vm1, %v13643_v3 }
 0xe71   :  { %12681 = vmatprep.subr.bf16.mxu1 %v13641_v0 }
 0xe74   :  { %12683 = vmatpush3.bf16.msra.mxu1 %v13977_v22 }
 0xe75   :  { %12690 = vmatprep.subr.bf16.mxu1 %v13641_v0 }
 0xf42   :  { %v2037_v52 = vpop.f32.mrb[26].mxu1 }
 0xf43   :  { %v2038_v17 = vadd.f32 %v14386_v29, %v2037_v52  ;;  %v11400_v56 = vpop.f32.mrb[27].mxu1 }
 0xf45   :  { %13285 = vtanh.f32 %v2038_v17 }
 0xf4f   :  { %v13286_v63 = vpop.eup %13285 }
 0xf50   :  { %11410 = vmatmul.mubr.msk.f32.vlgmr.msra.gmra.mrb[36].mxu0 %vm135_vm0, %v13286_v63 }
 0xf51   :  { %12686 = vmatpush3.bf16.msra.mxu0 %v13938_v8  ;;  %11431 = vmatprep.mubr.msk.f32.mxu0 %vm13642_vm1, %v13643_v3 }
 0xf52   :  { %12687 = vmatprep.subr.bf16.mxu0 %v13641_v0 }
 0xf55   :  { %12689 = vmatpush3.bf16.msra.mxu0 %v13948_v13 }
 0xf56   :  { %12696 = vmatprep.subr.bf16.mxu0 %v13641_v0 }
 0xf58   :  { %11432 = vmatmul.mubr.msk.f32.vlgmr.msra.gmra.mrb[38].mxu0 %vm135_vm0, %v14066_v26 }
 0xf59   :  { %12698 = vmatpush3.bf16.msra.mxu0 %v14064_v21  ;;  %11459 = vmatprep.mubr.msk.f32.mxu0 %vm13642_vm1, %v13643_v3 }
 0xf5a   :  { %12699 = vmatprep.subr.bf16.mxu0 %v13641_v0 }
 0xf5d   :  { %12701 = vmatpush3.bf16.msra.mxu0 %v14071_v30  ;;  %v2122_v30 = vpop.permute.xlu0 %2121 }
 0xf5e   :  { %12702 = vmatprep.subr.bf16.mxu0 %v13641_v0  ;;  %vm2123_vm9 = vcmp.eq.s32.totalorder %v2122_v30, 1 }
 0xf61   :  { %12704 = vmatpush3.bf16.msra.mxu0 %v14077_v33 }
 0xf62   :  { %11457 = vmatprep.subr.mxu0 %v13643_v3 }
 0xf65   :  { %11458 = vmatpush3.msra.mxu0 %v14082_v34 }
 0xf66   :  { %12713 = vmatprep.subr.bf16.mxu0 %v13641_v0  ;;  %11460 = vmatmul.mubr.msk.f32.vlgmr.msra.gmra.mrb[40].mxu0 %vm1029_vm4, %v10182_v47 }
 0xf67   :  { %11462 = vmatprep.mubr.msk.f32.mxu0 %vm13642_vm1, %v13643_v3  ;;  %12715 = vmatpush3.bf16.msra.mxu0 %v14129_v5 }
 0xf68   :  { %12716 = vmatprep.subr.bf16.mxu0 %v13641_v0 }
 0xf6a   :  { %11463 = vmatmul.mubr.msk.f32.gmra.mrb[42].mxu0 %vm1029_vm4, %v10183_v48 }
 0xf6b   :  { %11465 = vmatprep.mubr.msk.f32.mxu0 %vm13642_vm1, %v13643_v3  ;;  %12718 = vmatpush3.bf16.msra.mxu0 %v14135_v7 }
 0xf6c   :  { %12736 = vmatprep.subr.bf16.mxu0 %v13641_v0 }
 0xf6e   :  { %11466 = vmatmul.mubr.msk.f32.gmra.mrb[44].mxu0 %vm1029_vm4, %v10184_v12 }
 0xf6f   :  { %11493 = vmatprep.mubr.msk.f32.mxu0 %vm13642_vm1, %v13643_v3 }
0x1023   :  { %v2111_v26 = vpop.f32.mrb[36].mxu0 }
0x1024   :  { %v2112_v21 = vadd.f32 %v13984_v23, %v2111_v26  ;;  %v11411_v2 = vpop.f32.mrb[37].mxu0  ;;  %v10176_v23 = vld [vmem:[%s16277_s27 + $0x8] sm:$0xff] }
0x1026   :  { %13287 = vtanh.f32 %v2112_v21 }
0x102b   :  { %v2266_v4 = vpop.f32.mrb[38].mxu0 }
0x102c   :  { %v2267_v6 = vadd.f32 %v13990_v27, %v2266_v4  ;;  %v11433_v15 = vpop.f32.mrb[39].mxu0 }
0x102e   :  { %2278 = vrot.lane.b32.xlu1 %v2267_v6, %s16273_s0 }
0x1030   :  { %v13288_v20 = vpop.eup %13287 }
0x1031   :  { %v2124_v33 = vsel %vm2123_vm9, %v13288_v20, %v14354_v43 }
0x1032   :  { %11421 = vmatmul.mubr.msk.f32.vlgmr.msra.gmra.mrb[28].mxu1 %vm135_vm0, %v2124_v33 }
0x1033   :  { %12692 = vmatpush3.bf16.msra.mxu1 %v14032_v58  ;;  %11442 = vmatprep.mubr.msk.f32.mxu1 %vm13642_vm1, %v13643_v3 }
0x1034   :  { %12693 = vmatprep.subr.bf16.mxu1 %v13641_v0 }
0x1037   :  { %12695 = vmatpush3.bf16.msra.mxu1 %v14036_v60 }
0x1038   :  { %12705 = vmatprep.subr.bf16.mxu1 %v13641_v0 }
0x10a0   :  { %v2279_v37 = vpop.permute.xlu1 %2278 }
0x1105   :  { %v2196_v27 = vpop.f32.mrb[28].mxu1 }
0x1106   :  { %v2197_v34 = vadd.f32 %v10176_v23, %v2196_v27  ;;  %v11422_v43 = vpop.f32.mrb[29].mxu1  ;;  %v2479_v27 = vpop.f32.mrb[40].mxu0 }
0x1108   :  { %v2270_v25 = vadd.f32 %v2267_v6, %v2197_v34 }
0x110a   :  { %v10179_v31 = vmul.f32 -1.442695, %v2270_v25 }
0x110c   :  { %13289 = vpow2.f32 %v10179_v31 }
0x1116   :  { %v13290_v32 = vpop.eup %13289 }
0x1117   :  { %v2274_v35 = vadd.f32 1.0, %v13290_v32 }
0x1119   :  { %13291 = vrcp.f32 %v2274_v35 }
0x1123   :  { %v13292_v36 = vpop.eup %13291 }
0x1124   :  { %v2281_v40 = vmul.f32 %v13292_v36, %v2279_v37  ;;  %v2288_v52 = vsub.f32 1.0, %v13292_v36  ;;  %v2294_v56 = vmul.f32 %v13292_v36, %v14053_v9  ;;  %v10189_v37 = vld [vmem:[%s16226_s5 + $0x20] sm:$0xff] }
0x1126   :  { %2283 = vrot.lane.b32.xlu0 %v2281_v40, %s16273_s0 }
0x1198   :  { %v2284_v42 = vpop.permute.xlu0 %2283 }
0x1199   :  { %v2286_v46 = vadd.f32 %v2284_v42, %v2197_v34  ;;  %v11461_v34 = vpop.f32.mrb[41].mxu0 }
0x119a   :  { %v2484_v43 = vpop.f32.mrb[42].mxu0 }
0x119b   :  { %13293 = vtanh.f32 %v2286_v46  ;;  %v11464_v25 = vpop.f32.mrb[43].mxu0 }
0x11a5   :  { %v13294_v1 = vpop.eup %13293 }
0x11a6   :  { %2290 = vrot.lane.b32.xlu0 %v13294_v1, %s13647_s17 }
0x1218   :  { %v2291_v17 = vpop.permute.xlu0 %2290 }
0x1219   :  { %v2293_v63 = vmul.f32 %v2291_v17, %v2288_v52  ;;  %v10188_v52 = vld [vmem:[%s16226_s5 + $0x18] sm:$0xff] }
0x121b   :  { %v14455_v26 = vadd.f32 %v2294_v56, %v2293_v63 }
0x121d   :  { %2297 = vrot.lane.b32.xlu0 %v14455_v26, %s13647_s17 }
0x128f   :  { %v14459_v21 = vpop.permute.xlu0 %2297 }
0x1290   :  { %11443 = vmatmul.mubr.msk.f32.vlgmr.msra.gmra.mrb[30].mxu1 %vm135_vm0, %v14459_v21 }
0x1291   :  { %11476 = vmatprep.mubr.msk.f32.mxu1 %vm13642_vm1, %v13643_v3 }
0x1363   :  { %v2367_v9 = vpop.f32.mrb[30].mxu1 }
0x1364   :  { %v2368_v2 = vadd.f32 %v14107_v38, %v2367_v9  ;;  %v11444_v4 = vpop.f32.mrb[31].mxu1  ;;  %v2489_v38 = vpop.f32.mrb[44].mxu0 }
0x1365   :  { %v11467_v31 = vpop.f32.mrb[45].mxu0 }
0x1366   :  { %v2371_v6 = vadd.f32 %v2368_v2, %v14060_v14 }
0x1368   :  { %v10181_v15 = vmul.f32 -1.442695, %v2371_v6 }
0x136a   :  { %13295 = vpow2.f32 %v10181_v15 }
0x1374   :  { %v13296_v30 = vpop.eup %13295 }
0x1375   :  { %v2375_v20 = vadd.f32 1.0, %v13296_v30 }
0x1377   :  { %13297 = vrcp.f32 %v2375_v20 }
0x1381   :  { %v13298_v33 = vpop.eup %13297 }
0x1382   :  { %v2378_v23 = vmul.f32 %v13298_v33, %v14111_v45  ;;  %v2385_v40 = vsub.f32 1.0, %v13298_v33  ;;  %v2391_v46 = vmul.f32 %v13298_v33, %v14141_v10  ;;  %v10190_v10 = vld [vmem:[%s16226_s5 + $0x28] sm:$0xff] }
0x1384   :  { %2380 = vrot.lane.b32.xlu0 %v2378_v23, %s16273_s0 }
0x1388   :  { %2500 = vrot.lane.b32.xlu0 %v2479_v27, %s16274_s18 }
0x138c   :  { %2504 = vrot.lane.b32.xlu0 %v2489_v38, %s16274_s18 }
0x13f6   :  { %v2381_v14 = vpop.permute.xlu0 %2380 }
0x13f7   :  { %v2383_v32 = vadd.f32 %v2381_v14, %v2368_v2 }
0x13f9   :  { %13299 = vtanh.f32 %v2383_v32 }
0x13fa   :  { %v2501_v35 = vpop.permute.xlu0 %2500 }
0x13fb   :  { %2518 = vrot.lane.b32.xlu0 %v2501_v35, %s13647_s17 }
0x13fe   :  { %v2505_v36 = vpop.permute.xlu0 %2504 }
0x13ff   :  { %2522 = vrot.lane.b32.xlu0 %v2505_v36, %s13647_s17 }
0x1403   :  { %v13300_v45 = vpop.eup %13299  ;;  %2511 = vrot.lane.b32.xlu0 %v10189_v37, %s16274_s18 }
0x1404   :  { %2387 = vrot.lane.b32.xlu1 %v13300_v45, %s13647_s17 }
0x1408   :  { %2502 = vrot.lane.b32.xlu1 %v2484_v43, %s16274_s18 }
0x146d   :  { %v2519_v12 = vpop.permute.xlu0 %2518 }
0x1471   :  { %v2523_v17 = vpop.permute.xlu0 %2522 }
0x1475   :  { %v2512_v56 = vpop.permute.xlu0 %2511 }
0x1476   :  { %v2388_v42 = vpop.permute.xlu1 %2387 }
0x1477   :  { %v2390_v1 = vmul.f32 %v2388_v42, %v2385_v40 }
0x1479   :  { %v14480_v47 = vadd.f32 %v2391_v46, %v2390_v1 }
0x147a   :  { %v2503_v48 = vpop.permute.xlu1 %2502 }
0x147b   :  { %2516 = vrot.lane.b32.xlu1 %v14480_v47, %s13647_s17 }
0x147f   :  { %2520 = vrot.lane.b32.xlu1 %v2503_v48, %s13647_s17 }
0x1483   :  { %2509 = vrot.lane.b32.xlu1 %v10188_v52, %s16274_s18 }
0x1487   :  { %2513 = vrot.lane.b32.xlu1 %v10190_v10, %s16274_s18 }
0x148b   :  { %2620 = vrot.lane.b32.xlu1 %v2512_v56, %s13647_s17 }
0x14ed   :  { %v14494_v63 = vpop.permute.xlu1 %2516 }
0x14ee   :  { %2984 = vst.msk [vmem:[#allocation2 + $0x8] sm:$0xff] %vm135_vm0, %v14494_v63  ;;  %v12706_v9 = vpack.c.bf16 %v2519_v12, %v14494_v63  ;;  %11494 = vmatmul.mubr.msk.f32.vlgmr.msra.gmra.mrb[46].mxu0 %vm135_vm0, %v14494_v63 }
0x14ef   :  { %11496 = vmatprep.mubr.msk.f32.mxu0 %vm13642_vm1, %v13643_v3  ;;  %12738 = vmatpush3.bf16.msra.mxu0 %v13839_v16 }
0x14f0   :  { %12708 = vmatpush3.bf16.xpose.msk.msra.mxu1 %vm14162_vm5, %v12706_v9  ;;  %12739 = vmatprep.subr.bf16.mxu0 %v13641_v0 }
0x14f1   :  { %v2521_v2 = vpop.permute.xlu1 %2520  ;;  %12709 = vmatprep.subr.bf16.mxu1 %v13641_v0 }
0x14f2   :  { %11497 = vmatmul.mubr.msk.f32.gmra.mrb[48].mxu0 %vm135_vm0, %v2519_v12  ;;  %v12710_v6 = vpack.c.bf16 %v2523_v17, %v2521_v2 }
0x14f3   :  { %11499 = vmatprep.mubr.msk.f32.mxu0 %vm13642_vm1, %v13643_v3  ;;  %12741 = vmatpush3.bf16.msra.mxu0 %v13877_v28 }
0x14f4   :  { %12750 = vmatprep.subr.bf16.mxu0 %v13641_v0 }
0x14f5   :  { %v2510_v4 = vpop.permute.xlu1 %2509 }
0x14f6   :  { %2618 = vrot.lane.b32.xlu0 %v2510_v4, %s13647_s17  ;;  %11500 = vmatmul.mubr.msk.f32.gmra.mrb[50].mxu0 %vm135_vm0, %v2521_v2 }
0x14f7   :  { %11502 = vmatprep.mubr.msk.f32.mxu0 %vm13642_vm1, %v13643_v3 }
0x14f8   :  { %12712 = vmatpush3.bf16.xpose.msk.msra.mxu1 %vm14162_vm5, %v12710_v6 }
0x14f9   :  { %v2514_v15 = vpop.permute.xlu1 %2513  ;;  %12719 = vmatprep.subr.bf16.mxu1 %v13641_v0 }
0x14fa   :  { %11503 = vmatmul.mubr.msk.f32.gmra.mrb[52].mxu0 %vm135_vm0, %v2523_v17  ;;  %2622 = vrot.lane.b32.xlu0 %v2514_v15, %s13647_s17 }
0x14fb   :  { %11505 = vmatprep.mubr.msk.f32.mxu0 %vm13642_vm1, %v13643_v3 }
0x14fd   :  { %v2621_v20 = vpop.permute.xlu1 %2620 }
0x14ff   :  { %11477 = vmatmul.mubr.msk.f32.vlgmr.msra.gmra.mrb[32].mxu1 %vm135_vm0, %v10188_v52 }
0x1500   :  { %11479 = vmatprep.mubr.msk.f32.mxu1 %vm13642_vm1, %v13643_v3 }
0x1503   :  { %11480 = vmatmul.mubr.msk.f32.gmra.mrb[34].mxu1 %vm135_vm0, %v10189_v37 }
0x1504   :  { %11482 = vmatprep.mubr.msk.f32.mxu1 %vm13642_vm1, %v13643_v3 }
0x1507   :  { %11483 = vmatmul.mubr.msk.f32.gmra.mrb[36].mxu1 %vm135_vm0, %v10190_v10 }
0x1508   :  { %11522 = vmatprep.mubr.msk.f32.mxu1 %vm13642_vm1, %v13643_v3 }
0x1568   :  { %v2619_v30 = vpop.permute.xlu0 %2618 }
0x1569   :  { %11506 = vmatmul.mubr.msk.f32.gmra.mrb[54].mxu0 %vm135_vm0, %v2619_v30 }
0x156a   :  { %11508 = vmatprep.mubr.msk.f32.mxu0 %vm13642_vm1, %v13643_v3 }
0x156c   :  { %v2623_v33 = vpop.permute.xlu0 %2622 }
0x156d   :  { %11509 = vmatmul.mubr.msk.f32.gmra.mrb[56].mxu0 %vm135_vm0, %v2621_v20 }
0x156e   :  { %11511 = vmatprep.mubr.msk.f32.mxu0 %vm13642_vm1, %v13643_v3 }
0x1571   :  { %11512 = vmatmul.mubr.msk.f32.gmra.mrb[58].mxu0 %vm135_vm0, %v2623_v33 }
0x1572   :  { %11553 = vmatprep.mubr.msk.f32.mxu0 %vm13642_vm1, %v13643_v3 }
0x15c1   :  { %v2696_v23 = vpop.f32.mrb[46].mxu0 }
0x15c2   :  { %v11495_v27 = vpop.f32.mrb[47].mxu0  ;;  %v2697_v34 = vadd.f32 %v14216_v54, %v2696_v23 }
0x15c4   :  { %13301 = vtanh.f32 %v2697_v34 }
0x15c5   :  { %v2701_v43 = vpop.f32.mrb[48].mxu0 }
0x15c6   :  { %v2702_v25 = vadd.f32 %v14216_v54, %v2701_v43  ;;  %v11498_v38 = vpop.f32.mrb[49].mxu0 }
0x15c8   :  { %13303 = vtanh.f32 %v2702_v25 }
0x15c9   :  { %v2706_v31 = vpop.f32.mrb[50].mxu0 }
0x15ca   :  { %v11501_v14 = vpop.f32.mrb[51].mxu0  ;;  %v2707_v32 = vadd.f32 %v14216_v54, %v2706_v31 }
0x15cc   :  { %13305 = vtanh.f32 %v2707_v32 }
0x15cd   :  { %v2711_v35 = vpop.f32.mrb[52].mxu0 }
0x15ce   :  { %v2712_v36 = vadd.f32 %v14216_v54, %v2711_v35  ;;  %v11504_v45 = vpop.f32.mrb[53].mxu0  ;;  %v13302_v37 = vpop.eup %13301 }
0x15d0   :  { %13307 = vtanh.f32 %v2712_v36 }
0x15d2   :  { %v13304_v40 = vpop.eup %13303  ;;  %v14559_v15 = vpop.f32.mrb[32].mxu1 }
0x15d3   :  { %v12720_v42 = vpack.c.bf16 %v13304_v40, %v13302_v37  ;;  %v11478_v30 = vpop.f32.mrb[33].mxu1 }
0x15d4   :  { %v10212_v30 = vld [vmem:[%s16231_s7 + $0x28] sm:$0xff] }
0x15d5   :  { %12722 = vmatpush3.bf16.xpose.msk.msra.mxu1 %vm14162_vm5, %v12720_v42 }
0x15d6   :  { %12723 = vmatprep.subr.bf16.mxu1 %v13641_v0  ;;  %v13306_v46 = vpop.eup %13305  ;;  %v14562_v33 = vpop.f32.mrb[34].mxu1 }
0x15d7   :  { %v11481_v23 = vpop.f32.mrb[35].mxu1 }
0x15da   :  { %v13308_v1 = vpop.eup %13307  ;;  %v14565_v27 = vpop.f32.mrb[36].mxu1 }
0x15db   :  { %v12724_v48 = vpack.c.bf16 %v13308_v1, %v13306_v46  ;;  %v11484_v43 = vpop.f32.mrb[37].mxu1 }
0x15dd   :  { %12726 = vmatpush3.bf16.xpose.msk.msra.mxu1 %vm14162_vm5, %v12724_v48  ;;  %v10210_v48 = vld [vmem:[%s16231_s7 + $0x18] sm:$0xff] }
0x15de   :  { %12727 = vmatprep.subr.bf16.mxu1 %v13641_v0 }
0x15e4   :  { %11523 = vmatmul.mubr.msk.f32.vlgmr.msra.gmra.mrb[38].mxu1 %vm135_vm0, %v14231_v39 }
0x15e5   :  { %11531 = vmatprep.mubr.msk.f32.mxu1 %vm13642_vm1, %v13643_v3 }
0x163c   :  { %v2716_v12 = vpop.f32.mrb[54].mxu0 }
0x163d   :  { %v2717_v52 = vadd.f32 %v14216_v54, %v2716_v12  ;;  %v11507_v10 = vpop.f32.mrb[55].mxu0 }
0x163f   :  { %13309 = vtanh.f32 %v2717_v52 }
0x1640   :  { %v2721_v17 = vpop.f32.mrb[56].mxu0 }
0x1641   :  { %v2722_v56 = vadd.f32 %v14216_v54, %v2721_v17  ;;  %v11510_v9 = vpop.f32.mrb[57].mxu0 }
0x1643   :  { %13311 = vtanh.f32 %v2722_v56  ;;  %v10211_v56 = vld [vmem:[%s16231_s7 + $0x20] sm:$0xff] }
0x1644   :  { %v2726_v2 = vpop.f32.mrb[58].mxu0 }
0x1645   :  { %v2727_v4 = vadd.f32 %v14216_v54, %v2726_v2  ;;  %v11513_v6 = vpop.f32.mrb[59].mxu0 }
0x1647   :  { %13313 = vtanh.f32 %v2727_v4 }
0x1649   :  { %v13310_v39 = vpop.eup %13309 }
0x164a   :  { %v2819_v20 = vmul.f32 %v13310_v39, %v14240_v50 }
0x164c   :  { %2825 = vrot.lane.b32.xlu1 %v2819_v20, %s13647_s17 }
0x164d   :  { %v13312_v34 = vpop.eup %13311 }
0x164e   :  { %v2820_v25 = vmul.f32 %v13312_v34, %v14240_v50 }
0x1650   :  { %2827 = vrot.lane.b32.xlu0 %v2820_v25, %s13647_s17 }
0x1651   :  { %v13314_v54 = vpop.eup %13313 }
0x1652   :  { %v2821_v38 = vmul.f32 %v13314_v54, %v14240_v50 }
0x1654   :  { %2829 = vrot.lane.b32.xlu1 %v2821_v38, %s13647_s17 }
0x16b7   :  { %v2815_v31 = vpop.f32.mrb[38].mxu1 }
0x16b8   :  { %v11524_v14 = vpop.f32.mrb[39].mxu1  ;;  %v2846_v42 = vrot.slane %v2815_v31, %v14260_v44 }
0x16be   :  { %v2826_v32 = vpop.permute.xlu1 %2825 }
0x16bf   :  { %v2834_v35 = vsel %vm135_vm0, %v2826_v32, 0.0 }
0x16c0   :  { %2835 = vadd.xlane.f32.xlu0 %v2834_v35 }
0x16c2   :  { %v2828_v36 = vpop.permute.xlu0 %2827 }
0x16c3   :  { %v2837_v45 = vsel %vm135_vm0, %v2828_v36, 0.0 }
0x16c4   :  { %2838 = vadd.xlane.f32.xlu1 %v2837_v45 }
0x16c6   :  { %v2830_v37 = vpop.permute.xlu1 %2829 }
0x16c7   :  { %v2840_v40 = vsel %vm135_vm0, %v2830_v37, 0.0 }
0x16c8   :  { %2841 = vadd.xlane.f32.xlu0 %v2840_v40 }
0x174d   :  { %v2836_v46 = vpop.xlane.xlu0 %2835 }
0x174e   :  { %v2847_v1 = vadd.f32 %v2846_v42, %v2836_v46 }
0x1750   :  { %v2850_v12 = vadd.f32 %v2847_v1, %v14263_v49 }
0x1751   :  { %v2839_v52 = vpop.xlane.xlu1 %2838 }
0x1752   :  { %v2848_v10 = vadd.f32 %v2846_v42, %v2839_v52  ;;  %v2857_v17 = vadd.f32 %v10210_v48, %v2850_v12 }
0x1754   :  { %v2851_v9 = vadd.f32 %v2848_v10, %v14263_v49  ;;  %v2860_v2 = vsel %vm135_vm0, %v2857_v17, -inf }
0x1755   :  { %2861 = vmax.xlane.f32.xlu0 %v2860_v2  ;;  %v2842_v4 = vpop.xlane.xlu0 %2841 }
0x1756   :  { %v2849_v6 = vadd.f32 %v2846_v42, %v2842_v4  ;;  %v2858_v39 = vadd.f32 %v10211_v56, %v2851_v9 }
0x1758   :  { %v2852_v20 = vadd.f32 %v2849_v6, %v14263_v49  ;;  %v2863_v23 = vsel %vm135_vm0, %v2858_v39, -inf }
0x1759   :  { %2864 = vmax.xlane.f32.xlu1 %v2863_v23 }
0x175a   :  { %v2859_v34 = vadd.f32 %v10212_v30, %v2852_v20 }
0x175c   :  { %v2866_v43 = vsel %vm135_vm0, %v2859_v34, -inf }
0x175d   :  { %2867 = vmax.xlane.f32.xlu0 %v2866_v43 }
0x17e2   :  { %v2862_v25 = vpop.xlane.xlu0 %2861 }
0x17e3   :  { %v2869_v54 = vsub.f32 %v2857_v17, %v2862_v25 }
0x17e5   :  { %v2872_v38 = vmul.f32 1.442695, %v2869_v54 }
0x17e6   :  { %v2865_v31 = vpop.xlane.xlu1 %2864 }
0x17e7   :  { %13315 = vpow2.f32 %v2872_v38  ;;  %v2870_v14 = vsub.f32 %v2858_v39, %v2865_v31  ;;  %v10217_v31 = vld [vmem:[%s16262_s15 + $0x40] sm:$0xff] }
0x17e9   :  { %v2874_v32 = vmul.f32 1.442695, %v2870_v14 }
0x17ea   :  { %v2868_v35 = vpop.xlane.xlu0 %2867 }
0x17eb   :  { %13317 = vpow2.f32 %v2874_v32  ;;  %v2871_v36 = vsub.f32 %v2859_v34, %v2868_v35  ;;  %v10219_v35 = vld [vmem:[%s16262_s15 + $0x50] sm:$0xff] }
0x17ed   :  { %v2876_v45 = vmul.f32 1.442695, %v2871_v36  ;;  %v10220_v36 = vld [vmem:[%s16262_s15 + $0x58] sm:$0xff] }
0x17ef   :  { %13319 = vpow2.f32 %v2876_v45  ;;  %v12734_v45 = vpack.c.bf16 %v10220_v36, %v10219_v35 }
0x17f1   :  { %v13316_v37 = vpop.eup %13315 }
0x17f2   :  { %v2878_v40 = vsel %vm135_vm0, %v13316_v37, 0.0 }
0x17f3   :  { %2879 = vadd.xlane.f32.xlu1 %v2878_v40 }
0x17f5   :  { %v13318_v42 = vpop.eup %13317 }
0x17f6   :  { %v2881_v46 = vsel %vm135_vm0, %v13318_v42, 0.0 }
0x17f7   :  { %2882 = vadd.xlane.f32.xlu0 %v2881_v46 }
0x17f9   :  { %v13320_v1 = vpop.eup %13319 }
0x17fa   :  { %v2884_v48 = vsel %vm135_vm0, %v13320_v1, 0.0 }
0x17fb   :  { %2885 = vadd.xlane.f32.xlu1 %v2884_v48  ;;  %v10224_v48 = vld [vmem:[%s16264_s12 + $0x58] sm:$0xff] }
0x1880   :  { %v2880_v12 = vpop.xlane.xlu1 %2879 }
0x1881   :  { %13321 = vrcp.f32 %v2880_v12  ;;  %v3144_v12 = vadd.f32 %v10224_v48, %v10220_v36 }
0x1884   :  { %v2883_v52 = vpop.xlane.xlu0 %2882 }
0x1885   :  { %13323 = vrcp.f32 %v2883_v52 }
0x1888   :  { %v2886_v10 = vpop.xlane.xlu1 %2885 }
0x1889   :  { %13325 = vrcp.f32 %v2886_v10 }
0x188b   :  { %v13322_v17 = vpop.eup %13321 }
0x188c   :  { %v2890_v56 = vmul.f32 %v13322_v17, %v13316_v37  ;;  %v10221_v37 = vld [vmem:[%s16264_s12 + $0x40] sm:$0xff] }
0x188d   :  { %v3141_v40 = vadd.f32 %v10221_v37, %v10217_v31 }
0x188e   :  { %v2893_v9 = vmul.f32 %v2890_v56, %v14559_v15  ;;  %v10234_v15 = vld [vmem:[%s16268_s2 + $0x10] sm:$0xff] }
0x188f   :  { %v13324_v2 = vpop.eup %13323  ;;  %vm3466_vm10 = vcmp.gt.f32.partialorder %v10234_v15, 0.5  ;;  %v14654_v56 = vld [vmem:[%s16266_s28 + $0x10] sm:$0xff] }
0x1890   :  { %v2896_v4 = vsel %vm135_vm0, %v2893_v9, 0.0  ;;  %v2891_v6 = vmul.f32 %v13324_v2, %v13318_v42  ;;  %v3467_v25 = vsel %vm3466_vm10, 1, %v13644_v62  ;;  %v10223_v42 = vld [vmem:[%s16264_s12 + $0x50] sm:$0xff] }
0x1891   :  { %2897 = vadd.xlane.f32.xlu0 %v2896_v4 }
0x1892   :  { %v2894_v39 = vmul.f32 %v2891_v6, %v14562_v33 }
0x1893   :  { %v13326_v30 = vpop.eup %13325 }
0x1894   :  { %v2899_v20 = vsel %vm135_vm0, %v2894_v39, 0.0  ;;  %v2892_v23 = vmul.f32 %v13326_v30, %v13320_v1  ;;  %v3143_v1 = vadd.f32 %v10223_v42, %v10219_v35 }
0x1895   :  { %2900 = vadd.xlane.f32.xlu1 %v2899_v20 }
0x1896   :  { %v2895_v34 = vmul.f32 %v2892_v23, %v14565_v27  ;;  %v10218_v27 = vld [vmem:[%s16262_s15 + $0x48] sm:$0xff] }
0x1897   :  { %v12731_v14 = vpack.c.bf16 %v10218_v27, %v10217_v31 }
0x1898   :  { %v2902_v43 = vsel %vm135_vm0, %v2895_v34, 0.0 }
0x1899   :  { %2903 = vadd.xlane.f32.xlu0 %v2902_v43 }
0x18a6   :  { %3469 = vperm.xlu1 %13218, %v3467_v25  }
0x191e   :  { %v2898_v54 = vpop.xlane.xlu0 %2897 }
0x1922   :  { %v2901_v33 = vpop.xlane.xlu1 %2900 }
0x1923   :  { %v12728_v38 = vpack.c.bf16 %v2901_v33, %v2898_v54 }
0x1925   :  { %12729 = vmatpush3.bf16.msra.mxu1 %v12728_v38 }
0x1926   :  { %11529 = vmatprep.subr.mxu1 %v13643_v3  ;;  %v2904_v32 = vpop.xlane.xlu0 %2903 }
0x1929   :  { %11530 = vmatpush3.msra.mxu1 %v2904_v32 }
0x192a   :  { %11532 = vmatmul.mubr.msk.f32.vlgmr.msra.gmra.mrb[40].mxu1 %vm1555_vm7, %v14303_v55  ;;  %12730 = vmatprep.subr.bf16.mxu1 %v13641_v0  ;;  %v10222_v55 = vld [vmem:[%s16264_s12 + $0x48] sm:$0xff] }
0x192b   :  { %12732 = vmatpush3.bf16.msra.mxu1 %v12731_v14  ;;  %11542 = vmatprep.mubr.msk.f32.mxu1 %vm13642_vm1, %v13643_v3  ;;  %v3142_v46 = vadd.f32 %v10222_v55, %v10218_v27 }
0x192c   :  { %12733 = vmatprep.subr.bf16.mxu1 %v13641_v0 }
0x192f   :  { %12735 = vmatpush3.bf16.msra.mxu1 %v12734_v45 }
0x1930   :  { %12743 = vmatprep.subr.bf16.mxu1 %v13825_v11 }
0x1932   :  { %11543 = vmatmul.mubr.msk.f32.vlgmr.msra.gmra.mrb[42].mxu1 %vm135_vm0, %v14324_v24 }
0x1933   :  { %12745 = vmatpush3.bf16.msra.mxu1 %v13825_v11  ;;  %11564 = vmatprep.mubr.msk.f32.mxu1 %vm135_vm0, %v3141_v40 }
0x1934   :  { %12747 = vmatprep.subr.bf16.mxu1 %v13846_v19 }
0x1937   :  { %12749 = vmatpush3.bf16.msra.mxu1 %v13846_v19 }
0x1938   :  { %12756 = vmatprep.subr.bf16.mxu1 %v13641_v0 }
0x193a   :  { %11565 = vmatmul.mubr.msk.f32.vlgmr.msra.gmra.mrb[44].mxu1 %vm135_vm0, %v3142_v46 }
0x193b   :  { %11567 = vmatprep.mubr.msk.f32.mxu1 %vm135_vm0, %v3143_v1  ;;  %12758 = vmatpush3.bf16.msra.mxu1 %v13839_v16 }
0x193c   :  { %12759 = vmatprep.subr.bf16.mxu1 %v13641_v0 }
0x193e   :  { %11568 = vmatmul.mubr.msk.f32.gmra.mrb[46].mxu1 %vm135_vm0, %v3144_v12 }
0x193f   :  { %12761 = vmatpush3.bf16.msra.mxu1 %v13877_v28  ;;  %11589 = vmatprep.mubr.msk.f32.mxu1 %vm13642_vm1, %v13643_v3 }
0x1940   :  { %12768 = vmatprep.subr.bf16.mxu1 %v13641_v0 }
0x19fd   :  { %v2971_v52 = vpop.f32.mrb[40].mxu1 }
0x19fe   :  { %v10214_v10 = vmul.f32 -1.442695, %v2971_v52  ;;  %v11533_v17 = vpop.f32.mrb[41].mxu1 }
0x19ff   :  { %v14715_v17 = vld [vmem:[%s16278_s1] ss:$0 sm:$0xff] }
0x1a00   :  { %13327 = vpow2.f32 %v10214_v10 }
0x1a05   :  { %v3063_v9 = vpop.f32.mrb[42].mxu1 }
0x1a06   :  { %v3064_v2 = vadd.f32 %v14654_v56, %v3063_v9  ;;  %v11544_v4 = vpop.f32.mrb[43].mxu1 }
0x1a08   :  { %11554 = vmatmul.mubr.msk.f32.vlgmr.msra.gmra.mrb[60].mxu0 %vm135_vm0, %v3064_v2  ;;  %v3470_v2 = vpop.permute.xlu1 %3469 }
0x1a09   :  { %11578 = vmatprep.mubr.msk.f32.mxu0 %vm13642_vm1, %v13643_v3  ;;  %vm3471_vm11 = vcmp.eq.s32.totalorder %v3470_v2, 1  ;;  %v10243_v2 = vld [vmem:[%s16223_s6 + $0x38] sm:$0xff] }
0x1a0a   :  { %v13328_v6 = vpop.eup %13327 }
0x1a0b   :  { %v2978_v39 = vadd.f32 1.0, %v13328_v6 }
0x1a0d   :  { %13329 = vrcp.f32 %v2978_v39  ;;  %v11566_v30 = vpop.f32.mrb[44].mxu1 }
0x1a0e   :  { %v3229_v20 = vadd.f32 %v14363_v53, %v11566_v30  ;;  %v3223_v23 = vpop.f32.mrb[45].mxu1 }
0x1a0f   :  { %v3224_v34 = vadd.f32 %v14363_v53, %v3223_v23 }
0x1a10   :  { %13331 = vtanh.f32 %v3229_v20  ;;  %v10235_v20 = vld [vmem:[%s16277_s27 + $0x10] sm:$0xff] }
0x1a11   :  { %13333 = vtanh.f32 %v3224_v34  ;;  %v11569_v43 = vpop.f32.mrb[46].mxu1 }
0x1a12   :  { %v3239_v15 = vadd.f32 %v14363_v53, %v11569_v43  ;;  %v3233_v25 = vpop.f32.mrb[47].mxu1 }
0x1a13   :  { %v3234_v54 = vadd.f32 %v14363_v53, %v3233_v25 }
0x1a14   :  { %13335 = vtanh.f32 %v3239_v15 }
0x1a15   :  { %13337 = vtanh.f32 %v3234_v54 }
0x1a17   :  { %v13330_v33 = vpop.eup %13329 }
0x1a18   :  { %10215 = vst.msk [vmem:[%s16233_s26 + $0x8] sm:$0xff] %vm1635_vm8, %v13330_v33 }
0x1a1a   :  { %v13332_v38 = vpop.eup %13331 }
0x1a1b   :  { %v13334_v31 = vpop.eup %13333 }
0x1a1c   :  { %v12751_v27 = vpack.c.bf16 %v13332_v38, %v13334_v31 }
0x1a1e   :  { %v13336_v14 = vpop.eup %13335  ;;  %12752 = vmatpush3.bf16.msra.mxu0 %v12751_v27 }
0x1a1f   :  { %v13338_v32 = vpop.eup %13337  ;;  %12753 = vmatprep.subr.bf16.mxu0 %v13641_v0 }
0x1a20   :  { %v12754_v35 = vpack.c.bf16 %v13336_v14, %v13338_v32 }
0x1a22   :  { %12755 = vmatpush3.bf16.msra.mxu0 %v12754_v35  ;;  %v14735_v35 = vld [vmem:[%s16222_s20] ss:$0 sm:$0xff] }
0x1a23   :  { %12762 = vmatprep.subr.bf16.mxu0 %v13641_v0 }
0x1a25   :  { %11579 = vmatmul.mubr.msk.f32.vlgmr.msra.gmra.mrb[62].mxu0 %vm135_vm0, %v14324_v24 }
0x1a26   :  { %12764 = vmatpush3.bf16.msra.mxu0 %v13915_v59  ;;  %11600 = vmatprep.mubr.msk.f32.mxu0 %vm13642_vm1, %v13643_v3 }
0x1a27   :  { %12765 = vmatprep.subr.bf16.mxu0 %v13641_v0 }
0x1a2a   :  { %12767 = vmatpush3.bf16.msra.mxu0 %v13921_v61 }
0x1a2b   :  { %12774 = vmatprep.subr.bf16.mxu0 %v13641_v0 }
0x1adb   :  { %v3136_v53 = vpop.f32.mrb[60].mxu0 }
0x1adc   :  { %v11555_v36 = vpop.f32.mrb[61].mxu0  ;;  %v3137_v45 = vadd.f32 %v14386_v29, %v3136_v53 }
0x1ade   :  { %13339 = vtanh.f32 %v3137_v45 }
0x1ae8   :  { %v13340_v37 = vpop.eup %13339 }
0x1af8   :  { %v3312_v40 = vpop.f32.mrb[62].mxu0 }
0x1af9   :  { %v3313_v55 = vadd.f32 %v13340_v37, %v3312_v40  ;;  %v11580_v24 = vpop.f32.mrb[63].mxu0 }
0x1afa   :  { %v3819_v24 = vld [vmem:[#allocation2] sm:$0xff] }
0x1afb   :  { %11590 = vmatmul.mubr.msk.f32.vlgmr.msra.gmra.mrb[48].mxu1 %vm135_vm0, %v3313_v55 }
0x1afc   :  { %12770 = vmatpush3.bf16.msra.mxu1 %v13967_v18  ;;  %11611 = vmatprep.mubr.msk.f32.mxu1 %vm13642_vm1, %v13643_v3 }
0x1afd   :  { %12771 = vmatprep.subr.bf16.mxu1 %v13641_v0 }
0x1b00   :  { %12773 = vmatpush3.bf16.msra.mxu1 %v13977_v22 }
0x1b01   :  { %12780 = vmatprep.subr.bf16.mxu1 %v13641_v0 }
0x1bce   :  { %v3385_v42 = vpop.f32.mrb[48].mxu1 }
0x1bcf   :  { %v3386_v46 = vadd.f32 %v14386_v29, %v3385_v42  ;;  %v11591_v1 = vpop.f32.mrb[49].mxu1  ;;  %v3820_v42 = vld [vmem:[#allocation2 + $0x8] sm:$0xff] }
0x1bd0   :  { %v14744_v1 = vld [vmem:[#allocation2 + $0x18] sm:$0xff] }
0x1bd1   :  { %13341 = vtanh.f32 %v3386_v46  ;;  %v3821_v46 = vld [vmem:[#allocation2 + $0x10] sm:$0xff] }
0x1bdb   :  { %v13342_v48 = vpop.eup %13341 }
0x1bdc   :  { %11601 = vmatmul.mubr.msk.f32.vlgmr.msra.gmra.mrb[64].mxu0 %vm135_vm0, %v13342_v48 }
0x1bdd   :  { %12776 = vmatpush3.bf16.msra.mxu0 %v13938_v8  ;;  %11622 = vmatprep.mubr.msk.f32.mxu0 %vm13642_vm1, %v13643_v3 }
0x1bde   :  { %12777 = vmatprep.subr.bf16.mxu0 %v13641_v0 }
0x1be1   :  { %12779 = vmatpush3.bf16.msra.mxu0 %v13948_v13 }
0x1be2   :  { %12786 = vmatprep.subr.bf16.mxu0 %v13641_v0 }
0x1be4   :  { %11623 = vmatmul.mubr.msk.f32.vlgmr.msra.gmra.mrb[66].mxu0 %vm135_vm0, %v14459_v21  ;;  %v14709_v21 = vld [vmem:[%s16267_s29 + $0x2] ss:$0 sm:$0xff] }
0x1be5   :  { %12788 = vmatpush3.bf16.msra.mxu0 %v14012_v51  ;;  %11644 = vmatprep.mubr.msk.f32.mxu0 %vm13642_vm1, %v13643_v3 }
0x1be6   :  { %12789 = vmatprep.subr.bf16.mxu0 %v13641_v0 }
0x1be9   :  { %12791 = vmatpush3.bf16.msra.mxu0 %v14030_v57 }
0x1bea   :  { %12801 = vmatprep.subr.bf16.mxu0 %v13641_v0 }
0x1bec   :  { %11645 = vmatmul.mubr.msk.f32.vlgmr.msra.gmra.mrb[68].mxu0 %vm135_vm0, %v14494_v63 }
0x1bed   :  { %11678 = vmatprep.mubr.msk.f32.mxu0 %vm13642_vm1, %v13643_v3 }
0x1caf   :  { %v3459_v29 = vpop.f32.mrb[64].mxu0 }
0x1cb0   :  { %v3460_v12 = vadd.f32 %v14709_v21, %v3459_v29  ;;  %v11602_v52 = vpop.f32.mrb[65].mxu0  ;;  %v14748_v29 = vpack.c.bf16 %v3820_v42, %v3819_v24  ;;  %v10249_v24 = vld [vmem:[%s16226_s5 + $0x38] sm:$0xff] }
0x1cb1   :  { %v3824_v52 = vld [vmem:[#allocation2 + $0x28] sm:$0xff] }
0x1cb2   :  { %13343 = vtanh.f32 %v3460_v12  ;;  %v3823_v12 = vld [vmem:[#allocation2 + $0x20] sm:$0xff] }
0x1cb7   :  { %v3614_v10 = vpop.f32.mrb[66].mxu0 }
0x1cb8   :  { %v3615_v63 = vadd.f32 %v14715_v17, %v3614_v10  ;;  %v11624_v9 = vpop.f32.mrb[67].mxu0  ;;  %v14757_v10 = vpack.c.bf16 %v3824_v52, %v3823_v12 }
0x1cb9   :  { %v10242_v9 = vld [vmem:[%s16223_s6 + $0x30] sm:$0xff] }
0x1cba   :  { %3626 = vrot.lane.b32.xlu0 %v3615_v63, %s16273_s0 }
0x1cbc   :  { %v13344_v4 = vpop.eup %13343 }
0x1cbd   :  { %v3472_v6 = vsel %vm3471_vm11, %v13344_v4, %v14654_v56  ;;  %v10244_v4 = vld [vmem:[%s16223_s6 + $0x40] sm:$0xff] }
0x1cbe   :  { %11612 = vmatmul.mubr.msk.f32.vlgmr.msra.gmra.mrb[50].mxu1 %vm135_vm0, %v3472_v6 }
0x1cbf   :  { %v3785_v39 = vpop.f32.mrb[68].mxu0  ;;  %12782 = vmatpush3.bf16.msra.mxu1 %v14032_v58  ;;  %11633 = vmatprep.mubr.msk.f32.mxu1 %vm13642_vm1, %v13643_v3 }
0x1cc0   :  { %v11646_v30 = vpop.f32.mrb[69].mxu0  ;;  %12783 = vmatprep.subr.bf16.mxu1 %v13641_v0  ;;  %v3786_v53 = vadd.f32 %v14735_v35, %v3785_v39  ;;  %v14791_v39 = vld [vmem:[%s16224_s19] ss:$0 sm:$0xff] }
0x1cc3   :  { %12785 = vmatpush3.bf16.msra.mxu1 %v14036_v60 }
0x1cc4   :  { %12792 = vmatprep.subr.bf16.mxu1 %v13641_v0 }
0x1d2c   :  { %v3627_v38 = vpop.permute.xlu0 %3626 }
0x1d91   :  { %v3544_v56 = vpop.f32.mrb[50].mxu1 }
0x1d92   :  { %v3545_v23 = vadd.f32 %v10235_v20, %v3544_v56  ;;  %v11613_v34 = vpop.f32.mrb[51].mxu1 }
0x1d94   :  { %v3618_v43 = vadd.f32 %v3615_v63, %v3545_v23  ;;  %v14762_v63 = vld [vmem:[#allocation2 + $0x30] sm:$0xff] }
0x1d96   :  { %v10238_v15 = vmul.f32 -1.442695, %v3618_v43 }
0x1d98   :  { %13345 = vpow2.f32 %v10238_v15 }
0x1da2   :  { %v13346_v25 = vpop.eup %13345 }
0x1da3   :  { %v3622_v54 = vadd.f32 1.0, %v13346_v25 }
0x1da5   :  { %13347 = vrcp.f32 %v3622_v54 }
0x1daf   :  { %v13348_v33 = vpop.eup %13347 }
0x1db0   :  { %v3629_v31 = vmul.f32 %v13348_v33, %v3627_v38  ;;  %v3636_v36 = vsub.f32 1.0, %v13348_v33  ;;  %v3642_v37 = vmul.f32 %v13348_v33, %v14455_v26  ;;  %v12796_v26 = vpack.c.bf16 %v14744_v1, %v3821_v46 }
0x1db2   :  { %3631 = vrot.lane.b32.xlu1 %v3629_v31, %s16273_s0 }
0x1e24   :  { %v3632_v27 = vpop.permute.xlu1 %3631 }
0x1e25   :  { %v3634_v14 = vadd.f32 %v3632_v27, %v3545_v23 }
0x1e27   :  { %13349 = vtanh.f32 %v3634_v14 }
0x1e31   :  { %v13350_v32 = vpop.eup %13349 }
0x1e32   :  { %3638 = vrot.lane.b32.xlu1 %v13350_v32, %s13647_s17 }
0x1e36   :  { %3797 = vrot.lane.b32.xlu1 %v3786_v53, %s16273_s0 }
0x1ea4   :  { %v3639_v45 = vpop.permute.xlu1 %3638 }
0x1ea5   :  { %v3641_v40 = vmul.f32 %v3639_v45, %v3636_v36 }
0x1ea7   :  { %v14740_v55 = vadd.f32 %v3642_v37, %v3641_v40 }
0x1ea8   :  { %v3798_v25 = vpop.permute.xlu1 %3797 }
0x1ea9   :  { %3645 = vrot.lane.b32.xlu0 %v14740_v55, %s13647_s17 }
0x1f1b   :  { %v14746_v48 = vpop.permute.xlu0 %3645 }
0x1f1c   :  { %11634 = vmatmul.mubr.msk.f32.vlgmr.msra.gmra.mrb[52].mxu1 %vm135_vm0, %v14746_v48 }
0x1f1d   :  { %12794 = vmatpush3.bf16.msra.mxu1 %v14748_v29  ;;  %11661 = vmatprep.mubr.msk.f32.mxu1 %vm13642_vm1, %v13643_v3 }
0x1f1e   :  { %12795 = vmatprep.subr.bf16.mxu1 %v13641_v0 }
0x1f21   :  { %12797 = vmatpush3.bf16.msra.mxu1 %v12796_v26 }
0x1f22   :  { %12798 = vmatprep.subr.bf16.mxu1 %v13641_v0 }
0x1f25   :  { %12800 = vmatpush3.bf16.msra.mxu1 %v14757_v10 }
0x1f26   :  { %11659 = vmatprep.subr.mxu1 %v13643_v3 }
0x1f29   :  { %11660 = vmatpush3.msra.mxu1 %v14762_v63 }
0x1f2a   :  { %11662 = vmatmul.mubr.msk.f32.vlgmr.msra.gmra.mrb[54].mxu1 %vm1029_vm4, %v10242_v9  ;;  %12809 = vmatprep.subr.bf16.mxu1 %v13641_v0 }
0x1f2b   :  { %11664 = vmatprep.mubr.msk.f32.mxu1 %vm13642_vm1, %v13643_v3  ;;  %12811 = vmatpush3.bf16.msra.mxu1 %v14129_v5 }
0x1f2c   :  { %12812 = vmatprep.subr.bf16.mxu1 %v13641_v0 }
0x1f2e   :  { %11665 = vmatmul.mubr.msk.f32.gmra.mrb[56].mxu1 %vm1029_vm4, %v10243_v2 }
0x1f2f   :  { %11667 = vmatprep.mubr.msk.f32.mxu1 %vm13642_vm1, %v13643_v3  ;;  %12814 = vmatpush3.bf16.msra.mxu1 %v14135_v7 }
0x1f30   :  { %12832 = vmatprep.subr.bf16.mxu1 %v13641_v0 }
0x1f32   :  { %11668 = vmatmul.mubr.msk.f32.gmra.mrb[58].mxu1 %vm1029_vm4, %v10244_v4  ;;  %v10248_v4 = vld [vmem:[%s16226_s5 + $0x30] sm:$0xff] }
0x1f33   :  { %11695 = vmatprep.mubr.msk.f32.mxu1 %vm13642_vm1, %v13643_v3 }
0x1fef   :  { %v3715_v6 = vpop.f32.mrb[52].mxu1 }
0x1ff0   :  { %v3716_v30 = vadd.f32 %v14791_v39, %v3715_v6  ;;  %v11635_v20 = vpop.f32.mrb[53].mxu1 }
0x1ff2   :  { %v3789_v56 = vadd.f32 %v3786_v53, %v3716_v30 }
0x1ff4   :  { %v10241_v23 = vmul.f32 -1.442695, %v3789_v56 }
0x1ff6   :  { %13351 = vpow2.f32 %v10241_v23 }
0x1ffd   :  { %v3901_v33 = vpop.f32.mrb[54].mxu1 }
0x1ffe   :  { %v11663_v38 = vpop.f32.mrb[55].mxu1 }
0x2000   :  { %v13352_v34 = vpop.eup %13351 }
0x2001   :  { %v3793_v43 = vadd.f32 1.0, %v13352_v34  ;;  %v3906_v31 = vpop.f32.mrb[56].mxu1 }
0x2002   :  { %v11666_v27 = vpop.f32.mrb[57].mxu1 }
0x2003   :  { %13353 = vrcp.f32 %v3793_v43  ;;  %v14871_v27 = vld [vmem:[%s16228_s22] ss:$0 sm:$0xff] }
0x2005   :  { %v3911_v14 = vpop.f32.mrb[58].mxu1 }
0x2006   :  { %v11669_v32 = vpop.f32.mrb[59].mxu1 }
0x200d   :  { %v13354_v15 = vpop.eup %13353 }
0x200e   :  { %v3800_v54 = vmul.f32 %v13354_v15, %v3798_v25  ;;  %v3807_v42 = vsub.f32 1.0, %v13354_v15  ;;  %v3813_v26 = vmul.f32 %v13354_v15, %v14480_v47  ;;  %v10250_v47 = vld [vmem:[%s16226_s5 + $0x40] sm:$0xff] }
0x2010   :  { %3802 = vrot.lane.b32.xlu0 %v3800_v54, %s16273_s0 }
0x2014   :  { %3922 = vrot.lane.b32.xlu0 %v3901_v33, %s16274_s18 }
0x2018   :  { %3926 = vrot.lane.b32.xlu0 %v3911_v14, %s16274_s18 }
0x2082   :  { %v3803_v53 = vpop.permute.xlu0 %3802 }
0x2083   :  { %v3805_v36 = vadd.f32 %v3803_v53, %v3716_v30 }
0x2085   :  { %13355 = vtanh.f32 %v3805_v36 }
0x2086   :  { %v3923_v45 = vpop.permute.xlu0 %3922 }
0x2087   :  { %3940 = vrot.lane.b32.xlu0 %v3923_v45, %s13647_s17 }
0x208a   :  { %v3927_v37 = vpop.permute.xlu0 %3926 }
0x208b   :  { %3944 = vrot.lane.b32.xlu0 %v3927_v37, %s13647_s17 }
0x208f   :  { %v13356_v40 = vpop.eup %13355  ;;  %3933 = vrot.lane.b32.xlu0 %v10249_v24, %s16274_s18 }
0x2090   :  { %3809 = vrot.lane.b32.xlu1 %v13356_v40, %s13647_s17 }
0x2094   :  { %3924 = vrot.lane.b32.xlu1 %v3906_v31, %s16274_s18 }
0x20f9   :  { %v3941_v2 = vpop.permute.xlu0 %3940 }
0x20fd   :  { %v3945_v6 = vpop.permute.xlu0 %3944 }
0x2101   :  { %v3934_v30 = vpop.permute.xlu0 %3933 }
0x2102   :  { %v3810_v46 = vpop.permute.xlu1 %3809 }
0x2103   :  { %v3812_v12 = vmul.f32 %v3810_v46, %v3807_v42 }
0x2105   :  { %v14806_v52 = vadd.f32 %v3813_v26, %v3812_v12 }
0x2106   :  { %v3925_v9 = vpop.permute.xlu1 %3924 }
0x2107   :  { %3938 = vrot.lane.b32.xlu1 %v14806_v52, %s13647_s17 }
0x210b   :  { %3942 = vrot.lane.b32.xlu1 %v3925_v9, %s13647_s17 }
0x210f   :  { %3931 = vrot.lane.b32.xlu1 %v10248_v4, %s16274_s18 }
0x2113   :  { %3935 = vrot.lane.b32.xlu1 %v10250_v47, %s16274_s18 }
0x2117   :  { %4042 = vrot.lane.b32.xlu1 %v3934_v30, %s13647_s17 }
0x2179   :  { %v14820_v20 = vpop.permute.xlu1 %3938 }
0x217a   :  { %4406 = vst.msk [vmem:[#allocation2 + $0x10] sm:$0xff] %vm135_vm0, %v14820_v20  ;;  %v12802_v56 = vpack.c.bf16 %v3941_v2, %v14820_v20  ;;  %11696 = vmatmul.mubr.msk.f32.vlgmr.msra.gmra.mrb[60].mxu1 %vm135_vm0, %v14820_v20 }
0x217b   :  { %11698 = vmatprep.mubr.msk.f32.mxu1 %vm13642_vm1, %v13643_v3  ;;  %12834 = vmatpush3.bf16.msra.mxu1 %v13839_v16 }
0x217c   :  { %12804 = vmatpush3.bf16.xpose.msk.msra.mxu0 %vm14162_vm5, %v12802_v56  ;;  %12835 = vmatprep.subr.bf16.mxu1 %v13641_v0 }
0x217d   :  { %v3943_v23 = vpop.permute.xlu1 %3942  ;;  %12805 = vmatprep.subr.bf16.mxu0 %v13641_v0 }
0x217e   :  { %11699 = vmatmul.mubr.msk.f32.gmra.mrb[62].mxu1 %vm135_vm0, %v3941_v2  ;;  %v12806_v43 = vpack.c.bf16 %v3945_v6, %v3943_v23 }
0x217f   :  { %11701 = vmatprep.mubr.msk.f32.mxu1 %vm13642_vm1, %v13643_v3  ;;  %12837 = vmatpush3.bf16.msra.mxu1 %v13877_v28 }
0x2180   :  { %12846 = vmatprep.subr.bf16.mxu1 %v13641_v0 }
0x2181   :  { %v3932_v34 = vpop.permute.xlu1 %3931 }
0x2182   :  { %4040 = vrot.lane.b32.xlu0 %v3932_v34, %s13647_s17  ;;  %11702 = vmatmul.mubr.msk.f32.gmra.mrb[64].mxu1 %vm135_vm0, %v3943_v23 }
0x2183   :  { %11704 = vmatprep.mubr.msk.f32.mxu1 %vm13642_vm1, %v13643_v3 }
0x2184   :  { %12808 = vmatpush3.bf16.xpose.msk.msra.mxu0 %vm14162_vm5, %v12806_v43 }
0x2185   :  { %v3936_v15 = vpop.permute.xlu1 %3935  ;;  %12815 = vmatprep.subr.bf16.mxu0 %v13641_v0 }
0x2186   :  { %11705 = vmatmul.mubr.msk.f32.gmra.mrb[66].mxu1 %vm135_vm0, %v3945_v6  ;;  %4044 = vrot.lane.b32.xlu0 %v3936_v15, %s13647_s17  ;;  %v14886_v6 = vld [vmem:[%s16229_s24] sm:$0x1] }
0x2187   :  { %11707 = vmatprep.mubr.msk.f32.mxu1 %vm13642_vm1, %v13643_v3 }
0x2189   :  { %v4043_v54 = vpop.permute.xlu1 %4042 }
0x218b   :  { %11679 = vmatmul.mubr.msk.f32.vlgmr.msra.gmra.mrb[70].mxu0 %vm135_vm0, %v10248_v4 }
0x218c   :  { %11681 = vmatprep.mubr.msk.f32.mxu0 %vm13642_vm1, %v13643_v3 }
0x218f   :  { %11682 = vmatmul.mubr.msk.f32.gmra.mrb[72].mxu0 %vm135_vm0, %v10249_v24 }
0x2190   :  { %11684 = vmatprep.mubr.msk.f32.mxu0 %vm13642_vm1, %v13643_v3 }
0x2193   :  { %11685 = vmatmul.mubr.msk.f32.gmra.mrb[74].mxu0 %vm135_vm0, %v10250_v47 }
0x2194   :  { %11724 = vmatprep.mubr.msk.f32.mxu0 %vm13642_vm1, %v13643_v3 }
0x21f4   :  { %v4041_v25 = vpop.permute.xlu0 %4040 }
0x21f5   :  { %11708 = vmatmul.mubr.msk.f32.gmra.mrb[68].mxu1 %vm135_vm0, %v4041_v25 }
0x21f6   :  { %11710 = vmatprep.mubr.msk.f32.mxu1 %vm13642_vm1, %v13643_v3 }
0x21f8   :  { %v4045_v33 = vpop.permute.xlu0 %4044 }
0x21f9   :  { %11711 = vmatmul.mubr.msk.f32.gmra.mrb[70].mxu1 %vm135_vm0, %v4043_v54 }
0x21fa   :  { %11713 = vmatprep.mubr.msk.f32.mxu1 %vm13642_vm1, %v13643_v3 }
0x21fd   :  { %11714 = vmatmul.mubr.msk.f32.gmra.mrb[72].mxu1 %vm135_vm0, %v4045_v33 }
0x21fe   :  { %11755 = vmatprep.mubr.msk.f32.mxu1 %vm13642_vm1, %v13643_v3 }
0x224d   :  { %v4118_v38 = vpop.f32.mrb[60].mxu1 }
0x224e   :  { %v11697_v31 = vpop.f32.mrb[61].mxu1  ;;  %v4119_v14 = vadd.f32 %v14871_v27, %v4118_v38 }
0x2250   :  { %13357 = vtanh.f32 %v4119_v14 }
0x2251   :  { %v4123_v32 = vpop.f32.mrb[62].mxu1 }
0x2252   :  { %v4124_v53 = vadd.f32 %v14871_v27, %v4123_v32  ;;  %v11700_v36 = vpop.f32.mrb[63].mxu1 }
0x2254   :  { %13359 = vtanh.f32 %v4124_v53 }
0x2255   :  { %v4128_v45 = vpop.f32.mrb[64].mxu1 }
0x2256   :  { %v11703_v37 = vpop.f32.mrb[65].mxu1  ;;  %v4129_v40 = vadd.f32 %v14871_v27, %v4128_v45 }
0x2258   :  { %13361 = vtanh.f32 %v4129_v40 }
0x2259   :  { %v4133_v24 = vpop.f32.mrb[66].mxu1 }
0x225a   :  { %v4134_v42 = vadd.f32 %v14871_v27, %v4133_v24  ;;  %v11706_v46 = vpop.f32.mrb[67].mxu1  ;;  %v13358_v26 = vpop.eup %13357 }
0x225c   :  { %13363 = vtanh.f32 %v4134_v42 }
0x225e   :  { %v13360_v12 = vpop.eup %13359  ;;  %v14895_v38 = vpop.f32.mrb[70].mxu0 }
0x225f   :  { %v12816_v9 = vpack.c.bf16 %v13360_v12, %v13358_v26  ;;  %v11680_v14 = vpop.f32.mrb[71].mxu0 }
0x2260   :  { %v10271_v14 = vld [vmem:[%s16231_s7 + $0x38] sm:$0xff] }
0x2261   :  { %12818 = vmatpush3.bf16.xpose.msk.msra.mxu0 %vm14162_vm5, %v12816_v9 }
0x2262   :  { %12819 = vmatprep.subr.bf16.mxu0 %v13641_v0  ;;  %v13362_v2 = vpop.eup %13361  ;;  %v14898_v53 = vpop.f32.mrb[72].mxu0 }
0x2263   :  { %v11683_v36 = vpop.f32.mrb[73].mxu0 }
0x2266   :  { %v13364_v4 = vpop.eup %13363  ;;  %v14901_v45 = vpop.f32.mrb[74].mxu0 }
0x2267   :  { %v12820_v47 = vpack.c.bf16 %v13364_v4, %v13362_v2  ;;  %v11686_v40 = vpop.f32.mrb[75].mxu0 }
0x2269   :  { %12822 = vmatpush3.bf16.xpose.msk.msra.mxu0 %vm14162_vm5, %v12820_v47 }
0x226a   :  { %12823 = vmatprep.subr.bf16.mxu0 %v13641_v0 }
0x2270   :  { %11725 = vmatmul.mubr.msk.f32.vlgmr.msra.gmra.mrb[76].mxu0 %vm135_vm0, %v14886_v6 }
0x2271   :  { %11733 = vmatprep.mubr.msk.f32.mxu0 %vm13642_vm1, %v13643_v3 }
0x22c8   :  { %v4138_v30 = vpop.f32.mrb[68].mxu1 }
0x22c9   :  { %v4139_v56 = vadd.f32 %v14871_v27, %v4138_v30  ;;  %v11709_v23 = vpop.f32.mrb[69].mxu1 }
0x22cb   :  { %13365 = vtanh.f32 %v4139_v56 }
0x22cc   :  { %v4143_v34 = vpop.f32.mrb[70].mxu1 }
0x22cd   :  { %v4144_v43 = vadd.f32 %v14871_v27, %v4143_v34  ;;  %v11712_v15 = vpop.f32.mrb[71].mxu1 }
0x22ce   :  { %v10270_v15 = vld [vmem:[%s16231_s7 + $0x30] sm:$0xff] }
0x22cf   :  { %13367 = vtanh.f32 %v4144_v43 }
0x22d0   :  { %v4148_v25 = vpop.f32.mrb[72].mxu1 }
0x22d1   :  { %v4149_v54 = vadd.f32 %v14871_v27, %v4148_v25  ;;  %v11715_v33 = vpop.f32.mrb[73].mxu1 }
0x22d3   :  { %13369 = vtanh.f32 %v4149_v54 }
0x22d5   :  { %v13366_v31 = vpop.eup %13365 }
0x22d6   :  { %v4241_v32 = vmul.f32 %v13366_v31, %v14240_v50 }
0x22d8   :  { %4247 = vrot.lane.b32.xlu1 %v4241_v32, %s13647_s17 }
0x22d9   :  { %v13368_v37 = vpop.eup %13367 }
0x22da   :  { %v4242_v24 = vmul.f32 %v13368_v37, %v14240_v50 }
0x22dc   :  { %4249 = vrot.lane.b32.xlu0 %v4242_v24, %s13647_s17 }
0x22dd   :  { %v13370_v42 = vpop.eup %13369 }
0x22de   :  { %v4243_v46 = vmul.f32 %v13370_v42, %v14240_v50  ;;  %v10272_v42 = vld [vmem:[%s16231_s7 + $0x40] sm:$0xff] }
0x22e0   :  { %4251 = vrot.lane.b32.xlu1 %v4243_v46, %s13647_s17 }
0x2343   :  { %v4237_v26 = vpop.f32.mrb[76].mxu0 }
0x2344   :  { %v11726_v12 = vpop.f32.mrb[77].mxu0  ;;  %v4268_v23 = vrot.slane %v4237_v26, %v14260_v44 }
0x234a   :  { %v4248_v9 = vpop.permute.xlu1 %4247 }
0x234b   :  { %v4256_v2 = vsel %vm135_vm0, %v4248_v9, 0.0 }
0x234c   :  { %4257 = vadd.xlane.f32.xlu0 %v4256_v2 }
0x234e   :  { %v4250_v4 = vpop.permute.xlu0 %4249 }
0x234f   :  { %v4259_v47 = vsel %vm135_vm0, %v4250_v4, 0.0 }
0x2350   :  { %4260 = vadd.xlane.f32.xlu1 %v4259_v47 }
0x2352   :  { %v4252_v30 = vpop.permute.xlu1 %4251 }
0x2353   :  { %v4262_v56 = vsel %vm135_vm0, %v4252_v30, 0.0 }
0x2354   :  { %4263 = vadd.xlane.f32.xlu0 %v4262_v56 }
0x23d9   :  { %v4258_v34 = vpop.xlane.xlu0 %4257 }
0x23da   :  { %v4269_v43 = vadd.f32 %v4268_v23, %v4258_v34 }
0x23dc   :  { %v4272_v25 = vadd.f32 %v4269_v43, %v14263_v49 }
0x23dd   :  { %v4261_v54 = vpop.xlane.xlu1 %4260 }
0x23de   :  { %v4270_v33 = vadd.f32 %v4268_v23, %v4261_v54  ;;  %v4279_v31 = vadd.f32 %v10270_v15, %v4272_v25 }
0x23e0   :  { %v4273_v32 = vadd.f32 %v4270_v33, %v14263_v49  ;;  %v4282_v36 = vsel %vm135_vm0, %v4279_v31, -inf }
0x23e1   :  { %v4264_v37 = vpop.xlane.xlu0 %4263  ;;  %4283 = vmax.xlane.f32.xlu0 %v4282_v36 }
0x23e2   :  { %v4271_v40 = vadd.f32 %v4268_v23, %v4264_v37  ;;  %v4280_v24 = vadd.f32 %v10271_v14, %v4273_v32 }
0x23e4   :  { %v4274_v46 = vadd.f32 %v4271_v40, %v14263_v49  ;;  %v4285_v26 = vsel %vm135_vm0, %v4280_v24, -inf }
0x23e5   :  { %4286 = vmax.xlane.f32.xlu1 %v4285_v26 }
0x23e6   :  { %v4281_v12 = vadd.f32 %v10272_v42, %v4274_v46 }
0x23e8   :  { %v4288_v9 = vsel %vm135_vm0, %v4281_v12, -inf }
0x23e9   :  { %4289 = vmax.xlane.f32.xlu0 %v4288_v9 }
0x246e   :  { %v4284_v2 = vpop.xlane.xlu0 %4283 }
0x246f   :  { %v4291_v4 = vsub.f32 %v4279_v31, %v4284_v2 }
0x2471   :  { %v4294_v47 = vmul.f32 1.442695, %v4291_v4 }
0x2472   :  { %v4287_v30 = vpop.xlane.xlu1 %4286 }
0x2473   :  { %13371 = vpow2.f32 %v4294_v47  ;;  %v4292_v56 = vsub.f32 %v4280_v24, %v4287_v30 }
0x2475   :  { %v4296_v23 = vmul.f32 1.442695, %v4292_v56 }
0x2476   :  { %v4290_v34 = vpop.xlane.xlu0 %4289 }
0x2477   :  { %13373 = vpow2.f32 %v4296_v23  ;;  %v4293_v43 = vsub.f32 %v4281_v12, %v4290_v34 }
0x2479   :  { %v4298_v15 = vmul.f32 1.442695, %v4293_v43 }
0x247b   :  { %13375 = vpow2.f32 %v4298_v15 }
0x247d   :  { %v13372_v25 = vpop.eup %13371 }
0x247e   :  { %v4300_v54 = vsel %vm135_vm0, %v13372_v25, 0.0 }
0x247f   :  { %4301 = vadd.xlane.f32.xlu1 %v4300_v54 }
0x2481   :  { %v13374_v33 = vpop.eup %13373 }
0x2482   :  { %v4303_v14 = vsel %vm135_vm0, %v13374_v33, 0.0 }
0x2483   :  { %4304 = vadd.xlane.f32.xlu0 %v4303_v14  ;;  %v10279_v14 = vld [vmem:[%s16262_s15 + $0x70] sm:$0xff] }
0x2485   :  { %v13376_v32 = vpop.eup %13375 }
0x2486   :  { %v4306_v31 = vsel %vm135_vm0, %v13376_v32, 0.0 }
0x2487   :  { %4307 = vadd.xlane.f32.xlu1 %v4306_v31  ;;  %v14955_v31 = vld [vmem:[%s16232_s9] sm:$0xff] }
0x250c   :  { %v4302_v36 = vpop.xlane.xlu1 %4301 }
0x250d   :  { %13377 = vrcp.f32 %v4302_v36 }
0x2510   :  { %v4305_v37 = vpop.xlane.xlu0 %4304 }
0x2511   :  { %13379 = vrcp.f32 %v4305_v37  ;;  %v10281_v37 = vld [vmem:[%s16264_s12 + $0x60] sm:$0xff] }
0x2514   :  { %v4308_v40 = vpop.xlane.xlu1 %4307 }
0x2515   :  { %13381 = vrcp.f32 %v4308_v40 }
0x2517   :  { %v13378_v24 = vpop.eup %13377 }
0x2518   :  { %v4312_v42 = vmul.f32 %v13378_v24, %v13372_v25  ;;  %v10277_v25 = vld [vmem:[%s16262_s15 + $0x60] sm:$0xff] }
0x2519   :  { %v4563_v40 = vadd.f32 %v10281_v37, %v10277_v25  ;;  %v14970_v24 = vld [vmem:[%s16265_s8] sm:$0xff] }
0x251a   :  { %v4315_v46 = vmul.f32 %v4312_v42, %v14895_v38  ;;  %v10294_v38 = vld [vmem:[%s16268_s2 + $0x18] sm:$0xff]  ;;  %v10282_v42 = vld [vmem:[%s16264_s12 + $0x68] sm:$0xff] }
0x251b   :  { %v13380_v26 = vpop.eup %13379  ;;  %vm4888_vm12 = vcmp.gt.f32.partialorder %v10294_v38, 0.5 }
0x251c   :  { %v4318_v12 = vsel %vm135_vm0, %v4315_v46, 0.0  ;;  %v4313_v9 = vmul.f32 %v13380_v26, %v13374_v33  ;;  %v4889_v34 = vsel %vm4888_vm12, 1, %v13644_v62  ;;  %v10283_v46 = vld [vmem:[%s16264_s12 + $0x70] sm:$0xff] }
0x251d   :  { %4319 = vadd.xlane.f32.xlu0 %v4318_v12  ;;  %v4565_v12 = vadd.f32 %v10283_v46, %v10279_v14 }
0x251e   :  { %v4316_v2 = vmul.f32 %v4313_v9, %v14898_v53  ;;  %v10284_v9 = vld [vmem:[%s16264_s12 + $0x78] sm:$0xff] }
0x251f   :  { %v13382_v4 = vpop.eup %13381 }
0x2520   :  { %v4321_v47 = vsel %vm135_vm0, %v4316_v2, 0.0  ;;  %v4314_v30 = vmul.f32 %v13382_v4, %v13376_v32  ;;  %v10280_v32 = vld [vmem:[%s16262_s15 + $0x78] sm:$0xff] }
0x2521   :  { %4322 = vadd.xlane.f32.xlu1 %v4321_v47  ;;  %v12830_v36 = vpack.c.bf16 %v10280_v32, %v10279_v14  ;;  %v4566_v2 = vadd.f32 %v10284_v9, %v10280_v32 }
0x2522   :  { %v4317_v56 = vmul.f32 %v4314_v30, %v14901_v45  ;;  %v10278_v45 = vld [vmem:[%s16262_s15 + $0x68] sm:$0xff] }
0x2523   :  { %v12827_v54 = vpack.c.bf16 %v10278_v45, %v10277_v25  ;;  %v4564_v26 = vadd.f32 %v10282_v42, %v10278_v45  ;;  %v15009_v25 = vld [vmem:[%s16267_s29 + $0x1] ss:$0 sm:$0xff] }
0x2524   :  { %v4324_v23 = vsel %vm135_vm0, %v4317_v56, 0.0  ;;  %v15000_v56 = vld [vmem:[%s16266_s28 + $0x18] sm:$0xff] }
0x2525   :  { %4325 = vadd.xlane.f32.xlu0 %v4324_v23 }
0x2532   :  { %4891 = vperm.xlu1 %13218, %v4889_v34  }
0x25aa   :  { %v4320_v43 = vpop.xlane.xlu0 %4319 }
0x25ae   :  { %v4323_v53 = vpop.xlane.xlu1 %4322 }
0x25af   :  { %v12824_v15 = vpack.c.bf16 %v4323_v53, %v4320_v43 }
0x25b1   :  { %12825 = vmatpush3.bf16.msra.mxu0 %v12824_v15 }
0x25b2   :  { %11731 = vmatprep.subr.mxu0 %v13643_v3  ;;  %v4326_v33 = vpop.xlane.xlu0 %4325 }
0x25b5   :  { %11732 = vmatpush3.msra.mxu0 %v4326_v33 }
0x25b6   :  { %11734 = vmatmul.mubr.msk.f32.vlgmr.msra.gmra.mrb[78].mxu0 %vm1555_vm7, %v14955_v31  ;;  %12826 = vmatprep.subr.bf16.mxu0 %v13641_v0 }
0x25b7   :  { %12828 = vmatpush3.bf16.msra.mxu0 %v12827_v54  ;;  %11744 = vmatprep.mubr.msk.f32.mxu0 %vm13642_vm1, %v13643_v3 }
0x25b8   :  { %12829 = vmatprep.subr.bf16.mxu0 %v13641_v0 }
0x25bb   :  { %12831 = vmatpush3.bf16.msra.mxu0 %v12830_v36 }
0x25bc   :  { %12839 = vmatprep.subr.bf16.mxu0 %v13825_v11 }
0x25be   :  { %11745 = vmatmul.mubr.msk.f32.vlgmr.msra.gmra.mrb[80].mxu0 %vm135_vm0, %v14970_v24 }
0x25bf   :  { %12841 = vmatpush3.bf16.msra.mxu0 %v13825_v11  ;;  %11766 = vmatprep.mubr.msk.f32.mxu0 %vm135_vm0, %v4563_v40 }
0x25c0   :  { %12843 = vmatprep.subr.bf16.mxu0 %v13846_v19 }
0x25c3   :  { %12845 = vmatpush3.bf16.msra.mxu0 %v13846_v19 }
0x25c4   :  { %12852 = vmatprep.subr.bf16.mxu0 %v13641_v0 }
0x25c6   :  { %11767 = vmatmul.mubr.msk.f32.vlgmr.msra.gmra.mrb[82].mxu0 %vm135_vm0, %v4564_v26 }
0x25c7   :  { %11769 = vmatprep.mubr.msk.f32.mxu0 %vm135_vm0, %v4565_v12  ;;  %12854 = vmatpush3.bf16.msra.mxu0 %v13839_v16 }
0x25c8   :  { %12855 = vmatprep.subr.bf16.mxu0 %v13641_v0 }
0x25ca   :  { %11770 = vmatmul.mubr.msk.f32.gmra.mrb[84].mxu0 %vm135_vm0, %v4566_v2 }
0x25cb   :  { %12857 = vmatpush3.bf16.msra.mxu0 %v13877_v28  ;;  %11791 = vmatprep.mubr.msk.f32.mxu0 %vm13642_vm1, %v13643_v3 }
0x25cc   :  { %12864 = vmatprep.subr.bf16.mxu0 %v13641_v0 }
0x2689   :  { %v4393_v4 = vpop.f32.mrb[78].mxu0 }
0x268a   :  { %v10274_v47 = vmul.f32 -1.442695, %v4393_v4  ;;  %v11735_v30 = vpop.f32.mrb[79].mxu0 }
0x268b   :  { %v15032_v30 = vld [vmem:[%s16267_s29] ss:$0 sm:$0xff] }
0x268c   :  { %13383 = vpow2.f32 %v10274_v47 }
0x2691   :  { %v4485_v23 = vpop.f32.mrb[80].mxu0 }
0x2692   :  { %v4486_v38 = vadd.f32 %v15000_v56, %v4485_v23  ;;  %v11746_v34 = vpop.f32.mrb[81].mxu0 }
0x2694   :  { %11756 = vmatmul.mubr.msk.f32.vlgmr.msra.gmra.mrb[74].mxu1 %vm135_vm0, %v4486_v38 }
0x2695   :  { %11780 = vmatprep.mubr.msk.f32.mxu1 %vm13642_vm1, %v13643_v3 }
0x2696   :  { %v13384_v43 = vpop.eup %13383 }
0x2697   :  { %v4400_v53 = vadd.f32 1.0, %v13384_v43 }
0x2699   :  { %13385 = vrcp.f32 %v4400_v53  ;;  %v11768_v15 = vpop.f32.mrb[82].mxu0 }
0x269a   :  { %v4651_v45 = vadd.f32 %v15009_v25, %v11768_v15  ;;  %v4645_v54 = vpop.f32.mrb[83].mxu0 }
0x269b   :  { %v4646_v33 = vadd.f32 %v15009_v25, %v4645_v54 }
0x269c   :  { %13387 = vtanh.f32 %v4651_v45 }
0x269d   :  { %13389 = vtanh.f32 %v4646_v33  ;;  %v11771_v14 = vpop.f32.mrb[84].mxu0 }
0x269e   :  { %v4661_v32 = vadd.f32 %v15009_v25, %v11771_v14  ;;  %v4655_v36 = vpop.f32.mrb[85].mxu0 }
0x269f   :  { %v4656_v37 = vadd.f32 %v15009_v25, %v4655_v36 }
0x26a0   :  { %13391 = vtanh.f32 %v4661_v32 }
0x26a1   :  { %13393 = vtanh.f32 %v4656_v37 }
0x26a3   :  { %v13386_v40 = vpop.eup %13385 }
0x26a4   :  { %10275 = vst.msk [vmem:[%s16233_s26 + $0x10] sm:$0xff] %vm1635_vm8, %v13386_v40 }
0x26a6   :  { %v13388_v42 = vpop.eup %13387 }
0x26a7   :  { %v13390_v46 = vpop.eup %13389 }
0x26a8   :  { %v12847_v26 = vpack.c.bf16 %v13388_v42, %v13390_v46  ;;  %v4892_v42 = vpop.permute.xlu1 %4891 }
0x26a9   :  { %vm4893_vm13 = vcmp.eq.s32.totalorder %v4892_v42, 1 }
0x26aa   :  { %v13392_v12 = vpop.eup %13391  ;;  %12848 = vmatpush3.bf16.msra.mxu1 %v12847_v26 }
0x26ab   :  { %v13394_v9 = vpop.eup %13393  ;;  %12849 = vmatprep.subr.bf16.mxu1 %v13641_v0 }
0x26ac   :  { %v12850_v2 = vpack.c.bf16 %v13392_v12, %v13394_v9 }
0x26ae   :  { %12851 = vmatpush3.bf16.msra.mxu1 %v12850_v2 }
0x26af   :  { %12858 = vmatprep.subr.bf16.mxu1 %v13641_v0 }
0x26b1   :  { %11781 = vmatmul.mubr.msk.f32.vlgmr.msra.gmra.mrb[76].mxu1 %vm135_vm0, %v14970_v24 }
0x26b2   :  { %12860 = vmatpush3.bf16.msra.mxu1 %v13915_v59  ;;  %11802 = vmatprep.mubr.msk.f32.mxu1 %vm13642_vm1, %v13643_v3 }
0x26b3   :  { %12861 = vmatprep.subr.bf16.mxu1 %v13641_v0 }
0x26b6   :  { %12863 = vmatpush3.bf16.msra.mxu1 %v13921_v61 }
0x26b7   :  { %12870 = vmatprep.subr.bf16.mxu1 %v13641_v0 }
0x2767   :  { %v4558_v4 = vpop.f32.mrb[74].mxu1 }
0x2768   :  { %v11757_v47 = vpop.f32.mrb[75].mxu1  ;;  %v4559_v23 = vadd.f32 %v15032_v30, %v4558_v4 }
0x276a   :  { %13395 = vtanh.f32 %v4559_v23 }
0x2774   :  { %v13396_v38 = vpop.eup %13395 }
0x2784   :  { %v4734_v34 = vpop.f32.mrb[76].mxu1 }
0x2785   :  { %v4735_v43 = vadd.f32 %v13396_v38, %v4734_v34  ;;  %v11782_v53 = vpop.f32.mrb[77].mxu1 }
0x2787   :  { %11792 = vmatmul.mubr.msk.f32.vlgmr.msra.gmra.mrb[86].mxu0 %vm135_vm0, %v4735_v43 }
0x2788   :  { %12866 = vmatpush3.bf16.msra.mxu0 %v13967_v18  ;;  %11813 = vmatprep.mubr.msk.f32.mxu0 %vm13642_vm1, %v13643_v3 }
0x2789   :  { %12867 = vmatprep.subr.bf16.mxu0 %v13641_v0 }
0x278c   :  { %12869 = vmatpush3.bf16.msra.mxu0 %v13977_v22 }
0x278d   :  { %12876 = vmatprep.subr.bf16.mxu0 %v13641_v0 }
0x285a   :  { %v4807_v15 = vpop.f32.mrb[86].mxu0 }
0x285b   :  { %v4808_v45 = vadd.f32 %v15032_v30, %v4807_v15  ;;  %v11793_v54 = vpop.f32.mrb[87].mxu0 }
0x285d   :  { %13397 = vtanh.f32 %v4808_v45 }
0x2867   :  { %v13398_v33 = vpop.eup %13397 }
0x2868   :  { %11803 = vmatmul.mubr.msk.f32.vlgmr.msra.gmra.mrb[78].mxu1 %vm135_vm0, %v13398_v33 }
0x2869   :  { %12872 = vmatpush3.bf16.msra.mxu1 %v13938_v8  ;;  %11824 = vmatprep.mubr.msk.f32.mxu1 %vm13642_vm1, %v13643_v3 }
0x286a   :  { %12873 = vmatprep.subr.bf16.mxu1 %v13641_v0 }
0x286d   :  { %12875 = vmatpush3.bf16.msra.mxu1 %v13948_v13 }
0x286e   :  { %12882 = vmatprep.subr.bf16.mxu1 %v13641_v0 }
0x2870   :  { %11825 = vmatmul.mubr.msk.f32.vlgmr.msra.gmra.mrb[80].mxu1 %vm135_vm0, %v14746_v48 }
0x2871   :  { %12884 = vmatpush3.bf16.msra.mxu1 %v14012_v51  ;;  %11846 = vmatprep.mubr.msk.f32.mxu1 %vm13642_vm1, %v13643_v3 }
0x2872   :  { %12885 = vmatprep.subr.bf16.mxu1 %v13641_v0 }
0x2875   :  { %12887 = vmatpush3.bf16.msra.mxu1 %v14030_v57 }
0x2876   :  { %12897 = vmatprep.subr.bf16.mxu1 %v13641_v0 }
0x2878   :  { %11847 = vmatmul.mubr.msk.f32.vlgmr.msra.gmra.mrb[82].mxu1 %vm135_vm0, %v14820_v20 }
0x2879   :  { %11880 = vmatprep.mubr.msk.f32.mxu1 %vm13642_vm1, %v13643_v3 }
0x293b   :  { %v4881_v14 = vpop.f32.mrb[78].mxu1 }
0x293c   :  { %v4882_v48 = vadd.f32 %v14709_v21, %v4881_v14  ;;  %v11804_v32 = vpop.f32.mrb[79].mxu1 }
0x293e   :  { %13399 = vtanh.f32 %v4882_v48 }
0x2943   :  { %v5036_v36 = vpop.f32.mrb[80].mxu1 }
0x2944   :  { %v5037_v37 = vadd.f32 %v14715_v17, %v5036_v36  ;;  %v11826_v40 = vpop.f32.mrb[81].mxu1  ;;  %v10295_v17 = vld [vmem:[%s16277_s27 + $0x18] sm:$0xff] }
0x2945   :  { %v15089_v40 = vld [vmem:[#allocation2 + $0x10] sm:$0xff] }
0x2946   :  { %5048 = vrot.lane.b32.xlu0 %v5037_v37, %s16273_s0 }
0x2948   :  { %v13400_v46 = vpop.eup %13399 }
0x2949   :  { %v4894_v26 = vsel %vm4893_vm13, %v13400_v46, %v15000_v56 }
0x294a   :  { %11814 = vmatmul.mubr.msk.f32.vlgmr.msra.gmra.mrb[88].mxu0 %vm135_vm0, %v4894_v26 }
0x294b   :  { %v5207_v20 = vpop.f32.mrb[82].mxu1  ;;  %12878 = vmatpush3.bf16.msra.mxu0 %v14032_v58  ;;  %11835 = vmatprep.mubr.msk.f32.mxu0 %vm13642_vm1, %v13643_v3 }
0x294c   :  { %v11848_v21 = vpop.f32.mrb[83].mxu1  ;;  %12879 = vmatprep.subr.bf16.mxu0 %v13641_v0  ;;  %v5208_v54 = vadd.f32 %v14735_v35, %v5207_v20  ;;  %v12892_v35 = vpack.c.bf16 %v14744_v1, %v15089_v40  ;;  %v10303_v1 = vld [vmem:[%s16223_s6 + $0x50] sm:$0xff] }
0x294f   :  { %12881 = vmatpush3.bf16.msra.mxu0 %v14036_v60 }
0x2950   :  { %12888 = vmatprep.subr.bf16.mxu0 %v13641_v0 }
0x29b8   :  { %v5049_v34 = vpop.permute.xlu0 %5048 }
0x2a1d   :  { %v4966_v56 = vpop.f32.mrb[88].mxu0 }
0x2a1e   :  { %v4967_v12 = vadd.f32 %v10295_v17, %v4966_v56  ;;  %v11815_v9 = vpop.f32.mrb[89].mxu0 }
0x2a20   :  { %v5040_v2 = vadd.f32 %v5037_v37, %v4967_v12 }
0x2a22   :  { %v10298_v4 = vmul.f32 -1.442695, %v5040_v2 }
0x2a24   :  { %13401 = vpow2.f32 %v10298_v4 }
0x2a2e   :  { %v13402_v47 = vpop.eup %13401 }
0x2a2f   :  { %v5044_v23 = vadd.f32 1.0, %v13402_v47 }
0x2a31   :  { %13403 = vrcp.f32 %v5044_v23 }
0x2a3b   :  { %v13404_v38 = vpop.eup %13403 }
0x2a3c   :  { %v5051_v43 = vmul.f32 %v13404_v38, %v5049_v34  ;;  %v5058_v33 = vsub.f32 1.0, %v13404_v38  ;;  %v5064_v48 = vmul.f32 %v13404_v38, %v14740_v55  ;;  %v10302_v55 = vld [vmem:[%s16223_s6 + $0x48] sm:$0xff] }
0x2a3e   :  { %5053 = vrot.lane.b32.xlu1 %v5051_v43, %s16273_s0 }
0x2ab0   :  { %v5054_v53 = vpop.permute.xlu1 %5053 }
0x2ab1   :  { %v5056_v15 = vadd.f32 %v5054_v53, %v4967_v12 }
0x2ab3   :  { %13405 = vtanh.f32 %v5056_v15 }
0x2abd   :  { %v13406_v45 = vpop.eup %13405 }
0x2abe   :  { %5060 = vrot.lane.b32.xlu1 %v13406_v45, %s13647_s17  ;;  %v10309_v45 = vld [vmem:[%s16226_s5 + $0x50] sm:$0xff] }
0x2ac2   :  { %5219 = vrot.lane.b32.xlu1 %v5208_v54, %s16273_s0 }
0x2b30   :  { %v5061_v14 = vpop.permute.xlu1 %5060 }
0x2b31   :  { %v5063_v32 = vmul.f32 %v5061_v14, %v5058_v33 }
0x2b33   :  { %v15081_v36 = vadd.f32 %v5064_v48, %v5063_v32 }
0x2b34   :  { %v5220_v56 = vpop.permute.xlu1 %5219 }
0x2b35   :  { %5067 = vrot.lane.b32.xlu0 %v15081_v36, %s13647_s17 }
0x2ba7   :  { %v15085_v37 = vpop.permute.xlu0 %5067 }
0x2ba8   :  { %11836 = vmatmul.mubr.msk.f32.vlgmr.msra.gmra.mrb[90].mxu0 %vm135_vm0, %v15085_v37 }
0x2ba9   :  { %12890 = vmatpush3.bf16.msra.mxu0 %v14748_v29  ;;  %11863 = vmatprep.mubr.msk.f32.mxu0 %vm13642_vm1, %v13643_v3  ;;  %v10304_v29 = vld [vmem:[%s16223_s6 + $0x58] sm:$0xff] }
0x2baa   :  { %12891 = vmatprep.subr.bf16.mxu0 %v13641_v0 }
0x2bad   :  { %12893 = vmatpush3.bf16.msra.mxu0 %v12892_v35 }
0x2bae   :  { %12894 = vmatprep.subr.bf16.mxu0 %v13641_v0 }
0x2bb1   :  { %12896 = vmatpush3.bf16.msra.mxu0 %v14757_v10 }
0x2bb2   :  { %11861 = vmatprep.subr.mxu0 %v13643_v3 }
0x2bb5   :  { %11862 = vmatpush3.msra.mxu0 %v14762_v63 }
0x2bb6   :  { %11864 = vmatmul.mubr.msk.f32.vlgmr.msra.gmra.mrb[92].mxu0 %vm1029_vm4, %v10302_v55  ;;  %12905 = vmatprep.subr.bf16.mxu0 %v13641_v0 }
0x2bb7   :  { %11866 = vmatprep.mubr.msk.f32.mxu0 %vm13642_vm1, %v13643_v3  ;;  %12907 = vmatpush3.bf16.msra.mxu0 %v14129_v5 }
0x2bb8   :  { %12908 = vmatprep.subr.bf16.mxu0 %v13641_v0 }
0x2bba   :  { %11867 = vmatmul.mubr.msk.f32.gmra.mrb[94].mxu0 %vm1029_vm4, %v10303_v1  ;;  %v10308_v1 = vld [vmem:[%s16226_s5 + $0x48] sm:$0xff] }
0x2bbb   :  { %11869 = vmatprep.mubr.msk.f32.mxu0 %vm13642_vm1, %v13643_v3  ;;  %12910 = vmatpush3.bf16.msra.mxu0 %v14135_v7 }
0x2bbc   :  { %12928 = vmatprep.subr.bf16.mxu0 %v13641_v0 }
0x2bbe   :  { %11870 = vmatmul.mubr.msk.f32.gmra.mrb[96].mxu0 %vm1029_vm4, %v10304_v29 }
0x2bbf   :  { %11897 = vmatprep.mubr.msk.f32.mxu0 %vm13642_vm1, %v13643_v3 }
0x2c7b   :  { %v5137_v10 = vpop.f32.mrb[90].mxu0 }
0x2c7c   :  { %v5138_v63 = vadd.f32 %v14791_v39, %v5137_v10  ;;  %v11837_v42 = vpop.f32.mrb[91].mxu0 }
0x2c7e   :  { %v5211_v46 = vadd.f32 %v5208_v54, %v5138_v63 }
0x2c80   :  { %v10301_v26 = vmul.f32 -1.442695, %v5211_v46 }
0x2c82   :  { %13407 = vpow2.f32 %v10301_v26 }
0x2c89   :  { %v5323_v9 = vpop.f32.mrb[92].mxu0 }
0x2c8a   :  { %v11865_v2 = vpop.f32.mrb[93].mxu0 }
0x2c8c   :  { %v13408_v20 = vpop.eup %13407 }
0x2c8d   :  { %v5215_v21 = vadd.f32 1.0, %v13408_v20  ;;  %v5328_v4 = vpop.f32.mrb[94].mxu0 }
0x2c8e   :  { %v11868_v47 = vpop.f32.mrb[95].mxu0 }
0x2c8f   :  { %13409 = vrcp.f32 %v5215_v21 }
0x2c91   :  { %v5333_v23 = vpop.f32.mrb[96].mxu0 }
0x2c92   :  { %v11871_v39 = vpop.f32.mrb[97].mxu0 }
0x2c99   :  { %v13410_v17 = vpop.eup %13409 }
0x2c9a   :  { %v5222_v12 = vmul.f32 %v13410_v17, %v5220_v56  ;;  %v5229_v54 = vsub.f32 1.0, %v13410_v17  ;;  %v5235_v14 = vmul.f32 %v13410_v17, %v14806_v52  ;;  %v10310_v52 = vld [vmem:[%s16226_s5 + $0x58] sm:$0xff] }
0x2c9c   :  { %5224 = vrot.lane.b32.xlu0 %v5222_v12, %s16273_s0 }
0x2ca0   :  { %5344 = vrot.lane.b32.xlu0 %v5323_v9, %s16274_s18 }
0x2ca4   :  { %5348 = vrot.lane.b32.xlu0 %v5333_v23, %s16274_s18 }
0x2d0e   :  { %v5225_v38 = vpop.permute.xlu0 %5224 }
0x2d0f   :  { %v5227_v34 = vadd.f32 %v5225_v38, %v5138_v63 }
0x2d11   :  { %13411 = vtanh.f32 %v5227_v34 }
0x2d12   :  { %v5345_v43 = vpop.permute.xlu0 %5344 }
0x2d13   :  { %5362 = vrot.lane.b32.xlu0 %v5345_v43, %s13647_s17 }
0x2d16   :  { %v5349_v53 = vpop.permute.xlu0 %5348 }
0x2d17   :  { %5366 = vrot.lane.b32.xlu0 %v5349_v53, %s13647_s17 }
0x2d1b   :  { %v13412_v15 = vpop.eup %13411  ;;  %5355 = vrot.lane.b32.xlu0 %v10309_v45, %s16274_s18 }
0x2d1c   :  { %5231 = vrot.lane.b32.xlu1 %v13412_v15, %s13647_s17 }
0x2d20   :  { %5346 = vrot.lane.b32.xlu1 %v5328_v4, %s16274_s18 }
0x2d85   :  { %v5363_v55 = vpop.permute.xlu0 %5362 }
0x2d89   :  { %v5367_v29 = vpop.permute.xlu0 %5366 }
0x2d8d   :  { %v5356_v10 = vpop.permute.xlu0 %5355 }
0x2d8e   :  { %v5232_v33 = vpop.permute.xlu1 %5231 }
0x2d8f   :  { %v5234_v48 = vmul.f32 %v5232_v33, %v5229_v54 }
0x2d91   :  { %v15137_v32 = vadd.f32 %v5235_v14, %v5234_v48 }
0x2d92   :  { %v5347_v35 = vpop.permute.xlu1 %5346 }
0x2d93   :  { %5360 = vrot.lane.b32.xlu1 %v15137_v32, %s13647_s17 }
0x2d97   :  { %5364 = vrot.lane.b32.xlu1 %v5347_v35, %s13647_s17 }
0x2d9b   :  { %5353 = vrot.lane.b32.xlu1 %v10308_v1, %s16274_s18 }
0x2d9f   :  { %5357 = vrot.lane.b32.xlu1 %v10310_v52, %s16274_s18 }
0x2da3   :  { %5464 = vrot.lane.b32.xlu1 %v5356_v10, %s13647_s17 }
0x2e05   :  { %v15151_v63 = vpop.permute.xlu1 %5360 }
0x2e06   :  { %5828 = vst.msk [vmem:[#allocation2 + $0x18] sm:$0xff] %vm135_vm0, %v15151_v63  ;;  %v12898_v42 = vpack.c.bf16 %v5363_v55, %v15151_v63  ;;  %11898 = vmatmul.mubr.msk.f32.vlgmr.msra.gmra.mrb[98].mxu0 %vm135_vm0, %v15151_v63 }
0x2e07   :  { %11900 = vmatprep.mubr.msk.f32.mxu0 %vm13642_vm1, %v13643_v3  ;;  %12930 = vmatpush3.bf16.msra.mxu0 %v13839_v16 }
0x2e08   :  { %12900 = vmatpush3.bf16.xpose.msk.msra.mxu1 %vm14162_vm5, %v12898_v42  ;;  %12931 = vmatprep.subr.bf16.mxu0 %v13641_v0 }
0x2e09   :  { %v5365_v46 = vpop.permute.xlu1 %5364  ;;  %12901 = vmatprep.subr.bf16.mxu1 %v13641_v0 }
0x2e0a   :  { %11901 = vmatmul.mubr.msk.f32.gmra.mrb[100].mxu0 %vm135_vm0, %v5363_v55  ;;  %v12902_v20 = vpack.c.bf16 %v5367_v29, %v5365_v46 }
0x2e0b   :  { %11903 = vmatprep.mubr.msk.f32.mxu0 %vm13642_vm1, %v13643_v3  ;;  %12933 = vmatpush3.bf16.msra.mxu0 %v13877_v28 }
0x2e0c   :  { %12942 = vmatprep.subr.bf16.mxu0 %v13641_v0 }
0x2e0d   :  { %v5354_v26 = vpop.permute.xlu1 %5353 }
0x2e0e   :  { %5462 = vrot.lane.b32.xlu0 %v5354_v26, %s13647_s17  ;;  %11904 = vmatmul.mubr.msk.f32.gmra.mrb[102].mxu0 %vm135_vm0, %v5365_v46 }
0x2e0f   :  { %11906 = vmatprep.mubr.msk.f32.mxu0 %vm13642_vm1, %v13643_v3 }
0x2e10   :  { %12904 = vmatpush3.bf16.xpose.msk.msra.mxu1 %vm14162_vm5, %v12902_v20 }
0x2e11   :  { %v5358_v21 = vpop.permute.xlu1 %5357  ;;  %12911 = vmatprep.subr.bf16.mxu1 %v13641_v0 }
0x2e12   :  { %11907 = vmatmul.mubr.msk.f32.gmra.mrb[104].mxu0 %vm135_vm0, %v5367_v29  ;;  %5466 = vrot.lane.b32.xlu0 %v5358_v21, %s13647_s17 }
0x2e13   :  { %11909 = vmatprep.mubr.msk.f32.mxu0 %vm13642_vm1, %v13643_v3 }
0x2e15   :  { %v5465_v56 = vpop.permute.xlu1 %5464 }
0x2e17   :  { %11881 = vmatmul.mubr.msk.f32.vlgmr.msra.gmra.mrb[84].mxu1 %vm135_vm0, %v10308_v1 }
0x2e18   :  { %11883 = vmatprep.mubr.msk.f32.mxu1 %vm13642_vm1, %v13643_v3 }
0x2e1b   :  { %11884 = vmatmul.mubr.msk.f32.gmra.mrb[86].mxu1 %vm135_vm0, %v10309_v45 }
0x2e1c   :  { %11886 = vmatprep.mubr.msk.f32.mxu1 %vm13642_vm1, %v13643_v3 }
0x2e1f   :  { %11887 = vmatmul.mubr.msk.f32.gmra.mrb[88].mxu1 %vm135_vm0, %v10310_v52 }
0x2e20   :  { %11926 = vmatprep.mubr.msk.f32.mxu1 %vm13642_vm1, %v13643_v3 }
0x2e80   :  { %v5463_v17 = vpop.permute.xlu0 %5462 }
0x2e81   :  { %11910 = vmatmul.mubr.msk.f32.gmra.mrb[106].mxu0 %vm135_vm0, %v5463_v17 }
0x2e82   :  { %11912 = vmatprep.mubr.msk.f32.mxu0 %vm13642_vm1, %v13643_v3 }
0x2e84   :  { %v5467_v12 = vpop.permute.xlu0 %5466 }
0x2e85   :  { %11913 = vmatmul.mubr.msk.f32.gmra.mrb[108].mxu0 %vm135_vm0, %v5465_v56 }
0x2e86   :  { %11915 = vmatprep.mubr.msk.f32.mxu0 %vm13642_vm1, %v13643_v3 }
0x2e89   :  { %11916 = vmatmul.mubr.msk.f32.gmra.mrb[110].mxu0 %vm135_vm0, %v5467_v12 }
0x2e8a   :  { %11957 = vmatprep.mubr.msk.f32.mxu0 %vm13642_vm1, %v13643_v3 }
0x2ed9   :  { %v5540_v9 = vpop.f32.mrb[98].mxu0 }
0x2eda   :  { %v11899_v2 = vpop.f32.mrb[99].mxu0  ;;  %v5541_v4 = vadd.f32 %v14871_v27, %v5540_v9 }
0x2edc   :  { %13413 = vtanh.f32 %v5541_v4 }
0x2edd   :  { %v5545_v47 = vpop.f32.mrb[100].mxu0 }
0x2ede   :  { %v5546_v23 = vadd.f32 %v14871_v27, %v5545_v47  ;;  %v11902_v39 = vpop.f32.mrb[101].mxu0 }
0x2ee0   :  { %13415 = vtanh.f32 %v5546_v23 }
0x2ee1   :  { %v5550_v38 = vpop.f32.mrb[102].mxu0 }
0x2ee2   :  { %v11905_v34 = vpop.f32.mrb[103].mxu0  ;;  %v5551_v43 = vadd.f32 %v14871_v27, %v5550_v38 }
0x2ee4   :  { %13417 = vtanh.f32 %v5551_v43 }
0x2ee5   :  { %v5555_v53 = vpop.f32.mrb[104].mxu0 }
0x2ee6   :  { %v5556_v15 = vadd.f32 %v14871_v27, %v5555_v53  ;;  %v11908_v45 = vpop.f32.mrb[105].mxu0  ;;  %v13414_v54 = vpop.eup %13413 }
0x2ee8   :  { %13419 = vtanh.f32 %v5556_v15 }
0x2eea   :  { %v13416_v33 = vpop.eup %13415  ;;  %v15216_v17 = vpop.f32.mrb[84].mxu1 }
0x2eeb   :  { %v12912_v14 = vpack.c.bf16 %v13416_v33, %v13414_v54  ;;  %v11882_v56 = vpop.f32.mrb[85].mxu1 }
0x2eed   :  { %12914 = vmatpush3.bf16.xpose.msk.msra.mxu1 %vm14162_vm5, %v12912_v14 }
0x2eee   :  { %12915 = vmatprep.subr.bf16.mxu1 %v13641_v0  ;;  %v13418_v48 = vpop.eup %13417  ;;  %v15219_v9 = vpop.f32.mrb[86].mxu1 }
0x2eef   :  { %v11885_v2 = vpop.f32.mrb[87].mxu1 }
0x2ef2   :  { %v13420_v35 = vpop.eup %13419  ;;  %v15222_v4 = vpop.f32.mrb[88].mxu1 }
0x2ef3   :  { %v12916_v55 = vpack.c.bf16 %v13420_v35, %v13418_v48  ;;  %v11888_v23 = vpop.f32.mrb[89].mxu1 }
0x2ef5   :  { %12918 = vmatpush3.bf16.xpose.msk.msra.mxu1 %vm14162_vm5, %v12916_v55 }
0x2ef6   :  { %12919 = vmatprep.subr.bf16.mxu1 %v13641_v0 }
0x2efc   :  { %11927 = vmatmul.mubr.msk.f32.vlgmr.msra.gmra.mrb[90].mxu1 %vm135_vm0, %v14886_v6 }
0x2efd   :  { %11935 = vmatprep.mubr.msk.f32.mxu1 %vm13642_vm1, %v13643_v3 }
0x2f54   :  { %v5560_v1 = vpop.f32.mrb[106].mxu0 }
0x2f55   :  { %v5561_v52 = vadd.f32 %v14871_v27, %v5560_v1  ;;  %v11911_v29 = vpop.f32.mrb[107].mxu0  ;;  %v10330_v1 = vld [vmem:[%s16231_s7 + $0x48] sm:$0xff] }
0x2f57   :  { %13421 = vtanh.f32 %v5561_v52 }
0x2f58   :  { %v5565_v10 = vpop.f32.mrb[108].mxu0 }
0x2f59   :  { %v5566_v42 = vadd.f32 %v14871_v27, %v5565_v10  ;;  %v11914_v46 = vpop.f32.mrb[109].mxu0 }
0x2f5a   :  { %v10331_v46 = vld [vmem:[%s16231_s7 + $0x50] sm:$0xff] }
0x2f5b   :  { %13423 = vtanh.f32 %v5566_v42 }
0x2f5c   :  { %v5570_v26 = vpop.f32.mrb[110].mxu0 }
0x2f5d   :  { %v5571_v20 = vadd.f32 %v14871_v27, %v5570_v26  ;;  %v11917_v21 = vpop.f32.mrb[111].mxu0 }
0x2f5f   :  { %13425 = vtanh.f32 %v5571_v20 }
0x2f61   :  { %v13422_v6 = vpop.eup %13421 }
0x2f62   :  { %v5663_v12 = vmul.f32 %v13422_v6, %v14240_v50 }
0x2f64   :  { %5669 = vrot.lane.b32.xlu1 %v5663_v12, %s13647_s17  ;;  %v10332_v12 = vld [vmem:[%s16231_s7 + $0x58] sm:$0xff] }
0x2f65   :  { %v13424_v47 = vpop.eup %13423 }
0x2f66   :  { %v5664_v39 = vmul.f32 %v13424_v47, %v14240_v50 }
0x2f68   :  { %5671 = vrot.lane.b32.xlu0 %v5664_v39, %s13647_s17 }
0x2f69   :  { %v13426_v27 = vpop.eup %13425 }
0x2f6a   :  { %v5665_v38 = vmul.f32 %v13426_v27, %v14240_v50 }
0x2f6c   :  { %5673 = vrot.lane.b32.xlu1 %v5665_v38, %s13647_s17 }
0x2fcf   :  { %v5659_v34 = vpop.f32.mrb[90].mxu1 }
0x2fd0   :  { %v11928_v43 = vpop.f32.mrb[91].mxu1  ;;  %v5690_v48 = vrot.slane %v5659_v34, %v14260_v44 }
0x2fd6   :  { %v5670_v53 = vpop.permute.xlu1 %5669 }
0x2fd7   :  { %v5678_v15 = vsel %vm135_vm0, %v5670_v53, 0.0 }
0x2fd8   :  { %5679 = vadd.xlane.f32.xlu0 %v5678_v15 }
0x2fda   :  { %v5672_v45 = vpop.permute.xlu0 %5671 }
0x2fdb   :  { %v5681_v54 = vsel %vm135_vm0, %v5672_v45, 0.0 }
0x2fdc   :  { %5682 = vadd.xlane.f32.xlu1 %v5681_v54 }
0x2fde   :  { %v5674_v33 = vpop.permute.xlu1 %5673 }
0x2fdf   :  { %v5684_v14 = vsel %vm135_vm0, %v5674_v33, 0.0 }
0x2fe0   :  { %5685 = vadd.xlane.f32.xlu0 %v5684_v14 }
0x3065   :  { %v5680_v35 = vpop.xlane.xlu0 %5679 }
0x3066   :  { %v5691_v55 = vadd.f32 %v5690_v48, %v5680_v35 }
0x3068   :  { %v5694_v52 = vadd.f32 %v5691_v55, %v14263_v49 }
0x3069   :  { %v5683_v29 = vpop.xlane.xlu1 %5682 }
0x306a   :  { %v5692_v10 = vadd.f32 %v5690_v48, %v5683_v29  ;;  %v5701_v42 = vadd.f32 %v10330_v1, %v5694_v52 }
0x306c   :  { %v5695_v26 = vadd.f32 %v5692_v10, %v14263_v49  ;;  %v5704_v20 = vsel %vm135_vm0, %v5701_v42, -inf }
0x306d   :  { %v5686_v21 = vpop.xlane.xlu0 %5685  ;;  %5705 = vmax.xlane.f32.xlu0 %v5704_v20 }
0x306e   :  { %v5693_v6 = vadd.f32 %v5690_v48, %v5686_v21  ;;  %v5702_v56 = vadd.f32 %v10331_v46, %v5695_v26 }
0x3070   :  { %v5696_v2 = vadd.f32 %v5693_v6, %v14263_v49  ;;  %v5707_v47 = vsel %vm135_vm0, %v5702_v56, -inf }
0x3071   :  { %5708 = vmax.xlane.f32.xlu1 %v5707_v47 }
0x3072   :  { %v5703_v23 = vadd.f32 %v10332_v12, %v5696_v2 }
0x3074   :  { %v5710_v39 = vsel %vm135_vm0, %v5703_v23, -inf }
0x3075   :  { %5711 = vmax.xlane.f32.xlu0 %v5710_v39 }
0x30fa   :  { %v5706_v27 = vpop.xlane.xlu0 %5705 }
0x30fb   :  { %v5713_v38 = vsub.f32 %v5701_v42, %v5706_v27 }
0x30fd   :  { %v5716_v34 = vmul.f32 1.442695, %v5713_v38 }
0x30fe   :  { %v5709_v43 = vpop.xlane.xlu1 %5708 }
0x30ff   :  { %13427 = vpow2.f32 %v5716_v34  ;;  %v5714_v53 = vsub.f32 %v5702_v56, %v5709_v43 }
0x3101   :  { %v5718_v15 = vmul.f32 1.442695, %v5714_v53  ;;  %v10337_v53 = vld [vmem:[%s16262_s15 + $0x80] sm:$0xff] }
0x3102   :  { %v5712_v45 = vpop.xlane.xlu0 %5711 }
0x3103   :  { %13429 = vpow2.f32 %v5718_v15  ;;  %v5715_v54 = vsub.f32 %v5703_v23, %v5712_v45 }
0x3105   :  { %v5720_v33 = vmul.f32 1.442695, %v5715_v54  ;;  %v10339_v54 = vld [vmem:[%s16262_s15 + $0x90] sm:$0xff] }
0x3107   :  { %13431 = vpow2.f32 %v5720_v33  ;;  %v10340_v33 = vld [vmem:[%s16262_s15 + $0x98] sm:$0xff] }
0x3109   :  { %v13428_v14 = vpop.eup %13427 }
0x310a   :  { %v5722_v48 = vsel %vm135_vm0, %v13428_v14, 0.0 }
0x310b   :  { %5723 = vadd.xlane.f32.xlu1 %v5722_v48  ;;  %v10341_v48 = vld [vmem:[%s16264_s12 + $0x80] sm:$0xff] }
0x310d   :  { %v13430_v35 = vpop.eup %13429 }
0x310e   :  { %v5725_v55 = vsel %vm135_vm0, %v13430_v35, 0.0 }
0x310f   :  { %5726 = vadd.xlane.f32.xlu0 %v5725_v55  ;;  %v10343_v55 = vld [vmem:[%s16264_s12 + $0x90] sm:$0xff] }
0x3111   :  { %v13432_v1 = vpop.eup %13431 }
0x3112   :  { %v5728_v52 = vsel %vm135_vm0, %v13432_v1, 0.0 }
0x3113   :  { %5729 = vadd.xlane.f32.xlu1 %v5728_v52  ;;  %v5987_v52 = vadd.f32 %v10343_v55, %v10339_v54 }
0x3198   :  { %v5724_v29 = vpop.xlane.xlu1 %5723 }
0x3199   :  { %13433 = vrcp.f32 %v5724_v29  ;;  %v10344_v29 = vld [vmem:[%s16264_s12 + $0x98] sm:$0xff] }
0x319c   :  { %v5727_v10 = vpop.xlane.xlu0 %5726 }
0x319d   :  { %13435 = vrcp.f32 %v5727_v10  ;;  %v5988_v10 = vadd.f32 %v10344_v29, %v10340_v33 }
0x31a0   :  { %v5730_v42 = vpop.xlane.xlu1 %5729 }
0x31a1   :  { %13437 = vrcp.f32 %v5730_v42 }
0x31a3   :  { %v13434_v46 = vpop.eup %13433 }
0x31a4   :  { %v5734_v26 = vmul.f32 %v13434_v46, %v13428_v14  ;;  %v12926_v14 = vpack.c.bf16 %v10340_v33, %v10339_v54 }
0x31a6   :  { %v5737_v20 = vmul.f32 %v5734_v26, %v15216_v17  ;;  %v10354_v17 = vld [vmem:[%s16268_s2 + $0x20] sm:$0xff] }
0x31a7   :  { %v13436_v21 = vpop.eup %13435  ;;  %vm6310_vm14 = vcmp.gt.f32.partialorder %v10354_v17, 0.5 }
0x31a8   :  { %v5740_v6 = vsel %vm135_vm0, %v5737_v20, 0.0  ;;  %v5735_v56 = vmul.f32 %v13436_v21, %v13430_v35  ;;  %v6311_v38 = vsel %vm6310_vm14, 1, %v13644_v62  ;;  %v5985_v35 = vadd.f32 %v10341_v48, %v10337_v53  ;;  %v15311_v20 = vld [vmem:[%s16266_s28 + $0x20] sm:$0xff] }
0x31a9   :  { %5741 = vadd.xlane.f32.xlu0 %v5740_v6 }
0x31aa   :  { %v5738_v12 = vmul.f32 %v5735_v56, %v15219_v9 }
0x31ab   :  { %v13438_v2 = vpop.eup %13437 }
0x31ac   :  { %v5743_v47 = vsel %vm135_vm0, %v5738_v12, 0.0  ;;  %v5736_v23 = vmul.f32 %v13438_v2, %v13432_v1 }
0x31ad   :  { %5744 = vadd.xlane.f32.xlu1 %v5743_v47 }
0x31ae   :  { %v5739_v39 = vmul.f32 %v5736_v23, %v15222_v4  ;;  %v10338_v4 = vld [vmem:[%s16262_s15 + $0x88] sm:$0xff] }
0x31af   :  { %v12923_v15 = vpack.c.bf16 %v10338_v4, %v10337_v53 }
0x31b0   :  { %v5746_v27 = vsel %vm135_vm0, %v5739_v39, 0.0 }
0x31b1   :  { %5747 = vadd.xlane.f32.xlu0 %v5746_v27 }
0x31be   :  { %6313 = vperm.xlu1 %13218, %v6311_v38  }
0x3236   :  { %v5742_v34 = vpop.xlane.xlu0 %5741 }
0x323a   :  { %v5745_v9 = vpop.xlane.xlu1 %5744 }
0x323b   :  { %v12920_v43 = vpack.c.bf16 %v5745_v9, %v5742_v34 }
0x323d   :  { %12921 = vmatpush3.bf16.msra.mxu1 %v12920_v43 }
0x323e   :  { %11933 = vmatprep.subr.mxu1 %v13643_v3  ;;  %v5748_v45 = vpop.xlane.xlu0 %5747 }
0x3241   :  { %11934 = vmatpush3.msra.mxu1 %v5748_v45 }
0x3242   :  { %11936 = vmatmul.mubr.msk.f32.vlgmr.msra.gmra.mrb[92].mxu1 %vm1555_vm7, %v14955_v31  ;;  %12922 = vmatprep.subr.bf16.mxu1 %v13641_v0  ;;  %v10342_v31 = vld [vmem:[%s16264_s12 + $0x88] sm:$0xff] }
0x3243   :  { %12924 = vmatpush3.bf16.msra.mxu1 %v12923_v15  ;;  %11946 = vmatprep.mubr.msk.f32.mxu1 %vm13642_vm1, %v13643_v3  ;;  %v5986_v1 = vadd.f32 %v10342_v31, %v10338_v4 }
0x3244   :  { %12925 = vmatprep.subr.bf16.mxu1 %v13641_v0 }
0x3247   :  { %12927 = vmatpush3.bf16.msra.mxu1 %v12926_v14 }
0x3248   :  { %12935 = vmatprep.subr.bf16.mxu1 %v13825_v11 }
0x324a   :  { %11947 = vmatmul.mubr.msk.f32.vlgmr.msra.gmra.mrb[94].mxu1 %vm135_vm0, %v14970_v24 }
0x324b   :  { %12937 = vmatpush3.bf16.msra.mxu1 %v13825_v11  ;;  %11968 = vmatprep.mubr.msk.f32.mxu1 %vm135_vm0, %v5985_v35 }
0x324c   :  { %12939 = vmatprep.subr.bf16.mxu1 %v13846_v19 }
0x324f   :  { %12941 = vmatpush3.bf16.msra.mxu1 %v13846_v19 }
0x3250   :  { %12948 = vmatprep.subr.bf16.mxu1 %v13641_v0 }
0x3252   :  { %11969 = vmatmul.mubr.msk.f32.vlgmr.msra.gmra.mrb[96].mxu1 %vm135_vm0, %v5986_v1 }
0x3253   :  { %11971 = vmatprep.mubr.msk.f32.mxu1 %vm135_vm0, %v5987_v52  ;;  %12950 = vmatpush3.bf16.msra.mxu1 %v13839_v16 }
0x3254   :  { %12951 = vmatprep.subr.bf16.mxu1 %v13641_v0 }
0x3256   :  { %11972 = vmatmul.mubr.msk.f32.gmra.mrb[98].mxu1 %vm135_vm0, %v5988_v10 }
0x3257   :  { %12953 = vmatpush3.bf16.msra.mxu1 %v13877_v28  ;;  %11993 = vmatprep.mubr.msk.f32.mxu1 %vm13642_vm1, %v13643_v3 }
0x3258   :  { %12960 = vmatprep.subr.bf16.mxu1 %v13641_v0 }
0x3315   :  { %v5815_v42 = vpop.f32.mrb[92].mxu1 }
0x3316   :  { %v10334_v46 = vmul.f32 -1.442695, %v5815_v42  ;;  %v11937_v26 = vpop.f32.mrb[93].mxu1 }
0x3318   :  { %13439 = vpow2.f32 %v10334_v46 }
0x331d   :  { %v5907_v21 = vpop.f32.mrb[94].mxu1 }
0x331e   :  { %v5908_v6 = vadd.f32 %v15311_v20, %v5907_v21  ;;  %v11948_v56 = vpop.f32.mrb[95].mxu1  ;;  %v15372_v21 = vld [vmem:[%s16278_s1] ss:$0 sm:$0xff] }
0x331f   :  { %v6314_v56 = vpop.permute.xlu1 %6313 }
0x3320   :  { %11958 = vmatmul.mubr.msk.f32.vlgmr.msra.gmra.mrb[112].mxu0 %vm135_vm0, %v5908_v6  ;;  %vm6315_vm15 = vcmp.eq.s32.totalorder %v6314_v56, 1  ;;  %v10364_v56 = vld [vmem:[%s16223_s6 + $0x70] sm:$0xff] }
0x3321   :  { %11982 = vmatprep.mubr.msk.f32.mxu0 %vm13642_vm1, %v13643_v3 }
0x3322   :  { %v13440_v12 = vpop.eup %13439 }
0x3323   :  { %v5822_v2 = vadd.f32 1.0, %v13440_v12 }
0x3325   :  { %13441 = vrcp.f32 %v5822_v2  ;;  %v11970_v47 = vpop.f32.mrb[96].mxu1 }
0x3326   :  { %v6073_v23 = vadd.f32 %v15009_v25, %v11970_v47  ;;  %v6067_v39 = vpop.f32.mrb[97].mxu1 }
0x3327   :  { %v6068_v27 = vadd.f32 %v15009_v25, %v6067_v39  ;;  %v10355_v39 = vld [vmem:[%s16277_s27 + $0x20] sm:$0xff] }
0x3328   :  { %13443 = vtanh.f32 %v6073_v23 }
0x3329   :  { %13445 = vtanh.f32 %v6068_v27  ;;  %v11973_v17 = vpop.f32.mrb[98].mxu1 }
0x332a   :  { %v6083_v38 = vadd.f32 %v15009_v25, %v11973_v17  ;;  %v6077_v34 = vpop.f32.mrb[99].mxu1 }
0x332b   :  { %v6078_v9 = vadd.f32 %v15009_v25, %v6077_v34 }
0x332c   :  { %13447 = vtanh.f32 %v6083_v38 }
0x332d   :  { %13449 = vtanh.f32 %v6078_v9 }
0x332f   :  { %v13442_v43 = vpop.eup %13441 }
0x3330   :  { %10335 = vst.msk [vmem:[%s16233_s26 + $0x18] sm:$0xff] %vm1635_vm8, %v13442_v43 }
0x3332   :  { %v13444_v53 = vpop.eup %13443 }
0x3333   :  { %v13446_v4 = vpop.eup %13445 }
0x3334   :  { %v12943_v15 = vpack.c.bf16 %v13444_v53, %v13446_v4 }
0x3336   :  { %v13448_v45 = vpop.eup %13447  ;;  %12944 = vmatpush3.bf16.msra.mxu0 %v12943_v15 }
0x3337   :  { %v13450_v54 = vpop.eup %13449  ;;  %12945 = vmatprep.subr.bf16.mxu0 %v13641_v0 }
0x3338   :  { %v12946_v33 = vpack.c.bf16 %v13448_v45, %v13450_v54 }
0x333a   :  { %12947 = vmatpush3.bf16.msra.mxu0 %v12946_v33 }
0x333b   :  { %12954 = vmatprep.subr.bf16.mxu0 %v13641_v0 }
0x333d   :  { %11983 = vmatmul.mubr.msk.f32.vlgmr.msra.gmra.mrb[114].mxu0 %vm135_vm0, %v14970_v24 }
0x333e   :  { %12956 = vmatpush3.bf16.msra.mxu0 %v13915_v59  ;;  %12004 = vmatprep.mubr.msk.f32.mxu0 %vm13642_vm1, %v13643_v3 }
0x333f   :  { %12957 = vmatprep.subr.bf16.mxu0 %v13641_v0 }
0x3342   :  { %12959 = vmatpush3.bf16.msra.mxu0 %v13921_v61 }
0x3343   :  { %12966 = vmatprep.subr.bf16.mxu0 %v13641_v0 }
0x33f3   :  { %v5980_v25 = vpop.f32.mrb[112].mxu0 }
0x33f4   :  { %v11959_v14 = vpop.f32.mrb[113].mxu0  ;;  %v5981_v48 = vadd.f32 %v15032_v30, %v5980_v25  ;;  %v15392_v25 = vld [vmem:[%s16222_s20] ss:$0 sm:$0xff] }
0x33f6   :  { %13451 = vtanh.f32 %v5981_v48 }
0x3400   :  { %v13452_v35 = vpop.eup %13451 }
0x3410   :  { %v6156_v31 = vpop.f32.mrb[114].mxu0 }
0x3411   :  { %v6157_v55 = vadd.f32 %v13452_v35, %v6156_v31  ;;  %v11984_v24 = vpop.f32.mrb[115].mxu0 }
0x3413   :  { %11994 = vmatmul.mubr.msk.f32.vlgmr.msra.gmra.mrb[100].mxu1 %vm135_vm0, %v6157_v55 }
0x3414   :  { %12962 = vmatpush3.bf16.msra.mxu1 %v13967_v18  ;;  %12015 = vmatprep.mubr.msk.f32.mxu1 %vm13642_vm1, %v13643_v3 }
0x3415   :  { %12963 = vmatprep.subr.bf16.mxu1 %v13641_v0 }
0x3418   :  { %12965 = vmatpush3.bf16.msra.mxu1 %v13977_v22 }
0x3419   :  { %12972 = vmatprep.subr.bf16.mxu1 %v13641_v0 }
0x34e6   :  { %v6229_v1 = vpop.f32.mrb[100].mxu1 }
0x34e7   :  { %v6230_v52 = vadd.f32 %v15032_v30, %v6229_v1  ;;  %v11995_v29 = vpop.f32.mrb[101].mxu1  ;;  %v6663_v1 = vld [vmem:[#allocation2] sm:$0xff] }
0x34e9   :  { %13453 = vtanh.f32 %v6230_v52  ;;  %v6664_v52 = vld [vmem:[#allocation2 + $0x8] sm:$0xff] }
0x34f3   :  { %v13454_v10 = vpop.eup %13453 }
0x34f4   :  { %12005 = vmatmul.mubr.msk.f32.vlgmr.msra.gmra.mrb[116].mxu0 %vm135_vm0, %v13454_v10  ;;  %v15403_v10 = vpack.c.bf16 %v6664_v52, %v6663_v1 }
0x34f5   :  { %12968 = vmatpush3.bf16.msra.mxu0 %v13938_v8  ;;  %12026 = vmatprep.mubr.msk.f32.mxu0 %vm13642_vm1, %v13643_v3 }
0x34f6   :  { %12969 = vmatprep.subr.bf16.mxu0 %v13641_v0 }
0x34f9   :  { %12971 = vmatpush3.bf16.msra.mxu0 %v13948_v13 }
0x34fa   :  { %12978 = vmatprep.subr.bf16.mxu0 %v13641_v0 }
0x34fc   :  { %12027 = vmatmul.mubr.msk.f32.vlgmr.msra.gmra.mrb[118].mxu0 %vm135_vm0, %v15085_v37  ;;  %v15366_v37 = vld [vmem:[%s16267_s29 + $0x2] ss:$0 sm:$0xff] }
0x34fd   :  { %12980 = vmatpush3.bf16.msra.mxu0 %v14012_v51  ;;  %12048 = vmatprep.mubr.msk.f32.mxu0 %vm13642_vm1, %v13643_v3 }
0x34fe   :  { %12981 = vmatprep.subr.bf16.mxu0 %v13641_v0 }
0x3501   :  { %12983 = vmatpush3.bf16.msra.mxu0 %v14030_v57 }
0x3502   :  { %12993 = vmatprep.subr.bf16.mxu0 %v13641_v0 }
0x3504   :  { %12049 = vmatmul.mubr.msk.f32.vlgmr.msra.gmra.mrb[120].mxu0 %vm135_vm0, %v15151_v63 }
0x3505   :  { %12082 = vmatprep.mubr.msk.f32.mxu0 %vm13642_vm1, %v13643_v3 }
0x35c7   :  { %v6303_v30 = vpop.f32.mrb[116].mxu0 }
0x35c8   :  { %v6304_v42 = vadd.f32 %v15366_v37, %v6303_v30  ;;  %v12006_v46 = vpop.f32.mrb[117].mxu0  ;;  %v15407_v30 = vld [vmem:[#allocation2 + $0x18] sm:$0xff] }
0x35c9   :  { %v12988_v46 = vpack.c.bf16 %v15407_v30, %v15089_v40  ;;  %v10363_v40 = vld [vmem:[%s16223_s6 + $0x68] sm:$0xff] }
0x35ca   :  { %13455 = vtanh.f32 %v6304_v42  ;;  %v15413_v42 = vld [vmem:[#allocation2 + $0x28] sm:$0xff] }
0x35cf   :  { %v6458_v26 = vpop.f32.mrb[118].mxu0 }
0x35d0   :  { %v6459_v63 = vadd.f32 %v15372_v21, %v6458_v26  ;;  %v12028_v6 = vpop.f32.mrb[119].mxu0 }
0x35d1   :  { %v10362_v6 = vld [vmem:[%s16223_s6 + $0x60] sm:$0xff] }
0x35d2   :  { %6470 = vrot.lane.b32.xlu0 %v6459_v63, %s16273_s0 }
0x35d4   :  { %v13456_v12 = vpop.eup %13455 }
0x35d5   :  { %v6316_v2 = vsel %vm6315_vm15, %v13456_v12, %v15311_v20 }
0x35d6   :  { %12016 = vmatmul.mubr.msk.f32.vlgmr.msra.gmra.mrb[102].mxu1 %vm135_vm0, %v6316_v2  ;;  %v15449_v2 = vld [vmem:[%s16224_s19] ss:$0 sm:$0xff] }
0x35d7   :  { %v6629_v47 = vpop.f32.mrb[120].mxu0  ;;  %12974 = vmatpush3.bf16.msra.mxu1 %v14032_v58  ;;  %12037 = vmatprep.mubr.msk.f32.mxu1 %vm13642_vm1, %v13643_v3 }
0x35d8   :  { %v12050_v23 = vpop.f32.mrb[121].mxu0  ;;  %12975 = vmatprep.subr.bf16.mxu1 %v13641_v0  ;;  %v6630_v14 = vadd.f32 %v15392_v25, %v6629_v47 }
0x35db   :  { %12977 = vmatpush3.bf16.msra.mxu1 %v14036_v60 }
0x35dc   :  { %12984 = vmatprep.subr.bf16.mxu1 %v13641_v0 }
0x3644   :  { %v6471_v4 = vpop.permute.xlu0 %6470 }
0x36a9   :  { %v6388_v20 = vpop.f32.mrb[102].mxu1 }
0x36aa   :  { %v6389_v27 = vadd.f32 %v10355_v39, %v6388_v20  ;;  %v12017_v17 = vpop.f32.mrb[103].mxu1 }
0x36ac   :  { %v6462_v38 = vadd.f32 %v6459_v63, %v6389_v27  ;;  %v15420_v63 = vld [vmem:[#allocation2 + $0x30] sm:$0xff] }
0x36ae   :  { %v10358_v34 = vmul.f32 -1.442695, %v6462_v38 }
0x36b0   :  { %13457 = vpow2.f32 %v10358_v34 }
0x36ba   :  { %v13458_v9 = vpop.eup %13457 }
0x36bb   :  { %v6466_v43 = vadd.f32 1.0, %v13458_v9 }
0x36bd   :  { %13459 = vrcp.f32 %v6466_v43 }
0x36c7   :  { %v13460_v53 = vpop.eup %13459 }
0x36c8   :  { %v6473_v15 = vmul.f32 %v13460_v53, %v6471_v4  ;;  %v6480_v48 = vsub.f32 1.0, %v13460_v53  ;;  %v6486_v31 = vmul.f32 %v13460_v53, %v15081_v36  ;;  %v6667_v36 = vld [vmem:[#allocation2 + $0x20] sm:$0xff] }
0x36c9   :  { %v12991_v26 = vpack.c.bf16 %v15413_v42, %v6667_v36 }
0x36ca   :  { %6475 = vrot.lane.b32.xlu1 %v6473_v15, %s16273_s0 }
0x373c   :  { %v6476_v45 = vpop.permute.xlu1 %6475 }
0x373d   :  { %v6478_v54 = vadd.f32 %v6476_v45, %v6389_v27 }
0x373f   :  { %13461 = vtanh.f32 %v6478_v54 }
0x3749   :  { %v13462_v33 = vpop.eup %13461 }
0x374a   :  { %6482 = vrot.lane.b32.xlu1 %v13462_v33, %s13647_s17 }
0x374e   :  { %6641 = vrot.lane.b32.xlu1 %v6630_v14, %s16273_s0 }
0x37bc   :  { %v6483_v35 = vpop.permute.xlu1 %6482 }
0x37bd   :  { %v6485_v55 = vmul.f32 %v6483_v35, %v6480_v48 }
0x37bf   :  { %v15397_v24 = vadd.f32 %v6486_v31, %v6485_v55  ;;  %v10369_v55 = vld [vmem:[%s16226_s5 + $0x68] sm:$0xff] }
0x37c0   :  { %v6642_v34 = vpop.permute.xlu1 %6641 }
0x37c1   :  { %6489 = vrot.lane.b32.xlu0 %v15397_v24, %s13647_s17 }
0x3833   :  { %v15401_v29 = vpop.permute.xlu0 %6489 }
0x3834   :  { %12038 = vmatmul.mubr.msk.f32.vlgmr.msra.gmra.mrb[104].mxu1 %vm135_vm0, %v15401_v29 }
0x3835   :  { %12986 = vmatpush3.bf16.msra.mxu1 %v15403_v10  ;;  %12065 = vmatprep.mubr.msk.f32.mxu1 %vm13642_vm1, %v13643_v3 }
0x3836   :  { %12987 = vmatprep.subr.bf16.mxu1 %v13641_v0 }
0x3839   :  { %12989 = vmatpush3.bf16.msra.mxu1 %v12988_v46 }
0x383a   :  { %12990 = vmatprep.subr.bf16.mxu1 %v13641_v0 }
0x383d   :  { %12992 = vmatpush3.bf16.msra.mxu1 %v12991_v26 }
0x383e   :  { %12063 = vmatprep.subr.mxu1 %v13643_v3 }
0x3841   :  { %12064 = vmatpush3.msra.mxu1 %v15420_v63 }
0x3842   :  { %12066 = vmatmul.mubr.msk.f32.vlgmr.msra.gmra.mrb[106].mxu1 %vm1029_vm4, %v10362_v6  ;;  %13001 = vmatprep.subr.bf16.mxu1 %v13641_v0 }
0x3843   :  { %12068 = vmatprep.mubr.msk.f32.mxu1 %vm13642_vm1, %v13643_v3  ;;  %13003 = vmatpush3.bf16.msra.mxu1 %v14129_v5 }
0x3844   :  { %13004 = vmatprep.subr.bf16.mxu1 %v13641_v0 }
0x3846   :  { %12069 = vmatmul.mubr.msk.f32.gmra.mrb[108].mxu1 %vm1029_vm4, %v10363_v40 }
0x3847   :  { %12071 = vmatprep.mubr.msk.f32.mxu1 %vm13642_vm1, %v13643_v3  ;;  %13006 = vmatpush3.bf16.msra.mxu1 %v14135_v7 }
0x3848   :  { %13024 = vmatprep.subr.bf16.mxu1 %v13641_v0 }
0x384a   :  { %12072 = vmatmul.mubr.msk.f32.gmra.mrb[110].mxu1 %vm1029_vm4, %v10364_v56  ;;  %v10368_v56 = vld [vmem:[%s16226_s5 + $0x60] sm:$0xff] }
0x384b   :  { %12099 = vmatprep.mubr.msk.f32.mxu1 %vm13642_vm1, %v13643_v3 }
0x3907   :  { %v6559_v12 = vpop.f32.mrb[104].mxu1 }
0x3908   :  { %v6560_v47 = vadd.f32 %v15449_v2, %v6559_v12  ;;  %v12039_v23 = vpop.f32.mrb[105].mxu1 }
0x390a   :  { %v6633_v39 = vadd.f32 %v6630_v14, %v6560_v47 }
0x390c   :  { %v10361_v20 = vmul.f32 -1.442695, %v6633_v39 }
0x390e   :  { %13463 = vpow2.f32 %v10361_v20 }
0x3915   :  { %v6745_v43 = vpop.f32.mrb[106].mxu1 }
0x3916   :  { %v12067_v53 = vpop.f32.mrb[107].mxu1 }
0x3918   :  { %v13464_v27 = vpop.eup %13463 }
0x3919   :  { %v6637_v17 = vadd.f32 1.0, %v13464_v27  ;;  %v6750_v4 = vpop.f32.mrb[108].mxu1 }
0x391a   :  { %v12070_v15 = vpop.f32.mrb[109].mxu1 }
0x391b   :  { %13465 = vrcp.f32 %v6637_v17  ;;  %v15529_v15 = vld [vmem:[%s16228_s22] ss:$0 sm:$0xff] }
0x391d   :  { %v6755_v45 = vpop.f32.mrb[110].mxu1 }
0x391e   :  { %v12073_v54 = vpop.f32.mrb[111].mxu1 }
0x3925   :  { %v13466_v38 = vpop.eup %13465 }
0x3926   :  { %v6644_v9 = vmul.f32 %v13466_v38, %v6642_v34  ;;  %v6651_v1 = vsub.f32 1.0, %v13466_v38  ;;  %v6657_v36 = vmul.f32 %v13466_v38, %v15137_v32  ;;  %v10370_v32 = vld [vmem:[%s16226_s5 + $0x70] sm:$0xff] }
0x3928   :  { %6646 = vrot.lane.b32.xlu0 %v6644_v9, %s16273_s0 }
0x392c   :  { %6766 = vrot.lane.b32.xlu0 %v6745_v43, %s16274_s18 }
0x3930   :  { %6770 = vrot.lane.b32.xlu0 %v6755_v45, %s16274_s18 }
0x399a   :  { %v6647_v33 = vpop.permute.xlu0 %6646 }
0x399b   :  { %v6649_v14 = vadd.f32 %v6647_v33, %v6560_v47 }
0x399d   :  { %13467 = vtanh.f32 %v6649_v14 }
0x399e   :  { %v6767_v48 = vpop.permute.xlu0 %6766 }
0x399f   :  { %6784 = vrot.lane.b32.xlu0 %v6767_v48, %s13647_s17 }
0x39a2   :  { %v6771_v35 = vpop.permute.xlu0 %6770 }
0x39a3   :  { %6788 = vrot.lane.b32.xlu0 %v6771_v35, %s13647_s17 }
0x39a7   :  { %v13468_v31 = vpop.eup %13467  ;;  %6777 = vrot.lane.b32.xlu0 %v10369_v55, %s16274_s18 }
0x39a8   :  { %6653 = vrot.lane.b32.xlu1 %v13468_v31, %s13647_s17 }
0x39ac   :  { %6768 = vrot.lane.b32.xlu1 %v6750_v4, %s16274_s18 }
0x3a11   :  { %v6785_v40 = vpop.permute.xlu0 %6784 }
0x3a15   :  { %v6789_v12 = vpop.permute.xlu0 %6788 }
0x3a19   :  { %v6778_v47 = vpop.permute.xlu0 %6777 }
0x3a1a   :  { %v6654_v52 = vpop.permute.xlu1 %6653 }
0x3a1b   :  { %v6656_v46 = vmul.f32 %v6654_v52, %v6651_v1 }
0x3a1d   :  { %v15464_v26 = vadd.f32 %v6657_v36, %v6656_v46 }
0x3a1e   :  { %v6769_v6 = vpop.permute.xlu1 %6768 }
0x3a1f   :  { %6782 = vrot.lane.b32.xlu1 %v15464_v26, %s13647_s17 }
0x3a23   :  { %6786 = vrot.lane.b32.xlu1 %v6769_v6, %s13647_s17 }
0x3a27   :  { %6775 = vrot.lane.b32.xlu1 %v10368_v56, %s16274_s18 }
0x3a2b   :  { %6779 = vrot.lane.b32.xlu1 %v10370_v32, %s16274_s18 }
0x3a2f   :  { %6886 = vrot.lane.b32.xlu1 %v6778_v47, %s13647_s17 }
0x3a91   :  { %v15478_v23 = vpop.permute.xlu1 %6782 }
0x3a92   :  { %7250 = vst.msk [vmem:[#allocation2 + $0x20] sm:$0xff] %vm135_vm0, %v15478_v23  ;;  %v12994_v39 = vpack.c.bf16 %v6785_v40, %v15478_v23  ;;  %12100 = vmatmul.mubr.msk.f32.vlgmr.msra.gmra.mrb[112].mxu1 %vm135_vm0, %v15478_v23 }
0x3a93   :  { %12102 = vmatprep.mubr.msk.f32.mxu1 %vm13642_vm1, %v13643_v3  ;;  %13026 = vmatpush3.bf16.msra.mxu1 %v13839_v16 }
0x3a94   :  { %12996 = vmatpush3.bf16.xpose.msk.msra.mxu0 %vm14162_vm5, %v12994_v39  ;;  %13027 = vmatprep.subr.bf16.mxu1 %v13641_v0 }
0x3a95   :  { %v6787_v20 = vpop.permute.xlu1 %6786  ;;  %12997 = vmatprep.subr.bf16.mxu0 %v13641_v0 }
0x3a96   :  { %12103 = vmatmul.mubr.msk.f32.gmra.mrb[114].mxu1 %vm135_vm0, %v6785_v40  ;;  %v12998_v17 = vpack.c.bf16 %v6789_v12, %v6787_v20 }
0x3a97   :  { %12105 = vmatprep.mubr.msk.f32.mxu1 %vm13642_vm1, %v13643_v3  ;;  %13029 = vmatpush3.bf16.msra.mxu1 %v13877_v28 }
0x3a98   :  { %13038 = vmatprep.subr.bf16.mxu1 %v13641_v0 }
0x3a99   :  { %v6776_v27 = vpop.permute.xlu1 %6775 }
0x3a9a   :  { %6884 = vrot.lane.b32.xlu0 %v6776_v27, %s13647_s17  ;;  %12106 = vmatmul.mubr.msk.f32.gmra.mrb[116].mxu1 %vm135_vm0, %v6787_v20 }
0x3a9b   :  { %12108 = vmatprep.mubr.msk.f32.mxu1 %vm13642_vm1, %v13643_v3 }
0x3a9c   :  { %13000 = vmatpush3.bf16.xpose.msk.msra.mxu0 %vm14162_vm5, %v12998_v17 }
0x3a9d   :  { %v6780_v38 = vpop.permute.xlu1 %6779  ;;  %13007 = vmatprep.subr.bf16.mxu0 %v13641_v0 }
0x3a9e   :  { %12109 = vmatmul.mubr.msk.f32.gmra.mrb[118].mxu1 %vm135_vm0, %v6789_v12  ;;  %6888 = vrot.lane.b32.xlu0 %v6780_v38, %s13647_s17  ;;  %v15544_v12 = vld [vmem:[%s16229_s24] sm:$0x1] }
0x3a9f   :  { %12111 = vmatprep.mubr.msk.f32.mxu1 %vm13642_vm1, %v13643_v3 }
0x3aa1   :  { %v6887_v9 = vpop.permute.xlu1 %6886 }
0x3aa3   :  { %12083 = vmatmul.mubr.msk.f32.vlgmr.msra.gmra.mrb[122].mxu0 %vm135_vm0, %v10368_v56 }
0x3aa4   :  { %12085 = vmatprep.mubr.msk.f32.mxu0 %vm13642_vm1, %v13643_v3 }
0x3aa7   :  { %12086 = vmatmul.mubr.msk.f32.gmra.mrb[124].mxu0 %vm135_vm0, %v10369_v55 }
0x3aa8   :  { %12088 = vmatprep.mubr.msk.f32.mxu0 %vm13642_vm1, %v13643_v3 }
0x3aab   :  { %12089 = vmatmul.mubr.msk.f32.gmra.mrb[126].mxu0 %vm135_vm0, %v10370_v32 }
0x3aac   :  { %12128 = vmatprep.mubr.msk.f32.mxu0 %vm13642_vm1, %v13643_v3 }
0x3b0c   :  { %v6885_v34 = vpop.permute.xlu0 %6884 }
0x3b0d   :  { %12112 = vmatmul.mubr.msk.f32.gmra.mrb[120].mxu1 %vm135_vm0, %v6885_v34 }
0x3b0e   :  { %12114 = vmatprep.mubr.msk.f32.mxu1 %vm13642_vm1, %v13643_v3 }
0x3b10   :  { %v6889_v43 = vpop.permute.xlu0 %6888 }
0x3b11   :  { %12115 = vmatmul.mubr.msk.f32.gmra.mrb[122].mxu1 %vm135_vm0, %v6887_v9 }
0x3b12   :  { %12117 = vmatprep.mubr.msk.f32.mxu1 %vm13642_vm1, %v13643_v3 }
0x3b15   :  { %12118 = vmatmul.mubr.msk.f32.gmra.mrb[124].mxu1 %vm135_vm0, %v6889_v43 }
0x3b16   :  { %12159 = vmatprep.mubr.msk.f32.mxu1 %vm13642_vm1, %v13643_v3 }
0x3b65   :  { %v6962_v53 = vpop.f32.mrb[112].mxu1 }
0x3b66   :  { %v12101_v4 = vpop.f32.mrb[113].mxu1  ;;  %v6963_v45 = vadd.f32 %v15529_v15, %v6962_v53 }
0x3b68   :  { %13469 = vtanh.f32 %v6963_v45 }
0x3b69   :  { %v6967_v54 = vpop.f32.mrb[114].mxu1 }
0x3b6a   :  { %v6968_v33 = vadd.f32 %v15529_v15, %v6967_v54  ;;  %v12104_v14 = vpop.f32.mrb[115].mxu1 }
0x3b6c   :  { %13471 = vtanh.f32 %v6968_v33 }
0x3b6d   :  { %v6972_v48 = vpop.f32.mrb[116].mxu1 }
0x3b6e   :  { %v12107_v35 = vpop.f32.mrb[117].mxu1  ;;  %v6973_v31 = vadd.f32 %v15529_v15, %v6972_v48 }
0x3b70   :  { %13473 = vtanh.f32 %v6973_v31 }
0x3b71   :  { %v6977_v55 = vpop.f32.mrb[118].mxu1 }
0x3b72   :  { %v6978_v1 = vadd.f32 %v15529_v15, %v6977_v55  ;;  %v12110_v52 = vpop.f32.mrb[119].mxu1  ;;  %v13470_v36 = vpop.eup %13469 }
0x3b74   :  { %13475 = vtanh.f32 %v6978_v1 }
0x3b76   :  { %v13472_v46 = vpop.eup %13471  ;;  %v15553_v53 = vpop.f32.mrb[122].mxu0 }
0x3b77   :  { %v13008_v6 = vpack.c.bf16 %v13472_v46, %v13470_v36  ;;  %v12084_v45 = vpop.f32.mrb[123].mxu0 }
0x3b78   :  { %v10391_v45 = vld [vmem:[%s16231_s7 + $0x68] sm:$0xff] }
0x3b79   :  { %13010 = vmatpush3.bf16.xpose.msk.msra.mxu0 %vm14162_vm5, %v13008_v6 }
0x3b7a   :  { %13011 = vmatprep.subr.bf16.mxu0 %v13641_v0  ;;  %v13474_v40 = vpop.eup %13473  ;;  %v15556_v33 = vpop.f32.mrb[124].mxu0 }
0x3b7b   :  { %v12087_v14 = vpop.f32.mrb[125].mxu0 }
0x3b7e   :  { %v13476_v56 = vpop.eup %13475  ;;  %v15559_v48 = vpop.f32.mrb[126].mxu0 }
0x3b7f   :  { %v13012_v32 = vpack.c.bf16 %v13476_v56, %v13474_v40  ;;  %v12090_v31 = vpop.f32.mrb[127].mxu0 }
0x3b81   :  { %13014 = vmatpush3.bf16.xpose.msk.msra.mxu0 %vm14162_vm5, %v13012_v32 }
0x3b82   :  { %13015 = vmatprep.subr.bf16.mxu0 %v13641_v0 }
0x3b88   :  { %12129 = vmatmul.mubr.msk.f32.vlgmr.msra.gmra.mrb[128].mxu0 %vm135_vm0, %v15544_v12 }
0x3b89   :  { %12137 = vmatprep.mubr.msk.f32.mxu0 %vm13642_vm1, %v13643_v3 }
0x3be0   :  { %v6982_v47 = vpop.f32.mrb[120].mxu1 }
0x3be1   :  { %v6983_v39 = vadd.f32 %v15529_v15, %v6982_v47  ;;  %v12113_v20 = vpop.f32.mrb[121].mxu1 }
0x3be3   :  { %13477 = vtanh.f32 %v6983_v39 }
0x3be4   :  { %v6987_v27 = vpop.f32.mrb[122].mxu1 }
0x3be5   :  { %v6988_v17 = vadd.f32 %v15529_v15, %v6987_v27  ;;  %v12116_v38 = vpop.f32.mrb[123].mxu1 }
0x3be6   :  { %v10390_v38 = vld [vmem:[%s16231_s7 + $0x60] sm:$0xff] }
0x3be7   :  { %13479 = vtanh.f32 %v6988_v17 }
0x3be8   :  { %v6992_v34 = vpop.f32.mrb[124].mxu1 }
0x3be9   :  { %v6993_v9 = vadd.f32 %v15529_v15, %v6992_v34  ;;  %v12119_v43 = vpop.f32.mrb[125].mxu1 }
0x3beb   :  { %13481 = vtanh.f32 %v6993_v9 }
0x3bed   :  { %v13478_v4 = vpop.eup %13477 }
0x3bee   :  { %v7085_v54 = vmul.f32 %v13478_v4, %v14240_v50 }
0x3bf0   :  { %7091 = vrot.lane.b32.xlu1 %v7085_v54, %s13647_s17 }
0x3bf1   :  { %v13480_v35 = vpop.eup %13479 }
0x3bf2   :  { %v7086_v55 = vmul.f32 %v13480_v35, %v14240_v50 }
0x3bf4   :  { %7093 = vrot.lane.b32.xlu0 %v7086_v55, %s13647_s17 }
0x3bf5   :  { %v13482_v1 = vpop.eup %13481 }
0x3bf6   :  { %v7087_v52 = vmul.f32 %v13482_v1, %v14240_v50  ;;  %v10392_v1 = vld [vmem:[%s16231_s7 + $0x70] sm:$0xff] }
0x3bf8   :  { %7095 = vrot.lane.b32.xlu1 %v7087_v52, %s13647_s17 }
0x3c5b   :  { %v7081_v36 = vpop.f32.mrb[128].mxu0 }
0x3c5c   :  { %v12130_v46 = vpop.f32.mrb[129].mxu0  ;;  %v7112_v20 = vrot.slane %v7081_v36, %v14260_v44 }
0x3c62   :  { %v7092_v6 = vpop.permute.xlu1 %7091 }
0x3c63   :  { %v7100_v40 = vsel %vm135_vm0, %v7092_v6, 0.0 }
0x3c64   :  { %7101 = vadd.xlane.f32.xlu0 %v7100_v40 }
0x3c66   :  { %v7094_v56 = vpop.permute.xlu0 %7093 }
0x3c67   :  { %v7103_v32 = vsel %vm135_vm0, %v7094_v56, 0.0 }
0x3c68   :  { %7104 = vadd.xlane.f32.xlu1 %v7103_v32 }
0x3c6a   :  { %v7096_v47 = vpop.permute.xlu1 %7095 }
0x3c6b   :  { %v7106_v39 = vsel %vm135_vm0, %v7096_v47, 0.0 }
0x3c6c   :  { %7107 = vadd.xlane.f32.xlu0 %v7106_v39 }
0x3cf1   :  { %v7102_v27 = vpop.xlane.xlu0 %7101 }
0x3cf2   :  { %v7113_v17 = vadd.f32 %v7112_v20, %v7102_v27 }
0x3cf4   :  { %v7116_v34 = vadd.f32 %v7113_v17, %v14263_v49 }
0x3cf5   :  { %v7105_v9 = vpop.xlane.xlu1 %7104 }
0x3cf6   :  { %v7114_v43 = vadd.f32 %v7112_v20, %v7105_v9  ;;  %v7123_v4 = vadd.f32 %v10390_v38, %v7116_v34 }
0x3cf8   :  { %v7117_v54 = vadd.f32 %v7114_v43, %v14263_v49  ;;  %v7126_v14 = vsel %vm135_vm0, %v7123_v4, -inf }
0x3cf9   :  { %v7108_v35 = vpop.xlane.xlu0 %7107  ;;  %7127 = vmax.xlane.f32.xlu0 %v7126_v14 }
0x3cfa   :  { %v7115_v31 = vadd.f32 %v7112_v20, %v7108_v35  ;;  %v7124_v55 = vadd.f32 %v10391_v45, %v7117_v54 }
0x3cfc   :  { %v7118_v52 = vadd.f32 %v7115_v31, %v14263_v49  ;;  %v7129_v36 = vsel %vm135_vm0, %v7124_v55, -inf }
0x3cfd   :  { %7130 = vmax.xlane.f32.xlu1 %v7129_v36 }
0x3cfe   :  { %v7125_v46 = vadd.f32 %v10392_v1, %v7118_v52 }
0x3d00   :  { %v7132_v6 = vsel %vm135_vm0, %v7125_v46, -inf }
0x3d01   :  { %7133 = vmax.xlane.f32.xlu0 %v7132_v6 }
0x3d86   :  { %v7128_v40 = vpop.xlane.xlu0 %7127 }
0x3d87   :  { %v7135_v56 = vsub.f32 %v7123_v4, %v7128_v40 }
0x3d89   :  { %v7138_v32 = vmul.f32 1.442695, %v7135_v56 }
0x3d8a   :  { %v7131_v47 = vpop.xlane.xlu1 %7130 }
0x3d8b   :  { %13483 = vpow2.f32 %v7138_v32  ;;  %v7136_v39 = vsub.f32 %v7124_v55, %v7131_v47 }
0x3d8d   :  { %v7140_v20 = vmul.f32 1.442695, %v7136_v39 }
0x3d8e   :  { %v7134_v27 = vpop.xlane.xlu0 %7133 }
0x3d8f   :  { %13485 = vpow2.f32 %v7140_v20  ;;  %v7137_v17 = vsub.f32 %v7125_v46, %v7134_v27 }
0x3d91   :  { %v7142_v38 = vmul.f32 1.442695, %v7137_v17 }
0x3d93   :  { %13487 = vpow2.f32 %v7142_v38 }
0x3d95   :  { %v13484_v34 = vpop.eup %13483 }
0x3d96   :  { %v7144_v9 = vsel %vm135_vm0, %v13484_v34, 0.0 }
0x3d97   :  { %7145 = vadd.xlane.f32.xlu1 %v7144_v9 }
0x3d99   :  { %v13486_v43 = vpop.eup %13485 }
0x3d9a   :  { %v7147_v45 = vsel %vm135_vm0, %v13486_v43, 0.0 }
0x3d9b   :  { %7148 = vadd.xlane.f32.xlu0 %v7147_v45  ;;  %v10399_v45 = vld [vmem:[%s16262_s15 + $0xb0] sm:$0xff] }
0x3d9d   :  { %v13488_v54 = vpop.eup %13487 }
0x3d9e   :  { %v7150_v4 = vsel %vm135_vm0, %v13488_v54, 0.0 }
0x3d9f   :  { %7151 = vadd.xlane.f32.xlu1 %v7150_v4  ;;  %v15613_v4 = vld [vmem:[%s16232_s9] sm:$0xff] }
0x3e24   :  { %v7146_v14 = vpop.xlane.xlu1 %7145 }
0x3e25   :  { %13489 = vrcp.f32 %v7146_v14 }
0x3e28   :  { %v7149_v35 = vpop.xlane.xlu0 %7148 }
0x3e29   :  { %13491 = vrcp.f32 %v7149_v35  ;;  %v10401_v35 = vld [vmem:[%s16264_s12 + $0xa0] sm:$0xff] }
0x3e2c   :  { %v7152_v31 = vpop.xlane.xlu1 %7151 }
0x3e2d   :  { %13493 = vrcp.f32 %v7152_v31 }
0x3e2f   :  { %v13490_v55 = vpop.eup %13489 }
0x3e30   :  { %v7156_v1 = vmul.f32 %v13490_v55, %v13484_v34  ;;  %v10397_v34 = vld [vmem:[%s16262_s15 + $0xa0] sm:$0xff] }
0x3e31   :  { %v7407_v31 = vadd.f32 %v10401_v35, %v10397_v34  ;;  %v15628_v55 = vld [vmem:[%s16265_s8] sm:$0xff] }
0x3e32   :  { %v7159_v52 = vmul.f32 %v7156_v1, %v15553_v53  ;;  %v10414_v53 = vld [vmem:[%s16268_s2 + $0x28] sm:$0xff] }
0x3e33   :  { %v13492_v36 = vpop.eup %13491  ;;  %vm7732_vm2 = vcmp.gt.f32.partialorder %v10414_v53, 0.5  ;;  %v10402_v1 = vld [vmem:[%s16264_s12 + $0xa8] sm:$0xff] }
0x3e34   :  { %v7162_v46 = vsel %vm135_vm0, %v7159_v52, 0.0  ;;  %v7157_v6 = vmul.f32 %v13492_v36, %v13486_v43  ;;  %v7733_v27 = vsel %vm7732_vm2, 1, %v13644_v62  ;;  %v10403_v52 = vld [vmem:[%s16264_s12 + $0xb0] sm:$0xff] }
0x3e35   :  { %7163 = vadd.xlane.f32.xlu0 %v7162_v46  ;;  %v7409_v46 = vadd.f32 %v10403_v52, %v10399_v45 }
0x3e36   :  { %v7160_v40 = vmul.f32 %v7157_v6, %v15556_v33  ;;  %v10404_v6 = vld [vmem:[%s16264_s12 + $0xb8] sm:$0xff] }
0x3e37   :  { %v13494_v56 = vpop.eup %13493 }
0x3e38   :  { %v7165_v32 = vsel %vm135_vm0, %v7160_v40, 0.0  ;;  %v7158_v47 = vmul.f32 %v13494_v56, %v13488_v54  ;;  %v10400_v54 = vld [vmem:[%s16262_s15 + $0xb8] sm:$0xff] }
0x3e39   :  { %7166 = vadd.xlane.f32.xlu1 %v7165_v32  ;;  %v13022_v14 = vpack.c.bf16 %v10400_v54, %v10399_v45  ;;  %v7410_v40 = vadd.f32 %v10404_v6, %v10400_v54 }
0x3e3a   :  { %v7161_v39 = vmul.f32 %v7158_v47, %v15559_v48  ;;  %v10398_v48 = vld [vmem:[%s16262_s15 + $0xa8] sm:$0xff] }
0x3e3b   :  { %v13019_v9 = vpack.c.bf16 %v10398_v48, %v10397_v34  ;;  %v7408_v36 = vadd.f32 %v10402_v1, %v10398_v48  ;;  %v15667_v34 = vld [vmem:[%s16267_s29 + $0x1] ss:$0 sm:$0xff] }
0x3e3c   :  { %v7168_v20 = vsel %vm135_vm0, %v7161_v39, 0.0  ;;  %v15658_v39 = vld [vmem:[%s16266_s28 + $0x28] sm:$0xff] }
0x3e3d   :  { %7169 = vadd.xlane.f32.xlu0 %v7168_v20 }
0x3e4a   :  { %7735 = vperm.xlu1 %13218, %v7733_v27  }
0x3ec2   :  { %v7164_v17 = vpop.xlane.xlu0 %7163 }
0x3ec6   :  { %v7167_v33 = vpop.xlane.xlu1 %7166 }
0x3ec7   :  { %v13016_v38 = vpack.c.bf16 %v7167_v33, %v7164_v17 }
0x3ec9   :  { %13017 = vmatpush3.bf16.msra.mxu0 %v13016_v38 }
0x3eca   :  { %12135 = vmatprep.subr.mxu0 %v13643_v3  ;;  %v7170_v43 = vpop.xlane.xlu0 %7169 }
0x3ecd   :  { %12136 = vmatpush3.msra.mxu0 %v7170_v43 }
0x3ece   :  { %12138 = vmatmul.mubr.msk.f32.vlgmr.msra.gmra.mrb[130].mxu0 %vm1555_vm7, %v15613_v4  ;;  %13018 = vmatprep.subr.bf16.mxu0 %v13641_v0 }
0x3ecf   :  { %13020 = vmatpush3.bf16.msra.mxu0 %v13019_v9  ;;  %12148 = vmatprep.mubr.msk.f32.mxu0 %vm13642_vm1, %v13643_v3 }
0x3ed0   :  { %13021 = vmatprep.subr.bf16.mxu0 %v13641_v0 }
0x3ed3   :  { %13023 = vmatpush3.bf16.msra.mxu0 %v13022_v14 }
0x3ed4   :  { %13031 = vmatprep.subr.bf16.mxu0 %v13825_v11 }
0x3ed6   :  { %12149 = vmatmul.mubr.msk.f32.vlgmr.msra.gmra.mrb[132].mxu0 %vm135_vm0, %v15628_v55 }
0x3ed7   :  { %13033 = vmatpush3.bf16.msra.mxu0 %v13825_v11  ;;  %12170 = vmatprep.mubr.msk.f32.mxu0 %vm135_vm0, %v7407_v31 }
0x3ed8   :  { %13035 = vmatprep.subr.bf16.mxu0 %v13846_v19 }
0x3edb   :  { %13037 = vmatpush3.bf16.msra.mxu0 %v13846_v19 }
0x3edc   :  { %13044 = vmatprep.subr.bf16.mxu0 %v13641_v0 }
0x3ede   :  { %12171 = vmatmul.mubr.msk.f32.vlgmr.msra.gmra.mrb[134].mxu0 %vm135_vm0, %v7408_v36 }
0x3edf   :  { %12173 = vmatprep.mubr.msk.f32.mxu0 %vm135_vm0, %v7409_v46  ;;  %13046 = vmatpush3.bf16.msra.mxu0 %v13839_v16 }
0x3ee0   :  { %13047 = vmatprep.subr.bf16.mxu0 %v13641_v0 }
0x3ee2   :  { %12174 = vmatmul.mubr.msk.f32.gmra.mrb[136].mxu0 %vm135_vm0, %v7410_v40 }
0x3ee3   :  { %13049 = vmatpush3.bf16.msra.mxu0 %v13877_v28  ;;  %12195 = vmatprep.mubr.msk.f32.mxu0 %vm13642_vm1, %v13643_v3 }
0x3ee4   :  { %13056 = vmatprep.subr.bf16.mxu0 %v13641_v0 }
0x3fa1   :  { %v7237_v56 = vpop.f32.mrb[130].mxu0 }
0x3fa2   :  { %v10394_v32 = vmul.f32 -1.442695, %v7237_v56  ;;  %v12139_v47 = vpop.f32.mrb[131].mxu0 }
0x3fa3   :  { %v15690_v47 = vld [vmem:[%s16267_s29] ss:$0 sm:$0xff] }
0x3fa4   :  { %13495 = vpow2.f32 %v10394_v32 }
0x3fa9   :  { %v7329_v20 = vpop.f32.mrb[132].mxu0 }
0x3faa   :  { %v7330_v53 = vadd.f32 %v15658_v39, %v7329_v20  ;;  %v12150_v27 = vpop.f32.mrb[133].mxu0 }
0x3fac   :  { %12160 = vmatmul.mubr.msk.f32.vlgmr.msra.gmra.mrb[126].mxu1 %vm135_vm0, %v7330_v53 }
0x3fad   :  { %12184 = vmatprep.mubr.msk.f32.mxu1 %vm13642_vm1, %v13643_v3 }
0x3fae   :  { %v13496_v17 = vpop.eup %13495 }
0x3faf   :  { %v7244_v33 = vadd.f32 1.0, %v13496_v17 }
0x3fb1   :  { %13497 = vrcp.f32 %v7244_v33  ;;  %v12172_v38 = vpop.f32.mrb[134].mxu0 }
0x3fb2   :  { %v7495_v48 = vadd.f32 %v15667_v34, %v12172_v38  ;;  %v7489_v9 = vpop.f32.mrb[135].mxu0 }
0x3fb3   :  { %v7490_v43 = vadd.f32 %v15667_v34, %v7489_v9 }
0x3fb4   :  { %13499 = vtanh.f32 %v7495_v48 }
0x3fb5   :  { %13501 = vtanh.f32 %v7490_v43  ;;  %v12175_v45 = vpop.f32.mrb[136].mxu0 }
0x3fb6   :  { %v7505_v54 = vadd.f32 %v15667_v34, %v12175_v45  ;;  %v7499_v14 = vpop.f32.mrb[137].mxu0 }
0x3fb7   :  { %v7500_v35 = vadd.f32 %v15667_v34, %v7499_v14 }
0x3fb8   :  { %13503 = vtanh.f32 %v7505_v54 }
0x3fb9   :  { %13505 = vtanh.f32 %v7500_v35 }
0x3fbb   :  { %v13498_v31 = vpop.eup %13497 }
0x3fbc   :  { %10395 = vst.msk [vmem:[%s16233_s26 + $0x20] sm:$0xff] %vm1635_vm8, %v13498_v31 }
0x3fbe   :  { %v13500_v1 = vpop.eup %13499 }
0x3fbf   :  { %v13502_v52 = vpop.eup %13501 }
0x3fc0   :  { %v13039_v36 = vpack.c.bf16 %v13500_v1, %v13502_v52  ;;  %v7736_v1 = vpop.permute.xlu1 %7735 }
0x3fc1   :  { %vm7737_vm3 = vcmp.eq.s32.totalorder %v7736_v1, 1 }
0x3fc2   :  { %v13504_v46 = vpop.eup %13503  ;;  %13040 = vmatpush3.bf16.msra.mxu1 %v13039_v36 }
0x3fc3   :  { %v13506_v6 = vpop.eup %13505  ;;  %13041 = vmatprep.subr.bf16.mxu1 %v13641_v0 }
0x3fc4   :  { %v13042_v40 = vpack.c.bf16 %v13504_v46, %v13506_v6 }
0x3fc6   :  { %13043 = vmatpush3.bf16.msra.mxu1 %v13042_v40 }
0x3fc7   :  { %13050 = vmatprep.subr.bf16.mxu1 %v13641_v0 }
0x3fc9   :  { %12185 = vmatmul.mubr.msk.f32.vlgmr.msra.gmra.mrb[128].mxu1 %vm135_vm0, %v15628_v55 }
0x3fca   :  { %13052 = vmatpush3.bf16.msra.mxu1 %v13915_v59  ;;  %12206 = vmatprep.mubr.msk.f32.mxu1 %vm13642_vm1, %v13643_v3 }
0x3fcb   :  { %13053 = vmatprep.subr.bf16.mxu1 %v13641_v0 }
0x3fce   :  { %13055 = vmatpush3.bf16.msra.mxu1 %v13921_v61 }
0x3fcf   :  { %13062 = vmatprep.subr.bf16.mxu1 %v13641_v0 }
0x407f   :  { %v7402_v56 = vpop.f32.mrb[126].mxu1 }
0x4080   :  { %v12161_v32 = vpop.f32.mrb[127].mxu1  ;;  %v7403_v20 = vadd.f32 %v15690_v47, %v7402_v56 }
0x4082   :  { %13507 = vtanh.f32 %v7403_v20 }
0x408c   :  { %v13508_v53 = vpop.eup %13507 }
0x409c   :  { %v7578_v27 = vpop.f32.mrb[128].mxu1 }
0x409d   :  { %v7579_v17 = vadd.f32 %v13508_v53, %v7578_v27  ;;  %v12186_v33 = vpop.f32.mrb[129].mxu1 }
0x409f   :  { %12196 = vmatmul.mubr.msk.f32.vlgmr.msra.gmra.mrb[138].mxu0 %vm135_vm0, %v7579_v17 }
0x40a0   :  { %13058 = vmatpush3.bf16.msra.mxu0 %v13967_v18  ;;  %12217 = vmatprep.mubr.msk.f32.mxu0 %vm13642_vm1, %v13643_v3 }
0x40a1   :  { %13059 = vmatprep.subr.bf16.mxu0 %v13641_v0 }
0x40a4   :  { %13061 = vmatpush3.bf16.msra.mxu0 %v13977_v22 }
0x40a5   :  { %13068 = vmatprep.subr.bf16.mxu0 %v13641_v0 }
0x4172   :  { %v7651_v38 = vpop.f32.mrb[138].mxu0 }
0x4173   :  { %v7652_v48 = vadd.f32 %v15690_v47, %v7651_v38  ;;  %v12197_v9 = vpop.f32.mrb[139].mxu0 }
0x4175   :  { %13509 = vtanh.f32 %v7652_v48 }
0x417f   :  { %v13510_v43 = vpop.eup %13509 }
0x4180   :  { %12207 = vmatmul.mubr.msk.f32.vlgmr.msra.gmra.mrb[130].mxu1 %vm135_vm0, %v13510_v43 }
0x4181   :  { %13064 = vmatpush3.bf16.msra.mxu1 %v13938_v8  ;;  %12228 = vmatprep.mubr.msk.f32.mxu1 %vm13642_vm1, %v13643_v3 }
0x4182   :  { %13065 = vmatprep.subr.bf16.mxu1 %v13641_v0 }
0x4185   :  { %13067 = vmatpush3.bf16.msra.mxu1 %v13948_v13 }
0x4186   :  { %13074 = vmatprep.subr.bf16.mxu1 %v13641_v0 }
0x4188   :  { %12229 = vmatmul.mubr.msk.f32.vlgmr.msra.gmra.mrb[132].mxu1 %vm135_vm0, %v15401_v29 }
0x4189   :  { %13076 = vmatpush3.bf16.msra.mxu1 %v14012_v51  ;;  %12250 = vmatprep.mubr.msk.f32.mxu1 %vm13642_vm1, %v13643_v3 }
0x418a   :  { %13077 = vmatprep.subr.bf16.mxu1 %v13641_v0 }
0x418d   :  { %13079 = vmatpush3.bf16.msra.mxu1 %v14030_v57 }
0x418e   :  { %13089 = vmatprep.subr.bf16.mxu1 %v13641_v0 }
0x4190   :  { %12251 = vmatmul.mubr.msk.f32.vlgmr.msra.gmra.mrb[134].mxu1 %vm135_vm0, %v15478_v23 }
0x4191   :  { %12284 = vmatprep.mubr.msk.f32.mxu1 %vm13642_vm1, %v13643_v3 }
0x4253   :  { %v7725_v45 = vpop.f32.mrb[130].mxu1 }
0x4254   :  { %v7726_v29 = vadd.f32 %v15366_v37, %v7725_v45  ;;  %v12208_v54 = vpop.f32.mrb[131].mxu1 }
0x4256   :  { %13511 = vtanh.f32 %v7726_v29 }
0x425b   :  { %v7880_v14 = vpop.f32.mrb[132].mxu1 }
0x425c   :  { %v7881_v35 = vadd.f32 %v15372_v21, %v7880_v14  ;;  %v12230_v31 = vpop.f32.mrb[133].mxu1  ;;  %v10415_v21 = vld [vmem:[%s16277_s27 + $0x28] sm:$0xff] }
0x425d   :  { %v15755_v31 = vld [vmem:[#allocation2 + $0x20] sm:$0xff] }
0x425e   :  { %7892 = vrot.lane.b32.xlu0 %v7881_v35, %s16273_s0  ;;  %v13087_v1 = vpack.c.bf16 %v15413_v42, %v15755_v31  ;;  %v10424_v42 = vld [vmem:[%s16223_s6 + $0x88] sm:$0xff] }
0x4260   :  { %v13512_v52 = vpop.eup %13511 }
0x4261   :  { %v7738_v36 = vsel %vm7737_vm3, %v13512_v52, %v15658_v39 }
0x4262   :  { %12218 = vmatmul.mubr.msk.f32.vlgmr.msra.gmra.mrb[140].mxu0 %vm135_vm0, %v7738_v36 }
0x4263   :  { %v8051_v23 = vpop.f32.mrb[134].mxu1  ;;  %13070 = vmatpush3.bf16.msra.mxu0 %v14032_v58  ;;  %12239 = vmatprep.mubr.msk.f32.mxu0 %vm13642_vm1, %v13643_v3 }
0x4264   :  { %v12252_v37 = vpop.f32.mrb[135].mxu1  ;;  %13071 = vmatprep.subr.bf16.mxu0 %v13641_v0  ;;  %v8052_v9 = vadd.f32 %v15392_v25, %v8051_v23  ;;  %v15751_v25 = vld [vmem:[#allocation2 + $0x10] sm:$0xff] }
0x4267   :  { %13073 = vmatpush3.bf16.msra.mxu0 %v14036_v60 }
0x4268   :  { %13080 = vmatprep.subr.bf16.mxu0 %v13641_v0 }
0x42d0   :  { %v7893_v27 = vpop.permute.xlu0 %7892 }
0x4335   :  { %v7810_v39 = vpop.f32.mrb[140].mxu0 }
0x4336   :  { %v7811_v46 = vadd.f32 %v10415_v21, %v7810_v39  ;;  %v12219_v6 = vpop.f32.mrb[141].mxu0 }
0x4338   :  { %v7884_v40 = vadd.f32 %v7881_v35, %v7811_v46 }
0x433a   :  { %v10418_v56 = vmul.f32 -1.442695, %v7884_v40 }
0x433c   :  { %13513 = vpow2.f32 %v10418_v56 }
0x4346   :  { %v13514_v32 = vpop.eup %13513 }
0x4347   :  { %v7888_v20 = vadd.f32 1.0, %v13514_v32 }
0x4349   :  { %13515 = vrcp.f32 %v7888_v20 }
0x4353   :  { %v13516_v53 = vpop.eup %13515 }
0x4354   :  { %v7895_v17 = vmul.f32 %v13516_v53, %v7893_v27  ;;  %v7902_v43 = vsub.f32 1.0, %v13516_v53  ;;  %v7908_v29 = vmul.f32 %v13516_v53, %v15397_v24  ;;  %v13084_v24 = vpack.c.bf16 %v15407_v30, %v15751_v25  ;;  %v10423_v30 = vld [vmem:[%s16223_s6 + $0x80] sm:$0xff] }
0x4356   :  { %7897 = vrot.lane.b32.xlu1 %v7895_v17, %s16273_s0 }
0x43c8   :  { %v7898_v33 = vpop.permute.xlu1 %7897 }
0x43c9   :  { %v7900_v38 = vadd.f32 %v7898_v33, %v7811_v46 }
0x43cb   :  { %13517 = vtanh.f32 %v7900_v38 }
0x43d5   :  { %v13518_v48 = vpop.eup %13517 }
0x43d6   :  { %7904 = vrot.lane.b32.xlu1 %v13518_v48, %s13647_s17 }
0x43da   :  { %8063 = vrot.lane.b32.xlu1 %v8052_v9, %s16273_s0 }
0x4448   :  { %v7905_v45 = vpop.permute.xlu1 %7904 }
0x4449   :  { %v7907_v54 = vmul.f32 %v7905_v45, %v7902_v43  ;;  %v10429_v43 = vld [vmem:[%s16226_s5 + $0x80] sm:$0xff] }
0x444b   :  { %v15739_v14 = vadd.f32 %v7908_v29, %v7907_v54 }
0x444c   :  { %v8064_v6 = vpop.permute.xlu1 %8063 }
0x444d   :  { %7911 = vrot.lane.b32.xlu0 %v15739_v14, %s13647_s17 }
0x44bf   :  { %v15743_v35 = vpop.permute.xlu0 %7911 }
0x44c0   :  { %12240 = vmatmul.mubr.msk.f32.vlgmr.msra.gmra.mrb[142].mxu0 %vm135_vm0, %v15743_v35 }
0x44c1   :  { %13082 = vmatpush3.bf16.msra.mxu0 %v15403_v10  ;;  %12267 = vmatprep.mubr.msk.f32.mxu0 %vm13642_vm1, %v13643_v3  ;;  %v10422_v10 = vld [vmem:[%s16223_s6 + $0x78] sm:$0xff] }
0x44c2   :  { %13083 = vmatprep.subr.bf16.mxu0 %v13641_v0 }
0x44c5   :  { %13085 = vmatpush3.bf16.msra.mxu0 %v13084_v24 }
0x44c6   :  { %13086 = vmatprep.subr.bf16.mxu0 %v13641_v0 }
0x44c9   :  { %13088 = vmatpush3.bf16.msra.mxu0 %v13087_v1 }
0x44ca   :  { %12265 = vmatprep.subr.mxu0 %v13643_v3 }
0x44cd   :  { %12266 = vmatpush3.msra.mxu0 %v15420_v63 }
0x44ce   :  { %12268 = vmatmul.mubr.msk.f32.vlgmr.msra.gmra.mrb[144].mxu0 %vm1029_vm4, %v10422_v10  ;;  %13097 = vmatprep.subr.bf16.mxu0 %v13641_v0 }
0x44cf   :  { %12270 = vmatprep.mubr.msk.f32.mxu0 %vm13642_vm1, %v13643_v3  ;;  %13099 = vmatpush3.bf16.msra.mxu0 %v14129_v5 }
0x44d0   :  { %13100 = vmatprep.subr.bf16.mxu0 %v13641_v0 }
0x44d2   :  { %12271 = vmatmul.mubr.msk.f32.gmra.mrb[146].mxu0 %vm1029_vm4, %v10423_v30 }
0x44d3   :  { %12273 = vmatprep.mubr.msk.f32.mxu0 %vm13642_vm1, %v13643_v3  ;;  %13102 = vmatpush3.bf16.msra.mxu0 %v14135_v7 }
0x44d4   :  { %13120 = vmatprep.subr.bf16.mxu0 %v13641_v0 }
0x44d6   :  { %12274 = vmatmul.mubr.msk.f32.gmra.mrb[148].mxu0 %vm1029_vm4, %v10424_v42  ;;  %v10428_v42 = vld [vmem:[%s16226_s5 + $0x78] sm:$0xff] }
0x44d7   :  { %12301 = vmatprep.mubr.msk.f32.mxu0 %vm13642_vm1, %v13643_v3 }
0x4593   :  { %v7981_v63 = vpop.f32.mrb[142].mxu0 }
0x4594   :  { %v7982_v52 = vadd.f32 %v15449_v2, %v7981_v63  ;;  %v12241_v36 = vpop.f32.mrb[143].mxu0 }
0x4596   :  { %v8055_v23 = vadd.f32 %v8052_v9, %v7982_v52 }
0x4598   :  { %v10421_v37 = vmul.f32 -1.442695, %v8055_v23 }
0x459a   :  { %13519 = vpow2.f32 %v10421_v37 }
0x45a1   :  { %v8167_v56 = vpop.f32.mrb[144].mxu0 }
0x45a2   :  { %v12269_v32 = vpop.f32.mrb[145].mxu0 }
0x45a4   :  { %v13520_v21 = vpop.eup %13519 }
0x45a5   :  { %v8059_v39 = vadd.f32 1.0, %v13520_v21  ;;  %v8172_v20 = vpop.f32.mrb[146].mxu0 }
0x45a6   :  { %v12272_v53 = vpop.f32.mrb[147].mxu0 }
0x45a7   :  { %13521 = vrcp.f32 %v8059_v39 }
0x45a9   :  { %v8177_v27 = vpop.f32.mrb[148].mxu0 }
0x45aa   :  { %v12275_v2 = vpop.f32.mrb[149].mxu0 }
0x45b1   :  { %v13522_v46 = vpop.eup %13521 }
0x45b2   :  { %v8066_v40 = vmul.f32 %v13522_v46, %v8064_v6  ;;  %v8073_v45 = vsub.f32 1.0, %v13522_v46  ;;  %v8079_v54 = vmul.f32 %v13522_v46, %v15464_v26  ;;  %v10430_v26 = vld [vmem:[%s16226_s5 + $0x88] sm:$0xff] }
0x45b4   :  { %8068 = vrot.lane.b32.xlu0 %v8066_v40, %s16273_s0 }
0x45b8   :  { %8188 = vrot.lane.b32.xlu0 %v8167_v56, %s16274_s18 }
0x45bc   :  { %8192 = vrot.lane.b32.xlu0 %v8177_v27, %s16274_s18 }
0x4626   :  { %v8069_v17 = vpop.permute.xlu0 %8068 }
0x4627   :  { %v8071_v33 = vadd.f32 %v8069_v17, %v7982_v52 }
0x4629   :  { %13523 = vtanh.f32 %v8071_v33 }
0x462a   :  { %v8189_v38 = vpop.permute.xlu0 %8188 }
0x462b   :  { %8206 = vrot.lane.b32.xlu0 %v8189_v38, %s13647_s17 }
0x462e   :  { %v8193_v48 = vpop.permute.xlu0 %8192 }
0x462f   :  { %8210 = vrot.lane.b32.xlu0 %v8193_v48, %s13647_s17 }
0x4633   :  { %v13524_v9 = vpop.eup %13523  ;;  %8199 = vrot.lane.b32.xlu0 %v10429_v43, %s16274_s18 }
0x4634   :  { %8075 = vrot.lane.b32.xlu1 %v13524_v9, %s13647_s17 }
0x4638   :  { %8190 = vrot.lane.b32.xlu1 %v8172_v20, %s16274_s18 }
0x469d   :  { %v8207_v30 = vpop.permute.xlu0 %8206 }
0x46a1   :  { %v8211_v63 = vpop.permute.xlu0 %8210 }
0x46a5   :  { %v8200_v52 = vpop.permute.xlu0 %8199 }
0x46a6   :  { %v8076_v29 = vpop.permute.xlu1 %8075 }
0x46a7   :  { %v8078_v24 = vmul.f32 %v8076_v29, %v8073_v45 }
0x46a9   :  { %v15798_v1 = vadd.f32 %v8079_v54, %v8078_v24 }
0x46aa   :  { %v8191_v10 = vpop.permute.xlu1 %8190 }
0x46ab   :  { %8204 = vrot.lane.b32.xlu1 %v15798_v1, %s13647_s17 }
0x46af   :  { %8208 = vrot.lane.b32.xlu1 %v8191_v10, %s13647_s17 }
0x46b3   :  { %8197 = vrot.lane.b32.xlu1 %v10428_v42, %s16274_s18 }
0x46b7   :  { %8201 = vrot.lane.b32.xlu1 %v10430_v26, %s16274_s18 }
0x46bb   :  { %8308 = vrot.lane.b32.xlu1 %v8200_v52, %s13647_s17 }
0x471d   :  { %v15812_v36 = vpop.permute.xlu1 %8204 }
0x471e   :  { %8672 = vst.msk [vmem:[#allocation2 + $0x28] sm:$0xff] %vm135_vm0, %v15812_v36  ;;  %v13090_v23 = vpack.c.bf16 %v8207_v30, %v15812_v36  ;;  %12302 = vmatmul.mubr.msk.f32.vlgmr.msra.gmra.mrb[150].mxu0 %vm135_vm0, %v15812_v36 }
0x471f   :  { %12304 = vmatprep.mubr.msk.f32.mxu0 %vm13642_vm1, %v13643_v3  ;;  %13122 = vmatpush3.bf16.msra.mxu0 %v13839_v16 }
0x4720   :  { %13092 = vmatpush3.bf16.xpose.msk.msra.mxu1 %vm14162_vm5, %v13090_v23  ;;  %13123 = vmatprep.subr.bf16.mxu0 %v13641_v0 }
0x4721   :  { %v8209_v37 = vpop.permute.xlu1 %8208  ;;  %13093 = vmatprep.subr.bf16.mxu1 %v13641_v0 }
0x4722   :  { %12305 = vmatmul.mubr.msk.f32.gmra.mrb[152].mxu0 %vm135_vm0, %v8207_v30  ;;  %v13094_v39 = vpack.c.bf16 %v8211_v63, %v8209_v37 }
0x4723   :  { %12307 = vmatprep.mubr.msk.f32.mxu0 %vm13642_vm1, %v13643_v3  ;;  %13125 = vmatpush3.bf16.msra.mxu0 %v13877_v28 }
0x4724   :  { %13134 = vmatprep.subr.bf16.mxu0 %v13641_v0 }
0x4725   :  { %v8198_v21 = vpop.permute.xlu1 %8197 }
0x4726   :  { %8306 = vrot.lane.b32.xlu0 %v8198_v21, %s13647_s17  ;;  %12308 = vmatmul.mubr.msk.f32.gmra.mrb[154].mxu0 %vm135_vm0, %v8209_v37 }
0x4727   :  { %12310 = vmatprep.mubr.msk.f32.mxu0 %vm13642_vm1, %v13643_v3 }
0x4728   :  { %13096 = vmatpush3.bf16.xpose.msk.msra.mxu1 %vm14162_vm5, %v13094_v39 }
0x4729   :  { %v8202_v46 = vpop.permute.xlu1 %8201  ;;  %13103 = vmatprep.subr.bf16.mxu1 %v13641_v0 }
0x472a   :  { %12311 = vmatmul.mubr.msk.f32.gmra.mrb[156].mxu0 %vm135_vm0, %v8211_v63  ;;  %8310 = vrot.lane.b32.xlu0 %v8202_v46, %s13647_s17 }
0x472b   :  { %12313 = vmatprep.mubr.msk.f32.mxu0 %vm13642_vm1, %v13643_v3 }
0x472d   :  { %v8309_v40 = vpop.permute.xlu1 %8308 }
0x472f   :  { %12285 = vmatmul.mubr.msk.f32.vlgmr.msra.gmra.mrb[136].mxu1 %vm135_vm0, %v10428_v42 }
0x4730   :  { %12287 = vmatprep.mubr.msk.f32.mxu1 %vm13642_vm1, %v13643_v3 }
0x4733   :  { %12288 = vmatmul.mubr.msk.f32.gmra.mrb[138].mxu1 %vm135_vm0, %v10429_v43 }
0x4734   :  { %12290 = vmatprep.mubr.msk.f32.mxu1 %vm13642_vm1, %v13643_v3 }
0x4737   :  { %12291 = vmatmul.mubr.msk.f32.gmra.mrb[140].mxu1 %vm135_vm0, %v10430_v26 }
0x4738   :  { %12330 = vmatprep.mubr.msk.f32.mxu1 %vm13642_vm1, %v13643_v3 }
0x4798   :  { %v8307_v6 = vpop.permute.xlu0 %8306 }
0x4799   :  { %12314 = vmatmul.mubr.msk.f32.gmra.mrb[158].mxu0 %vm135_vm0, %v8307_v6 }
0x479a   :  { %12316 = vmatprep.mubr.msk.f32.mxu0 %vm13642_vm1, %v13643_v3 }
0x479c   :  { %v8311_v56 = vpop.permute.xlu0 %8310 }
0x479d   :  { %12317 = vmatmul.mubr.msk.f32.gmra.mrb[160].mxu0 %vm135_vm0, %v8309_v40 }
0x479e   :  { %12319 = vmatprep.mubr.msk.f32.mxu0 %vm13642_vm1, %v13643_v3 }
0x47a1   :  { %12320 = vmatmul.mubr.msk.f32.gmra.mrb[162].mxu0 %vm135_vm0, %v8311_v56 }
0x47a2   :  { %12361 = vmatprep.mubr.msk.f32.mxu0 %vm13642_vm1, %v13643_v3 }
0x47f1   :  { %v8384_v32 = vpop.f32.mrb[150].mxu0 }
0x47f2   :  { %v12303_v20 = vpop.f32.mrb[151].mxu0  ;;  %v8385_v53 = vadd.f32 %v15529_v15, %v8384_v32 }
0x47f4   :  { %13525 = vtanh.f32 %v8385_v53 }
0x47f5   :  { %v8389_v27 = vpop.f32.mrb[152].mxu0 }
0x47f6   :  { %v8390_v2 = vadd.f32 %v15529_v15, %v8389_v27  ;;  %v12306_v17 = vpop.f32.mrb[153].mxu0 }
0x47f8   :  { %13527 = vtanh.f32 %v8390_v2 }
0x47f9   :  { %v8394_v33 = vpop.f32.mrb[154].mxu0 }
0x47fa   :  { %v12309_v38 = vpop.f32.mrb[155].mxu0  ;;  %v8395_v48 = vadd.f32 %v15529_v15, %v8394_v33 }
0x47fc   :  { %13529 = vtanh.f32 %v8395_v48 }
0x47fd   :  { %v8399_v9 = vpop.f32.mrb[156].mxu0 }
0x47fe   :  { %v8400_v43 = vadd.f32 %v15529_v15, %v8399_v9  ;;  %v12312_v45 = vpop.f32.mrb[157].mxu0  ;;  %v13526_v29 = vpop.eup %13525 }
0x4800   :  { %13531 = vtanh.f32 %v8400_v43 }
0x4802   :  { %v13528_v54 = vpop.eup %13527  ;;  %v15877_v40 = vpop.f32.mrb[136].mxu1 }
0x4803   :  { %v13104_v24 = vpack.c.bf16 %v13528_v54, %v13526_v29  ;;  %v12286_v56 = vpop.f32.mrb[137].mxu1 }
0x4805   :  { %13106 = vmatpush3.bf16.xpose.msk.msra.mxu1 %vm14162_vm5, %v13104_v24 }
0x4806   :  { %13107 = vmatprep.subr.bf16.mxu1 %v13641_v0  ;;  %v13530_v10 = vpop.eup %13529  ;;  %v15880_v20 = vpop.f32.mrb[138].mxu1 }
0x4807   :  { %v12289_v53 = vpop.f32.mrb[139].mxu1 }
0x4808   :  { %v10452_v53 = vld [vmem:[%s16231_s7 + $0x88] sm:$0xff] }
0x480a   :  { %v13532_v30 = vpop.eup %13531  ;;  %v15883_v27 = vpop.f32.mrb[140].mxu1 }
0x480b   :  { %v13108_v42 = vpack.c.bf16 %v13532_v30, %v13530_v10  ;;  %v12292_v17 = vpop.f32.mrb[141].mxu1 }
0x480d   :  { %13110 = vmatpush3.bf16.xpose.msk.msra.mxu1 %vm14162_vm5, %v13108_v42 }
0x480e   :  { %13111 = vmatprep.subr.bf16.mxu1 %v13641_v0 }
0x4814   :  { %12331 = vmatmul.mubr.msk.f32.vlgmr.msra.gmra.mrb[142].mxu1 %vm135_vm0, %v15544_v12 }
0x4815   :  { %12339 = vmatprep.mubr.msk.f32.mxu1 %vm13642_vm1, %v13643_v3 }
0x486c   :  { %v8404_v26 = vpop.f32.mrb[158].mxu0 }
0x486d   :  { %v8405_v63 = vadd.f32 %v15529_v15, %v8404_v26  ;;  %v12315_v52 = vpop.f32.mrb[159].mxu0 }
0x486f   :  { %13533 = vtanh.f32 %v8405_v63  ;;  %v10450_v63 = vld [vmem:[%s16231_s7 + $0x78] sm:$0xff] }
0x4870   :  { %v8409_v23 = vpop.f32.mrb[160].mxu0 }
0x4871   :  { %v8410_v37 = vadd.f32 %v15529_v15, %v8409_v23  ;;  %v12318_v21 = vpop.f32.mrb[161].mxu0 }
0x4873   :  { %13535 = vtanh.f32 %v8410_v37 }
0x4874   :  { %v8414_v39 = vpop.f32.mrb[162].mxu0 }
0x4875   :  { %v8415_v46 = vadd.f32 %v15529_v15, %v8414_v39  ;;  %v12321_v6 = vpop.f32.mrb[163].mxu0  ;;  %v10451_v39 = vld [vmem:[%s16231_s7 + $0x80] sm:$0xff] }
0x4877   :  { %13537 = vtanh.f32 %v8415_v46 }
0x4879   :  { %v13534_v12 = vpop.eup %13533 }
0x487a   :  { %v8507_v32 = vmul.f32 %v13534_v12, %v14240_v50 }
0x487c   :  { %8513 = vrot.lane.b32.xlu1 %v8507_v32, %s13647_s17 }
0x487d   :  { %v13536_v2 = vpop.eup %13535 }
0x487e   :  { %v8508_v33 = vmul.f32 %v13536_v2, %v14240_v50 }
0x4880   :  { %8515 = vrot.lane.b32.xlu0 %v8508_v33, %s13647_s17 }
0x4881   :  { %v13538_v15 = vpop.eup %13537 }
0x4882   :  { %v8509_v38 = vmul.f32 %v13538_v15, %v14240_v50 }
0x4884   :  { %8517 = vrot.lane.b32.xlu1 %v8509_v38, %s13647_s17 }
0x48e7   :  { %v8503_v48 = vpop.f32.mrb[142].mxu1 }
0x48e8   :  { %v12332_v9 = vpop.f32.mrb[143].mxu1  ;;  %v8534_v30 = vrot.slane %v8503_v48, %v14260_v44 }
0x48ee   :  { %v8514_v43 = vpop.permute.xlu1 %8513 }
0x48ef   :  { %v8522_v45 = vsel %vm135_vm0, %v8514_v43, 0.0 }
0x48f0   :  { %8523 = vadd.xlane.f32.xlu0 %v8522_v45 }
0x48f2   :  { %v8516_v29 = vpop.permute.xlu0 %8515 }
0x48f3   :  { %v8525_v54 = vsel %vm135_vm0, %v8516_v29, 0.0 }
0x48f4   :  { %8526 = vadd.xlane.f32.xlu1 %v8525_v54 }
0x48f6   :  { %v8518_v24 = vpop.permute.xlu1 %8517 }
0x48f7   :  { %v8528_v10 = vsel %vm135_vm0, %v8518_v24, 0.0 }
0x48f8   :  { %8529 = vadd.xlane.f32.xlu0 %v8528_v10 }
0x497d   :  { %v8524_v42 = vpop.xlane.xlu0 %8523 }
0x497e   :  { %v8535_v26 = vadd.f32 %v8534_v30, %v8524_v42 }
0x4980   :  { %v8538_v52 = vadd.f32 %v8535_v26, %v14263_v49 }
0x4981   :  { %v8527_v23 = vpop.xlane.xlu1 %8526 }
0x4982   :  { %v8536_v37 = vadd.f32 %v8534_v30, %v8527_v23  ;;  %v8545_v21 = vadd.f32 %v10450_v63, %v8538_v52 }
0x4984   :  { %v8539_v46 = vadd.f32 %v8536_v37, %v14263_v49  ;;  %v8548_v6 = vsel %vm135_vm0, %v8545_v21, -inf }
0x4985   :  { %v8530_v12 = vpop.xlane.xlu0 %8529  ;;  %8549 = vmax.xlane.f32.xlu0 %v8548_v6 }
0x4986   :  { %v8537_v56 = vadd.f32 %v8534_v30, %v8530_v12  ;;  %v8546_v32 = vadd.f32 %v10451_v39, %v8539_v46 }
0x4988   :  { %v8540_v2 = vadd.f32 %v8537_v56, %v14263_v49  ;;  %v8551_v17 = vsel %vm135_vm0, %v8546_v32, -inf }
0x4989   :  { %8552 = vmax.xlane.f32.xlu1 %v8551_v17 }
0x498a   :  { %v8547_v33 = vadd.f32 %v10452_v53, %v8540_v2 }
0x498c   :  { %v8554_v15 = vsel %vm135_vm0, %v8547_v33, -inf }
0x498d   :  { %8555 = vmax.xlane.f32.xlu0 %v8554_v15 }
0x4a12   :  { %v8550_v38 = vpop.xlane.xlu0 %8549 }
0x4a13   :  { %v8557_v48 = vsub.f32 %v8545_v21, %v8550_v38 }
0x4a15   :  { %v8560_v9 = vmul.f32 1.442695, %v8557_v48 }
0x4a16   :  { %v8553_v43 = vpop.xlane.xlu1 %8552 }
0x4a17   :  { %13539 = vpow2.f32 %v8560_v9  ;;  %v8558_v45 = vsub.f32 %v8546_v32, %v8553_v43 }
0x4a19   :  { %v8562_v29 = vmul.f32 1.442695, %v8558_v45 }
0x4a1a   :  { %v8556_v54 = vpop.xlane.xlu0 %8555 }
0x4a1b   :  { %13541 = vpow2.f32 %v8562_v29  ;;  %v8559_v24 = vsub.f32 %v8547_v33, %v8556_v54  ;;  %v10457_v29 = vld [vmem:[%s16262_s15 + $0xc0] sm:$0xff] }
0x4a1d   :  { %v8564_v10 = vmul.f32 1.442695, %v8559_v24 }
0x4a1f   :  { %13543 = vpow2.f32 %v8564_v10  ;;  %v10460_v10 = vld [vmem:[%s16262_s15 + $0xd8] sm:$0xff] }
0x4a21   :  { %v13540_v30 = vpop.eup %13539 }
0x4a22   :  { %v8566_v42 = vsel %vm135_vm0, %v13540_v30, 0.0 }
0x4a23   :  { %8567 = vadd.xlane.f32.xlu1 %v8566_v42  ;;  %v10461_v42 = vld [vmem:[%s16264_s12 + $0xc0] sm:$0xff] }
0x4a25   :  { %v13542_v26 = vpop.eup %13541 }
0x4a26   :  { %v8569_v63 = vsel %vm135_vm0, %v13542_v26, 0.0 }
0x4a27   :  { %8570 = vadd.xlane.f32.xlu0 %v8569_v63  ;;  %v10463_v63 = vld [vmem:[%s16264_s12 + $0xd0] sm:$0xff] }
0x4a29   :  { %v13544_v52 = vpop.eup %13543 }
0x4a2a   :  { %v8572_v23 = vsel %vm135_vm0, %v13544_v52, 0.0 }
0x4a2b   :  { %8573 = vadd.xlane.f32.xlu1 %v8572_v23 }
0x4ab0   :  { %v8568_v37 = vpop.xlane.xlu1 %8567 }
0x4ab1   :  { %13545 = vrcp.f32 %v8568_v37  ;;  %v10464_v37 = vld [vmem:[%s16264_s12 + $0xd8] sm:$0xff] }
0x4ab4   :  { %v8571_v21 = vpop.xlane.xlu0 %8570 }
0x4ab5   :  { %13547 = vrcp.f32 %v8571_v21 }
0x4ab8   :  { %v8574_v39 = vpop.xlane.xlu1 %8573 }
0x4ab9   :  { %13549 = vrcp.f32 %v8574_v39 }
0x4abb   :  { %v13546_v46 = vpop.eup %13545 }
0x4abc   :  { %v8578_v6 = vmul.f32 %v13546_v46, %v13540_v30  ;;  %v15972_v46 = vld [vmem:[%s16266_s28 + $0x30] sm:$0xff] }
0x4abe   :  { %v8581_v12 = vmul.f32 %v8578_v6, %v15877_v40  ;;  %v10474_v40 = vld [vmem:[%s16268_s2 + $0x30] sm:$0xff] }
0x4abf   :  { %v13548_v56 = vpop.eup %13547  ;;  %vm9154_vm6 = vcmp.gt.f32.partialorder %v10474_v40, 0.5 }
0x4ac0   :  { %v8584_v32 = vsel %vm135_vm0, %v8581_v12, 0.0  ;;  %v8579_v53 = vmul.f32 %v13548_v56, %v13542_v26  ;;  %v9155_v9 = vsel %vm9154_vm6, 1, %v13644_v62  ;;  %v10459_v62 = vld [vmem:[%s16262_s15 + $0xd0] sm:$0xff]  ;;  %v8829_v26 = vadd.f32 %v10461_v42, %v10457_v29 }
0x4ac1   :  { %8585 = vadd.xlane.f32.xlu0 %v8584_v32  ;;  %v13118_v30 = vpack.c.bf16 %v10460_v10, %v10459_v62  ;;  %v8831_v23 = vadd.f32 %v10463_v63, %v10459_v62 }
0x4ac2   :  { %v8582_v2 = vmul.f32 %v8579_v53, %v15880_v20 }
0x4ac3   :  { %v13550_v17 = vpop.eup %13549 }
0x4ac4   :  { %v8587_v33 = vsel %vm135_vm0, %v8582_v2, 0.0  ;;  %v8580_v15 = vmul.f32 %v13550_v17, %v13544_v52 }
0x4ac5   :  { %8588 = vadd.xlane.f32.xlu1 %v8587_v33 }
0x4ac6   :  { %v8583_v38 = vmul.f32 %v8580_v15, %v15883_v27  ;;  %v10458_v27 = vld [vmem:[%s16262_s15 + $0xc8] sm:$0xff] }
0x4ac7   :  { %v13115_v54 = vpack.c.bf16 %v10458_v27, %v10457_v29 }
0x4ac8   :  { %v8590_v48 = vsel %vm135_vm0, %v8583_v38, 0.0 }
0x4ac9   :  { %8591 = vadd.xlane.f32.xlu0 %v8590_v48 }
0x4ad6   :  { %9157 = vperm.xlu1 %13218, %v9155_v9  }
0x4b4e   :  { %v8586_v43 = vpop.xlane.xlu0 %8585 }
0x4b52   :  { %v8589_v20 = vpop.xlane.xlu1 %8588 }
0x4b53   :  { %v13112_v45 = vpack.c.bf16 %v8589_v20, %v8586_v43 }
0x4b55   :  { %13113 = vmatpush3.bf16.msra.mxu1 %v13112_v45 }
0x4b56   :  { %12337 = vmatprep.subr.mxu1 %v13643_v3  ;;  %v8592_v24 = vpop.xlane.xlu0 %8591 }
0x4b59   :  { %12338 = vmatpush3.msra.mxu1 %v8592_v24 }
0x4b5a   :  { %12340 = vmatmul.mubr.msk.f32.vlgmr.msra.gmra.mrb[144].mxu1 %vm1555_vm7, %v15613_v4  ;;  %13114 = vmatprep.subr.bf16.mxu1 %v13641_v0  ;;  %v10462_v4 = vld [vmem:[%s16264_s12 + $0xc8] sm:$0xff] }
0x4b5b   :  { %13116 = vmatpush3.bf16.msra.mxu1 %v13115_v54  ;;  %12350 = vmatprep.mubr.msk.f32.mxu1 %vm13642_vm1, %v13643_v3  ;;  %v8830_v52 = vadd.f32 %v10462_v4, %v10458_v27  ;;  %v9158_v4 = vpop.permute.xlu1 %9157 }
0x4b5c   :  { %13117 = vmatprep.subr.bf16.mxu1 %v13641_v0  ;;  %vm9159_vm9 = vcmp.eq.s32.totalorder %v9158_v4, 1 }
0x4b5f   :  { %13119 = vmatpush3.bf16.msra.mxu1 %v13118_v30 }
0x4b60   :  { %13127 = vmatprep.subr.bf16.mxu1 %v13825_v11 }
0x4b62   :  { %12351 = vmatmul.mubr.msk.f32.vlgmr.msra.gmra.mrb[146].mxu1 %vm135_vm0, %v15628_v55 }
0x4b63   :  { %13129 = vmatpush3.bf16.msra.mxu1 %v13825_v11  ;;  %12372 = vmatprep.mubr.msk.f32.mxu1 %vm135_vm0, %v8829_v26  ;;  %v8832_v11 = vadd.f32 %v10464_v37, %v10460_v10  ;;  %v10475_v37 = vld [vmem:[%s16277_s27 + $0x30] sm:$0xff] }
0x4b64   :  { %13131 = vmatprep.subr.bf16.mxu1 %v13846_v19 }
0x4b67   :  { %13133 = vmatpush3.bf16.msra.mxu1 %v13846_v19 }
0x4b68   :  { %13140 = vmatprep.subr.bf16.mxu1 %v13641_v0 }
0x4b6a   :  { %12373 = vmatmul.mubr.msk.f32.vlgmr.msra.gmra.mrb[148].mxu1 %vm135_vm0, %v8830_v52 }
0x4b6b   :  { %12375 = vmatprep.mubr.msk.f32.mxu1 %vm135_vm0, %v8831_v23  ;;  %13142 = vmatpush3.bf16.msra.mxu1 %v13839_v16 }
0x4b6c   :  { %13143 = vmatprep.subr.bf16.mxu1 %v13641_v0 }
0x4b6e   :  { %12376 = vmatmul.mubr.msk.f32.gmra.mrb[150].mxu1 %vm135_vm0, %v8832_v11 }
0x4b6f   :  { %13145 = vmatpush3.bf16.msra.mxu1 %v13877_v28  ;;  %12397 = vmatprep.mubr.msk.f32.mxu1 %vm13642_vm1, %v13643_v3 }
0x4b70   :  { %13152 = vmatprep.subr.bf16.mxu1 %v13641_v0 }
0x4c2d   :  { %v8659_v19 = vpop.f32.mrb[144].mxu1 }
0x4c2e   :  { %v10454_v21 = vmul.f32 -1.442695, %v8659_v19  ;;  %v12341_v39 = vpop.f32.mrb[145].mxu1 }
0x4c30   :  { %13551 = vpow2.f32 %v10454_v21 }
0x4c35   :  { %v8751_v16 = vpop.f32.mrb[146].mxu1 }
0x4c36   :  { %v8752_v6 = vadd.f32 %v15972_v46, %v8751_v16  ;;  %v12352_v12 = vpop.f32.mrb[147].mxu1 }
0x4c38   :  { %12362 = vmatmul.mubr.msk.f32.vlgmr.msra.gmra.mrb[164].mxu0 %vm135_vm0, %v8752_v6 }
0x4c39   :  { %12386 = vmatprep.mubr.msk.f32.mxu0 %vm13642_vm1, %v13643_v3 }
0x4c3a   :  { %v13552_v28 = vpop.eup %13551 }
0x4c3b   :  { %v8666_v56 = vadd.f32 1.0, %v13552_v28 }
0x4c3d   :  { %13553 = vrcp.f32 %v8666_v56  ;;  %v12374_v32 = vpop.f32.mrb[148].mxu1 }
0x4c3e   :  { %v8917_v53 = vadd.f32 %v15667_v34, %v12374_v32  ;;  %v8911_v2 = vpop.f32.mrb[149].mxu1 }
0x4c3f   :  { %v8912_v17 = vadd.f32 %v15667_v34, %v8911_v2 }
0x4c40   :  { %13555 = vtanh.f32 %v8917_v53  ;;  %v13636_v53 = vld [vmem:[%s16222_s20] ss:$0 sm:$0xff] }
0x4c41   :  { %13557 = vtanh.f32 %v8912_v17  ;;  %v12377_v33 = vpop.f32.mrb[150].mxu1 }
0x4c42   :  { %v8927_v15 = vadd.f32 %v15667_v34, %v12377_v33  ;;  %v8921_v38 = vpop.f32.mrb[151].mxu1 }
0x4c43   :  { %v8922_v48 = vadd.f32 %v15667_v34, %v8921_v38 }
0x4c44   :  { %13559 = vtanh.f32 %v8927_v15 }
0x4c45   :  { %13561 = vtanh.f32 %v8922_v48 }
0x4c47   :  { %v13554_v40 = vpop.eup %13553 }
0x4c48   :  { %10455 = vst.msk [vmem:[%s16233_s26 + $0x28] sm:$0xff] %vm1635_vm8, %v13554_v40  ;;  %v9507_v40 = vld [vmem:[#allocation2] sm:$0xff] }
0x4c4a   :  { %v13556_v9 = vpop.eup %13555 }
0x4c4b   :  { %v13558_v43 = vpop.eup %13557 }
0x4c4c   :  { %v13135_v20 = vpack.c.bf16 %v13556_v9, %v13558_v43  ;;  %v9508_v9 = vld [vmem:[#allocation2 + $0x8] sm:$0xff] }
0x4c4e   :  { %v13560_v45 = vpop.eup %13559  ;;  %13136 = vmatpush3.bf16.msra.mxu0 %v13135_v20  ;;  %v13177_v20 = vpack.c.bf16 %v9508_v9, %v9507_v40 }
0x4c4f   :  { %v13562_v29 = vpop.eup %13561  ;;  %13137 = vmatprep.subr.bf16.mxu0 %v13641_v0 }
0x4c50   :  { %v13138_v27 = vpack.c.bf16 %v13560_v45, %v13562_v29  ;;  %v9510_v45 = vld [vmem:[#allocation2 + $0x18] sm:$0xff] }
0x4c51   :  { %v13180_v29 = vpack.c.bf16 %v9510_v45, %v15751_v25  ;;  %v10483_v25 = vld [vmem:[%s16223_s6 + $0x98] sm:$0xff] }
0x4c52   :  { %13139 = vmatpush3.bf16.msra.mxu0 %v13138_v27 }
0x4c53   :  { %13146 = vmatprep.subr.bf16.mxu0 %v13641_v0 }
0x4c55   :  { %12387 = vmatmul.mubr.msk.f32.vlgmr.msra.gmra.mrb[166].mxu0 %vm135_vm0, %v15628_v55 }
0x4c56   :  { %13148 = vmatpush3.bf16.msra.mxu0 %v13915_v59  ;;  %12408 = vmatprep.mubr.msk.f32.mxu0 %vm13642_vm1, %v13643_v3 }
0x4c57   :  { %13149 = vmatprep.subr.bf16.mxu0 %v13641_v0 }
0x4c5a   :  { %13151 = vmatpush3.bf16.msra.mxu0 %v13921_v61 }
0x4c5b   :  { %13158 = vmatprep.subr.bf16.mxu0 %v13641_v0 }
0x4d0b   :  { %v8824_v34 = vpop.f32.mrb[164].mxu0 }
0x4d0c   :  { %v12363_v54 = vpop.f32.mrb[165].mxu0  ;;  %v8825_v24 = vadd.f32 %v15690_v47, %v8824_v34  ;;  %v9513_v34 = vld [vmem:[#allocation2 + $0x30] sm:$0xff] }
0x4d0d   :  { %v10482_v54 = vld [vmem:[%s16223_s6 + $0x90] sm:$0xff] }
0x4d0e   :  { %13563 = vtanh.f32 %v8825_v24 }
0x4d18   :  { %v13564_v62 = vpop.eup %13563 }
0x4d28   :  { %v9000_v10 = vpop.f32.mrb[166].mxu0 }
0x4d29   :  { %v9001_v30 = vadd.f32 %v13564_v62, %v9000_v10  ;;  %v12388_v55 = vpop.f32.mrb[167].mxu0 }
0x4d2b   :  { %12398 = vmatmul.mubr.msk.f32.vlgmr.msra.gmra.mrb[152].mxu1 %vm135_vm0, %v9001_v30 }
0x4d2c   :  { %13154 = vmatpush3.bf16.msra.mxu1 %v13967_v18  ;;  %12419 = vmatprep.mubr.msk.f32.mxu1 %vm13642_vm1, %v13643_v3 }
0x4d2d   :  { %13155 = vmatprep.subr.bf16.mxu1 %v13641_v0 }
0x4d30   :  { %13157 = vmatpush3.bf16.msra.mxu1 %v13977_v22 }
0x4d31   :  { %13164 = vmatprep.subr.bf16.mxu1 %v13641_v0 }
0x4dfe   :  { %v9073_v59 = vpop.f32.mrb[152].mxu1 }
0x4dff   :  { %v9074_v61 = vadd.f32 %v15690_v47, %v9073_v59  ;;  %v12399_v42 = vpop.f32.mrb[153].mxu1 }
0x4e01   :  { %13565 = vtanh.f32 %v9074_v61 }
0x4e0b   :  { %v13566_v26 = vpop.eup %13565 }
0x4e0c   :  { %12409 = vmatmul.mubr.msk.f32.vlgmr.msra.gmra.mrb[168].mxu0 %vm135_vm0, %v13566_v26 }
0x4e0d   :  { %13160 = vmatpush3.bf16.msra.mxu0 %v13938_v8  ;;  %12430 = vmatprep.mubr.msk.f32.mxu0 %vm13642_vm1, %v13643_v3 }
0x4e0e   :  { %13161 = vmatprep.subr.bf16.mxu0 %v13641_v0 }
0x4e11   :  { %13163 = vmatpush3.bf16.msra.mxu0 %v13948_v13  ;;  %v13634_v13 = vld [vmem:[%s16267_s29 + $0x2] ss:$0 sm:$0xff] }
0x4e12   :  { %13170 = vmatprep.subr.bf16.mxu0 %v13641_v0 }
0x4e14   :  { %12431 = vmatmul.mubr.msk.f32.vlgmr.msra.gmra.mrb[170].mxu0 %vm135_vm0, %v15743_v35 }
0x4e15   :  { %13172 = vmatpush3.bf16.msra.mxu0 %v14012_v51  ;;  %12452 = vmatprep.mubr.msk.f32.mxu0 %vm13642_vm1, %v13643_v3 }
0x4e16   :  { %13173 = vmatprep.subr.bf16.mxu0 %v13641_v0 }
0x4e19   :  { %13175 = vmatpush3.bf16.msra.mxu0 %v14030_v57  ;;  %v13635_v57 = vld [vmem:[%s16278_s1] ss:$0 sm:$0xff] }
0x4e1a   :  { %13185 = vmatprep.subr.bf16.mxu0 %v13641_v0 }
0x4e1c   :  { %12453 = vmatmul.mubr.msk.f32.vlgmr.msra.gmra.mrb[172].mxu0 %vm135_vm0, %v15812_v36 }
0x4e1d   :  { %12486 = vmatprep.mubr.msk.f32.mxu0 %vm13642_vm1, %v13643_v3 }
0x4edf   :  { %v9147_v8 = vpop.f32.mrb[168].mxu0 }
0x4ee0   :  { %v9148_v18 = vadd.f32 %v13634_v13, %v9147_v8  ;;  %v12410_v22 = vpop.f32.mrb[169].mxu0 }
0x4ee2   :  { %13567 = vtanh.f32 %v9148_v18 }
0x4ee7   :  { %v9302_v51 = vpop.f32.mrb[170].mxu0 }
0x4ee8   :  { %v9303_v47 = vadd.f32 %v13635_v57, %v9302_v51  ;;  %v12432_v35 = vpop.f32.mrb[171].mxu0 }
0x4eea   :  { %9314 = vrot.lane.b32.xlu0 %v9303_v47, %s16273_s0 }
0x4eec   :  { %v13568_v36 = vpop.eup %13567 }
0x4eed   :  { %v9160_v63 = vsel %vm9159_vm9, %v13568_v36, %v15972_v46 }
0x4eee   :  { %12420 = vmatmul.mubr.msk.f32.vlgmr.msra.gmra.mrb[154].mxu1 %vm135_vm0, %v9160_v63 }
0x4eef   :  { %v9473_v52 = vpop.f32.mrb[172].mxu0  ;;  %13166 = vmatpush3.bf16.msra.mxu1 %v14032_v58  ;;  %12441 = vmatprep.mubr.msk.f32.mxu1 %vm13642_vm1, %v13643_v3 }
0x4ef0   :  { %v12454_v23 = vpop.f32.mrb[173].mxu0  ;;  %13167 = vmatprep.subr.bf16.mxu1 %v13641_v0  ;;  %v9474_v2 = vadd.f32 %v13636_v53, %v9473_v52  ;;  %v10489_v52 = vld [vmem:[%s16226_s5 + $0x98] sm:$0xff] }
0x4ef3   :  { %13169 = vmatpush3.bf16.msra.mxu1 %v14036_v60 }
0x4ef4   :  { %13176 = vmatprep.subr.bf16.mxu1 %v13641_v0 }
0x4f5c   :  { %v9315_v12 = vpop.permute.xlu0 %9314 }
0x4fc1   :  { %v9232_v11 = vpop.f32.mrb[154].mxu1 }
0x4fc2   :  { %v9233_v19 = vadd.f32 %v10475_v37, %v9232_v11  ;;  %v12421_v21 = vpop.f32.mrb[155].mxu1 }
0x4fc4   :  { %v9306_v39 = vadd.f32 %v9303_v47, %v9233_v19 }
0x4fc6   :  { %v10478_v46 = vmul.f32 -1.442695, %v9306_v39 }
0x4fc8   :  { %13569 = vpow2.f32 %v10478_v46 }
0x4fd2   :  { %v13570_v58 = vpop.eup %13569 }
0x4fd3   :  { %v9310_v16 = vadd.f32 1.0, %v13570_v58  ;;  %v10488_v58 = vld [vmem:[%s16226_s5 + $0x90] sm:$0xff] }
0x4fd5   :  { %13571 = vrcp.f32 %v9310_v16  ;;  %v10490_v16 = vld [vmem:[%s16226_s5 + $0xa0] sm:$0xff] }
0x4fdf   :  { %v13572_v6 = vpop.eup %13571 }
0x4fe0   :  { %v9317_v28 = vmul.f32 %v13572_v6, %v9315_v12  ;;  %v9324_v17 = vsub.f32 1.0, %v13572_v6  ;;  %v9330_v15 = vmul.f32 %v13572_v6, %v15739_v14  ;;  %v9512_v14 = vld [vmem:[#allocation2 + $0x28] sm:$0xff] }
0x4fe1   :  { %v13183_v27 = vpack.c.bf16 %v9512_v14, %v15755_v31  ;;  %v10484_v31 = vld [vmem:[%s16223_s6 + $0xa0] sm:$0xff] }
0x4fe2   :  { %9319 = vrot.lane.b32.xlu1 %v9317_v28, %s16273_s0 }
0x5054   :  { %v9320_v60 = vpop.permute.xlu1 %9319 }
0x5055   :  { %v9322_v56 = vadd.f32 %v9320_v60, %v9233_v19 }
0x5057   :  { %13573 = vtanh.f32 %v9322_v56 }
0x5061   :  { %v13574_v32 = vpop.eup %13573 }
0x5062   :  { %9326 = vrot.lane.b32.xlu1 %v13574_v32, %s13647_s17 }
0x5066   :  { %9485 = vrot.lane.b32.xlu1 %v9474_v2, %s16273_s0 }
0x50d4   :  { %v9327_v33 = vpop.permute.xlu1 %9326 }
0x50d5   :  { %v9329_v38 = vmul.f32 %v9327_v33, %v9324_v17 }
0x50d7   :  { %v9331_v48 = vadd.f32 %v9330_v15, %v9329_v38 }
0x50d9   :  { %9333 = vrot.lane.b32.xlu0 %v9331_v48, %s13647_s17  ;;  %v13638_v48 = vld [vmem:[%s16228_s22] ss:$0 sm:$0xff] }
0x514b   :  { %v9334_v43 = vpop.permute.xlu0 %9333 }
0x514c   :  { %12442 = vmatmul.mubr.msk.f32.vlgmr.msra.gmra.mrb[156].mxu1 %vm135_vm0, %v9334_v43 }
0x514d   :  { %13178 = vmatpush3.bf16.msra.mxu1 %v13177_v20  ;;  %12469 = vmatprep.mubr.msk.f32.mxu1 %vm13642_vm1, %v13643_v3 }
0x514e   :  { %13179 = vmatprep.subr.bf16.mxu1 %v13641_v0 }
0x5151   :  { %13181 = vmatpush3.bf16.msra.mxu1 %v13180_v29 }
0x5152   :  { %13182 = vmatprep.subr.bf16.mxu1 %v13641_v0 }
0x5155   :  { %13184 = vmatpush3.bf16.msra.mxu1 %v13183_v27 }
0x5156   :  { %12467 = vmatprep.subr.mxu1 %v13643_v3 }
0x5159   :  { %12468 = vmatpush3.msra.mxu1 %v9513_v34 }
0x515a   :  { %12470 = vmatmul.mubr.msk.f32.vlgmr.msra.gmra.mrb[158].mxu1 %vm1029_vm4, %v10482_v54  ;;  %13193 = vmatprep.subr.bf16.mxu1 %v13641_v0 }
0x515b   :  { %12472 = vmatprep.mubr.msk.f32.mxu1 %vm13642_vm1, %v13643_v3  ;;  %13195 = vmatpush3.bf16.msra.mxu1 %v14129_v5  ;;  %v13637_v5 = vld [vmem:[%s16224_s19] ss:$0 sm:$0xff] }
0x515c   :  { %13196 = vmatprep.subr.bf16.mxu1 %v13641_v0 }
0x515e   :  { %12473 = vmatmul.mubr.msk.f32.gmra.mrb[160].mxu1 %vm1029_vm4, %v10483_v25 }
0x515f   :  { %12475 = vmatprep.mubr.msk.f32.mxu1 %vm13642_vm1, %v13643_v3  ;;  %13198 = vmatpush3.bf16.msra.mxu1 %v14135_v7  ;;  %v9486_v7 = vpop.permute.xlu1 %9485 }
0x5162   :  { %12476 = vmatmul.mubr.msk.f32.gmra.mrb[162].mxu1 %vm1029_vm4, %v10484_v31 }
0x5163   :  { %12503 = vmatprep.mubr.msk.f32.mxu1 %vm13642_vm1, %v13643_v3 }
0x521f   :  { %v9403_v24 = vpop.f32.mrb[156].mxu1 }
0x5220   :  { %v9404_v62 = vadd.f32 %v13637_v5, %v9403_v24  ;;  %v12443_v10 = vpop.f32.mrb[157].mxu1 }
0x5222   :  { %v9477_v30 = vadd.f32 %v9474_v2, %v9404_v62 }
0x5224   :  { %v10481_v55 = vmul.f32 -1.442695, %v9477_v30  ;;  %v13639_v30 = vld [vmem:[%s16229_s24] sm:$0x1] }
0x5226   :  { %13575 = vpow2.f32 %v10481_v55 }
0x522d   :  { %v9589_v8 = vpop.f32.mrb[158].mxu1 }
0x522e   :  { %v12471_v13 = vpop.f32.mrb[159].mxu1 }
0x5230   :  { %v13576_v59 = vpop.eup %13575 }
0x5231   :  { %v9481_v61 = vadd.f32 1.0, %v13576_v59  ;;  %v9594_v18 = vpop.f32.mrb[160].mxu1 }
0x5232   :  { %v12474_v22 = vpop.f32.mrb[161].mxu1 }
0x5233   :  { %13577 = vrcp.f32 %v9481_v61 }
0x5235   :  { %v9599_v51 = vpop.f32.mrb[162].mxu1 }
0x5236   :  { %v12477_v57 = vpop.f32.mrb[163].mxu1 }
0x523d   :  { %v13578_v42 = vpop.eup %13577 }
0x523e   :  { %v9488_v26 = vmul.f32 %v13578_v42, %v9486_v7  ;;  %v9495_v23 = vsub.f32 1.0, %v13578_v42  ;;  %v9501_v11 = vmul.f32 %v13578_v42, %v15798_v1 }
0x5240   :  { %9490 = vrot.lane.b32.xlu0 %v9488_v26, %s16273_s0 }
0x5244   :  { %9610 = vrot.lane.b32.xlu0 %v9589_v8, %s16274_s18 }
0x5248   :  { %9614 = vrot.lane.b32.xlu0 %v9599_v51, %s16274_s18 }
0x52b2   :  { %v9491_v47 = vpop.permute.xlu0 %9490 }
0x52b3   :  { %v9493_v35 = vadd.f32 %v9491_v47, %v9404_v62 }
0x52b5   :  { %13579 = vtanh.f32 %v9493_v35 }
0x52b6   :  { %v9611_v4 = vpop.permute.xlu0 %9610 }
0x52b7   :  { %9628 = vrot.lane.b32.xlu0 %v9611_v4, %s13647_s17 }
0x52ba   :  { %v9615_v36 = vpop.permute.xlu0 %9614 }
0x52bb   :  { %9632 = vrot.lane.b32.xlu0 %v9615_v36, %s13647_s17 }
0x52bf   :  { %v13580_v63 = vpop.eup %13579  ;;  %9621 = vrot.lane.b32.xlu0 %v10489_v52, %s16274_s18 }
0x52c0   :  { %9497 = vrot.lane.b32.xlu1 %v13580_v63, %s13647_s17 }
0x52c4   :  { %9612 = vrot.lane.b32.xlu1 %v9594_v18, %s16274_s18 }
0x5329   :  { %v9629_v46 = vpop.permute.xlu0 %9628 }
0x532d   :  { %v9633_v6 = vpop.permute.xlu0 %9632 }
0x5331   :  { %v9622_v1 = vpop.permute.xlu0 %9621 }
0x5332   :  { %v9498_v37 = vpop.permute.xlu1 %9497 }
0x5333   :  { %v9500_v19 = vmul.f32 %v9498_v37, %v9495_v23 }
0x5335   :  { %v9502_v21 = vadd.f32 %v9501_v11, %v9500_v19 }
0x5336   :  { %v9613_v39 = vpop.permute.xlu1 %9612 }
0x5337   :  { %9626 = vrot.lane.b32.xlu1 %v9502_v21, %s13647_s17 }
0x533b   :  { %9630 = vrot.lane.b32.xlu1 %v9613_v39, %s13647_s17 }
0x533f   :  { %9619 = vrot.lane.b32.xlu1 %v10488_v58, %s16274_s18 }
0x5343   :  { %9623 = vrot.lane.b32.xlu1 %v10490_v16, %s16274_s18 }
0x5347   :  { %9730 = vrot.lane.b32.xlu1 %v9622_v1, %s13647_s17 }
0x53a9   :  { %v9627_v12 = vpop.permute.xlu1 %9626 }
0x53aa   :  { %10094 = vst.msk [vmem:[#allocation2 + $0x30] sm:$0xff] %vm135_vm0, %v9627_v12  ;;  %v13186_v28 = vpack.c.bf16 %v9629_v46, %v9627_v12  ;;  %12504 = vmatmul.mubr.msk.f32.vlgmr.msra.gmra.mrb[164].mxu1 %vm135_vm0, %v9627_v12  ;;  %v10510_v12 = vld [vmem:[%s16231_s7 + $0x90] sm:$0xff] }
0x53ab   :  { %12506 = vmatprep.mubr.msk.f32.mxu1 %vm13642_vm1, %v13643_v3 }
0x53ac   :  { %13188 = vmatpush3.bf16.xpose.msk.msra.mxu0 %vm14162_vm5, %v13186_v28 }
0x53ad   :  { %v9631_v60 = vpop.permute.xlu1 %9630  ;;  %13189 = vmatprep.subr.bf16.mxu0 %v13641_v0 }
0x53ae   :  { %12507 = vmatmul.mubr.msk.f32.gmra.mrb[166].mxu1 %vm135_vm0, %v9629_v46  ;;  %v13190_v32 = vpack.c.bf16 %v9633_v6, %v9631_v60 }
0x53af   :  { %12509 = vmatprep.mubr.msk.f32.mxu1 %vm13642_vm1, %v13643_v3 }
0x53b1   :  { %v9620_v56 = vpop.permute.xlu1 %9619 }
0x53b2   :  { %9728 = vrot.lane.b32.xlu0 %v9620_v56, %s13647_s17  ;;  %12510 = vmatmul.mubr.msk.f32.gmra.mrb[168].mxu1 %vm135_vm0, %v9631_v60 }
0x53b3   :  { %12512 = vmatprep.mubr.msk.f32.mxu1 %vm13642_vm1, %v13643_v3 }
0x53b4   :  { %13192 = vmatpush3.bf16.xpose.msk.msra.mxu0 %vm14162_vm5, %v13190_v32 }
0x53b5   :  { %v9624_v53 = vpop.permute.xlu1 %9623  ;;  %13199 = vmatprep.subr.bf16.mxu0 %v13641_v0 }
0x53b6   :  { %12513 = vmatmul.mubr.msk.f32.gmra.mrb[170].mxu1 %vm135_vm0, %v9633_v6  ;;  %9732 = vrot.lane.b32.xlu0 %v9624_v53, %s13647_s17  ;;  %v10511_v53 = vld [vmem:[%s16231_s7 + $0x98] sm:$0xff] }
0x53b7   :  { %12515 = vmatprep.mubr.msk.f32.mxu1 %vm13642_vm1, %v13643_v3 }
0x53b9   :  { %v9731_v17 = vpop.permute.xlu1 %9730 }
0x53bb   :  { %12487 = vmatmul.mubr.msk.f32.vlgmr.msra.gmra.mrb[174].mxu0 %vm135_vm0, %v10488_v58 }
0x53bc   :  { %12489 = vmatprep.mubr.msk.f32.mxu0 %vm13642_vm1, %v13643_v3 }
0x53bf   :  { %12490 = vmatmul.mubr.msk.f32.gmra.mrb[176].mxu0 %vm135_vm0, %v10489_v52 }
0x53c0   :  { %12492 = vmatprep.mubr.msk.f32.mxu0 %vm13642_vm1, %v13643_v3 }
0x53c3   :  { %12493 = vmatmul.mubr.msk.f32.gmra.mrb[178].mxu0 %vm135_vm0, %v10490_v16 }
0x53c4   :  { %12532 = vmatprep.mubr.msk.f32.mxu0 %vm13642_vm1, %v13643_v3 }
0x5424   :  { %v9729_v2 = vpop.permute.xlu0 %9728 }
0x5425   :  { %12516 = vmatmul.mubr.msk.f32.gmra.mrb[172].mxu1 %vm135_vm0, %v9729_v2 }
0x5426   :  { %12518 = vmatprep.mubr.msk.f32.mxu1 %vm13642_vm1, %v13643_v3 }
0x5428   :  { %v9733_v33 = vpop.permute.xlu0 %9732 }
0x5429   :  { %12519 = vmatmul.mubr.msk.f32.gmra.mrb[174].mxu1 %vm135_vm0, %v9731_v17 }
0x542a   :  { %12521 = vmatprep.mubr.msk.f32.mxu1 %vm13642_vm1, %v13643_v3 }
0x542d   :  { %12522 = vmatmul.mubr.msk.f32.gmra.mrb[176].mxu1 %vm135_vm0, %v9733_v33 }
0x547d   :  { %v9806_v15 = vpop.f32.mrb[164].mxu1 }
0x547e   :  { %v12505_v38 = vpop.f32.mrb[165].mxu1  ;;  %v9807_v40 = vadd.f32 %v13638_v48, %v9806_v15 }
0x547f   :  { %v10512_v38 = vld [vmem:[%s16231_s7 + $0xa0] sm:$0xff] }
0x5480   :  { %13581 = vtanh.f32 %v9807_v40 }
0x5481   :  { %v9811_v9 = vpop.f32.mrb[166].mxu1 }
0x5482   :  { %v9812_v43 = vadd.f32 %v13638_v48, %v9811_v9  ;;  %v12508_v20 = vpop.f32.mrb[167].mxu1 }
0x5484   :  { %13583 = vtanh.f32 %v9812_v43 }
0x5485   :  { %v9816_v45 = vpop.f32.mrb[168].mxu1 }
0x5486   :  { %v12511_v29 = vpop.f32.mrb[169].mxu1  ;;  %v9817_v14 = vadd.f32 %v13638_v48, %v9816_v45 }
0x5488   :  { %13585 = vtanh.f32 %v9817_v14 }
0x5489   :  { %v9821_v27 = vpop.f32.mrb[170].mxu1 }
0x548a   :  { %v9822_v34 = vadd.f32 %v13638_v48, %v9821_v27  ;;  %v12514_v54 = vpop.f32.mrb[171].mxu1  ;;  %v13582_v25 = vpop.eup %13581 }
0x548c   :  { %13587 = vtanh.f32 %v9822_v34 }
0x548e   :  { %v13584_v31 = vpop.eup %13583  ;;  %v16158_v13 = vpop.f32.mrb[174].mxu0 }
0x548f   :  { %v13200_v24 = vpack.c.bf16 %v13584_v31, %v13582_v25  ;;  %v12488_v22 = vpop.f32.mrb[175].mxu0 }
0x5491   :  { %13202 = vmatpush3.bf16.xpose.msk.msra.mxu0 %vm14162_vm5, %v13200_v24 }
0x5492   :  { %13203 = vmatprep.subr.bf16.mxu0 %v13641_v0  ;;  %v13586_v5 = vpop.eup %13585  ;;  %v16161_v57 = vpop.f32.mrb[176].mxu0 }
0x5493   :  { %v12491_v47 = vpop.f32.mrb[177].mxu0 }
0x5496   :  { %v13588_v62 = vpop.eup %13587  ;;  %v16164_v35 = vpop.f32.mrb[178].mxu0 }
0x5497   :  { %v13204_v10 = vpack.c.bf16 %v13588_v62, %v13586_v5  ;;  %v12494_v36 = vpop.f32.mrb[179].mxu0 }
0x5499   :  { %13206 = vmatpush3.bf16.xpose.msk.msra.mxu0 %vm14162_vm5, %v13204_v10 }
0x549a   :  { %13207 = vmatprep.subr.bf16.mxu0 %v13641_v0 }
0x54a0   :  { %12533 = vmatmul.mubr.msk.f32.vlgmr.msra.gmra.mrb[180].mxu0 %vm135_vm0, %v13639_v30 }
0x54a1   :  { %12541 = vmatprep.mubr.msk.f32.mxu0 %vm13642_vm1, %v13643_v3 }
0x54f8   :  { %v9826_v55 = vpop.f32.mrb[172].mxu1 }
0x54f9   :  { %v9827_v59 = vadd.f32 %v13638_v48, %v9826_v55  ;;  %v12517_v61 = vpop.f32.mrb[173].mxu1 }
0x54fb   :  { %13589 = vtanh.f32 %v9827_v59 }
0x54fc   :  { %v9831_v42 = vpop.f32.mrb[174].mxu1 }
0x54fd   :  { %v9832_v7 = vadd.f32 %v13638_v48, %v9831_v42  ;;  %v12520_v26 = vpop.f32.mrb[175].mxu1 }
0x54ff   :  { %13591 = vtanh.f32 %v9832_v7 }
0x5500   :  { %v9836_v41 = vpop.f32.mrb[176].mxu1 }
0x5501   :  { %v9837_v8 = vadd.f32 %v13638_v48, %v9836_v41  ;;  %v12523_v0 = vpop.f32.mrb[177].mxu1 }
0x5503   :  { %13593 = vtanh.f32 %v9837_v8 }
0x5505   :  { %v13590_v18 = vpop.eup %13589 }
0x5506   :  { %v9929_v51 = vmul.f32 %v13590_v18, %v14240_v50 }
0x5508   :  { %9935 = vrot.lane.b32.xlu1 %v9929_v51, %s13647_s17 }
0x5509   :  { %v13592_v4 = vpop.eup %13591 }
0x550a   :  { %v9930_v63 = vmul.f32 %v13592_v4, %v14240_v50 }
0x550c   :  { %9937 = vrot.lane.b32.xlu0 %v9930_v63, %s13647_s17 }
0x550d   :  { %v13594_v52 = vpop.eup %13593 }
0x550e   :  { %v9931_v23 = vmul.f32 %v13594_v52, %v14240_v50 }
0x5510   :  { %9939 = vrot.lane.b32.xlu1 %v9931_v23, %s13647_s17 }
0x5573   :  { %v9925_v37 = vpop.f32.mrb[180].mxu0 }
0x5574   :  { %v12534_v11 = vpop.f32.mrb[181].mxu0  ;;  %v9956_v6 = vrot.slane %v9925_v37, %v14260_v44 }
0x557a   :  { %v9936_v19 = vpop.permute.xlu1 %9935 }
0x557b   :  { %v9944_v21 = vsel %vm135_vm0, %v9936_v19, 0.0 }
0x557c   :  { %9945 = vadd.xlane.f32.xlu0 %v9944_v21 }
0x557e   :  { %v9938_v39 = vpop.permute.xlu0 %9937 }
0x557f   :  { %v9947_v46 = vsel %vm135_vm0, %v9938_v39, 0.0 }
0x5580   :  { %9948 = vadd.xlane.f32.xlu1 %v9947_v46 }
0x5582   :  { %v9940_v58 = vpop.permute.xlu1 %9939 }
0x5583   :  { %v9950_v16 = vsel %vm135_vm0, %v9940_v58, 0.0 }
0x5584   :  { %9951 = vadd.xlane.f32.xlu0 %v9950_v16 }
0x5609   :  { %v9946_v1 = vpop.xlane.xlu0 %9945 }
0x560a   :  { %v9957_v50 = vadd.f32 %v9956_v6, %v9946_v1 }
0x560c   :  { %v9960_v28 = vadd.f32 %v9957_v50, %v14263_v49 }
0x560d   :  { %v9949_v60 = vpop.xlane.xlu1 %9948 }
0x560e   :  { %v9958_v56 = vadd.f32 %v9956_v6, %v9949_v60  ;;  %v9967_v32 = vadd.f32 %v10510_v12, %v9960_v28 }
0x5610   :  { %v9961_v2 = vadd.f32 %v9958_v56, %v14263_v49  ;;  %v9970_v17 = vsel %vm135_vm0, %v9967_v32, -inf }
0x5611   :  { %v9952_v44 = vpop.xlane.xlu0 %9951  ;;  %9971 = vmax.xlane.f32.xlu0 %v9970_v17 }
0x5612   :  { %v9959_v33 = vadd.f32 %v9956_v6, %v9952_v44  ;;  %v9968_v15 = vadd.f32 %v10511_v53, %v9961_v2 }
0x5614   :  { %v9962_v48 = vadd.f32 %v9959_v33, %v14263_v49  ;;  %v9973_v40 = vsel %vm135_vm0, %v9968_v15, -inf }
0x5615   :  { %9974 = vmax.xlane.f32.xlu1 %v9973_v40 }
0x5616   :  { %v9969_v9 = vadd.f32 %v10512_v38, %v9962_v48 }
0x5618   :  { %v9976_v43 = vsel %vm135_vm0, %v9969_v9, -inf }
0x5619   :  { %9977 = vmax.xlane.f32.xlu0 %v9976_v43 }
0x569e   :  { %v9972_v20 = vpop.xlane.xlu0 %9971 }
0x569f   :  { %v9979_v45 = vsub.f32 %v9967_v32, %v9972_v20 }
0x56a1   :  { %v9982_v29 = vmul.f32 1.442695, %v9979_v45 }
0x56a2   :  { %v9975_v14 = vpop.xlane.xlu1 %9974 }
0x56a3   :  { %13595 = vpow2.f32 %v9982_v29  ;;  %v9980_v27 = vsub.f32 %v9968_v15, %v9975_v14 }
0x56a5   :  { %v9984_v34 = vmul.f32 1.442695, %v9980_v27 }
0x56a6   :  { %v9978_v54 = vpop.xlane.xlu0 %9977 }
0x56a7   :  { %13597 = vpow2.f32 %v9984_v34  ;;  %v9981_v25 = vsub.f32 %v9969_v9, %v9978_v54 }
0x56a9   :  { %v9986_v31 = vmul.f32 1.442695, %v9981_v25 }
0x56ab   :  { %13599 = vpow2.f32 %v9986_v31 }
0x56ad   :  { %v13596_v49 = vpop.eup %13595 }
0x56ae   :  { %v9988_v24 = vsel %vm135_vm0, %v13596_v49, 0.0 }
0x56af   :  { %9989 = vadd.xlane.f32.xlu1 %v9988_v24 }
0x56b1   :  { %v13598_v5 = vpop.eup %13597 }
0x56b2   :  { %v9991_v62 = vsel %vm135_vm0, %v13598_v5, 0.0 }
0x56b3   :  { %9992 = vadd.xlane.f32.xlu0 %v9991_v62 }
0x56b5   :  { %v13600_v10 = vpop.eup %13599 }
0x56b6   :  { %v9994_v30 = vsel %vm135_vm0, %v13600_v10, 0.0 }
0x56b7   :  { %9995 = vadd.xlane.f32.xlu1 %v9994_v30 }
0x573c   :  { %v9990_v55 = vpop.xlane.xlu1 %9989 }
0x573d   :  { %13601 = vrcp.f32 %v9990_v55 }
0x5740   :  { %v9993_v59 = vpop.xlane.xlu0 %9992 }
0x5741   :  { %13603 = vrcp.f32 %v9993_v59 }
0x5744   :  { %v9996_v61 = vpop.xlane.xlu1 %9995 }
0x5745   :  { %13605 = vrcp.f32 %v9996_v61 }
0x5747   :  { %v13602_v42 = vpop.eup %13601 }
0x5748   :  { %v10000_v7 = vmul.f32 %v13602_v42, %v13596_v49 }
0x574a   :  { %v10003_v26 = vmul.f32 %v10000_v7, %v16158_v13 }
0x574b   :  { %v13604_v41 = vpop.eup %13603 }
0x574c   :  { %v10006_v8 = vsel %vm135_vm0, %v10003_v26, 0.0  ;;  %v10001_v0 = vmul.f32 %v13604_v41, %v13598_v5 }
0x574d   :  { %10007 = vadd.xlane.f32.xlu0 %v10006_v8 }
0x574e   :  { %v10004_v18 = vmul.f32 %v10001_v0, %v16161_v57  ;;  %v13640_v57 = vld [vmem:[%s16232_s9] sm:$0xff] }
0x574f   :  { %v13606_v22 = vpop.eup %13605 }
0x5750   :  { %v10009_v51 = vsel %vm135_vm0, %v10004_v18, 0.0  ;;  %v10002_v47 = vmul.f32 %v13606_v22, %v13600_v10 }
0x5751   :  { %10010 = vadd.xlane.f32.xlu1 %v10009_v51 }
0x5752   :  { %v10005_v4 = vmul.f32 %v10002_v47, %v16164_v35 }
0x5754   :  { %v10012_v36 = vsel %vm135_vm0, %v10005_v4, 0.0 }
0x5755   :  { %10013 = vadd.xlane.f32.xlu0 %v10012_v36 }
0x57da   :  { %v10008_v63 = vpop.xlane.xlu0 %10007 }
0x57de   :  { %v10011_v52 = vpop.xlane.xlu1 %10010 }
0x57df   :  { %v13208_v13 = vpack.c.bf16 %v10011_v52, %v10008_v63 }
0x57e1   :  { %13209 = vmatpush3.bf16.msra.mxu0 %v13208_v13 }
0x57e2   :  { %12539 = vmatprep.subr.mxu0 %v13643_v3  ;;  %v10014_v23 = vpop.xlane.xlu0 %10013 }
0x57e5   :  { %12540 = vmatpush3.msra.mxu0 %v10014_v23 }
0x57e6   :  { %12542 = vmatmul.mubr.msk.f32.vlgmr.msra.gmra.mrb[182].mxu0 %vm1555_vm7, %v13640_v57 }
0x58b9   :  { %v10081_v37 = vpop.f32.mrb[182].mxu0 }
0x58ba   :  { %v10514_v11 = vmul.f32 -1.442695, %v10081_v37  ;;  %v12543_v35 = vpop.f32.mrb[183].mxu0 }
0x58bc   :  { %13607 = vpow2.f32 %v10514_v11 }
0x58c6   :  { %v13608_v19 = vpop.eup %13607 }
0x58c7   :  { %v10088_v21 = vadd.f32 1.0, %v13608_v19 }
0x58c9   :  { %13609 = vrcp.f32 %v10088_v21 }
0x58d3   :  { %v13610_v39 = vpop.eup %13609 }
0x58d4   :  { %10515 = vst.msk [vmem:[%s16233_s26 + $0x30] sm:$0xff] %vm1635_vm8, %v13610_v39 }

</bundles_post_ra>
